<compile_context>
chip_gen: v5e
topology: v5e:2x2
jax: 0.10.0
libtpu: 0.0.40
codegen_flags: <defaults>
</compile_context>

<pallas_src>
import jax
import jax.numpy as jnp
from jax.experimental import pallas as pl
from jax.experimental.pallas import tpu as pltpu

# ----- logical model sizes (match torch recat defaults) ---------------------
NODE_IN, EDGE_IN = 155, 9
HID, PRED_HID, OUT_DIM, DEPTH = 300, 512, 4, 3
PRELU_ALPHA = 0.25

# ----- lane-padded (TPU-friendly) sizes --------------------------------------
NODE_PAD, EDGE_PAD = 256, 128          # K-axis padding of the projections
HID_PAD, OUT_PAD = 384, 128            # lane-dense hidden / output widths
N_NODES, N_EDGES, E_PAD = 8, 12, 16    # small synthetic graphs


# =============================================================================
# Kernel 1: full GIN forward for one graph per grid step (weights resident)
# =============================================================================
def _gin_kernel(nodes_ref, edges_ref, adj_ref, inc_ref,
                wn_ref, bn_ref, we_ref, be_ref,
                gw1_ref, gb1_ref, gw2_ref, gb2_ref,
                emb_ref):
    # node projection + ReLU                                  [N, HID_PAD]
    h = jnp.dot(nodes_ref[...], wn_ref[...], preferred_element_type=jnp.float32)
    h = jnp.maximum(h + bn_ref[...], 0.0)

    # edge projection                                          [E, HID_PAD]
    e = jnp.dot(edges_ref[...], we_ref[...],
                preferred_element_type=jnp.float32) + be_ref[...]

    # per-dst-node summed edge contribution (loop-invariant, stays on-chip)
    e_agg = jnp.dot(inc_ref[...], e.astype(jnp.bfloat16),
                    preferred_element_type=jnp.float32)        # [N, HID_PAD]

    adj = adj_ref[...]                                         # (A + I), bf16
    h = h.astype(jnp.bfloat16)

    for l in range(DEPTH):
        # neighbourhood sum aggregation + edge contribution
        agg = jnp.dot(adj, h, preferred_element_type=jnp.float32) + e_agg
        # GIN update MLP: Linear -> ReLU -> Linear (inter-layer ReLU fused)
        z = jnp.dot(agg.astype(jnp.bfloat16), gw1_ref[l],
                    preferred_element_type=jnp.float32) + gb1_ref[l]
        z = jnp.maximum(z, 0.0)
        z = jnp.dot(z.astype(jnp.bfloat16), gw2_ref[l],
                    preferred_element_type=jnp.float32) + gb2_ref[l]
        if l < DEPTH - 1:
            z = jnp.maximum(z, 0.0)
        h = z.astype(jnp.bfloat16)
        # dropout: identity at inference

    # AvgPooling readout over the graph's nodes -> [1, HID_PAD]
    emb_ref[...] = jnp.sum(h.astype(jnp.float32), axis=0, keepdims=True) * (1.0 / N_NODES)


def gin_batched(params, nodes, edges, adj, inc):
    """Run the GIN on all graphs in one pallas_call (grid = graph index)."""
    G = nodes.shape[0]
    w2 = lambda g: (0, 0)
    w3 = lambda g: (0, 0, 0)
    per_graph = lambda shape: pl.BlockSpec((None,) + shape, lambda g: (g, 0, 0))

    return pl.pallas_call(
        _gin_kernel,
        out_shape=jax.ShapeDtypeStruct((G, 1, HID_PAD), jnp.float32),
        grid=(G,),
        in_specs=[
            per_graph((N_NODES, NODE_PAD)),          # node features
            per_graph((E_PAD, EDGE_PAD)),            # edge features
            per_graph((N_NODES, N_NODES)),           # A + I
            per_graph((N_NODES, E_PAD)),             # edge -> dst-node incidence
            pl.BlockSpec((NODE_PAD, HID_PAD), w2),   # weights: resident in VMEM
            pl.BlockSpec((1, HID_PAD), w2),
            pl.BlockSpec((EDGE_PAD, HID_PAD), w2),
            pl.BlockSpec((1, HID_PAD), w2),
            pl.BlockSpec((DEPTH, HID_PAD, HID_PAD), w3),
            pl.BlockSpec((DEPTH, 1, HID_PAD), w3),
            pl.BlockSpec((DEPTH, HID_PAD, HID_PAD), w3),
            pl.BlockSpec((DEPTH, 1, HID_PAD), w3),
        ],
        out_specs=pl.BlockSpec((None, 1, HID_PAD), lambda g: (g, 0, 0)),
        compiler_params=pltpu.CompilerParams(
            dimension_semantics=("parallel",)),      # shard graphs across TCs (v7x)
    )(nodes, edges, adj, inc,
      params["proj_node_w"], params["proj_node_b"],
      params["proj_edge_w"], params["proj_edge_b"],
      params["gnn_w1"], params["gnn_b1"],
      params["gnn_w2"], params["gnn_b2"])


# =============================================================================
# Kernel 2: signed combination of graph embeddings + prediction head (fused)
# =============================================================================
def _head_kernel(signs_ref, emb_ref, w1_ref, b1_ref, w2_ref, b2_ref,
                 w3_ref, b3_ref, out_ref):
    # react = sum_g sign[g] * emb[g]   (r - p, or 0.7*(r-p) + 0.3*rg)
    react = jnp.sum(signs_ref[...] * emb_ref[...], axis=0, keepdims=True)
    h = jnp.dot(react.astype(jnp.bfloat16), w1_ref[...],
                preferred_element_type=jnp.float32) + b1_ref[...]
    h = jnp.where(h >= 0.0, h, PRELU_ALPHA * h)      # PReLU (dropout = identity)
    h = jnp.dot(h.astype(jnp.bfloat16), w2_ref[...],
                preferred_element_type=jnp.float32) + b2_ref[...]
    h = jnp.where(h >= 0.0, h, PRELU_ALPHA * h)
    out_ref[...] = jnp.dot(h.astype(jnp.bfloat16), w3_ref[...],
                           preferred_element_type=jnp.float32) + b3_ref[...]


def predict_head(params, signs, emb):
    vmem = lambda: pl.BlockSpec(memory_space=pltpu.MemorySpace.VMEM)
    return pl.pallas_call(
        _head_kernel,
        out_shape=jax.ShapeDtypeStruct((1, OUT_PAD), jnp.float32),
        in_specs=[vmem() for _ in range(8)],
        out_specs=vmem(),
    )(signs, emb,
      params["pred_w1"], params["pred_b1"],
      params["pred_w2"], params["pred_b2"],
      params["pred_w3"], params["pred_b3"])


# =============================================================================
# recat.forward  (jitted: 2 pallas_calls total)
# =============================================================================
@jax.jit
def recat_forward(params, graphs, signs):
    nodes, edges, adj, inc = graphs
    emb = gin_batched(params, nodes, edges, adj, inc)     # [G, 1, HID_PAD]
    emb = emb.reshape(emb.shape[0], HID_PAD)              # [G, HID_PAD]
    out = predict_head(params, signs, emb)                # [1, OUT_PAD]
    return out[:, :OUT_DIM]                               # strip lane padding


# =============================================================================
# Parameters (deterministic synthetic init; logical shapes, then zero-padded)
# =============================================================================
def init_params(key):
    ks = iter(jax.random.split(key, 20))

    def nrm(shape):
        return 0.05 * jax.random.normal(next(ks), shape, jnp.float32)

    return dict(
        proj_node_w=nrm((NODE_IN, HID)), proj_node_b=nrm((HID,)),
        proj_edge_w=nrm((EDGE_IN, HID)), proj_edge_b=nrm((HID,)),
        gnn_w1=nrm((DEPTH, HID, HID)), gnn_b1=nrm((DEPTH, HID)),
        gnn_w2=nrm((DEPTH, HID, HID)), gnn_b2=nrm((DEPTH, HID)),
        pred_w1=nrm((HID, PRED_HID)), pred_b1=nrm((PRED_HID,)),
        pred_w2=nrm((PRED_HID, PRED_HID)), pred_b2=nrm((PRED_HID,)),
        pred_w3=nrm((PRED_HID, OUT_DIM)), pred_b3=nrm((OUT_DIM,)),
    )


def _pad_to(a, shape):
    return jnp.pad(a, [(0, t - s) for s, t in zip(a.shape, shape)])


def prepare_params(raw):
    """Zero-pad to lane-dense shapes; weights -> bf16, biases stay f32."""
    p = {}
    p["proj_node_w"] = _pad_to(raw["proj_node_w"], (NODE_PAD, HID_PAD)).astype(jnp.bfloat16)
    p["proj_node_b"] = _pad_to(raw["proj_node_b"][None, :], (1, HID_PAD))
    p["proj_edge_w"] = _pad_to(raw["proj_edge_w"], (EDGE_PAD, HID_PAD)).astype(jnp.bfloat16)
    p["proj_edge_b"] = _pad_to(raw["proj_edge_b"][None, :], (1, HID_PAD))
    p["gnn_w1"] = _pad_to(raw["gnn_w1"], (DEPTH, HID_PAD, HID_PAD)).astype(jnp.bfloat16)
    p["gnn_b1"] = _pad_to(raw["gnn_b1"][:, None, :], (DEPTH, 1, HID_PAD))
    p["gnn_w2"] = _pad_to(raw["gnn_w2"], (DEPTH, HID_PAD, HID_PAD)).astype(jnp.bfloat16)
    p["gnn_b2"] = _pad_to(raw["gnn_b2"][:, None, :], (DEPTH, 1, HID_PAD))
    p["pred_w1"] = _pad_to(raw["pred_w1"], (HID_PAD, PRED_HID)).astype(jnp.bfloat16)
    p["pred_b1"] = raw["pred_b1"][None, :]
    p["pred_w2"] = raw["pred_w2"].astype(jnp.bfloat16)
    p["pred_b2"] = raw["pred_b2"][None, :]
    p["pred_w3"] = _pad_to(raw["pred_w3"], (PRED_HID, OUT_PAD)).astype(jnp.bfloat16)
    p["pred_b3"] = _pad_to(raw["pred_b3"][None, :], (1, OUT_PAD))
    return p


# =============================================================================
# Synthetic graph construction + batching
# =============================================================================
def make_graph(key, n_nodes=N_NODES, n_edges=N_EDGES):
    k1, k2, k3, k4 = jax.random.split(key, 4)
    node_feats = jax.random.normal(k1, (n_nodes, NODE_IN), jnp.float32)
    edge_feats = jax.random.normal(k2, (n_edges, EDGE_IN), jnp.float32)
    src = jax.random.randint(k3, (n_edges,), 0, n_nodes)
    dst = jax.random.randint(k4, (n_edges,), 0, n_nodes)
    adj = jnp.zeros((n_nodes, n_nodes), jnp.float32).at[dst, src].add(1.0)
    adj_hat = adj + jnp.eye(n_nodes, dtype=jnp.float32)              # A + I
    inc_dst = jnp.zeros((n_nodes, n_edges), jnp.float32).at[
        dst, jnp.arange(n_edges)].set(1.0)                           # edge -> dst node
    return node_feats, edge_feats, adj_hat, inc_dst


def prepare_graphs(mols):
    """Stack graphs on a leading axis, zero-pad feature / edge dims, cast bf16."""
    nodes, edges, adjs, incs = [], [], [], []
    for nf, ef, a, inc in mols:
        nodes.append(_pad_to(nf, (N_NODES, NODE_PAD)))
        edges.append(_pad_to(ef, (E_PAD, EDGE_PAD)))   # padded edges have zero
        adjs.append(a)                                 # incidence -> no effect
        incs.append(_pad_to(inc, (N_NODES, E_PAD)))
    stack = lambda xs: jnp.stack(xs).astype(jnp.bfloat16)
    return stack(nodes), stack(edges), stack(adjs), stack(incs)


def build_inputs(rmols, pmols, rgmols=None):
    """All graphs in one batch; signed weights reproduce r-p (+0.3*rg) combine."""
    mols = list(rmols) + list(pmols)
    w_r, w_p = (1.0, -1.0) if rgmols is None else (0.7, -0.7)
    signs = [w_r] * len(rmols) + [w_p] * len(pmols)
    if rgmols is not None:
        mols += list(rgmols)
        signs += [0.3] * len(rgmols)
    graphs = prepare_graphs(mols)
    return graphs, jnp.asarray(signs, jnp.float32)[:, None]


if __name__ == "__main__":
    key = jax.random.PRNGKey(0)
    params = prepare_params(init_params(jax.random.fold_in(key, 1)))

    gkeys = jax.random.split(jax.random.fold_in(key, 2), 4)
    rmols = [make_graph(gkeys[0]), make_graph(gkeys[1])]
    pmols = [make_graph(gkeys[2]), make_graph(gkeys[3])]
    graphs, signs = build_inputs(rmols, pmols)

    out = recat_forward(params, graphs, signs)
    out = jax.block_until_ready(out)
    assert out.shape == (1, OUT_DIM) and out.dtype == jnp.float32
    print("KERNEL_OK")
</pallas_src>

<mosaic_0001>
module attributes {stable_mosaic.version = 11 : i64} {
  func.func @_head_kernel(%arg0: memref<4x1xf32, #tpu.memory_space<vmem>>, %arg1: memref<4x384xf32, #tpu.memory_space<vmem>>, %arg2: memref<384x512xbf16, #tpu.memory_space<vmem>>, %arg3: memref<1x512xf32, #tpu.memory_space<vmem>>, %arg4: memref<512x512xbf16, #tpu.memory_space<vmem>>, %arg5: memref<1x512xf32, #tpu.memory_space<vmem>>, %arg6: memref<512x128xbf16, #tpu.memory_space<vmem>>, %arg7: memref<1x128xf32, #tpu.memory_space<vmem>>, %arg8: memref<1x128xf32, #tpu.memory_space<vmem>>) attributes {dimension_semantics = [], scalar_prefetch = 0 : i64, scratch_operands = 0 : i64, tpu.core_type = #tpu.core_type<tc>} {
    %c0 = arith.constant 0 : index
    %c0_0 = arith.constant 0 : index
    %0 = vector.load %arg0[%c0, %c0_0] : memref<4x1xf32, #tpu.memory_space<vmem>>, vector<4x1xf32>
    %c0_1 = arith.constant 0 : index
    %c0_2 = arith.constant 0 : index
    %1 = vector.load %arg1[%c0_1, %c0_2] : memref<4x384xf32, #tpu.memory_space<vmem>>, vector<4x384xf32>
    %2 = vector.broadcast %0 : vector<4x1xf32> to vector<4x384xf32>
    %3 = arith.mulf %2, %1 : vector<4x384xf32>
    %cst = arith.constant dense<0.000000e+00> : vector<384xf32>
    %4 = vector.multi_reduction <add>, %3, %cst [0] : vector<4x384xf32> to vector<384xf32>
    %5 = vector.shape_cast %4 : vector<384xf32> to vector<1x384xf32>
    %6 = arith.truncf %5 : vector<1x384xf32> to vector<1x384xbf16>
    %c0_3 = arith.constant 0 : index
    %c0_4 = arith.constant 0 : index
    %7 = vector.load %arg2[%c0_3, %c0_4] : memref<384x512xbf16, #tpu.memory_space<vmem>>, vector<384x512xbf16>
    %cst_5 = arith.constant dense<0.000000e+00> : vector<1x512xf32>
    %8 = tpu.matmul %6, %7, %cst_5 {dimension_numbers = #tpu.dot_dimension_numbers<[1], [0], [0], [1], [0, 0, 1, 1], [], []>} : vector<1x384xbf16>, vector<384x512xbf16>, vector<1x512xf32> -> vector<1x512xf32>
    %c0_6 = arith.constant 0 : index
    %c0_7 = arith.constant 0 : index
    %9 = vector.load %arg3[%c0_6, %c0_7] : memref<1x512xf32, #tpu.memory_space<vmem>>, vector<1x512xf32>
    %10 = arith.addf %8, %9 : vector<1x512xf32>
    %cst_8 = arith.constant 0.000000e+00 : f32
    %11 = vector.broadcast %cst_8 : f32 to vector<1x512xf32>
    %12 = arith.cmpf oge, %10, %11 : vector<1x512xf32>
    %cst_9 = arith.constant 2.500000e-01 : f32
    %13 = vector.broadcast %cst_9 : f32 to vector<1x512xf32>
    %14 = arith.mulf %13, %10 : vector<1x512xf32>
    %15 = arith.select %12, %10, %14 : vector<1x512xi1>, vector<1x512xf32>
    %16 = arith.truncf %15 : vector<1x512xf32> to vector<1x512xbf16>
    %c0_10 = arith.constant 0 : index
    %c0_11 = arith.constant 0 : index
    %17 = vector.load %arg4[%c0_10, %c0_11] : memref<512x512xbf16, #tpu.memory_space<vmem>>, vector<512x512xbf16>
    %cst_12 = arith.constant dense<0.000000e+00> : vector<1x512xf32>
    %18 = tpu.matmul %16, %17, %cst_12 {dimension_numbers = #tpu.dot_dimension_numbers<[1], [0], [0], [1], [0, 0, 1, 1], [], []>} : vector<1x512xbf16>, vector<512x512xbf16>, vector<1x512xf32> -> vector<1x512xf32>
    %c0_13 = arith.constant 0 : index
    %c0_14 = arith.constant 0 : index
    %19 = vector.load %arg5[%c0_13, %c0_14] : memref<1x512xf32, #tpu.memory_space<vmem>>, vector<1x512xf32>
    %20 = arith.addf %18, %19 : vector<1x512xf32>
    %cst_15 = arith.constant 0.000000e+00 : f32
    %21 = vector.broadcast %cst_15 : f32 to vector<1x512xf32>
    %22 = arith.cmpf oge, %20, %21 : vector<1x512xf32>
    %cst_16 = arith.constant 2.500000e-01 : f32
    %23 = vector.broadcast %cst_16 : f32 to vector<1x512xf32>
    %24 = arith.mulf %23, %20 : vector<1x512xf32>
    %25 = arith.select %22, %20, %24 : vector<1x512xi1>, vector<1x512xf32>
    %26 = arith.truncf %25 : vector<1x512xf32> to vector<1x512xbf16>
    %c0_17 = arith.constant 0 : index
    %c0_18 = arith.constant 0 : index
    %27 = vector.load %arg6[%c0_17, %c0_18] : memref<512x128xbf16, #tpu.memory_space<vmem>>, vector<512x128xbf16>
    %cst_19 = arith.constant dense<0.000000e+00> : vector<1x128xf32>
    %28 = tpu.matmul %26, %27, %cst_19 {dimension_numbers = #tpu.dot_dimension_numbers<[1], [0], [0], [1], [0, 0, 1, 1], [], []>} : vector<1x512xbf16>, vector<512x128xbf16>, vector<1x128xf32> -> vector<1x128xf32>
    %c0_20 = arith.constant 0 : index
    %c0_21 = arith.constant 0 : index
    %29 = vector.load %arg7[%c0_20, %c0_21] : memref<1x128xf32, #tpu.memory_space<vmem>>, vector<1x128xf32>
    %30 = arith.addf %28, %29 : vector<1x128xf32>
    %c0_22 = arith.constant 0 : index
    %c0_23 = arith.constant 0 : index
    %31 = vector.load %arg8[%c0_22, %c0_23] : memref<1x128xf32, #tpu.memory_space<vmem>>, vector<1x128xf32>
    tpu.vector_store %arg8[%c0_22, %c0_23], %30 {strides = array<i32>} : memref<1x128xf32, #tpu.memory_space<vmem>>, vector<1x128xf32>,
    return
  }
}

module attributes {stable_mosaic.version = 11 : i64} {
  func.func @_gin_kernel(%arg0: i32, %arg1: memref<1x8x256xbf16, #tpu.memory_space<vmem>>, %arg2: memref<1x16x128xbf16, #tpu.memory_space<vmem>>, %arg3: memref<1x8x8xbf16, #tpu.memory_space<vmem>>, %arg4: memref<1x8x16xbf16, #tpu.memory_space<vmem>>, %arg5: memref<256x384xbf16, #tpu.memory_space<vmem>>, %arg6: memref<1x384xf32, #tpu.memory_space<vmem>>, %arg7: memref<128x384xbf16, #tpu.memory_space<vmem>>, %arg8: memref<1x384xf32, #tpu.memory_space<vmem>>, %arg9: memref<3x384x384xbf16, #tpu.memory_space<vmem>>, %arg10: memref<3x1x384xf32, #tpu.memory_space<vmem>>, %arg11: memref<3x384x384xbf16, #tpu.memory_space<vmem>>, %arg12: memref<3x1x384xf32, #tpu.memory_space<vmem>>, %arg13: memref<1x1x384xf32, #tpu.memory_space<vmem>>) attributes {dimension_semantics = [#tpu.dimension_semantics<parallel>], iteration_bounds = array<i64: 4>, scalar_prefetch = 0 : i64, scratch_operands = 0 : i64, tpu.core_type = #tpu.core_type<tc>, window_params = [{transform_indices = @transform_0, window_bounds = array<i64: 1, 8, 256>}, {transform_indices = @transform_1, window_bounds = array<i64: 1, 16, 128>}, {transform_indices = @transform_2, window_bounds = array<i64: 1, 8, 8>}, {transform_indices = @transform_3, window_bounds = array<i64: 1, 8, 16>}, {pipeline_mode = #tpu.pipeline_mode<synchronous>, transform_indices = @transform_4, window_bounds = array<i64: 256, 384>}, {pipeline_mode = #tpu.pipeline_mode<synchronous>, transform_indices = @transform_5, window_bounds = array<i64: 1, 384>}, {pipeline_mode = #tpu.pipeline_mode<synchronous>, transform_indices = @transform_6, window_bounds = array<i64: 128, 384>}, {pipeline_mode = #tpu.pipeline_mode<synchronous>, transform_indices = @transform_7, window_bounds = array<i64: 1, 384>}, {pipeline_mode = #tpu.pipeline_mode<synchronous>, transform_indices = @transform_8, window_bounds = array<i64: 3, 384, 384>}, {pipeline_mode = #tpu.pipeline_mode<synchronous>, transform_indices = @transform_9, window_bounds = array<i64: 3, 1, 384>}, {pipeline_mode = #tpu.pipeline_mode<synchronous>, transform_indices = @transform_10, window_bounds = array<i64: 3, 384, 384>}, {pipeline_mode = #tpu.pipeline_mode<synchronous>, transform_indices = @transform_11, window_bounds = array<i64: 3, 1, 384>}, {transform_indices = @transform_12, window_bounds = array<i64: 1, 1, 384>}]} {
    %c0 = arith.constant 0 : index
    %c0_0 = arith.constant 0 : index
    %c0_1 = arith.constant 0 : index
    %0 = vector.load %arg1[%c0, %c0_0, %c0_1] : memref<1x8x256xbf16, #tpu.memory_space<vmem>>, vector<1x8x256xbf16>
    %1 = vector.shape_cast %0 : vector<1x8x256xbf16> to vector<8x256xbf16>
    %c0_2 = arith.constant 0 : index
    %c0_3 = arith.constant 0 : index
    %2 = vector.load %arg5[%c0_2, %c0_3] : memref<256x384xbf16, #tpu.memory_space<vmem>>, vector<256x384xbf16>
    %cst = arith.constant dense<0.000000e+00> : vector<8x384xf32>
    %3 = tpu.matmul %1, %2, %cst {dimension_numbers = #tpu.dot_dimension_numbers<[1], [0], [0], [1], [0, 0, 1, 1], [], []>} : vector<8x256xbf16>, vector<256x384xbf16>, vector<8x384xf32> -> vector<8x384xf32>
    %c0_4 = arith.constant 0 : index
    %c0_5 = arith.constant 0 : index
    %4 = vector.load %arg6[%c0_4, %c0_5] : memref<1x384xf32, #tpu.memory_space<vmem>>, vector<1x384xf32>
    %5 = vector.broadcast %4 : vector<1x384xf32> to vector<8x384xf32>
    %6 = arith.addf %3, %5 : vector<8x384xf32>
    %cst_6 = arith.constant 0.000000e+00 : f32
    %7 = vector.broadcast %cst_6 : f32 to vector<8x384xf32>
    %8 = arith.maximumf %6, %7 : vector<8x384xf32>
    %c0_7 = arith.constant 0 : index
    %c0_8 = arith.constant 0 : index
    %c0_9 = arith.constant 0 : index
    %9 = vector.load %arg2[%c0_7, %c0_8, %c0_9] : memref<1x16x128xbf16, #tpu.memory_space<vmem>>, vector<1x16x128xbf16>
    %10 = vector.shape_cast %9 : vector<1x16x128xbf16> to vector<16x128xbf16>
    %c0_10 = arith.constant 0 : index
    %c0_11 = arith.constant 0 : index
    %11 = vector.load %arg7[%c0_10, %c0_11] : memref<128x384xbf16, #tpu.memory_space<vmem>>, vector<128x384xbf16>
    %cst_12 = arith.constant dense<0.000000e+00> : vector<16x384xf32>
    %12 = tpu.matmul %10, %11, %cst_12 {dimension_numbers = #tpu.dot_dimension_numbers<[1], [0], [0], [1], [0, 0, 1, 1], [], []>} : vector<16x128xbf16>, vector<128x384xbf16>, vector<16x384xf32> -> vector<16x384xf32>
    %c0_13 = arith.constant 0 : index
    %c0_14 = arith.constant 0 : index
    %13 = vector.load %arg8[%c0_13, %c0_14] : memref<1x384xf32, #tpu.memory_space<vmem>>, vector<1x384xf32>
    %14 = vector.broadcast %13 : vector<1x384xf32> to vector<16x384xf32>
    %15 = arith.addf %12, %14 : vector<16x384xf32>
    %c0_15 = arith.constant 0 : index
    %c0_16 = arith.constant 0 : index
    %c0_17 = arith.constant 0 : index
    %16 = vector.load %arg4[%c0_15, %c0_16, %c0_17] : memref<1x8x16xbf16, #tpu.memory_space<vmem>>, vector<1x8x16xbf16>
    %17 = vector.shape_cast %16 : vector<1x8x16xbf16> to vector<8x16xbf16>
    %18 = arith.truncf %15 : vector<16x384xf32> to vector<16x384xbf16>
    %cst_18 = arith.constant dense<0.000000e+00> : vector<8x384xf32>
    %19 = tpu.matmul %17, %18, %cst_18 {dimension_numbers = #tpu.dot_dimension_numbers<[1], [0], [0], [1], [0, 0, 1, 1], [], []>} : vector<8x16xbf16>, vector<16x384xbf16>, vector<8x384xf32> -> vector<8x384xf32>
    %c0_19 = arith.constant 0 : index
    %c0_20 = arith.constant 0 : index
    %c0_21 = arith.constant 0 : index
    %20 = vector.load %arg3[%c0_19, %c0_20, %c0_21] : memref<1x8x8xbf16, #tpu.memory_space<vmem>>, vector<1x8x8xbf16>
    %21 = vector.shape_cast %20 : vector<1x8x8xbf16> to vector<8x8xbf16>
    %22 = arith.truncf %8 : vector<8x384xf32> to vector<8x384xbf16>
    %cst_22 = arith.constant dense<0.000000e+00> : vector<8x384xf32>
    %23 = tpu.matmul %21, %22, %cst_22 {dimension_numbers = #tpu.dot_dimension_numbers<[1], [0], [0], [1], [0, 0, 1, 1], [], []>} : vector<8x8xbf16>, vector<8x384xbf16>, vector<8x384xf32> -> vector<8x384xf32>
    %24 = arith.addf %23, %19 : vector<8x384xf32>
    %25 = arith.truncf %24 : vector<8x384xf32> to vector<8x384xbf16>
    %c0_23 = arith.constant 0 : index
    %c0_24 = arith.constant 0 : index
    %c0_25 = arith.constant 0 : index
    %26 = vector.load %arg9[%c0_23, %c0_24, %c0_25] : memref<3x384x384xbf16, #tpu.memory_space<vmem>>, vector<1x384x384xbf16>
    %27 = vector.shape_cast %26 : vector<1x384x384xbf16> to vector<384x384xbf16>
    %cst_26 = arith.constant dense<0.000000e+00> : vector<8x384xf32>
    %28 = tpu.matmul %25, %27, %cst_26 {dimension_numbers = #tpu.dot_dimension_numbers<[1], [0], [0], [1], [0, 0, 1, 1], [], []>} : vector<8x384xbf16>, vector<384x384xbf16>, vector<8x384xf32> -> vector<8x384xf32>
    %c0_27 = arith.constant 0 : index
    %c0_28 = arith.constant 0 : index
    %c0_29 = arith.constant 0 : index
    %29 = vector.load %arg10[%c0_27, %c0_28, %c0_29] : memref<3x1x384xf32, #tpu.memory_space<vmem>>, vector<1x1x384xf32>
    %30 = vector.shape_cast %29 : vector<1x1x384xf32> to vector<1x384xf32>
    %31 = vector.broadcast %30 : vector<1x384xf32> to vector<8x384xf32>
    %32 = arith.addf %28, %31 : vector<8x384xf32>
    %cst_30 = arith.constant 0.000000e+00 : f32
    %33 = vector.broadcast %cst_30 : f32 to vector<8x384xf32>
    %34 = arith.maximumf %32, %33 : vector<8x384xf32>
    %35 = arith.truncf %34 : vector<8x384xf32> to vector<8x384xbf16>
    %c0_31 = arith.constant 0 : index
    %c0_32 = arith.constant 0 : index
    %c0_33 = arith.constant 0 : index
    %36 = vector.load %arg11[%c0_31, %c0_32, %c0_33] : memref<3x384x384xbf16, #tpu.memory_space<vmem>>, vector<1x384x384xbf16>
    %37 = vector.shape_cast %36 : vector<1x384x384xbf16> to vector<384x384xbf16>
    %cst_34 = arith.constant dense<0.000000e+00> : vector<8x384xf32>
    %38 = tpu.matmul %35, %37, %cst_34 {dimension_numbers = #tpu.dot_dimension_numbers<[1], [0], [0], [1], [0, 0, 1, 1], [], []>} : vector<8x384xbf16>, vector<384x384xbf16>, vector<8x384xf32> -> vector<8x384xf32>
    %c0_35 = arith.constant 0 : index
    %c0_36 = arith.constant 0 : index
    %c0_37 = arith.constant 0 : index
    %39 = vector.load %arg12[%c0_35, %c0_36, %c0_37] : memref<3x1x384xf32, #tpu.memory_space<vmem>>, vector<1x1x384xf32>
    %40 = vector.shape_cast %39 : vector<1x1x384xf32> to vector<1x384xf32>
    %41 = vector.broadcast %40 : vector<1x384xf32> to vector<8x384xf32>
    %42 = arith.addf %38, %41 : vector<8x384xf32>
    %cst_38 = arith.constant 0.000000e+00 : f32
    %43 = vector.broadcast %cst_38 : f32 to vector<8x384xf32>
    %44 = arith.maximumf %42, %43 : vector<8x384xf32>
    %45 = arith.truncf %44 : vector<8x384xf32> to vector<8x384xbf16>
    %cst_39 = arith.constant dense<0.000000e+00> : vector<8x384xf32>
    %46 = tpu.matmul %21, %45, %cst_39 {dimension_numbers = #tpu.dot_dimension_numbers<[1], [0], [0], [1], [0, 0, 1, 1], [], []>} : vector<8x8xbf16>, vector<8x384xbf16>, vector<8x384xf32> -> vector<8x384xf32>
    %47 = arith.addf %46, %19 : vector<8x384xf32>
    %48 = arith.truncf %47 : vector<8x384xf32> to vector<8x384xbf16>
    %c1 = arith.constant 1 : index
    %c0_40 = arith.constant 0 : index
    %c0_41 = arith.constant 0 : index
    %49 = vector.load %arg9[%c1, %c0_40, %c0_41] : memref<3x384x384xbf16, #tpu.memory_space<vmem>>, vector<1x384x384xbf16>
    %50 = vector.shape_cast %49 : vector<1x384x384xbf16> to vector<384x384xbf16>
    %cst_42 = arith.constant dense<0.000000e+00> : vector<8x384xf32>
    %51 = tpu.matmul %48, %50, %cst_42 {dimension_numbers = #tpu.dot_dimension_numbers<[1], [0], [0], [1], [0, 0, 1, 1], [], []>} : vector<8x384xbf16>, vector<384x384xbf16>, vector<8x384xf32> -> vector<8x384xf32>
    %c1_43 = arith.constant 1 : index
    %c0_44 = arith.constant 0 : index
    %c0_45 = arith.constant 0 : index
    %52 = vector.load %arg10[%c1_43, %c0_44, %c0_45] : memref<3x1x384xf32, #tpu.memory_space<vmem>>, vector<1x1x384xf32>
    %53 = vector.shape_cast %52 : vector<1x1x384xf32> to vector<1x384xf32>
    %54 = vector.broadcast %53 : vector<1x384xf32> to vector<8x384xf32>
    %55 = arith.addf %51, %54 : vector<8x384xf32>
    %cst_46 = arith.constant 0.000000e+00 : f32
    %56 = vector.broadcast %cst_46 : f32 to vector<8x384xf32>
    %57 = arith.maximumf %55, %56 : vector<8x384xf32>
    %58 = arith.truncf %57 : vector<8x384xf32> to vector<8x384xbf16>
    %c1_47 = arith.constant 1 : index
    %c0_48 = arith.constant 0 : index
    %c0_49 = arith.constant 0 : index
    %59 = vector.load %arg11[%c1_47, %c0_48, %c0_49] : memref<3x384x384xbf16, #tpu.memory_space<vmem>>, vector<1x384x384xbf16>
    %60 = vector.shape_cast %59 : vector<1x384x384xbf16> to vector<384x384xbf16>
    %cst_50 = arith.constant dense<0.000000e+00> : vector<8x384xf32>
    %61 = tpu.matmul %58, %60, %cst_50 {dimension_numbers = #tpu.dot_dimension_numbers<[1], [0], [0], [1], [0, 0, 1, 1], [], []>} : vector<8x384xbf16>, vector<384x384xbf16>, vector<8x384xf32> -> vector<8x384xf32>
    %c1_51 = arith.constant 1 : index
    %c0_52 = arith.constant 0 : index
    %c0_53 = arith.constant 0 : index
    %62 = vector.load %arg12[%c1_51, %c0_52, %c0_53] : memref<3x1x384xf32, #tpu.memory_space<vmem>>, vector<1x1x384xf32>
    %63 = vector.shape_cast %62 : vector<1x1x384xf32> to vector<1x384xf32>
    %64 = vector.broadcast %63 : vector<1x384xf32> to vector<8x384xf32>
    %65 = arith.addf %61, %64 : vector<8x384xf32>
    %cst_54 = arith.constant 0.000000e+00 : f32
    %66 = vector.broadcast %cst_54 : f32 to vector<8x384xf32>
    %67 = arith.maximumf %65, %66 : vector<8x384xf32>
    %68 = arith.truncf %67 : vector<8x384xf32> to vector<8x384xbf16>
    %cst_55 = arith.constant dense<0.000000e+00> : vector<8x384xf32>
    %69 = tpu.matmul %21, %68, %cst_55 {dimension_numbers = #tpu.dot_dimension_numbers<[1], [0], [0], [1], [0, 0, 1, 1], [], []>} : vector<8x8xbf16>, vector<8x384xbf16>, vector<8x384xf32> -> vector<8x384xf32>
    %70 = arith.addf %69, %19 : vector<8x384xf32>
    %71 = arith.truncf %70 : vector<8x384xf32> to vector<8x384xbf16>
    %c2 = arith.constant 2 : index
    %c0_56 = arith.constant 0 : index
    %c0_57 = arith.constant 0 : index
    %72 = vector.load %arg9[%c2, %c0_56, %c0_57] : memref<3x384x384xbf16, #tpu.memory_space<vmem>>, vector<1x384x384xbf16>
    %73 = vector.shape_cast %72 : vector<1x384x384xbf16> to vector<384x384xbf16>
    %cst_58 = arith.constant dense<0.000000e+00> : vector<8x384xf32>
    %74 = tpu.matmul %71, %73, %cst_58 {dimension_numbers = #tpu.dot_dimension_numbers<[1], [0], [0], [1], [0, 0, 1, 1], [], []>} : vector<8x384xbf16>, vector<384x384xbf16>, vector<8x384xf32> -> vector<8x384xf32>
    %c2_59 = arith.constant 2 : index
    %c0_60 = arith.constant 0 : index
    %c0_61 = arith.constant 0 : index
    %75 = vector.load %arg10[%c2_59, %c0_60, %c0_61] : memref<3x1x384xf32, #tpu.memory_space<vmem>>, vector<1x1x384xf32>
    %76 = vector.shape_cast %75 : vector<1x1x384xf32> to vector<1x384xf32>
    %77 = vector.broadcast %76 : vector<1x384xf32> to vector<8x384xf32>
    %78 = arith.addf %74, %77 : vector<8x384xf32>
    %cst_62 = arith.constant 0.000000e+00 : f32
    %79 = vector.broadcast %cst_62 : f32 to vector<8x384xf32>
    %80 = arith.maximumf %78, %79 : vector<8x384xf32>
    %81 = arith.truncf %80 : vector<8x384xf32> to vector<8x384xbf16>
    %c2_63 = arith.constant 2 : index
    %c0_64 = arith.constant 0 : index
    %c0_65 = arith.constant 0 : index
    %82 = vector.load %arg11[%c2_63, %c0_64, %c0_65] : memref<3x384x384xbf16, #tpu.memory_space<vmem>>, vector<1x384x384xbf16>
    %83 = vector.shape_cast %82 : vector<1x384x384xbf16> to vector<384x384xbf16>
    %cst_66 = arith.constant dense<0.000000e+00> : vector<8x384xf32>
    %84 = tpu.matmul %81, %83, %cst_66 {dimension_numbers = #tpu.dot_dimension_numbers<[1], [0], [0], [1], [0, 0, 1, 1], [], []>} : vector<8x384xbf16>, vector<384x384xbf16>, vector<8x384xf32> -> vector<8x384xf32>
    %c2_67 = arith.constant 2 : index
    %c0_68 = arith.constant 0 : index
    %c0_69 = arith.constant 0 : index
    %85 = vector.load %arg12[%c2_67, %c0_68, %c0_69] : memref<3x1x384xf32, #tpu.memory_space<vmem>>, vector<1x1x384xf32>
    %86 = vector.shape_cast %85 : vector<1x1x384xf32> to vector<1x384xf32>
    %87 = vector.broadcast %86 : vector<1x384xf32> to vector<8x384xf32>
    %88 = arith.addf %84, %87 : vector<8x384xf32>
    %89 = arith.truncf %88 : vector<8x384xf32> to vector<8x384xbf16>
    %90 = arith.extf %89 : vector<8x384xbf16> to vector<8x384xf32>
    %cst_70 = arith.constant dense<0.000000e+00> : vector<384xf32>
    %91 = vector.multi_reduction <add>, %90, %cst_70 [0] : vector<8x384xf32> to vector<384xf32>
    %92 = vector.shape_cast %91 : vector<384xf32> to vector<1x384xf32>
    %cst_71 = arith.constant 1.250000e-01 : f32
    %93 = vector.broadcast %cst_71 : f32 to vector<1x384xf32>
    %94 = arith.mulf %92, %93 : vector<1x384xf32>
    %c0_72 = arith.constant 0 : index
    %c0_73 = arith.constant 0 : index
    %c0_74 = arith.constant 0 : index
    %95 = vector.load %arg13[%c0_72, %c0_73, %c0_74] : memref<1x1x384xf32, #tpu.memory_space<vmem>>, vector<1x1x384xf32>
    %96 = vector.shape_cast %95 : vector<1x1x384xf32> to vector<1x384xf32>
    %97 = vector.shape_cast %94 : vector<1x384xf32> to vector<1x1x384xf32>
    tpu.vector_store %arg13[%c0_72, %c0_73, %c0_74], %97 {strides = array<i32>} : memref<1x1x384xf32, #tpu.memory_space<vmem>>, vector<1x1x384xf32>,
    return
  }
  func.func @transform_0(%arg0: i32) -> (i32, i32, i32) {
    %c0_i32 = arith.constant 0 : i32
    %c0_i32_0 = arith.constant 0 : i32
    %c0_i32_1 = arith.constant 0 : i32
    return %arg0, %c0_i32, %c0_i32_0 : i32, i32, i32
  }
  func.func @transform_1(%arg0: i32) -> (i32, i32, i32) {
    %c0_i32 = arith.constant 0 : i32
    %c0_i32_0 = arith.constant 0 : i32
    %c0_i32_1 = arith.constant 0 : i32
    return %arg0, %c0_i32, %c0_i32_0 : i32, i32, i32
  }
  func.func @transform_2(%arg0: i32) -> (i32, i32, i32) {
    %c0_i32 = arith.constant 0 : i32
    %c0_i32_0 = arith.constant 0 : i32
    %c0_i32_1 = arith.constant 0 : i32
    return %arg0, %c0_i32, %c0_i32_0 : i32, i32, i32
  }
  func.func @transform_3(%arg0: i32) -> (i32, i32, i32) {
    %c0_i32 = arith.constant 0 : i32
    %c0_i32_0 = arith.constant 0 : i32
    %c0_i32_1 = arith.constant 0 : i32
    return %arg0, %c0_i32, %c0_i32_0 : i32, i32, i32
  }
  func.func @transform_4(%arg0: i32) -> (i32, i32) {
    %c0_i32 = arith.constant 0 : i32
    %c0_i32_0 = arith.constant 0 : i32
    %c0_i32_1 = arith.constant 0 : i32
    return %c0_i32, %c0_i32_0 : i32, i32
  }
  func.func @transform_5(%arg0: i32) -> (i32, i32) {
    %c0_i32 = arith.constant 0 : i32
    %c0_i32_0 = arith.constant 0 : i32
    %c0_i32_1 = arith.constant 0 : i32
    return %c0_i32, %c0_i32_0 : i32, i32
  }
  func.func @transform_6(%arg0: i32) -> (i32, i32) {
    %c0_i32 = arith.constant 0 : i32
    %c0_i32_0 = arith.constant 0 : i32
    %c0_i32_1 = arith.constant 0 : i32
    return %c0_i32, %c0_i32_0 : i32, i32
  }
  func.func @transform_7(%arg0: i32) -> (i32, i32) {
    %c0_i32 = arith.constant 0 : i32
    %c0_i32_0 = arith.constant 0 : i32
    %c0_i32_1 = arith.constant 0 : i32
    return %c0_i32, %c0_i32_0 : i32, i32
  }
  func.func @transform_8(%arg0: i32) -> (i32, i32, i32) {
    %c0_i32 = arith.constant 0 : i32
    %c0_i32_0 = arith.constant 0 : i32
    %c0_i32_1 = arith.constant 0 : i32
    %c0_i32_2 = arith.constant 0 : i32
    return %c0_i32, %c0_i32_0, %c0_i32_1 : i32, i32, i32
  }
  func.func @transform_9(%arg0: i32) -> (i32, i32, i32) {
    %c0_i32 = arith.constant 0 : i32
    %c0_i32_0 = arith.constant 0 : i32
    %c0_i32_1 = arith.constant 0 : i32
    %c0_i32_2 = arith.constant 0 : i32
    return %c0_i32, %c0_i32_0, %c0_i32_1 : i32, i32, i32
  }
  func.func @transform_10(%arg0: i32) -> (i32, i32, i32) {
    %c0_i32 = arith.constant 0 : i32
    %c0_i32_0 = arith.constant 0 : i32
    %c0_i32_1 = arith.constant 0 : i32
    %c0_i32_2 = arith.constant 0 : i32
    return %c0_i32, %c0_i32_0, %c0_i32_1 : i32, i32, i32
  }
  func.func @transform_11(%arg0: i32) -> (i32, i32, i32) {
    %c0_i32 = arith.constant 0 : i32
    %c0_i32_0 = arith.constant 0 : i32
    %c0_i32_1 = arith.constant 0 : i32
    %c0_i32_2 = arith.constant 0 : i32
    return %c0_i32, %c0_i32_0, %c0_i32_1 : i32, i32, i32
  }
  func.func @transform_12(%arg0: i32) -> (i32, i32, i32) {
    %c0_i32 = arith.constant 0 : i32
    %c0_i32_0 = arith.constant 0 : i32
    %c0_i32_1 = arith.constant 0 : i32
    return %arg0, %c0_i32, %c0_i32_0 : i32, i32, i32
  }
}

</mosaic_0001>

<bundles_post_ra>
// kernel: recat_forward.3
= control target key start
LH: loop header
LB: loop body
LE: loop exit
PB: predicated region body
PF: predicated region fallthrough
CT: control target
= control target key end

     0   :  { %13 = vsyncpa [#allocation3], 0  ;;  %s3742_s0 = inlined_call_operand.vmem [shape: f32[4,1], index: 0, kind: input, shape index: {}]   ;;  %s3743_s1 = inlined_call_operand.vmem [shape: f32[4,384], index: 1, kind: input, shape index: {}]   ;;  %s3744_s2 = inlined_call_operand.hbm [shape: bf16[384,512], index: 2, kind: input, shape index: {}]   ;;  %s3745_s3 = inlined_call_operand.vmem [shape: f32[1,512], index: 3, kind: input, shape index: {}]   ;;  %s3746_s4 = inlined_call_operand.hbm [shape: bf16[512,512], index: 4, kind: input, shape index: {}]   ;;  %s3747_s5 = inlined_call_operand.vmem [shape: f32[1,512], index: 5, kind: input, shape index: {}]   ;;  %s3748_s6 = inlined_call_operand.hbm [shape: bf16[512,128], index: 6, kind: input, shape index: {}]   ;;  %s3749_s7 = inlined_call_operand.vmem [shape: f32[1,128], index: 7, kind: input, shape index: {}]   ;;  %s3750_s8 = inlined_call_operand.hbm [shape: f32[1,128], index: 8, kind: output, shape index: {}]  }
   0x1   :  { %14 = vsyncpa [#allocation6], 0 }
   0x2   :  { %15 = vsyncpa [#allocation4], 0  ;;  %s39_s29 = sshll.u32 %s3746_s4, 4  ;;  %s3604_s30 = smov [#allocation5]   ;;  %s40_s29 = int_to_ptr.hbm [resolvable:$true] %s39_s29 }
   0x3   :  { %s41_s9 = sshll.u32 %s3604_s30, 4  ;;  %s24_s12 = sshll.u32 %s3744_s2, 4  ;;  %s42_s9 = int_to_ptr.vmem [resolvable:$true] %s41_s9  ;;  %s25_s12 = int_to_ptr.hbm [resolvable:$true] %s24_s12 }
   0x4   :  { %s3605_s13 = smov 256   ;;  %s3606_s14 = smov 16  }
   0x5   :  { %47 = dma.hbm_to_vmem [thread:$0]  %s40_s29, 16384, %s42_s9, [#allocation6], %s3605_s13, %s3605_s13, %s3606_s14  }
   0x6   :  { %s3607_s15 = smov [#allocation2]   ;;  %s54_s19 = sshll.u32 %s3748_s6, 4  ;;  %s55_s19 = int_to_ptr.hbm [resolvable:$true] %s54_s19 }
   0x7   :  { %s26_s16 = sshll.u32 %s3607_s15, 4  ;;  %s3608_s4 = smov [#allocation7]   ;;  %s27_s16 = int_to_ptr.vmem [resolvable:$true] %s26_s16 }
   0x8   :  { %32 = dma.hbm_to_vmem [thread:$0]  %s25_s12, 12288, %s27_s16, [#allocation3], %s3605_s13, %s3605_s13, %s3606_s14  }
   0x9   :  { %s56_s20 = sshll.u32 %s3608_s4, 4  ;;  %s3609_s21 = smov 64   ;;  %s57_s20 = int_to_ptr.vmem [resolvable:$true] %s56_s20 }
   0xa   :  { %s3610_s22 = smov 4  }
   0xb   :  { %62 = dma.hbm_to_vmem [thread:$0]  %s55_s19, 4096, %s57_s20, [#allocation6], %s3609_s21, %s3609_s21, %s3610_s22  }
   0xc   :  { %3598 = dma.done.wait [#allocation3], 12288  }
   0xd   :  { %3599 = vsyncadd [#allocation3], 4294955008 }
   0xe   :  { %3600 = dma.done.wait [#allocation6], 20480  }
   0xf   :  { %3601 = vsyncadd [#allocation6], 4294946816  ;;  %v3611_v0 = vmov 0   ;;  %v77_v1 = vld [vmem:[%s3742_s0] sm:$0xf]  ;;  %vm99_vm0 = vcmask 1043456  }
  0x10   :  { %3501 = vset.pattern.permute.xlu0 %v3611_v0  ;;  %v2326_v2 = vld [vmem:[#allocation2 + $0xe0] sm:$0xf]  ;;  %v3266_v3 = vld [vmem:[#allocation2 + $0xec] sm:$0xf0]  ;;  %v3264_v10 = vld [vmem:[#allocation2 + $0xe4] sm:$0xf] }
  0x11   :  { %82 = vperm.xlu0 %3501, %v77_v1   ;;  %v2327_v4 = vor.u32 %v3266_v3, %v2326_v2  ;;  %v2454_v5 = vld [vmem:[#allocation2 + $0x1e0] sm:$0xf]  ;;  %v3298_v6 = vld [vmem:[#allocation2 + $0x1ec] sm:$0xf0]  ;;  %v2328_v11 = vld [vmem:[#allocation2 + $0xf0] sm:$0xf0] }
  0x12   :  { %v2582_v7 = vld [vmem:[#allocation2 + $0x2e0] sm:$0xf]  ;;  %v2455_v8 = vor.u32 %v3298_v6, %v2454_v5  ;;  %v3330_v9 = vld [vmem:[#allocation2 + $0x2ec] sm:$0xf0]  ;;  %v2331_v13 = vor.u32 %v3264_v10, %v2328_v11  ;;  %v3260_v23 = vld [vmem:[#allocation2 + $0xc4] sm:$0xf] }
  0x13   :  { %710 = vmatpush.bf16.msra.mxu0 %v2327_v4  ;;  %v2583_v12 = vor.u32 %v3330_v9, %v2582_v7  ;;  %v2310_v14 = vld [vmem:[#allocation2 + $0xc0] sm:$0xf]  ;;  %v3262_v15 = vld [vmem:[#allocation2 + $0xcc] sm:$0xf0]  ;;  %v2312_v24 = vld [vmem:[#allocation2 + $0xd0] sm:$0xf0] }
  0x14   :  { %v2438_v16 = vld [vmem:[#allocation2 + $0x1c0] sm:$0xf]  ;;  %723 = vmatpush.bf16.msra.mxu1 %v2455_v8  ;;  %v2311_v17 = vor.u32 %v3262_v15, %v2310_v14  ;;  %v3294_v18 = vld [vmem:[#allocation2 + $0x1cc] sm:$0xf0]  ;;  %749 = vmatpush.bf16.msra.mxu3 %v2331_v13  ;;  %v2315_v26 = vor.u32 %v3260_v23, %v2312_v24  ;;  %v3256_v33 = vld [vmem:[#allocation2 + $0xa4] sm:$0xf] }
  0x15   :  { %v2566_v19 = vld [vmem:[#allocation2 + $0x2c0] sm:$0xf]  ;;  %v3326_v20 = vld [vmem:[#allocation2 + $0x2cc] sm:$0xf0]  ;;  %736 = vmatpush.bf16.msra.mxu2 %v2583_v12  ;;  %v2439_v21 = vor.u32 %v3294_v18, %v2438_v16  ;;  %v2296_v35 = vld [vmem:[#allocation2 + $0xb0] sm:$0xf0] }
  0x16   :  { %v2567_v22 = vor.u32 %v3326_v20, %v2566_v19  ;;  %v2294_v25 = vld [vmem:[#allocation2 + $0xa0] sm:$0xf]  ;;  %v3258_v27 = vld [vmem:[#allocation2 + $0xac] sm:$0xf0]  ;;  %v2299_v39 = vor.u32 %v3256_v33, %v2296_v35  ;;  %v3252_v44 = vld [vmem:[#allocation2 + $0x84] sm:$0xf] }
  0x17   :  { %v2422_v28 = vld [vmem:[#allocation2 + $0x1a0] sm:$0xf]  ;;  %v3290_v29 = vld [vmem:[#allocation2 + $0x1ac] sm:$0xf0]  ;;  %711 = vmatpush.bf16.msra.mxu0 %v2311_v17  ;;  %v2295_v30 = vor.u32 %v3258_v27, %v2294_v25  ;;  %v2280_v45 = vld [vmem:[#allocation2 + $0x90] sm:$0xf0] }
  0x18   :  { %v2550_v31 = vld [vmem:[#allocation2 + $0x2a0] sm:$0xf]  ;;  %v3322_v32 = vld [vmem:[#allocation2 + $0x2ac] sm:$0xf0]  ;;  %724 = vmatpush.bf16.msra.mxu1 %v2439_v21  ;;  %v2423_v34 = vor.u32 %v3290_v29, %v2422_v28  ;;  %750 = vmatpush.bf16.msra.mxu3 %v2315_v26  ;;  %v2283_v51 = vor.u32 %v3252_v44, %v2280_v45  ;;  %v3248_v56 = vld [vmem:[#allocation2 + $0x64] sm:$0xf] }
  0x19   :  { %v2278_v36 = vld [vmem:[#allocation2 + $0x80] sm:$0xf]  ;;  %v3254_v37 = vld [vmem:[#allocation2 + $0x8c] sm:$0xf0]  ;;  %737 = vmatpush.bf16.msra.mxu2 %v2567_v22  ;;  %v2551_v38 = vor.u32 %v3322_v32, %v2550_v31  ;;  %v2264_v57 = vld [vmem:[#allocation2 + $0x70] sm:$0xf0] }
  0x1a   :  { %v2406_v40 = vld [vmem:[#allocation2 + $0x180] sm:$0xf]  ;;  %v3286_v41 = vld [vmem:[#allocation2 + $0x18c] sm:$0xf0]  ;;  %v2279_v46 = vor.u32 %v3254_v37, %v2278_v36  ;;  %v2267_v63 = vor.u32 %v3248_v56, %v2264_v57  ;;  %v3244_v4 = vld [vmem:[#allocation2 + $0x44] sm:$0xf] }
  0x1b   :  { %v2534_v42 = vld [vmem:[#allocation2 + $0x280] sm:$0xf]  ;;  %v3318_v43 = vld [vmem:[#allocation2 + $0x28c] sm:$0xf0]  ;;  %712 = vmatpush.bf16.msra.mxu0 %v2295_v30  ;;  %v2407_v47 = vor.u32 %v3286_v41, %v2406_v40  ;;  %v2248_v5 = vld [vmem:[#allocation2 + $0x50] sm:$0xf0] }
  0x1c   :  { %725 = vmatpush.bf16.msra.mxu1 %v2423_v34  ;;  %v2262_v48 = vld [vmem:[#allocation2 + $0x60] sm:$0xf]  ;;  %v3250_v49 = vld [vmem:[#allocation2 + $0x6c] sm:$0xf0]  ;;  %751 = vmatpush.bf16.msra.mxu3 %v2299_v39  ;;  %v2535_v50 = vor.u32 %v3318_v43, %v2534_v42  ;;  %v2251_v11 = vor.u32 %v3244_v4, %v2248_v5  ;;  %v3240_v16 = vld [vmem:[#allocation2 + $0x24] sm:$0xf] }
  0x1d   :  { %738 = vmatpush.bf16.msra.mxu2 %v2551_v38  ;;  %v2390_v52 = vld [vmem:[#allocation2 + $0x160] sm:$0xf]  ;;  %v3282_v53 = vld [vmem:[#allocation2 + $0x16c] sm:$0xf0]  ;;  %v2263_v58 = vor.u32 %v3250_v49, %v2262_v48  ;;  %v2232_v17 = vld [vmem:[#allocation2 + $0x30] sm:$0xf0] }
  0x1e   :  { %v2518_v54 = vld [vmem:[#allocation2 + $0x260] sm:$0xf]  ;;  %v3314_v55 = vld [vmem:[#allocation2 + $0x26c] sm:$0xf0]  ;;  %v2391_v59 = vor.u32 %v3282_v53, %v2390_v52  ;;  %v2235_v26 = vor.u32 %v3240_v16, %v2232_v17  ;;  %v3296_v28 = vld [vmem:[#allocation2 + $0x1e4] sm:$0xf] }
  0x1f   :  { %713 = vmatpush.bf16.msra.mxu0 %v2279_v46  ;;  %v2246_v60 = vld [vmem:[#allocation2 + $0x40] sm:$0xf]  ;;  %v3246_v61 = vld [vmem:[#allocation2 + $0x4c] sm:$0xf0]  ;;  %v2519_v62 = vor.u32 %v3314_v55, %v2518_v54  ;;  %v2456_v29 = vld [vmem:[#allocation2 + $0x1f0] sm:$0xf0] }
  0x20   :  { %726 = vmatpush.bf16.msra.mxu1 %v2407_v47  ;;  %752 = vmatpush.bf16.msra.mxu3 %v2283_v51  ;;  %v2374_v0 = vld [vmem:[#allocation2 + $0x140] sm:$0xf]  ;;  %v3278_v1 = vld [vmem:[#allocation2 + $0x14c] sm:$0xf0]  ;;  %v2247_v6 = vor.u32 %v3246_v61, %v2246_v60  ;;  %v3236_v30 = vld [vmem:[#allocation2 + $0x4] sm:$0xf]  ;;  %v2459_v38 = vor.u32 %v3296_v28, %v2456_v29 }
  0x21   :  { %739 = vmatpush.bf16.msra.mxu2 %v2535_v50  ;;  %v2502_v2 = vld [vmem:[#allocation2 + $0x240] sm:$0xf]  ;;  %v3310_v3 = vld [vmem:[#allocation2 + $0x24c] sm:$0xf0]  ;;  %v2375_v7 = vor.u32 %v3278_v1, %v2374_v0  ;;  %v2216_v31 = vld [vmem:[#allocation2 + $0x10] sm:$0xf0] }
  0x22   :  { %v2230_v8 = vld [vmem:[#allocation2 + $0x20] sm:$0xf]  ;;  %v3242_v9 = vld [vmem:[#allocation2 + $0x2c] sm:$0xf0]  ;;  %v2503_v10 = vor.u32 %v3310_v3, %v2502_v2  ;;  %v3328_v32 = vld [vmem:[#allocation2 + $0x2e4] sm:$0xf]  ;;  %v2219_v43 = vor.u32 %v3236_v30, %v2216_v31 }
  0x23   :  { %714 = vmatpush.bf16.msra.mxu0 %v2263_v58  ;;  %v2358_v12 = vld [vmem:[#allocation2 + $0x120] sm:$0xf]  ;;  %v3274_v13 = vld [vmem:[#allocation2 + $0x12c] sm:$0xf0]  ;;  %v2231_v18 = vor.u32 %v3242_v9, %v2230_v8  ;;  %v2584_v34 = vld [vmem:[#allocation2 + $0x2f0] sm:$0xf0] }
  0x24   :  { %727 = vmatpush.bf16.msra.mxu1 %v2391_v59  ;;  %753 = vmatpush.bf16.msra.mxu3 %v2267_v63  ;;  %v2486_v14 = vld [vmem:[#allocation2 + $0x220] sm:$0xf]  ;;  %v3306_v15 = vld [vmem:[#allocation2 + $0x22c] sm:$0xf0]  ;;  %v2359_v21 = vor.u32 %v3274_v13, %v2358_v12  ;;  %v2334_v35 = vld [vmem:[#allocation2 + $0xe8] sm:$0xf]  ;;  %v2587_v47 = vor.u32 %v3328_v32, %v2584_v34 }
  0x25   :  { %740 = vmatpush.bf16.msra.mxu2 %v2519_v62  ;;  %v2214_v19 = vld [vmem:[#allocation2] sm:$0xf]  ;;  %v3238_v20 = vld [vmem:[#allocation2 + $0xc] sm:$0xf0]  ;;  %v2487_v25 = vor.u32 %v3306_v15, %v2486_v14  ;;  %v3267_v36 = vld [vmem:[#allocation2 + $0xf4] sm:$0xf0] }
  0x26   :  { %v2342_v22 = vld [vmem:[#allocation2 + $0x100] sm:$0xf]  ;;  %v3270_v23 = vld [vmem:[#allocation2 + $0x10c] sm:$0xf0]  ;;  %v2215_v33 = vor.u32 %v3238_v20, %v2214_v19  ;;  %v2462_v39 = vld [vmem:[#allocation2 + $0x1e8] sm:$0xf]  ;;  %v2335_v48 = vor.u32 %v3267_v36, %v2334_v35 }
  0x27   :  { %715 = vmatpush.bf16.msra.mxu0 %v2247_v6  ;;  %v2470_v24 = vld [vmem:[#allocation2 + $0x200] sm:$0xf]  ;;  %v3302_v27 = vld [vmem:[#allocation2 + $0x20c] sm:$0xf0]  ;;  %v2343_v37 = vor.u32 %v3270_v23, %v2342_v22  ;;  %v3299_v40 = vld [vmem:[#allocation2 + $0x1f4] sm:$0xf0] }
  0x28   :  { %728 = vmatpush.bf16.msra.mxu1 %v2375_v7  ;;  %754 = vmatpush.bf16.msra.mxu3 %v2251_v11  ;;  %v3292_v41 = vld [vmem:[#allocation2 + $0x1c4] sm:$0xf]  ;;  %v2471_v42 = vor.u32 %v3302_v27, %v2470_v24  ;;  %v2440_v44 = vld [vmem:[#allocation2 + $0x1d0] sm:$0xf0]  ;;  %v78_v46 = vld [vmem:[%s3743_s1] sm:$0xff]  ;;  %v2463_v51 = vor.u32 %v3299_v40, %v2462_v39  ;;  %s3612_s29 = smov [#allocation8]  }
  0x29   :  { %741 = vmatpush.bf16.msra.mxu2 %v2503_v10  ;;  %v3324_v45 = vld [vmem:[#allocation2 + $0x2c4] sm:$0xf]  ;;  %v2568_v49 = vld [vmem:[#allocation2 + $0x2d0] sm:$0xf0]  ;;  %v79_v50 = vld [vmem:[%s3743_s1 + $0x8] sm:$0xf]  ;;  %v2443_v54 = vor.u32 %v3292_v41, %v2440_v44 }
  0x2a   :  { %87 = vst [vmem:[#allocation1] ss:$2 sm:$0xff] %v78_v46  ;;  %v2318_v52 = vld [vmem:[#allocation2 + $0xc8] sm:$0xf]  ;;  %v3263_v53 = vld [vmem:[#allocation2 + $0xd4] sm:$0xf0]  ;;  %v2571_v59 = vor.u32 %v3324_v45, %v2568_v49 }
  0x2b   :  { %716 = vmatpush.bf16.msra.mxu0 %v2231_v18  ;;  %89 = vst [vmem:[#allocation1 + $0x10] ss:$2 sm:$0xff] %v79_v50  ;;  %v2446_v55 = vld [vmem:[#allocation2 + $0x1c8] sm:$0xf]  ;;  %v3295_v56 = vld [vmem:[#allocation2 + $0x1d4] sm:$0xf0]  ;;  %v2319_v60 = vor.u32 %v3263_v53, %v2318_v52 }
  0x2c   :  { %729 = vmatpush.bf16.msra.mxu1 %v2359_v21  ;;  %755 = vmatpush.bf16.msra.mxu3 %v2235_v26  ;;  %v3288_v57 = vld [vmem:[#allocation2 + $0x1a4] sm:$0xf]  ;;  %v2424_v58 = vld [vmem:[#allocation2 + $0x1b0] sm:$0xf0]  ;;  %v2447_v62 = vor.u32 %v3295_v56, %v2446_v55  ;;  %v2302_v0 = vld [vmem:[#allocation2 + $0xa8] sm:$0xf] }
  0x2d   :  { %742 = vmatpush.bf16.msra.mxu2 %v2487_v25  ;;  %v3320_v61 = vld [vmem:[#allocation2 + $0x2a4] sm:$0xf]  ;;  %v2552_v63 = vld [vmem:[#allocation2 + $0x2b0] sm:$0xf0]  ;;  %v3259_v1 = vld [vmem:[#allocation2 + $0xb4] sm:$0xf0]  ;;  %v2427_v2 = vor.u32 %v3288_v57, %v2424_v58 }
  0x2e   :  { %v2430_v3 = vld [vmem:[#allocation2 + $0x1a8] sm:$0xf]  ;;  %v3291_v4 = vld [vmem:[#allocation2 + $0x1b4] sm:$0xf0]  ;;  %v2555_v5 = vor.u32 %v3320_v61, %v2552_v63  ;;  %v2303_v6 = vor.u32 %v3259_v1, %v2302_v0  ;;  %v3284_v8 = vld [vmem:[#allocation2 + $0x184] sm:$0xf] }
  0x2f   :  { %717 = vmatpush.bf16.msra.mxu0 %v2215_v33  ;;  %v2431_v7 = vor.u32 %v3291_v4, %v2430_v3  ;;  %v2408_v9 = vld [vmem:[#allocation2 + $0x190] sm:$0xf0]  ;;  %v3316_v10 = vld [vmem:[#allocation2 + $0x284] sm:$0xf]  ;;  %v2286_v13 = vld [vmem:[#allocation2 + $0x88] sm:$0xf] }
  0x30   :  { %730 = vmatpush.bf16.msra.mxu1 %v2343_v37  ;;  %756 = vmatpush.bf16.msra.mxu3 %v2219_v43  ;;  %v2411_v11 = vor.u32 %v3284_v8, %v2408_v9  ;;  %v2536_v12 = vld [vmem:[#allocation2 + $0x290] sm:$0xf0]  ;;  %v3255_v14 = vld [vmem:[#allocation2 + $0x94] sm:$0xf0]  ;;  %v2414_v17 = vld [vmem:[#allocation2 + $0x188] sm:$0xf] }
  0x31   :  { %743 = vmatpush.bf16.msra.mxu2 %v2471_v42  ;;  %v2539_v15 = vor.u32 %v3316_v10, %v2536_v12  ;;  %v2287_v16 = vor.u32 %v3255_v14, %v2286_v13  ;;  %v3287_v18 = vld [vmem:[#allocation2 + $0x194] sm:$0xf0]  ;;  %v3280_v20 = vld [vmem:[#allocation2 + $0x164] sm:$0xf]  ;;  %v2392_v21 = vld [vmem:[#allocation2 + $0x170] sm:$0xf0] }
  0x32   :  { %v2415_v19 = vor.u32 %v3287_v18, %v2414_v17  ;;  %v3312_v22 = vld [vmem:[#allocation2 + $0x264] sm:$0xf]  ;;  %v2395_v23 = vor.u32 %v3280_v20, %v2392_v21  ;;  %v2520_v24 = vld [vmem:[#allocation2 + $0x270] sm:$0xf0]  ;;  %v2270_v25 = vld [vmem:[#allocation2 + $0x68] sm:$0xf] }
  0x33   :  { %762 = vmatpush.bf16.msrb.mxu0 %v2459_v38  ;;  %v3251_v26 = vld [vmem:[#allocation2 + $0x74] sm:$0xf0]  ;;  %v2523_v27 = vor.u32 %v3312_v22, %v2520_v24  ;;  %v2398_v29 = vld [vmem:[#allocation2 + $0x168] sm:$0xf]  ;;  %v3276_v32 = vld [vmem:[#allocation2 + $0x144] sm:$0xf] }
  0x34   :  { %775 = vmatpush.bf16.msrb.mxu1 %v2587_v47  ;;  %801 = vmatpush.bf16.msrb.mxu3 %v2463_v51  ;;  %v2271_v28 = vor.u32 %v3251_v26, %v2270_v25  ;;  %v3283_v30 = vld [vmem:[#allocation2 + $0x174] sm:$0xf0]  ;;  %v2376_v33 = vld [vmem:[#allocation2 + $0x150] sm:$0xf0]  ;;  %v3308_v34 = vld [vmem:[#allocation2 + $0x244] sm:$0xf] }
  0x35   :  { %788 = vmatpush.bf16.msrb.mxu2 %v2335_v48  ;;  %v2399_v31 = vor.u32 %v3283_v30, %v2398_v29  ;;  %v2379_v35 = vor.u32 %v3276_v32, %v2376_v33  ;;  %v2504_v36 = vld [vmem:[#allocation2 + $0x250] sm:$0xf0]  ;;  %v2254_v37 = vld [vmem:[#allocation2 + $0x48] sm:$0xf]  ;;  %v3247_v38 = vld [vmem:[#allocation2 + $0x54] sm:$0xf0] }
  0x36   :  { %v2507_v39 = vor.u32 %v3308_v34, %v2504_v36  ;;  %v2255_v40 = vor.u32 %v3247_v38, %v2254_v37  ;;  %v2382_v41 = vld [vmem:[#allocation2 + $0x148] sm:$0xf]  ;;  %v3279_v42 = vld [vmem:[#allocation2 + $0x154] sm:$0xf0]  ;;  %v3272_v44 = vld [vmem:[#allocation2 + $0x124] sm:$0xf] }
  0x37   :  { %763 = vmatpush.bf16.msrb.mxu0 %v2443_v54  ;;  %v2383_v43 = vor.u32 %v3279_v42, %v2382_v41  ;;  %v2360_v45 = vld [vmem:[#allocation2 + $0x130] sm:$0xf0]  ;;  %v3304_v46 = vld [vmem:[#allocation2 + $0x224] sm:$0xf]  ;;  %v2238_v49 = vld [vmem:[#allocation2 + $0x28] sm:$0xf] }
  0x38   :  { %776 = vmatpush.bf16.msrb.mxu1 %v2571_v59  ;;  %802 = vmatpush.bf16.msrb.mxu3 %v2447_v62  ;;  %v2363_v47 = vor.u32 %v3272_v44, %v2360_v45  ;;  %v2488_v48 = vld [vmem:[#allocation2 + $0x230] sm:$0xf0]  ;;  %v3243_v50 = vld [vmem:[#allocation2 + $0x34] sm:$0xf0]  ;;  %v2366_v53 = vld [vmem:[#allocation2 + $0x128] sm:$0xf] }
  0x39   :  { %789 = vmatpush.bf16.msrb.mxu2 %v2319_v60  ;;  %v2491_v51 = vor.u32 %v3304_v46, %v2488_v48  ;;  %v2239_v52 = vor.u32 %v3243_v50, %v2238_v49  ;;  %v3275_v54 = vld [vmem:[#allocation2 + $0x134] sm:$0xf0]  ;;  %v3268_v56 = vld [vmem:[#allocation2 + $0x104] sm:$0xf]  ;;  %v2344_v57 = vld [vmem:[#allocation2 + $0x110] sm:$0xf0] }
  0x3a   :  { %v2367_v55 = vor.u32 %v3275_v54, %v2366_v53  ;;  %v3300_v58 = vld [vmem:[#allocation2 + $0x204] sm:$0xf]  ;;  %v2347_v59 = vor.u32 %v3268_v56, %v2344_v57  ;;  %v2472_v60 = vld [vmem:[#allocation2 + $0x210] sm:$0xf0]  ;;  %v2222_v61 = vld [vmem:[#allocation2 + $0x8] sm:$0xf] }
  0x3b   :  { %764 = vmatpush.bf16.msrb.mxu0 %v2427_v2  ;;  %v3239_v62 = vld [vmem:[#allocation2 + $0x14] sm:$0xf0]  ;;  %v2475_v63 = vor.u32 %v3300_v58, %v2472_v60  ;;  %v2350_v1 = vld [vmem:[#allocation2 + $0x108] sm:$0xf]  ;;  %v2336_v32 = vld [vmem:[#allocation2 + $0xf8] sm:$0xf0] }
  0x3c   :  { %777 = vmatpush.bf16.msrb.mxu1 %v2555_v5  ;;  %803 = vmatpush.bf16.msrb.mxu3 %v2431_v7  ;;  %v2223_v0 = vor.u32 %v3239_v62, %v2222_v61  ;;  %v3271_v2 = vld [vmem:[#allocation2 + $0x114] sm:$0xf0]  ;;  %v91_v5 = vld.sshfl [vmem:[#allocation1 + $0x8] sm:$0xff pattern:$0x75316420]  ;;  %s2199_s30 = sshll.u32 %s3612_s29, 4  ;;  %s2200_s30 = int_to_ptr.vmem [resolvable:$true] %s2199_s30 }
  0x3d   :  { %790 = vmatpush.bf16.msrb.mxu2 %v2303_v6  ;;  %v2351_v3 = vor.u32 %v3271_v2, %v2350_v1  ;;  %v90_v4 = vld.sshfl [vmem:[#allocation1] sm:$0xff pattern:$0x75316420]  ;;  %v92_v6 = vld.sshfl [vmem:[#allocation1 + $0x10] sm:$0xff pattern:$0x75316420] }
  0x3e   :  { %v2590_v26 = vld [vmem:[#allocation2 + $0x2e8] sm:$0xf]  ;;  %v3331_v30 = vld [vmem:[#allocation2 + $0x2f4] sm:$0xf0]  ;;  %v3297_v33 = vld [vmem:[#allocation2 + $0x1ec] sm:$0xf] }
  0x3f   :  { %765 = vmatpush.bf16.msrb.mxu0 %v2411_v11  ;;  %v2464_v37 = vld [vmem:[#allocation2 + $0x1f8] sm:$0xf0]  ;;  %v3329_v38 = vld [vmem:[#allocation2 + $0x2ec] sm:$0xf]  ;;  %v2574_v45 = vld [vmem:[#allocation2 + $0x2c8] sm:$0xf] }
  0x40   :  { %778 = vmatpush.bf16.msrb.mxu1 %v2539_v15  ;;  %804 = vmatpush.bf16.msrb.mxu3 %v2415_v19  ;;  %v3327_v46 = vld [vmem:[#allocation2 + $0x2d4] sm:$0xf0]  ;;  %v3261_v49 = vld [vmem:[#allocation2 + $0xcc] sm:$0xf]  ;;  %v2320_v50 = vld [vmem:[#allocation2 + $0xd8] sm:$0xf0] }
  0x41   :  { %791 = vmatpush.bf16.msrb.mxu2 %v2287_v16  ;;  %v3325_v53 = vld [vmem:[#allocation2 + $0x2cc] sm:$0xf]  ;;  %v2576_v54 = vld [vmem:[#allocation2 + $0x2d8] sm:$0xf0]  ;;  %v2323_v56 = vor.u32 %v3261_v49, %v2320_v50  ;;  %v2558_v57 = vld [vmem:[#allocation2 + $0x2a8] sm:$0xf] }
  0x42   :  { %v3323_v58 = vld [vmem:[#allocation2 + $0x2b4] sm:$0xf0]  ;;  %v2579_v60 = vor.u32 %v3325_v53, %v2576_v54  ;;  %v3257_v61 = vld [vmem:[#allocation2 + $0xac] sm:$0xf]  ;;  %v2304_v62 = vld [vmem:[#allocation2 + $0xb8] sm:$0xf0] }
  0x43   :  { %766 = vmatpush.bf16.msrb.mxu0 %v2395_v23  ;;  %v3321_v1 = vld [vmem:[#allocation2 + $0x2ac] sm:$0xf]  ;;  %v2560_v2 = vld [vmem:[#allocation2 + $0x2b8] sm:$0xf0]  ;;  %s2201_s11 = sshll.u32 %s3750_s8, 4  ;;  %s2202_s11 = int_to_ptr.hbm [resolvable:$true] %s2201_s11 }
  0x44   :  { %779 = vmatpush.bf16.msrb.mxu1 %v2523_v27  ;;  %805 = vmatpush.bf16.msrb.mxu3 %v2399_v31  ;;  %v3265_v31 = vld [vmem:[#allocation2 + $0xec] sm:$0xf]  ;;  %v2240_v49 = vld [vmem:[#allocation2 + $0x38] sm:$0xf0] }
  0x45   :  { %792 = vmatpush.bf16.msrb.mxu2 %v2271_v28  ;;  %v2339_v44 = vor.u32 %v3265_v31, %v2336_v32  ;;  %v3273_v50 = vld [vmem:[#allocation2 + $0x12c] sm:$0xf]  ;;  %v2496_v53 = vld [vmem:[#allocation2 + $0x238] sm:$0xf0] }
  0x47   :  { %767 = vmatpush.bf16.msrb.mxu0 %v2379_v35 }
  0x48   :  { %780 = vmatpush.bf16.msrb.mxu1 %v2507_v39  ;;  %806 = vmatpush.bf16.msrb.mxu3 %v2383_v43  ;;  %v2592_v39 = vld [vmem:[#allocation2 + $0x2f8] sm:$0xf0] }
  0x49   :  { %793 = vmatpush.bf16.msrb.mxu2 %v2255_v40  ;;  %v2591_v40 = vor.u32 %v3331_v30, %v2590_v26  ;;  %v2595_v48 = vor.u32 %v3329_v38, %v2592_v39  ;;  %v2528_v26 = vld [vmem:[#allocation2 + $0x278] sm:$0xf0]  ;;  %v3311_v30 = vld [vmem:[#allocation2 + $0x254] sm:$0xf0] }
  0x4a   :  { %v2512_v38 = vld [vmem:[#allocation2 + $0x258] sm:$0xf0] }
  0x4b   :  { %768 = vmatpush.bf16.msrb.mxu0 %v2363_v47  ;;  %v2467_v47 = vor.u32 %v3297_v33, %v2464_v37  ;;  %v3245_v33 = vld [vmem:[#allocation2 + $0x4c] sm:$0xf] }
  0x4c   :  { %781 = vmatpush.bf16.msrb.mxu1 %v2491_v51  ;;  %807 = vmatpush.bf16.msrb.mxu3 %v2367_v55  ;;  %v3293_v51 = vld [vmem:[#allocation2 + $0x1cc] sm:$0xf]  ;;  %v2575_v55 = vor.u32 %v3327_v46, %v2574_v45  ;;  %v3307_v45 = vld [vmem:[#allocation2 + $0x234] sm:$0xf0] }
  0x4d   :  { %794 = vmatpush.bf16.msrb.mxu2 %v2239_v52  ;;  %v2448_v52 = vld [vmem:[#allocation2 + $0x1d8] sm:$0xf0]  ;;  %v3309_v37 = vld [vmem:[#allocation2 + $0x24c] sm:$0xf] }
  0x4f   :  { %769 = vmatpush.bf16.msrb.mxu0 %v2347_v59  ;;  %v2451_v59 = vor.u32 %v3293_v51, %v2448_v52  ;;  %v2368_v51 = vld [vmem:[#allocation2 + $0x138] sm:$0xf0]  ;;  %v3305_v52 = vld [vmem:[#allocation2 + $0x22c] sm:$0xf] }
  0x50   :  { %782 = vmatpush.bf16.msrb.mxu1 %v2475_v63  ;;  %808 = vmatpush.bf16.msrb.mxu3 %v2351_v3  ;;  %v3289_v63 = vld [vmem:[#allocation2 + $0x1ac] sm:$0xf]  ;;  %v2559_v3 = vor.u32 %v3323_v58, %v2558_v57  ;;  %v3303_v57 = vld [vmem:[#allocation2 + $0x214] sm:$0xf0] }
  0x51   :  { %795 = vmatpush.bf16.msrb.mxu2 %v2223_v0  ;;  %v2432_v0 = vld [vmem:[#allocation2 + $0x1b8] sm:$0xf0]  ;;  %v3237_v58 = vld [vmem:[#allocation2 + $0xc] sm:$0xf] }
  0x83   :  { %v83_v7 = vpop.permute.xlu0 %82 }
  0x84   :  { %v96_v8 = vmul.f32 %v90_v4, %v83_v7  ;;  %v97_v9 = vmul.f32 %v91_v5, %v83_v7  ;;  %v98_v10 = vmul.f32 %v92_v6, %v83_v7  ;;  %v2307_v4 = vor.u32 %v3257_v61, %v2304_v62  ;;  %v2542_v5 = vld [vmem:[#allocation2 + $0x288] sm:$0xf]  ;;  %v3319_v6 = vld [vmem:[#allocation2 + $0x294] sm:$0xf0]  ;;  %v2224_v61 = vld [vmem:[#allocation2 + $0x18] sm:$0xf0] }
  0x85   :  { %v2435_v7 = vor.u32 %v3289_v63, %v2432_v0  ;;  %v3269_v62 = vld [vmem:[#allocation2 + $0x10c] sm:$0xf]  ;;  %v2352_v63 = vld [vmem:[#allocation2 + $0x118] sm:$0xf0] }
  0x86   :  { %v100_v11 = vsel %vm99_vm0, %v96_v8, 0.0  ;;  %v107_v12 = vsel %vm99_vm0, %v97_v9, 0.0  ;;  %v114_v13 = vsel %vm99_vm0, %v98_v10, 0.0  ;;  %v2563_v8 = vor.u32 %v3321_v1, %v2560_v2  ;;  %v3253_v9 = vld [vmem:[#allocation2 + $0x8c] sm:$0xf] }
  0x87   :  { %v101_v14 = vrot.slane %v100_v11, 4  ;;  %v108_v15 = vrot.slane %v107_v12, 4  ;;  %v115_v16 = vrot.slane %v114_v13, 4  ;;  %v2288_v10 = vld [vmem:[#allocation2 + $0x98] sm:$0xf0] }
  0x88   :  { %v3301_v0 = vld [vmem:[#allocation2 + $0x20c] sm:$0xf]  ;;  %v2480_v1 = vld [vmem:[#allocation2 + $0x218] sm:$0xf0]  ;;  %v2710_v2 = vld [vmem:[#allocation5 + $0xe0] sm:$0xf] }
  0x89   :  { %v102_v17 = vadd.f32 %v101_v14, %v100_v11  ;;  %v109_v18 = vadd.f32 %v108_v15, %v107_v12  ;;  %v116_v19 = vadd.f32 %v115_v16, %v114_v13  ;;  %v3285_v11 = vld [vmem:[#allocation2 + $0x18c] sm:$0xf]  ;;  %v2416_v12 = vld [vmem:[#allocation2 + $0x198] sm:$0xf0]  ;;  %v2543_v15 = vor.u32 %v3319_v6, %v2542_v5  ;;  %v3394_v5 = vld [vmem:[#allocation5 + $0x1ec] sm:$0xf0] }
  0x8a   :  { %v3317_v13 = vld [vmem:[#allocation2 + $0x28c] sm:$0xf]  ;;  %v2544_v14 = vld [vmem:[#allocation2 + $0x298] sm:$0xf0]  ;;  %v2291_v16 = vor.u32 %v3253_v9, %v2288_v10  ;;  %v2483_v9 = vor.u32 %v3301_v0, %v2480_v1  ;;  %v2614_v1 = vld [vmem:[#allocation5 + $0x20] sm:$0xf] }
  0x8b   :  { %v103_v20 = vrot.slane %v102_v17, 2  ;;  %v110_v21 = vrot.slane %v109_v18, 2  ;;  %v117_v22 = vrot.slane %v116_v19, 2 }
  0x8d   :  { %v104_v23 = vadd.f32 %v103_v20, %v102_v17  ;;  %v111_v24 = vadd.f32 %v110_v21, %v109_v18  ;;  %v118_v25 = vadd.f32 %v117_v22, %v116_v19  ;;  %v2526_v17 = vld [vmem:[#allocation2 + $0x268] sm:$0xf]  ;;  %v3315_v18 = vld [vmem:[#allocation2 + $0x274] sm:$0xf0]  ;;  %v2419_v19 = vor.u32 %v3285_v11, %v2416_v12  ;;  %v3249_v21 = vld [vmem:[#allocation2 + $0x6c] sm:$0xf] }
  0x8e   :  { %v2547_v20 = vor.u32 %v3317_v13, %v2544_v14  ;;  %v2272_v22 = vld [vmem:[#allocation2 + $0x78] sm:$0xf0]  ;;  %v2694_v11 = vld [vmem:[#allocation5 + $0xc0] sm:$0xf]  ;;  %v3426_v14 = vld [vmem:[#allocation5 + $0x2ec] sm:$0xf0] }
  0x8f   :  { %v105_v27 = vrot.slane %v104_v23, 1  ;;  %v112_v28 = vrot.slane %v111_v24, 1  ;;  %v119_v29 = vrot.slane %v118_v25, 1  ;;  %v2966_v13 = vld [vmem:[#allocation5 + $0x2e0] sm:$0xf] }
  0x91   :  { %v106_v34 = vadd.f32 %v105_v27, %v104_v23  ;;  %v113_v35 = vadd.f32 %v112_v28, %v111_v24  ;;  %v120_v36 = vadd.f32 %v119_v29, %v118_v25  ;;  %v3281_v23 = vld [vmem:[#allocation2 + $0x16c] sm:$0xf]  ;;  %v2400_v24 = vld [vmem:[#allocation2 + $0x178] sm:$0xf0]  ;;  %v2527_v27 = vor.u32 %v3315_v18, %v2526_v17  ;;  %v2510_v29 = vld [vmem:[#allocation2 + $0x248] sm:$0xf] }
  0x92   :  { %v3313_v25 = vld [vmem:[#allocation2 + $0x26c] sm:$0xf]  ;;  %v2275_v28 = vor.u32 %v3249_v21, %v2272_v22  ;;  %v2403_v31 = vor.u32 %v3281_v23, %v2400_v24  ;;  %v2511_v39 = vor.u32 %v3311_v30, %v2510_v29  ;;  %v3390_v17 = vld [vmem:[#allocation5 + $0x1cc] sm:$0xf0]  ;;  %v2678_v18 = vld [vmem:[#allocation5 + $0xa0] sm:$0xf] }
  0x93   :  { %v3676_v41 = vpack.c.bf16 %v106_v34, %v106_v34  ;;  %v3678_v42 = vpack.c.bf16 %v113_v35, %v113_v35  ;;  %v3680_v43 = vpack.c.bf16 %v120_v36, %v120_v36  ;;  %v2531_v32 = vor.u32 %v3313_v25, %v2528_v26  ;;  %v2256_v34 = vld [vmem:[#allocation2 + $0x58] sm:$0xf0]  ;;  %v3277_v35 = vld [vmem:[#allocation2 + $0x14c] sm:$0xf]  ;;  %v3354_v21 = vld [vmem:[#allocation5 + $0xac] sm:$0xf0] }
  0x94   :  { %v2384_v36 = vld [vmem:[#allocation2 + $0x158] sm:$0xf0]  ;;  %v2950_v23 = vld [vmem:[#allocation5 + $0x2c0] sm:$0xf]  ;;  %v3422_v24 = vld [vmem:[#allocation5 + $0x2cc] sm:$0xf0] }
  0x95   :  { %718 = vmatmul.bf16.vlgmr.msra.gmra.mxu0 %v3676_v41  ;;  %731 = vmatmul.bf16.vlgmr.msra.gmra.mxu1 %v3678_v42  ;;  %v2387_v46 = vor.u32 %v3277_v35, %v2384_v36  ;;  %v2806_v25 = vld [vmem:[#allocation5 + $0x1a0] sm:$0xf]  ;;  %v3386_v26 = vld [vmem:[#allocation5 + $0x1ac] sm:$0xf0]  ;;  %v2951_v30 = vor.u32 %v3422_v24, %v2950_v23  ;;  %v3352_v23 = vld [vmem:[#allocation5 + $0xa4] sm:$0xf] }
  0x96   :  { %744 = vmatmul.bf16.vlgmr.msra.gmra.mxu2 %v3680_v43  ;;  %757 = vmatmul.bf16.vlgmr.msra.gmra.mxu3 %v3676_v41  ;;  %v2662_v29 = vld [vmem:[#allocation5 + $0x80] sm:$0xf]  ;;  %v3418_v36 = vld [vmem:[#allocation5 + $0x2ac] sm:$0xf0]  ;;  %v2680_v24 = vld [vmem:[#allocation5 + $0xb0] sm:$0xf0] }
  0x97   :  { %814 = vmatpush.bf16.msra.mxu0 %v2591_v40  ;;  %827 = vmatpush.bf16.msra.mxu1 %v2339_v44  ;;  %v2259_v40 = vor.u32 %v3245_v33, %v2256_v34  ;;  %v2494_v44 = vld [vmem:[#allocation2 + $0x228] sm:$0xf]  ;;  %v3350_v33 = vld [vmem:[#allocation5 + $0x8c] sm:$0xf0]  ;;  %v2807_v34 = vor.u32 %v3386_v26, %v2806_v25  ;;  %v2934_v35 = vld [vmem:[#allocation5 + $0x2a0] sm:$0xf]  ;;  %v2683_v25 = vor.u32 %v3352_v23, %v2680_v24 }
  0x98   :  { %840 = vmatpush.bf16.msra.mxu2 %v2467_v47  ;;  %853 = vmatpush.bf16.msra.mxu3 %v2595_v48  ;;  %v2515_v47 = vor.u32 %v3309_v37, %v2512_v38  ;;  %v3241_v48 = vld [vmem:[#allocation2 + $0x2c] sm:$0xf]  ;;  %v2495_v54 = vor.u32 %v3307_v45, %v2494_v44  ;;  %v3382_v37 = vld [vmem:[#allocation5 + $0x18c] sm:$0xf0]  ;;  %v3078_v38 = vld [vmem:[#allocation5 + $0x3c0] sm:$0xf] }
  0x99   :  { %v2646_v44 = vld [vmem:[#allocation5 + $0x60] sm:$0xf]  ;;  %v3348_v26 = vld [vmem:[#allocation5 + $0x84] sm:$0xf]  ;;  %v2936_v23 = vld [vmem:[#allocation5 + $0x2b0] sm:$0xf0] }
  0x9b   :  { %815 = vmatpush.bf16.msra.mxu0 %v2575_v55  ;;  %828 = vmatpush.bf16.msra.mxu1 %v2323_v56  ;;  %v2243_v55 = vor.u32 %v3241_v48, %v2240_v49  ;;  %v2478_v56 = vld [vmem:[#allocation2 + $0x208] sm:$0xf]  ;;  %v3346_v48 = vld [vmem:[#allocation5 + $0x6c] sm:$0xf0]  ;;  %v2774_v49 = vld [vmem:[#allocation5 + $0x160] sm:$0xf] }
  0x9c   :  { %841 = vmatpush.bf16.msra.mxu2 %v2451_v59  ;;  %854 = vmatpush.bf16.msra.mxu3 %v2579_v60  ;;  %v2371_v59 = vor.u32 %v3273_v50, %v2368_v51  ;;  %v2499_v60 = vor.u32 %v3305_v52, %v2496_v53  ;;  %v2479_v6 = vor.u32 %v3303_v57, %v2478_v56  ;;  %v3378_v50 = vld [vmem:[#allocation5 + $0x16c] sm:$0xf0]  ;;  %v3062_v51 = vld [vmem:[#allocation5 + $0x3a0] sm:$0xf] }
  0x9d   :  { %v3450_v52 = vld [vmem:[#allocation5 + $0x3ac] sm:$0xf0]  ;;  %v2630_v56 = vld [vmem:[#allocation5 + $0x40] sm:$0xf]  ;;  %v2775_v57 = vor.u32 %v3378_v50, %v2774_v49 }
  0x9e   :  { %v3030_v49 = vld [vmem:[#allocation5 + $0x360] sm:$0xf] }
  0x9f   :  { %816 = vmatpush.bf16.msra.mxu0 %v2559_v3  ;;  %829 = vmatpush.bf16.msra.mxu1 %v2307_v4  ;;  %v3362_v3 = vld [vmem:[#allocation5 + $0xec] sm:$0xf0]  ;;  %v2838_v4 = vld [vmem:[#allocation5 + $0x1e0] sm:$0xf] }
  0xa0   :  { %842 = vmatpush.bf16.msra.mxu2 %v2435_v7  ;;  %855 = vmatpush.bf16.msra.mxu3 %v2563_v8  ;;  %v2227_v7 = vor.u32 %v3237_v58, %v2224_v61  ;;  %v2355_v8 = vor.u32 %v3269_v62, %v2352_v63  ;;  %v2711_v10 = vor.u32 %v3362_v3, %v2710_v2  ;;  %v2902_v58 = vld [vmem:[#allocation5 + $0x260] sm:$0xf]  ;;  %v3374_v62 = vld [vmem:[#allocation5 + $0x14c] sm:$0xf0] }
  0xa1   :  { %v2839_v12 = vor.u32 %v3394_v5, %v2838_v4  ;;  %v2758_v61 = vld [vmem:[#allocation5 + $0x140] sm:$0xf]  ;;  %v3338_v3 = vld [vmem:[#allocation5 + $0x2c] sm:$0xf0] }
  0xa2   :  { %v2759_v2 = vor.u32 %v3374_v62, %v2758_v61  ;;  %v2742_v4 = vld [vmem:[#allocation5 + $0x120] sm:$0xf]  ;;  %v3370_v5 = vld [vmem:[#allocation5 + $0x12c] sm:$0xf0] }
  0xa3   :  { %817 = vmatpush.bf16.msra.mxu0 %v2543_v15  ;;  %830 = vmatpush.bf16.msra.mxu1 %v2291_v16  ;;  %v3358_v15 = vld [vmem:[#allocation5 + $0xcc] sm:$0xf0]  ;;  %v2822_v16 = vld [vmem:[#allocation5 + $0x1c0] sm:$0xf] }
  0xa4   :  { %843 = vmatpush.bf16.msra.mxu2 %v2419_v19  ;;  %856 = vmatpush.bf16.msra.mxu3 %v2547_v20  ;;  %v2967_v19 = vor.u32 %v3426_v14, %v2966_v13  ;;  %v2695_v20 = vor.u32 %v3358_v15, %v2694_v11  ;;  %v2823_v22 = vor.u32 %v3390_v17, %v2822_v16  ;;  %v2726_v11 = vld [vmem:[#allocation5 + $0x100] sm:$0xf]  ;;  %v2712_v13 = vld [vmem:[#allocation5 + $0xf0] sm:$0xf0]  ;;  %v3392_v14 = vld [vmem:[#allocation5 + $0x1e4] sm:$0xf] }
  0xa5   :  { %770 = vmatmul.bf16.vlgmr.msrb.gmra.mxu0 %v3678_v42  ;;  %783 = vmatmul.bf16.vlgmr.msrb.gmra.mxu1 %v3680_v43  ;;  %v2840_v15 = vld [vmem:[#allocation5 + $0x1f0] sm:$0xf0]  ;;  %v3014_v62 = vld [vmem:[#allocation5 + $0x340] sm:$0xf] }
  0xa6   :  { %796 = vmatmul.bf16.vlgmr.msrb.gmra.mxu2 %v3676_v41  ;;  %809 = vmatmul.bf16.vlgmr.msrb.gmra.mxu3 %v3678_v42 }
  0xa7   :  { %818 = vmatpush.bf16.msra.mxu0 %v2527_v27  ;;  %831 = vmatpush.bf16.msra.mxu1 %v2275_v28  ;;  %v3094_v27 = vld [vmem:[#allocation5 + $0x3e0] sm:$0xf]  ;;  %v3458_v28 = vld [vmem:[#allocation5 + $0x3ec] sm:$0xf0] }
  0xa8   :  { %844 = vmatpush.bf16.msra.mxu2 %v2403_v31  ;;  %857 = vmatpush.bf16.msra.mxu3 %v2531_v32  ;;  %v3095_v31 = vor.u32 %v3458_v28, %v3094_v27  ;;  %v2679_v32 = vor.u32 %v3354_v21, %v2678_v18  ;;  %v2696_v21 = vld [vmem:[#allocation5 + $0xd0] sm:$0xf0] }
  0xa9   :  { %v2664_v27 = vld [vmem:[#allocation5 + $0x90] sm:$0xf0] }
  0xaa   :  { %v2667_v28 = vor.u32 %v3348_v26, %v2664_v27  ;;  %v3096_v26 = vld [vmem:[#allocation5 + $0x3f0] sm:$0xf0] }
  0xab   :  { %819 = vmatpush.bf16.msra.mxu0 %v2511_v39  ;;  %832 = vmatpush.bf16.msra.mxu1 %v2259_v40  ;;  %v3454_v39 = vld [vmem:[#allocation5 + $0x3cc] sm:$0xf0]  ;;  %v2663_v40 = vor.u32 %v3350_v33, %v2662_v29  ;;  %v3344_v29 = vld [vmem:[#allocation5 + $0x64] sm:$0xf]  ;;  %v2824_v33 = vld [vmem:[#allocation5 + $0x1d0] sm:$0xf0] }
  0xac   :  { %845 = vmatpush.bf16.msra.mxu2 %v2387_v46  ;;  %858 = vmatpush.bf16.msra.mxu3 %v2515_v47  ;;  %v2918_v46 = vld [vmem:[#allocation5 + $0x280] sm:$0xf]  ;;  %v3414_v47 = vld [vmem:[#allocation5 + $0x28c] sm:$0xf0] }
  0xad   :  { %v2919_v53 = vor.u32 %v3414_v47, %v2918_v46  ;;  %v2870_v47 = vld [vmem:[#allocation5 + $0x220] sm:$0xf] }
  0xaf   :  { %820 = vmatpush.bf16.msra.mxu0 %v2495_v54  ;;  %833 = vmatpush.bf16.msra.mxu1 %v2243_v55  ;;  %v3063_v54 = vor.u32 %v3450_v52, %v3062_v51  ;;  %v2647_v55 = vor.u32 %v3346_v48, %v2646_v44  ;;  %v3402_v48 = vld [vmem:[#allocation5 + $0x22c] sm:$0xf0] }
  0xb0   :  { %846 = vmatpush.bf16.msra.mxu2 %v2371_v59  ;;  %859 = vmatpush.bf16.msra.mxu3 %v2499_v60  ;;  %v3410_v59 = vld [vmem:[#allocation5 + $0x26c] sm:$0xf0]  ;;  %v2871_v50 = vor.u32 %v3402_v48, %v2870_v47  ;;  %v3404_v48 = vld [vmem:[#allocation5 + $0x244] sm:$0xf] }
  0xb1   :  { %v3342_v60 = vld [vmem:[#allocation5 + $0x4c] sm:$0xf0]  ;;  %v2903_v63 = vor.u32 %v3410_v59, %v2902_v58  ;;  %v2854_v58 = vld [vmem:[#allocation5 + $0x200] sm:$0xf] }
  0xb2   :  { %v2631_v0 = vor.u32 %v3342_v60, %v2630_v56  ;;  %v3442_v51 = vld [vmem:[#allocation5 + $0x36c] sm:$0xf0] }
  0xb3   :  { %821 = vmatpush.bf16.msra.mxu0 %v2479_v6  ;;  %834 = vmatpush.bf16.msra.mxu1 %v2227_v7  ;;  %v2615_v6 = vor.u32 %v3338_v3, %v2614_v1  ;;  %v2598_v7 = vld [vmem:[#allocation5] sm:$0xf]  ;;  %v3031_v52 = vor.u32 %v3442_v51, %v3030_v49  ;;  %v3398_v59 = vld [vmem:[#allocation5 + $0x20c] sm:$0xf0]  ;;  %v2888_v49 = vld [vmem:[#allocation5 + $0x250] sm:$0xf0] }
  0xb4   :  { %847 = vmatpush.bf16.msra.mxu2 %v2355_v8  ;;  %860 = vmatpush.bf16.msra.mxu3 %v2483_v9  ;;  %v3334_v8 = vld [vmem:[#allocation5 + $0xc] sm:$0xf0]  ;;  %v2743_v9 = vor.u32 %v3370_v5, %v2742_v4  ;;  %v2855_v61 = vor.u32 %v3398_v59, %v2854_v58  ;;  %v3332_v4 = vld [vmem:[#allocation5 + $0x4] sm:$0xf]  ;;  %v2600_v5 = vld [vmem:[#allocation5 + $0x10] sm:$0xf0] }
  0xb5   :  { %v2599_v16 = vor.u32 %v3334_v8, %v2598_v7  ;;  %v2603_v7 = vor.u32 %v3332_v4, %v2600_v5  ;;  %v2776_v8 = vld [vmem:[#allocation5 + $0x170] sm:$0xf0]  ;;  %v3444_v51 = vld [vmem:[#allocation5 + $0x384] sm:$0xf] }
  0xb6   :  { %822 = vmatmul.bf16.vlgmr.msra.gmra.mxu0 %v3680_v43  ;;  %835 = vmatmul.bf16.vlgmr.msra.gmra.mxu1 %v3676_v41  ;;  %v2790_v41 = vld [vmem:[#allocation5 + $0x180] sm:$0xf]  ;;  %v2872_v58 = vld [vmem:[#allocation5 + $0x230] sm:$0xf0]  ;;  %v3440_v59 = vld [vmem:[#allocation5 + $0x364] sm:$0xf] }
  0xb7   :  { %1660 = vmatpush.bf16.msrb.mxu0 %v2711_v10  ;;  %1673 = vmatpush.bf16.msrb.mxu1 %v2839_v12  ;;  %v2791_v45 = vor.u32 %v3382_v37, %v2790_v41  ;;  %v3360_v10 = vld [vmem:[#allocation5 + $0xe4] sm:$0xf]  ;;  %v3366_v12 = vld [vmem:[#allocation5 + $0x10c] sm:$0xf0]  ;;  %v3046_v37 = vld [vmem:[#allocation5 + $0x380] sm:$0xf] }
  0xb8   :  { %848 = vmatmul.bf16.vlgmr.msra.gmra.mxu2 %v3678_v42  ;;  %861 = vmatmul.bf16.vlgmr.msra.gmra.mxu3 %v3680_v43  ;;  %v2935_v42 = vor.u32 %v3418_v36, %v2934_v35  ;;  %v3079_v43 = vor.u32 %v3454_v39, %v3078_v38  ;;  %v2727_v17 = vor.u32 %v3366_v12, %v2726_v11  ;;  %v3406_v35 = vld [vmem:[#allocation5 + $0x24c] sm:$0xf0]  ;;  %v3436_v5 = vld [vmem:[#allocation5 + $0x344] sm:$0xf] }
  0xb9   :  { %1686 = vmatpush.bf16.msrb.mxu2 %v2967_v19  ;;  %1699 = vmatpush.bf16.msrb.mxu3 %v3095_v31  ;;  %v2715_v18 = vor.u32 %v3360_v10, %v2712_v13  ;;  %v2843_v19 = vor.u32 %v3392_v14, %v2840_v15  ;;  %v3388_v31 = vld [vmem:[#allocation5 + $0x1c4] sm:$0xf]  ;;  %v3446_v38 = vld [vmem:[#allocation5 + $0x38c] sm:$0xf0]  ;;  %v2952_v14 = vld [vmem:[#allocation5 + $0x2d0] sm:$0xf0] }
  0xba   :  { %v2827_v36 = vor.u32 %v3388_v31, %v2824_v33  ;;  %v3047_v39 = vor.u32 %v3446_v38, %v3046_v37  ;;  %v3434_v10 = vld [vmem:[#allocation5 + $0x32c] sm:$0xf0]  ;;  %v3420_v13 = vld [vmem:[#allocation5 + $0x2c4] sm:$0xf]  ;;  %v2728_v37 = vld [vmem:[#allocation5 + $0x110] sm:$0xf0] }
  0xbb   :  { %1661 = vmatpush.bf16.msrb.mxu0 %v2695_v20  ;;  %1674 = vmatpush.bf16.msrb.mxu1 %v2823_v22  ;;  %v3356_v20 = vld [vmem:[#allocation5 + $0xc4] sm:$0xf]  ;;  %v2955_v15 = vor.u32 %v3420_v13, %v2952_v14 }
  0xbc   :  { %v2699_v22 = vor.u32 %v3356_v20, %v2696_v21  ;;  %v3430_v20 = vld [vmem:[#allocation5 + $0x30c] sm:$0xf0]  ;;  %v3412_v31 = vld [vmem:[#allocation5 + $0x284] sm:$0xf] }
  0xbd   :  { %1687 = vmatpush.bf16.msrb.mxu2 %v2951_v30  ;;  %1700 = vmatpush.bf16.msrb.mxu3 %v3079_v43  ;;  %v2648_v30 = vld [vmem:[#allocation5 + $0x70] sm:$0xf0]  ;;  %v3452_v33 = vld [vmem:[#allocation5 + $0x3c4] sm:$0xf] }
  0xbe   :  { %v2632_v43 = vld [vmem:[#allocation5 + $0x50] sm:$0xf0]  ;;  %v3432_v14 = vld [vmem:[#allocation5 + $0x324] sm:$0xf] }
  0xbf   :  { %1662 = vmatpush.bf16.msrb.mxu0 %v2679_v32  ;;  %1675 = vmatpush.bf16.msrb.mxu1 %v2807_v34  ;;  %v2651_v32 = vor.u32 %v3344_v29, %v2648_v30  ;;  %v2886_v34 = vld [vmem:[#allocation5 + $0x240] sm:$0xf]  ;;  %v2744_v29 = vld [vmem:[#allocation5 + $0x130] sm:$0xf0] }
  0xc0   :  { %v2887_v41 = vor.u32 %v3406_v35, %v2886_v34  ;;  %v3080_v35 = vld [vmem:[#allocation5 + $0x3d0] sm:$0xf0] }
  0xc1   :  { %1688 = vmatpush.bf16.msrb.mxu2 %v2935_v42  ;;  %1701 = vmatpush.bf16.msrb.mxu3 %v3063_v54  ;;  %v3340_v42 = vld [vmem:[#allocation5 + $0x44] sm:$0xf]  ;;  %v2616_v54 = vld [vmem:[#allocation5 + $0x30] sm:$0xf0] }
  0xc2   :  { %v2635_v44 = vor.u32 %v3340_v42, %v2632_v43  ;;  %v2904_v42 = vld [vmem:[#allocation5 + $0x270] sm:$0xf0]  ;;  %v3697_v43 = vld [vmem:[%s3745_s3] sm:$0xf] }
  0xc3   :  { %1663 = vmatpush.bf16.msrb.mxu0 %v2663_v40  ;;  %1676 = vmatpush.bf16.msrb.mxu1 %v2791_v45  ;;  %v3384_v40 = vld [vmem:[#allocation5 + $0x1a4] sm:$0xf]  ;;  %v2808_v45 = vld [vmem:[#allocation5 + $0x1b0] sm:$0xf0]  ;;  %v702_v47 = vperm.slane %v3697_v43, 0 }
  0xc4   :  { %v2811_v46 = vor.u32 %v3384_v40, %v2808_v45  ;;  %v3064_v45 = vld [vmem:[#allocation5 + $0x3b0] sm:$0xf0] }
  0xc5   :  { %1689 = vmatpush.bf16.msrb.mxu2 %v2919_v53  ;;  %1702 = vmatpush.bf16.msrb.mxu3 %v3047_v39  ;;  %v3336_v53 = vld [vmem:[#allocation5 + $0x24] sm:$0xf] }
  0xc6   :  { %v2619_v56 = vor.u32 %v3336_v53, %v2616_v54  ;;  %v3408_v39 = vld [vmem:[#allocation5 + $0x264] sm:$0xf] }
  0xc7   :  { %1664 = vmatpush.bf16.msrb.mxu0 %v2647_v55  ;;  %1677 = vmatpush.bf16.msrb.mxu1 %v2775_v57  ;;  %v3380_v55 = vld [vmem:[#allocation5 + $0x184] sm:$0xf]  ;;  %v2792_v57 = vld [vmem:[#allocation5 + $0x190] sm:$0xf0]  ;;  %v2907_v40 = vor.u32 %v3408_v39, %v2904_v42  ;;  %v2670_v39 = vld [vmem:[#allocation5 + $0x88] sm:$0xf] }
  0xc8   :  { %v2795_v60 = vor.u32 %v3380_v55, %v2792_v57  ;;  %v3400_v57 = vld [vmem:[#allocation5 + $0x224] sm:$0xf]  ;;  %v3351_v42 = vld [vmem:[#allocation5 + $0x94] sm:$0xf0] }
  0xc9   :  { %1690 = vmatpush.bf16.msrb.mxu2 %v2903_v63  ;;  %1703 = vmatpush.bf16.msrb.mxu3 %v3031_v52  ;;  %v3438_v63 = vld [vmem:[#allocation5 + $0x34c] sm:$0xf0]  ;;  %v3048_v52 = vld [vmem:[#allocation5 + $0x390] sm:$0xf0] }
  0xca   :  { %v3015_v1 = vor.u32 %v3438_v63, %v3014_v62  ;;  %v3051_v55 = vor.u32 %v3444_v51, %v3048_v52  ;;  %v2671_v51 = vor.u32 %v3351_v42, %v2670_v39  ;;  %v2830_v52 = vld [vmem:[#allocation5 + $0x1c8] sm:$0xf]  ;;  %v3357_v39 = vld [vmem:[#allocation5 + $0xcc] sm:$0xf]  ;;  %v2704_v42 = vld [vmem:[#allocation5 + $0xd8] sm:$0xf0] }
  0xcb   :  { %1665 = vmatpush.bf16.msrb.mxu0 %v2631_v0  ;;  %1678 = vmatpush.bf16.msrb.mxu1 %v2759_v2  ;;  %v3424_v0 = vld [vmem:[#allocation5 + $0x2e4] sm:$0xf]  ;;  %v2968_v2 = vld [vmem:[#allocation5 + $0x2f0] sm:$0xf0] }
  0xcc   :  { %v2971_v3 = vor.u32 %v3424_v0, %v2968_v2  ;;  %v3396_v0 = vld [vmem:[#allocation5 + $0x204] sm:$0xf] }
  0xcd   :  { %1691 = vmatpush.bf16.msrb.mxu2 %v2887_v41  ;;  %1704 = vmatpush.bf16.msrb.mxu3 %v3015_v1  ;;  %v3364_v41 = vld [vmem:[#allocation5 + $0x104] sm:$0xf]  ;;  %v2856_v1 = vld [vmem:[#allocation5 + $0x210] sm:$0xf0] }
  0xce   :  { %v2731_v38 = vor.u32 %v3364_v41, %v2728_v37  ;;  %v2859_v4 = vor.u32 %v3396_v0, %v2856_v1  ;;  %v2846_v41 = vld [vmem:[#allocation5 + $0x1e8] sm:$0xf]  ;;  %v3395_v37 = vld [vmem:[#allocation5 + $0x1f4] sm:$0xf0] }
  0xcf   :  { %1666 = vmatpush.bf16.msrb.mxu0 %v2615_v6  ;;  %1679 = vmatpush.bf16.msrb.mxu1 %v2743_v9  ;;  %v3376_v6 = vld [vmem:[#allocation5 + $0x164] sm:$0xf]  ;;  %v2998_v9 = vld [vmem:[#allocation5 + $0x320] sm:$0xf] }
  0xd0   :  { %v2779_v11 = vor.u32 %v3376_v6, %v2776_v8  ;;  %v2999_v12 = vor.u32 %v3434_v10, %v2998_v9  ;;  %v3016_v6 = vld [vmem:[#allocation5 + $0x350] sm:$0xf0] }
  0xd1   :  { %1692 = vmatpush.bf16.msrb.mxu2 %v2871_v50  ;;  %v2891_v50 = vor.u32 %v3404_v48, %v2888_v49  ;;  %v3019_v10 = vor.u32 %v3436_v5, %v3016_v6  ;;  %v704_v48 = vperm.slane %v3697_v43, 2  ;;  %v3383_v5 = vld [vmem:[#allocation5 + $0x194] sm:$0xf0] }
  0xd2   :  { %1705 = vmatpush.bf16.msrb.mxu3 %v2999_v12  ;;  %v3363_v12 = vld [vmem:[#allocation5 + $0xf4] sm:$0xf0] }
  0xd3   :  { %1667 = vmatpush.bf16.msrb.mxu0 %v2599_v16  ;;  %1680 = vmatpush.bf16.msrb.mxu1 %v2727_v17  ;;  %v3372_v16 = vld [vmem:[#allocation5 + $0x144] sm:$0xf]  ;;  %v2760_v17 = vld [vmem:[#allocation5 + $0x150] sm:$0xf0] }
  0xd5   :  { %1693 = vmatpush.bf16.msrb.mxu2 %v2855_v61  ;;  %v2875_v61 = vor.u32 %v3400_v57, %v2872_v58 }
  0xd7   :  { %1712 = vmatpush.bf16.msra.mxu0 %v2715_v18  ;;  %1725 = vmatpush.bf16.msra.mxu1 %v2843_v19  ;;  %v2763_v18 = vor.u32 %v3372_v16, %v2760_v17  ;;  %v2982_v19 = vld [vmem:[#allocation5 + $0x300] sm:$0xf]  ;;  %v3000_v16 = vld [vmem:[#allocation5 + $0x330] sm:$0xf0] }
  0xd8   :  { %v2983_v21 = vor.u32 %v3430_v20, %v2982_v19  ;;  %v3003_v19 = vor.u32 %v3432_v14, %v3000_v16  ;;  %v3427_v14 = vld [vmem:[#allocation5 + $0x2f4] sm:$0xf0] }
  0xd9   :  { %1738 = vmatpush.bf16.msra.mxu2 %v2971_v3 }
  0xda   :  { %1706 = vmatpush.bf16.msrb.mxu3 %v2983_v21  ;;  %v2702_v21 = vld [vmem:[#allocation5 + $0xc8] sm:$0xf] }
  0xdb   :  { %1713 = vmatpush.bf16.msra.mxu0 %v2699_v22  ;;  %1726 = vmatpush.bf16.msra.mxu1 %v2827_v36  ;;  %v3416_v22 = vld [vmem:[#allocation5 + $0x2a4] sm:$0xf]  ;;  %v3083_v36 = vor.u32 %v3452_v33, %v3080_v35  ;;  %v2686_v33 = vld [vmem:[#allocation5 + $0xa8] sm:$0xf] }
  0xdc   :  { %v2939_v24 = vor.u32 %v3416_v22, %v2936_v23  ;;  %v3359_v22 = vld [vmem:[#allocation5 + $0xd4] sm:$0xf0]  ;;  %v3428_v23 = vld [vmem:[#allocation5 + $0x304] sm:$0xf] }
  0xdd   :  { %1739 = vmatpush.bf16.msra.mxu2 %v2955_v15  ;;  %v703_v15 = vperm.slane %v3697_v43, 1 }
  0xdf   :  { %1714 = vmatpush.bf16.msra.mxu0 %v2683_v25  ;;  %1727 = vmatpush.bf16.msra.mxu1 %v2811_v46  ;;  %v3456_v25 = vld [vmem:[#allocation5 + $0x3e4] sm:$0xf] }
  0xe0   :  { %v3099_v27 = vor.u32 %v3456_v25, %v3096_v26 }
  0xe1   :  { %1740 = vmatpush.bf16.msra.mxu2 %v2939_v24  ;;  %v2984_v24 = vld [vmem:[#allocation5 + $0x310] sm:$0xf0] }
  0xe2   :  { %1751 = vmatpush.bf16.msra.mxu3 %v3099_v27 }
  0xe3   :  { %1715 = vmatpush.bf16.msra.mxu0 %v2667_v28  ;;  %1728 = vmatpush.bf16.msra.mxu1 %v2795_v60  ;;  %v3368_v28 = vld [vmem:[#allocation5 + $0x124] sm:$0xf]  ;;  %v3032_v60 = vld [vmem:[#allocation5 + $0x370] sm:$0xf0] }
  0xe4   :  { %v2747_v30 = vor.u32 %v3368_v28, %v2744_v29  ;;  %v3035_v62 = vor.u32 %v3440_v59, %v3032_v60  ;;  %v2987_v28 = vor.u32 %v3428_v23, %v2984_v24  ;;  %v2814_v59 = vld [vmem:[#allocation5 + $0x1a8] sm:$0xf]  ;;  %v3387_v60 = vld [vmem:[#allocation5 + $0x1b4] sm:$0xf0]  ;;  %v3361_v24 = vld [vmem:[#allocation5 + $0xec] sm:$0xf] }
  0xe5   :  { %v2815_v1 = vor.u32 %v3387_v60, %v2814_v59  ;;  %v2926_v60 = vld [vmem:[#allocation5 + $0x288] sm:$0xf] }
  0xe6   :  { %1752 = vmatpush.bf16.msra.mxu3 %v3083_v36 }
  0xe7   :  { %1716 = vmatpush.bf16.msra.mxu0 %v2651_v32  ;;  %1729 = vmatpush.bf16.msra.mxu1 %v2779_v11  ;;  %v2920_v32 = vld [vmem:[#allocation5 + $0x290] sm:$0xf0]  ;;  %v2718_v11 = vld [vmem:[#allocation5 + $0xe8] sm:$0xf] }
  0xe8   :  { %v2923_v34 = vor.u32 %v3412_v31, %v2920_v32  ;;  %v2703_v31 = vor.u32 %v3359_v22, %v2702_v21  ;;  %v3335_v21 = vld [vmem:[#allocation5 + $0x14] sm:$0xf0] }
  0xea   :  { %1741 = vmatpush.bf16.msra.mxu2 %v2923_v34  ;;  %v3355_v34 = vld [vmem:[#allocation5 + $0xb4] sm:$0xf0] }
  0xeb   :  { %1717 = vmatpush.bf16.msra.mxu0 %v2635_v44  ;;  %1730 = vmatpush.bf16.msra.mxu1 %v2763_v18  ;;  %v3448_v44 = vld [vmem:[#allocation5 + $0x3a4] sm:$0xf]  ;;  %v2719_v18 = vor.u32 %v3363_v12, %v2718_v11  ;;  %v2687_v36 = vor.u32 %v3355_v34, %v2686_v33  ;;  %v705_v11 = vperm.slane %v3697_v43, 3  ;;  %v2766_v33 = vld [vmem:[#allocation5 + $0x148] sm:$0xf] }
  0xec   :  { %v3067_v46 = vor.u32 %v3448_v44, %v3064_v45  ;;  %v3375_v34 = vld [vmem:[#allocation5 + $0x154] sm:$0xf0] }
  0xee   :  { %1742 = vmatpush.bf16.msra.mxu2 %v2907_v40  ;;  %1753 = vmatpush.bf16.msra.mxu3 %v3067_v46  ;;  %v2847_v46 = vor.u32 %v3395_v37, %v2846_v41 }
  0xef   :  { %1718 = vmatpush.bf16.msra.mxu0 %v2619_v56  ;;  %1731 = vmatpush.bf16.msra.mxu1 %v2747_v30 }
  0xf2   :  { %1743 = vmatpush.bf16.msra.mxu2 %v2891_v50  ;;  %1754 = vmatpush.bf16.msra.mxu3 %v3051_v55  ;;  %v3347_v55 = vld [vmem:[#allocation5 + $0x74] sm:$0xf0] }
  0xf3   :  { %1719 = vmatpush.bf16.msra.mxu0 %v2603_v7  ;;  %1732 = vmatpush.bf16.msra.mxu1 %v2731_v38 }
  0xf6   :  { %1744 = vmatpush.bf16.msra.mxu2 %v2875_v61  ;;  %1755 = vmatpush.bf16.msra.mxu3 %v3035_v62  ;;  %v2638_v61 = vld [vmem:[#allocation5 + $0x48] sm:$0xf]  ;;  %v3343_v62 = vld [vmem:[#allocation5 + $0x54] sm:$0xf0] }
  0xfa   :  { %1745 = vmatpush.bf16.msra.mxu2 %v2859_v4  ;;  %1756 = vmatpush.bf16.msra.mxu3 %v3019_v10  ;;  %v2798_v4 = vld [vmem:[#allocation5 + $0x188] sm:$0xf] }
  0xfb   :  { %v2799_v12 = vor.u32 %v3383_v5, %v2798_v4  ;;  %v3367_v4 = vld [vmem:[#allocation5 + $0x114] sm:$0xf0] }
  0xfe   :  { %1757 = vmatpush.bf16.msra.mxu3 %v3003_v19  ;;  %v2606_v19 = vld [vmem:[#allocation5 + $0x8] sm:$0xf] }
 0x102   :  { %1758 = vmatpush.bf16.msra.mxu3 %v2987_v28  ;;  %v2958_v28 = vld [vmem:[#allocation5 + $0x2c8] sm:$0xf] }
 0x112   :  { %v719_v53 = vpop.f32.mrf.mxu0  ;;  %v732_v54 = vpop.f32.mrf.mxu1 }
 0x113   :  { %v720_v56 = vadd.f32 %v719_v53, %v702_v47  ;;  %v3391_v53 = vld [vmem:[#allocation5 + $0x1d4] sm:$0xf0] }
 0x115   :  { %v733_v63 = vadd.f32 %v732_v54, %v720_v56  ;;  %v2654_v54 = vld [vmem:[#allocation5 + $0x68] sm:$0xf]  ;;  %v2831_v56 = vor.u32 %v3391_v53, %v2830_v52  ;;  %v2707_v53 = vor.u32 %v3357_v39, %v2704_v42 }
 0x116   :  { %v2655_v58 = vor.u32 %v3347_v55, %v2654_v54  ;;  %v3353_v55 = vld [vmem:[#allocation5 + $0xac] sm:$0xf]  ;;  %v3038_v42 = vld [vmem:[#allocation5 + $0x368] sm:$0xf] }
 0x119   :  { %v745_v2 = vpop.f32.mrf.mxu2  ;;  %v758_v3 = vpop.f32.mrf.mxu3 }
 0x11a   :  { %v746_v7 = vadd.f32 %v745_v2, %v733_v63  ;;  %v721_v8 = vpop.f32.mrf.mxu0  ;;  %v734_v9 = vpop.f32.mrf.mxu1  ;;  %v759_v25 = vadd.f32 %v758_v3, %v703_v15  ;;  %v2639_v3 = vor.u32 %v3343_v62, %v2638_v61  ;;  %v3415_v61 = vld [vmem:[#allocation5 + $0x294] sm:$0xf0]  ;;  %v3086_v62 = vld [vmem:[#allocation5 + $0x3c8] sm:$0xf] }
 0x11b   :  { %v2622_v8 = vld [vmem:[#allocation5 + $0x28] sm:$0xf]  ;;  %v3339_v9 = vld [vmem:[#allocation5 + $0x34] sm:$0xf0] }
 0x11c   :  { %vm866_vm1 = vcmp.ge.f32.partialorder %v746_v7, 0.0  ;;  %v870_v13 = vmul.f32 0.25, %v746_v7  ;;  %v2623_v16 = vor.u32 %v3339_v9, %v2622_v8  ;;  %v2927_v8 = vor.u32 %v3415_v61, %v2926_v60  ;;  %v3349_v9 = vld [vmem:[#allocation5 + $0x8c] sm:$0xf]  ;;  %v2784_v61 = vld [vmem:[#allocation5 + $0x178] sm:$0xf0] }
 0x11d   :  { %v3377_v60 = vld [vmem:[#allocation5 + $0x16c] sm:$0xf] }
 0x11e   :  { %v874_v17 = vsel %vm866_vm1, %v746_v7, %v870_v13  ;;  %v2974_v13 = vld [vmem:[#allocation5 + $0x2e8] sm:$0xf] }
 0x11f   :  { %v3701_v20 = vpack.c.bf16 %v874_v17, %v874_v17  ;;  %v2782_v17 = vld [vmem:[#allocation5 + $0x168] sm:$0xf]  ;;  %v2975_v23 = vor.u32 %v3427_v14, %v2974_v13  ;;  %v3411_v14 = vld [vmem:[#allocation5 + $0x274] sm:$0xf0] }
 0x120   :  { %v2910_v13 = vld [vmem:[#allocation5 + $0x268] sm:$0xf] }
 0x121   :  { %v747_v26 = vpop.f32.mrf.mxu2  ;;  %v760_v27 = vpop.f32.mrf.mxu3  ;;  %1668 = vmatmul.bf16.vlgmr.msrb.gmra.mxu0 %v3701_v20 }
 0x122   :  { %1764 = vmatpush.bf16.msrb.mxu0 %v2719_v18  ;;  %v771_v29 = vpop.f32.mrf.mxu0  ;;  %v784_v30 = vpop.f32.mrf.mxu1  ;;  %v3379_v18 = vld [vmem:[#allocation5 + $0x174] sm:$0xf0] }
 0x123   :  { %v772_v32 = vadd.f32 %v771_v29, %v759_v25  ;;  %v2720_v25 = vld [vmem:[#allocation5 + $0xf8] sm:$0xf0]  ;;  %v2783_v43 = vor.u32 %v3379_v18, %v2782_v17  ;;  %v3423_v29 = vld [vmem:[#allocation5 + $0x2d4] sm:$0xf0] }
 0x124   :  { %v2723_v37 = vor.u32 %v3361_v24, %v2720_v25  ;;  %v3451_v17 = vld [vmem:[#allocation5 + $0x3b4] sm:$0xf0]  ;;  %v2656_v24 = vld [vmem:[#allocation5 + $0x78] sm:$0xf0] }
 0x125   :  { %v785_v35 = vadd.f32 %v784_v30, %v772_v32  ;;  %v2607_v32 = vor.u32 %v3335_v21, %v2606_v19  ;;  %v3389_v19 = vld [vmem:[#allocation5 + $0x1cc] sm:$0xf]  ;;  %v2832_v21 = vld [vmem:[#allocation5 + $0x1d8] sm:$0xf0] }
 0x126   :  { %1765 = vmatpush.bf16.msrb.mxu0 %v2703_v31 }
 0x127   :  { %vm867_vm2 = vcmp.ge.f32.partialorder %v785_v35, 0.0  ;;  %v871_v38 = vmul.f32 0.25, %v785_v35 }
 0x129   :  { %v875_v40 = vsel %vm867_vm2, %v785_v35, %v871_v38  ;;  %v797_v44 = vpop.f32.mrf.mxu2  ;;  %v810_v45 = vpop.f32.mrf.mxu3  ;;  %v2959_v38 = vor.u32 %v3423_v29, %v2958_v28  ;;  %v2835_v28 = vor.u32 %v3389_v19, %v2832_v21  ;;  %v3054_v29 = vld [vmem:[#allocation5 + $0x388] sm:$0xf]  ;;  %v3457_v19 = vld [vmem:[#allocation5 + $0x3ec] sm:$0xf]  ;;  %v3104_v21 = vld [vmem:[#allocation5 + $0x3f8] sm:$0xf0] }
 0x12a   :  { %v3704_v47 = vpack.c.bf16 %v875_v40, %v875_v40  ;;  %1766 = vmatpush.bf16.msrb.mxu0 %v2687_v36  ;;  %v773_v49 = vpop.f32.mrf.mxu0  ;;  %v786_v50 = vpop.f32.mrf.mxu1  ;;  %v798_v57 = vadd.f32 %v797_v44, %v704_v48  ;;  %v2767_v44 = vor.u32 %v3375_v34, %v2766_v33  ;;  %v3102_v48 = vld [vmem:[#allocation5 + $0x3e8] sm:$0xf]  ;;  %v2816_v33 = vld [vmem:[#allocation5 + $0x1b8] sm:$0xf0] }
 0x12b   :  { %v3459_v49 = vld [vmem:[#allocation5 + $0x3f4] sm:$0xf0]  ;;  %v2750_v50 = vld [vmem:[#allocation5 + $0x128] sm:$0xf] }
 0x12c   :  { %1681 = vmatmul.bf16.vlgmr.msrb.gmra.mxu1 %v3704_v47  ;;  %v811_v2 = vadd.f32 %v810_v45, %v798_v57  ;;  %v2942_v45 = vld [vmem:[#allocation5 + $0x2a8] sm:$0xf] }
 0x12d   :  { %1777 = vmatpush.bf16.msrb.mxu1 %v2847_v46  ;;  %v3419_v46 = vld [vmem:[#allocation5 + $0x2b4] sm:$0xf0] }
 0x12e   :  { %1767 = vmatpush.bf16.msrb.mxu0 %v2671_v51  ;;  %v3371_v51 = vld [vmem:[#allocation5 + $0x134] sm:$0xf0]  ;;  %v2943_v54 = vor.u32 %v3419_v46, %v2942_v45  ;;  %v3381_v45 = vld [vmem:[#allocation5 + $0x18c] sm:$0xf]  ;;  %v2800_v46 = vld [vmem:[#allocation5 + $0x198] sm:$0xf0] }
 0x12f   :  { %v2751_v59 = vor.u32 %v3371_v51, %v2750_v50  ;;  %v2624_v50 = vld [vmem:[#allocation5 + $0x38] sm:$0xf0] }
 0x131   :  { %v799_v63 = vpop.f32.mrf.mxu2  ;;  %v812_v0 = vpop.f32.mrf.mxu3  ;;  %1720 = vmatmul.bf16.vlgmr.msra.gmra.mxu0 %v3701_v20  ;;  %1778 = vmatpush.bf16.msrb.mxu1 %v2831_v56  ;;  %v2688_v56 = vld [vmem:[#allocation5 + $0xb8] sm:$0xf0] }
 0x132   :  { %1768 = vmatpush.bf16.msrb.mxu0 %v2655_v58  ;;  %v3103_v58 = vor.u32 %v3459_v49, %v3102_v48  ;;  %v2691_v5 = vor.u32 %v3353_v55, %v2688_v56  ;;  %v3337_v49 = vld [vmem:[#allocation5 + $0x2c] sm:$0xf]  ;;  %v2803_v55 = vor.u32 %v3381_v45, %v2800_v46  ;;  %v3439_v56 = vld [vmem:[#allocation5 + $0x354] sm:$0xf0]  ;;  %v3056_v46 = vld [vmem:[#allocation5 + $0x398] sm:$0xf0] }
 0x133   :  { %v823_v6 = vpop.f32.mrf.mxu0  ;;  %v836_v7 = vpop.f32.mrf.mxu1  ;;  %v3445_v45 = vld [vmem:[#allocation5 + $0x38c] sm:$0xf] }
 0x134   :  { %v824_v10 = vadd.f32 %v823_v6, %v811_v2  ;;  %v837_v27 = vadd.f32 %v836_v7, %v705_v11  ;;  %v3455_v2 = vld [vmem:[#allocation5 + $0x3d4] sm:$0xf0]  ;;  %v3393_v6 = vld [vmem:[#allocation5 + $0x1ec] sm:$0xf]  ;;  %v2848_v7 = vld [vmem:[#allocation5 + $0x1f8] sm:$0xf0] }
 0x135   :  { %1779 = vmatpush.bf16.msrb.mxu1 %v2815_v1  ;;  %v3087_v11 = vor.u32 %v3455_v2, %v3086_v62 }
 0x136   :  { %vm868_vm3 = vcmp.ge.f32.partialorder %v824_v10, 0.0  ;;  %v872_v15 = vmul.f32 0.25, %v824_v10  ;;  %1769 = vmatpush.bf16.msrb.mxu0 %v2639_v3  ;;  %v2734_v3 = vld [vmem:[#allocation5 + $0x108] sm:$0xf] }
 0x138   :  { %v876_v22 = vsel %vm868_vm3, %v824_v10, %v872_v15  ;;  %v2672_v10 = vld [vmem:[#allocation5 + $0x98] sm:$0xf0]  ;;  %v2851_v15 = vor.u32 %v3393_v6, %v2848_v7  ;;  %v3435_v6 = vld [vmem:[#allocation5 + $0x334] sm:$0xf0]  ;;  %v3421_v7 = vld [vmem:[#allocation5 + $0x2cc] sm:$0xf] }
 0x139   :  { %v3710_v26 = vpack.c.bf16 %v876_v22, %v876_v22  ;;  %1780 = vmatpush.bf16.msrb.mxu1 %v2799_v12  ;;  %v2735_v12 = vor.u32 %v3367_v4, %v2734_v3  ;;  %v2675_v18 = vor.u32 %v3349_v9, %v2672_v10  ;;  %v2911_v22 = vor.u32 %v3411_v14, %v2910_v13  ;;  %v3006_v4 = vld [vmem:[#allocation5 + $0x328] sm:$0xf]  ;;  %v3373_v10 = vld [vmem:[#allocation5 + $0x14c] sm:$0xf] }
 0x13a   :  { %1770 = vmatpush.bf16.msrb.mxu0 %v2623_v16  ;;  %v3070_v16 = vld [vmem:[#allocation5 + $0x3a8] sm:$0xf] }
 0x13b   :  { %v849_v30 = vpop.f32.mrf.mxu2  ;;  %v862_v31 = vpop.f32.mrf.mxu3  ;;  %1694 = vmatmul.bf16.vlgmr.msrb.gmra.mxu2 %v3710_v26  ;;  %v3071_v25 = vor.u32 %v3451_v17, %v3070_v16  ;;  %v2990_v14 = vld [vmem:[#allocation5 + $0x308] sm:$0xf]  ;;  %v3417_v17 = vld [vmem:[#allocation5 + $0x2ac] sm:$0xf] }
 0x13c   :  { %v850_v35 = vadd.f32 %v849_v30, %v837_v27  ;;  %v825_v36 = vpop.f32.mrf.mxu0  ;;  %v838_v41 = vpop.f32.mrf.mxu1  ;;  %1790 = vmatpush.bf16.msrb.mxu2 %v2975_v23  ;;  %1733 = vmatmul.bf16.vlgmr.msra.gmra.mxu1 %v3704_v47  ;;  %v3345_v23 = vld [vmem:[#allocation5 + $0x6c] sm:$0xf]  ;;  %v2894_v27 = vld [vmem:[#allocation5 + $0x248] sm:$0xf]  ;;  %v3447_v30 = vld [vmem:[#allocation5 + $0x394] sm:$0xf0] }
 0x13d   :  { %1781 = vmatpush.bf16.msrb.mxu1 %v2783_v43  ;;  %v3407_v43 = vld [vmem:[#allocation5 + $0x254] sm:$0xf0]  ;;  %v2640_v36 = vld [vmem:[#allocation5 + $0x58] sm:$0xf0]  ;;  %v3055_v41 = vor.u32 %v3447_v30, %v3054_v29  ;;  %v3453_v30 = vld [vmem:[#allocation5 + $0x3cc] sm:$0xf] }
 0x13e   :  { %v863_v40 = vadd.f32 %v862_v31, %v850_v35  ;;  %1771 = vmatpush.bf16.msrb.mxu0 %v2607_v32  ;;  %v2659_v31 = vor.u32 %v3345_v23, %v2656_v24  ;;  %v3385_v32 = vld [vmem:[#allocation5 + $0x1ac] sm:$0xf]  ;;  %v2895_v34 = vor.u32 %v3407_v43, %v2894_v27  ;;  %v2752_v23 = vld [vmem:[#allocation5 + $0x138] sm:$0xf0]  ;;  %v3107_v27 = vor.u32 %v3457_v19, %v3104_v21 }
 0x13f   :  { %v3341_v35 = vld [vmem:[#allocation5 + $0x4c] sm:$0xf]  ;;  %v2819_v39 = vor.u32 %v3385_v32, %v2816_v33  ;;  %v2928_v29 = vld [vmem:[#allocation5 + $0x298] sm:$0xf0] }
 0x140   :  { %vm869_vm4 = vcmp.ge.f32.partialorder %v863_v40, 0.0  ;;  %v873_v52 = vmul.f32 0.25, %v863_v40  ;;  %1791 = vmatpush.bf16.msrb.mxu2 %v2959_v38  ;;  %v3403_v38 = vld [vmem:[#allocation5 + $0x234] sm:$0xf0]  ;;  %v3365_v32 = vld [vmem:[#allocation5 + $0x10c] sm:$0xf] }
 0x141   :  { %1772 = vmatmul.bf16.vlgmr.msrb.gmra.mxu0 %v3701_v20  ;;  %1782 = vmatpush.bf16.msrb.mxu1 %v2767_v44  ;;  %v2643_v44 = vor.u32 %v3341_v35, %v2640_v36  ;;  %v2736_v33 = vld [vmem:[#allocation5 + $0x118] sm:$0xf0] }
 0x142   :  { %1816 = vmatpush.bf16.msra.mxu0 %v2723_v37  ;;  %v877_v57 = vsel %vm869_vm4, %v863_v40, %v873_v52  ;;  %v2878_v37 = vld [vmem:[#allocation5 + $0x228] sm:$0xf]  ;;  %v3443_v40 = vld [vmem:[#allocation5 + $0x374] sm:$0xf0]  ;;  %v2739_v36 = vor.u32 %v3365_v32, %v2736_v33 }
 0x143   :  { %v3715_v63 = vpack.c.bf16 %v877_v57, %v877_v57  ;;  %v851_v0 = vpop.f32.mrf.mxu2  ;;  %v864_v1 = vpop.f32.mrf.mxu3  ;;  %v2879_v48 = vor.u32 %v3403_v38, %v2878_v37  ;;  %v3039_v51 = vor.u32 %v3443_v40, %v3038_v42  ;;  %v2862_v52 = vld [vmem:[#allocation5 + $0x208] sm:$0xf]  ;;  %v3425_v57 = vld [vmem:[#allocation5 + $0x2ec] sm:$0xf]  ;;  %v2912_v37 = vld [vmem:[#allocation5 + $0x278] sm:$0xf0] }
 0x144   :  { %1792 = vmatpush.bf16.msrb.mxu2 %v2943_v54  ;;  %v3022_v54 = vld [vmem:[#allocation5 + $0x348] sm:$0xf]  ;;  %v3333_v0 = vld [vmem:[#allocation5 + $0xc] sm:$0xf]  ;;  %v2608_v1 = vld [vmem:[#allocation5 + $0x18] sm:$0xf0] }
 0x145   :  { %1707 = vmatmul.bf16.vlgmr.msrb.gmra.mxu3 %v3715_v63  ;;  %1783 = vmatpush.bf16.msrb.mxu1 %v2751_v59  ;;  %v2627_v59 = vor.u32 %v3337_v49, %v2624_v50  ;;  %v3023_v2 = vor.u32 %v3439_v56, %v3022_v54  ;;  %v2611_v9 = vor.u32 %v3333_v0, %v2608_v1  ;;  %v3449_v38 = vld [vmem:[#allocation5 + $0x3ac] sm:$0xf]  ;;  %v3483_v19 = vld [vmem:[#allocation7 + $0xb8] sm:$0xff] }
 0x146   :  { %1817 = vmatpush.bf16.msra.mxu0 %v2707_v53  ;;  %1803 = vmatpush.bf16.msrb.mxu3 %v3103_v58  ;;  %v3399_v53 = vld [vmem:[#allocation5 + $0x214] sm:$0xf0]  ;;  %v2976_v58 = vld [vmem:[#allocation5 + $0x2f8] sm:$0xf0]  ;;  %v3405_v40 = vld [vmem:[#allocation5 + $0x24c] sm:$0xf]  ;;  %v3059_v49 = vor.u32 %v3445_v45, %v3056_v46 }
 0x147   :  { %v2863_v62 = vor.u32 %v3399_v53, %v2862_v52  ;;  %v2979_v3 = vor.u32 %v3425_v57, %v2976_v58  ;;  %v3401_v50 = vld [vmem:[#allocation5 + $0x22c] sm:$0xf]  ;;  %v3040_v53 = vld [vmem:[#allocation5 + $0x378] sm:$0xf0] }
 0x148   :  { %1793 = vmatpush.bf16.msrb.mxu2 %v2927_v8  ;;  %v2960_v8 = vld [vmem:[#allocation5 + $0x2d8] sm:$0xf0]  ;;  %v3441_v52 = vld [vmem:[#allocation5 + $0x36c] sm:$0xf] }
 0x149   :  { %1784 = vmatpush.bf16.msrb.mxu1 %v2735_v12  ;;  %v3007_v12 = vor.u32 %v3435_v6, %v3006_v4  ;;  %v2963_v13 = vor.u32 %v3421_v7, %v2960_v8  ;;  %v3397_v56 = vld [vmem:[#allocation5 + $0x20c] sm:$0xf]  ;;  %v2864_v57 = vld [vmem:[#allocation5 + $0x218] sm:$0xf0]  ;;  %v3464_v7 = vld [vmem:[#allocation7 + $0x20] sm:$0xff] }
 0x14a   :  { %1818 = vmatpush.bf16.msra.mxu0 %v2691_v5  ;;  %1804 = vmatpush.bf16.msrb.mxu3 %v3087_v11  ;;  %v2787_v5 = vor.u32 %v3377_v60, %v2784_v61  ;;  %v2768_v11 = vld [vmem:[#allocation5 + $0x158] sm:$0xf0]  ;;  %v3437_v58 = vld [vmem:[#allocation5 + $0x34c] sm:$0xf]  ;;  %v2867_v60 = vor.u32 %v3397_v56, %v2864_v57 }
 0x14b   :  { %1746 = vmatmul.bf16.vlgmr.msra.gmra.mxu2 %v3710_v26  ;;  %v2771_v16 = vor.u32 %v3373_v10, %v2768_v11  ;;  %v3429_v1 = vld [vmem:[#allocation5 + $0x30c] sm:$0xf]  ;;  %v3467_v4 = vld [vmem:[#allocation7 + $0x38] sm:$0xff]  ;;  %v3462_v11 = vld [vmem:[#allocation7 + $0x10] sm:$0xff] }
 0x14c   :  { %1794 = vmatpush.bf16.msrb.mxu2 %v2911_v22  ;;  %1785 = vmatmul.bf16.vlgmr.msrb.gmra.mxu1 %v3704_v47  ;;  %v3369_v22 = vld [vmem:[#allocation5 + $0x12c] sm:$0xf]  ;;  %v3475_v10 = vld [vmem:[#allocation7 + $0x78] sm:$0xff] }
 0x14d   :  { %1829 = vmatpush.bf16.msra.mxu1 %v2851_v15  ;;  %v3431_v15 = vld [vmem:[#allocation5 + $0x314] sm:$0xf0]  ;;  %v2755_v43 = vor.u32 %v3369_v22, %v2752_v23  ;;  %v3465_v6 = vld [vmem:[#allocation7 + $0x28] sm:$0xff]  ;;  %v3470_v22 = vld [vmem:[#allocation7 + $0x50] sm:$0xff] }
 0x14e   :  { %1819 = vmatpush.bf16.msra.mxu0 %v2675_v18  ;;  %1805 = vmatpush.bf16.msrb.mxu3 %v3071_v25  ;;  %v2944_v18 = vld [vmem:[#allocation5 + $0x2b8] sm:$0xf0]  ;;  %v2991_v24 = vor.u32 %v3431_v15, %v2990_v14  ;;  %v3460_v15 = vld [vmem:[#allocation7] sm:$0xff]  ;;  %v3482_v23 = vld [vmem:[#allocation7 + $0xb0] sm:$0xff] }
 0x14f   :  { %v2947_v25 = vor.u32 %v3417_v17, %v2944_v18  ;;  %v3471_v18 = vld [vmem:[#allocation7 + $0x58] sm:$0xff]  ;;  %v3489_v57 = vld [vmem:[#allocation7 + $0xe8] sm:$0xff] }
 0x150   :  { %1795 = vmatpush.bf16.msrb.mxu2 %v2895_v34 }
 0x151   :  { %1830 = vmatpush.bf16.msra.mxu1 %v2835_v28  ;;  %v3413_v28 = vld [vmem:[#allocation5 + $0x28c] sm:$0xf] }
 0x152   :  { %1820 = vmatpush.bf16.msra.mxu0 %v2659_v31  ;;  %1806 = vmatpush.bf16.msrb.mxu3 %v3055_v41  ;;  %v3088_v31 = vld [vmem:[#allocation5 + $0x3d8] sm:$0xf0]  ;;  %v2931_v34 = vor.u32 %v3413_v28, %v2928_v29  ;;  %v3409_v41 = vld [vmem:[#allocation5 + $0x26c] sm:$0xf]  ;;  %v3730_v28 = vld [vmem:[%s3747_s5] sm:$0xf] }
 0x153   :  { %v3091_v35 = vor.u32 %v3453_v30, %v3088_v31  ;;  %v3468_v29 = vld [vmem:[#allocation7 + $0x40] sm:$0xff]  ;;  %v1652_v31 = vperm.slane %v3730_v28, 0 }
 0x154   :  { %1796 = vmatpush.bf16.msrb.mxu2 %v2879_v48  ;;  %v3480_v30 = vld [vmem:[#allocation7 + $0xa0] sm:$0xff] }
 0x155   :  { %1831 = vmatpush.bf16.msra.mxu1 %v2819_v39  ;;  %1759 = vmatmul.bf16.vlgmr.msra.gmra.mxu3 %v3715_v63  ;;  %v2915_v39 = vor.u32 %v3409_v41, %v2912_v37  ;;  %v3478_v41 = vld [vmem:[#allocation7 + $0x90] sm:$0xff] }
 0x156   :  { %1821 = vmatpush.bf16.msra.mxu0 %v2643_v44  ;;  %1807 = vmatpush.bf16.msrb.mxu3 %v3039_v51  ;;  %v2896_v44 = vld [vmem:[#allocation5 + $0x258] sm:$0xf0] }
 0x157   :  { %v2899_v48 = vor.u32 %v3405_v40, %v2896_v44  ;;  %v2880_v51 = vld [vmem:[#allocation5 + $0x238] sm:$0xf0]  ;;  %v3477_v40 = vld [vmem:[#allocation7 + $0x88] sm:$0xff] }
 0x158   :  { %1797 = vmatpush.bf16.msrb.mxu2 %v2863_v62  ;;  %v2883_v54 = vor.u32 %v3401_v50, %v2880_v51  ;;  %v3008_v62 = vld [vmem:[#allocation5 + $0x338] sm:$0xf0] }
 0x159   :  { %1832 = vmatpush.bf16.msra.mxu1 %v2803_v55  ;;  %v3043_v55 = vor.u32 %v3441_v52, %v3040_v53  ;;  %v1653_v52 = vperm.slane %v3730_v28, 1 }
 0x15a   :  { %1822 = vmatpush.bf16.msra.mxu0 %v2627_v59  ;;  %1808 = vmatpush.bf16.msrb.mxu3 %v3023_v2  ;;  %v3024_v59 = vld [vmem:[#allocation5 + $0x358] sm:$0xf0] }
 0x15b   :  { %1798 = vmatmul.bf16.vlgmr.msrb.gmra.mxu2 %v3710_v26  ;;  %v3027_v61 = vor.u32 %v3437_v58, %v3024_v59  ;;  %v2992_v2 = vld [vmem:[#allocation5 + $0x318] sm:$0xf0] }
 0x15c   :  { %1842 = vmatpush.bf16.msra.mxu2 %v2979_v3  ;;  %v2995_v3 = vor.u32 %v3429_v1, %v2992_v2 }
 0x15d   :  { %1833 = vmatpush.bf16.msra.mxu1 %v2787_v5  ;;  %v3466_v5 = vld [vmem:[#allocation7 + $0x30] sm:$0xff] }
 0x15e   :  { %1823 = vmatpush.bf16.msra.mxu0 %v2611_v9  ;;  %1809 = vmatpush.bf16.msrb.mxu3 %v3007_v12  ;;  %v3463_v9 = vld [vmem:[#allocation7 + $0x18] sm:$0xff] }
 0x160   :  { %1843 = vmatpush.bf16.msra.mxu2 %v2963_v13  ;;  %v3461_v13 = vld [vmem:[#allocation7 + $0x8] sm:$0xff] }
 0x161   :  { %1824 = vmatmul.bf16.vlgmr.msra.gmra.mxu0 %v3701_v20  ;;  %1834 = vmatpush.bf16.msra.mxu1 %v2771_v16  ;;  %v3072_v20 = vld [vmem:[#allocation5 + $0x3b8] sm:$0xf0]  ;;  %v3472_v16 = vld [vmem:[#allocation7 + $0x60] sm:$0xff] }
 0x162   :  { %1810 = vmatpush.bf16.msrb.mxu3 %v2991_v24  ;;  %v3075_v42 = vor.u32 %v3449_v38, %v3072_v20  ;;  %2141 = vmatpush.bf16.msrb.mxu0 %v3467_v4 }
 0x164   :  { %1844 = vmatpush.bf16.msra.mxu2 %v2947_v25  ;;  %v3469_v25 = vld [vmem:[#allocation7 + $0x48] sm:$0xff] }
 0x165   :  { %1835 = vmatpush.bf16.msra.mxu1 %v2755_v43  ;;  %1811 = vmatmul.bf16.vlgmr.msrb.gmra.mxu3 %v3715_v63 }
 0x166   :  { %1855 = vmatpush.bf16.msra.mxu3 %v3107_v27  ;;  %2142 = vmatpush.bf16.msrb.mxu0 %v3466_v5  ;;  %v3481_v27 = vld [vmem:[#allocation7 + $0xa8] sm:$0xff] }
 0x168   :  { %1845 = vmatpush.bf16.msra.mxu2 %v2931_v34  ;;  %v3479_v34 = vld [vmem:[#allocation7 + $0x98] sm:$0xff] }
 0x169   :  { %1836 = vmatpush.bf16.msra.mxu1 %v2739_v36 }
 0x16a   :  { %1856 = vmatpush.bf16.msra.mxu3 %v3091_v35  ;;  %2143 = vmatpush.bf16.msrb.mxu0 %v3465_v6  ;;  %v3486_v6 = vld [vmem:[#allocation7 + $0xd0] sm:$0xff] }
 0x16c   :  { %1846 = vmatpush.bf16.msra.mxu2 %v2915_v39  ;;  %1837 = vmatmul.bf16.vlgmr.msra.gmra.mxu1 %v3704_v47  ;;  %v3433_v47 = vld [vmem:[#allocation5 + $0x32c] sm:$0xf] }
 0x16d   :  { %v3011_v0 = vor.u32 %v3433_v47, %v3008_v62  ;;  %2154 = vmatpush.bf16.msrb.mxu1 %v3475_v10 }
 0x16e   :  { %1857 = vmatpush.bf16.msra.mxu3 %v3075_v42  ;;  %2144 = vmatpush.bf16.msrb.mxu0 %v3464_v7  ;;  %v1654_v7 = vperm.slane %v3730_v28, 2 }
 0x170   :  { %1847 = vmatpush.bf16.msra.mxu2 %v2899_v48  ;;  %v3476_v48 = vld [vmem:[#allocation7 + $0x80] sm:$0xff] }
 0x172   :  { %1858 = vmatpush.bf16.msra.mxu3 %v3059_v49  ;;  %2145 = vmatpush.bf16.msrb.mxu0 %v3463_v9  ;;  %v3491_v49 = vld [vmem:[#allocation7 + $0xf8] sm:$0xff] }
 0x174   :  { %1848 = vmatpush.bf16.msra.mxu2 %v2883_v54 }
 0x176   :  { %1859 = vmatpush.bf16.msra.mxu3 %v3043_v55  ;;  %2146 = vmatpush.bf16.msrb.mxu0 %v3462_v11  ;;  %v3490_v55 = vld [vmem:[#allocation7 + $0xf0] sm:$0xff] }
 0x178   :  { %1849 = vmatpush.bf16.msra.mxu2 %v2867_v60  ;;  %v3488_v60 = vld [vmem:[#allocation7 + $0xe0] sm:$0xff] }
 0x17a   :  { %1860 = vmatpush.bf16.msra.mxu3 %v3027_v61  ;;  %2147 = vmatpush.bf16.msrb.mxu0 %v3461_v13 }
 0x17b   :  { %1850 = vmatmul.bf16.vlgmr.msra.gmra.mxu2 %v3710_v26  ;;  %v3474_v26 = vld [vmem:[#allocation7 + $0x70] sm:$0xff] }
 0x17c   :  { %2155 = vmatpush.bf16.msrb.mxu1 %v3474_v26  ;;  %2167 = vmatpush.bf16.msrb.mxu2 %v3483_v19  ;;  %v3485_v26 = vld [vmem:[#allocation7 + $0xc8] sm:$0xff] }
 0x17e   :  { %1861 = vmatpush.bf16.msra.mxu3 %v3011_v0  ;;  %2148 = vmatpush.bf16.msrb.mxu0 %v3460_v15 }
 0x180   :  { %2168 = vmatpush.bf16.msrb.mxu2 %v3482_v23 }
 0x182   :  { %1862 = vmatpush.bf16.msra.mxu3 %v2995_v3  ;;  %v3487_v3 = vld [vmem:[#allocation7 + $0xd8] sm:$0xff] }
 0x184   :  { %2169 = vmatpush.bf16.msrb.mxu2 %v3481_v27 }
 0x185   :  { %1863 = vmatmul.bf16.vlgmr.msra.gmra.mxu3 %v3715_v63  ;;  %v3473_v63 = vld [vmem:[#allocation7 + $0x68] sm:$0xff] }
 0x186   :  { %2156 = vmatpush.bf16.msrb.mxu1 %v3473_v63  ;;  %2180 = vmatpush.bf16.msrb.mxu3 %v3491_v49 }
 0x188   :  { %2170 = vmatpush.bf16.msrb.mxu2 %v3480_v30 }
 0x18a   :  { %2157 = vmatpush.bf16.msrb.mxu1 %v3472_v16  ;;  %2181 = vmatpush.bf16.msrb.mxu3 %v3490_v55  ;;  %v3484_v16 = vld [vmem:[#allocation7 + $0xc0] sm:$0xff] }
 0x18c   :  { %2171 = vmatpush.bf16.msrb.mxu2 %v3479_v34 }
 0x18e   :  { %2158 = vmatpush.bf16.msrb.mxu1 %v3471_v18  ;;  %2182 = vmatpush.bf16.msrb.mxu3 %v3489_v57 }
 0x190   :  { %2172 = vmatpush.bf16.msrb.mxu2 %v3478_v41 }
 0x192   :  { %2159 = vmatpush.bf16.msrb.mxu1 %v3470_v22  ;;  %2183 = vmatpush.bf16.msrb.mxu3 %v3488_v60 }
 0x194   :  { %2173 = vmatpush.bf16.msrb.mxu2 %v3477_v40 }
 0x196   :  { %2160 = vmatpush.bf16.msrb.mxu1 %v3469_v25  ;;  %2184 = vmatpush.bf16.msrb.mxu3 %v3487_v3 }
 0x198   :  { %2174 = vmatpush.bf16.msrb.mxu2 %v3476_v48 }
 0x19a   :  { %2161 = vmatpush.bf16.msrb.mxu1 %v3468_v29  ;;  %2185 = vmatpush.bf16.msrb.mxu3 %v3486_v6 }
 0x19e   :  { %v1669_v8 = vpop.f32.mrf.mxu0  ;;  %2186 = vmatpush.bf16.msrb.mxu3 %v3485_v26 }
 0x19f   :  { %v1670_v36 = vadd.f32 %v1669_v8, %v1652_v31 }
 0x1a2   :  { %2187 = vmatpush.bf16.msrb.mxu3 %v3484_v16 }
 0x1a6   :  { %v1671_v12 = vpop.f32.mrf.mxu0 }
 0x1a9   :  { %v1682_v14 = vpop.f32.mrf.mxu1 }
 0x1aa   :  { %v1683_v37 = vadd.f32 %v1682_v14, %v1670_v36 }
 0x1ae   :  { %v1721_v17 = vpop.f32.mrf.mxu0 }
 0x1af   :  { %v1722_v58 = vadd.f32 %v1721_v17, %v1653_v52 }
 0x1b1   :  { %v1684_v21 = vpop.f32.mrf.mxu1 }
 0x1b6   :  { %v1723_v24 = vpop.f32.mrf.mxu0 }
 0x1b7   :  { %v1655_v24 = vperm.slane %v3730_v28, 3  ;;  %v1948_v28 = vld [vmem:[%s3749_s7] sm:$0x1] }
 0x1b9   :  { %v1734_v43 = vpop.f32.mrf.mxu1 }
 0x1ba   :  { %v1735_v59 = vadd.f32 %v1734_v43, %v1722_v58 }
 0x1be   :  { %v1695_v32 = vpop.f32.mrf.mxu2  ;;  %v1773_v33 = vpop.f32.mrf.mxu0 }
 0x1bf   :  { %v1696_v38 = vadd.f32 %v1695_v32, %v1683_v37  ;;  %v1774_v10 = vadd.f32 %v1773_v33, %v1654_v7 }
 0x1c1   :  { %v1736_v35 = vpop.f32.mrf.mxu1 }
 0x1c6   :  { %v1697_v20 = vpop.f32.mrf.mxu2  ;;  %v1775_v39 = vpop.f32.mrf.mxu0 }
 0x1c8   :  { %v1708_v42 = vpop.f32.mrf.mxu3 }
 0x1c9   :  { %v1709_v44 = vadd.f32 %v1708_v42, %v1696_v38  ;;  %v1786_v45 = vpop.f32.mrf.mxu1 }
 0x1ca   :  { %v1787_v12 = vadd.f32 %v1786_v45, %v1774_v10 }
 0x1cb   :  { %vm1868_vm5 = vcmp.ge.f32.partialorder %v1709_v44, 0.0  ;;  %v1872_v46 = vmul.f32 0.25, %v1709_v44 }
 0x1cd   :  { %v1876_v50 = vsel %vm1868_vm5, %v1709_v44, %v1872_v46 }
 0x1ce   :  { %v1880_v51 = vpack.c.bf16 %v1876_v50, %v1876_v50  ;;  %v1747_v53 = vpop.f32.mrf.mxu2 }
 0x1cf   :  { %v1748_v61 = vadd.f32 %v1747_v53, %v1735_v59 }
 0x1d0   :  { %v1710_v54 = vpop.f32.mrf.mxu3  ;;  %2149 = vmatmul.bf16.vlgmr.msrb.gmra.mxu0 %v1880_v51 }
 0x1d1   :  { %v1788_v56 = vpop.f32.mrf.mxu1 }
 0x1d6   :  { %v1749_v47 = vpop.f32.mrf.mxu2 }
 0x1d8   :  { %v1760_v62 = vpop.f32.mrf.mxu3 }
 0x1d9   :  { %v1761_v0 = vadd.f32 %v1760_v62, %v1748_v61 }
 0x1db   :  { %vm1869_vm6 = vcmp.ge.f32.partialorder %v1761_v0, 0.0  ;;  %v1873_v1 = vmul.f32 0.25, %v1761_v0 }
 0x1dd   :  { %v1877_v4 = vsel %vm1869_vm6, %v1761_v0, %v1873_v1 }
 0x1de   :  { %v1825_v2 = vpop.f32.mrf.mxu0  ;;  %v1881_v5 = vpack.c.bf16 %v1877_v4, %v1877_v4  ;;  %v1799_v8 = vpop.f32.mrf.mxu2 }
 0x1df   :  { %v1800_v13 = vadd.f32 %v1799_v8, %v1787_v12  ;;  %v1826_v27 = vadd.f32 %v1825_v2, %v1655_v24 }
 0x1e0   :  { %v1762_v9 = vpop.f32.mrf.mxu3  ;;  %2162 = vmatmul.bf16.vlgmr.msrb.gmra.mxu1 %v1881_v5 }
 0x1e6   :  { %v1827_v11 = vpop.f32.mrf.mxu0  ;;  %v1801_v63 = vpop.f32.mrf.mxu2 }
 0x1e8   :  { %v1812_v15 = vpop.f32.mrf.mxu3 }
 0x1e9   :  { %v1838_v14 = vpop.f32.mrf.mxu1  ;;  %v1813_v17 = vadd.f32 %v1812_v15, %v1800_v13 }
 0x1ea   :  { %v1839_v43 = vadd.f32 %v1838_v14, %v1826_v27 }
 0x1eb   :  { %vm1870_vm7 = vcmp.ge.f32.partialorder %v1813_v17, 0.0  ;;  %v1874_v18 = vmul.f32 0.25, %v1813_v17 }
 0x1ed   :  { %v1878_v19 = vsel %vm1870_vm7, %v1813_v17, %v1874_v18 }
 0x1ee   :  { %v1882_v21 = vpack.c.bf16 %v1878_v19, %v1878_v19 }
 0x1f0   :  { %v1814_v23 = vpop.f32.mrf.mxu3  ;;  %2175 = vmatmul.bf16.vlgmr.msrb.gmra.mxu2 %v1882_v21 }
 0x1f1   :  { %v1840_v22 = vpop.f32.mrf.mxu1 }
 0x1fe   :  { %v1851_v25 = vpop.f32.mrf.mxu2 }
 0x1ff   :  { %v1852_v29 = vadd.f32 %v1851_v25, %v1839_v43 }
 0x206   :  { %v1853_v30 = vpop.f32.mrf.mxu2 }
 0x208   :  { %v1864_v31 = vpop.f32.mrf.mxu3 }
 0x209   :  { %v1865_v32 = vadd.f32 %v1864_v31, %v1852_v29 }
 0x20b   :  { %vm1871_vm8 = vcmp.ge.f32.partialorder %v1865_v32, 0.0  ;;  %v1875_v33 = vmul.f32 0.25, %v1865_v32 }
 0x20d   :  { %v1879_v34 = vsel %vm1871_vm8, %v1865_v32, %v1875_v33 }
 0x20e   :  { %v1883_v35 = vpack.c.bf16 %v1879_v34, %v1879_v34 }
 0x210   :  { %v1866_v36 = vpop.f32.mrf.mxu3  ;;  %2188 = vmatmul.bf16.vlgmr.msrb.gmra.mxu3 %v1883_v35 }
 0x24d   :  { %v2150_v41 = vpop.f32.mrf.mxu0 }
 0x24e   :  { %v2151_v40 = vadd.f32 %v2150_v41, %v1948_v28 }
 0x255   :  { %v2152_v37 = vpop.f32.mrf.mxu0 }
 0x25d   :  { %v2163_v38 = vpop.f32.mrf.mxu1 }
 0x25e   :  { %v2164_v44 = vadd.f32 %v2163_v38, %v2151_v40 }
 0x265   :  { %v2165_v20 = vpop.f32.mrf.mxu1 }
 0x273   :  { %v2176_v39 = vpop.f32.mrf.mxu2 }
 0x274   :  { %v2177_v45 = vadd.f32 %v2176_v39, %v2164_v44 }
 0x27b   :  { %v2178_v42 = vpop.f32.mrf.mxu2 }
 0x293   :  { %v2189_v46 = vpop.f32.mrf.mxu3 }
 0x294   :  { %v2190_v48 = vadd.f32 %v2189_v46, %v2177_v45 }
 0x296   :  { %2193 = vst [vmem:[#allocation8] sm:$0x1] %v2190_v48 }
 0x297   :  { %2204 = dma.vmem_to_hbm [thread:$0]  %s2200_s30, 16, %s2202_s11, [#allocation4]  }
 0x29b   :  { %v2191_v49 = vpop.f32.mrf.mxu3 }
 0x29c   :  { %3602 = dma.done.wait [#allocation4], 16  }
 0x29d   :  { %3603 = vsyncadd [#allocation4], 4294967280 }
 0x29e   :  { %2209 = vsyncpa [#allocation3], 1 }
 0x29f   :  { %2210 = vsyncpa [#allocation6], 1 }
 0x2a0   :  { %2211 = vsyncpa [#allocation4], 1 }

// kernel: recat_forward.2
= control target key start
LH: loop header
LB: loop body
LE: loop exit
PB: predicated region body
PF: predicated region fallthrough
CT: control target
= control target key end

     0   :  { %s8909_s0 = inlined_call_operand.hbm [shape: bf16[4,8,256], index: 0, kind: input, shape index: {}]   ;;  %s8910_s1 = inlined_call_operand.hbm [shape: bf16[4,16,128], index: 1, kind: input, shape index: {}]   ;;  %s8911_s2 = inlined_call_operand.hbm [shape: bf16[4,8,8], index: 2, kind: input, shape index: {}]   ;;  %s8912_s3 = inlined_call_operand.hbm [shape: bf16[4,8,16], index: 3, kind: input, shape index: {}]   ;;  %s8913_s4 = inlined_call_operand.hbm [shape: bf16[256,384], index: 4, kind: input, shape index: {}]   ;;  %s8914_s5 = inlined_call_operand.vmem [shape: f32[1,384], index: 5, kind: input, shape index: {}]   ;;  %s8915_s6 = inlined_call_operand.hbm [shape: bf16[128,384], index: 6, kind: input, shape index: {}]   ;;  %s8916_s7 = inlined_call_operand.hbm [shape: f32[1,384], index: 7, kind: input, shape index: {}]   ;;  %s8917_s8 = inlined_call_operand.hbm [shape: bf16[3,384,384], index: 8, kind: input, shape index: {}]   ;;  %s8918_s9 = inlined_call_operand.vmem [shape: f32[3,1,384], index: 9, kind: input, shape index: {}]   ;;  %s8919_s10 = inlined_call_operand.hbm [shape: bf16[3,384,384], index: 10, kind: input, shape index: {}]   ;;  %s8920_s11 = inlined_call_operand.hbm [shape: f32[3,1,384], index: 11, kind: input, shape index: {}]   ;;  %s8921_s12 = inlined_call_operand.vmem [shape: f32[4,1,384], index: 12, kind: output, shape index: {}]  }
   0x1   :  { %8930 = sst [smem:[#allocation28_spill]] %s8910_s1 }
   0x2   :  { %8931 = sst [smem:[#allocation29_spill]] %s8913_s4 }
   0x3   :  { %8932 = sst [smem:[#allocation30_spill]] %s8915_s6 }
   0x4   :  { %8933 = sst [smem:[#allocation31_spill]] %s8916_s7 }
   0x5   :  { %8934 = sst [smem:[#allocation32_spill]] %s8917_s8 }
   0x6   :  { %8935 = sst [smem:[#allocation33_spill]] %s8919_s10 }
   0x7   :  { %8936 = sst [smem:[#allocation34_spill]] %s8920_s11 }
   0x8   :  { %8937 = sst [smem:[#allocation35_spill]] %s8921_s12 }
   0x9   :  { %17 = vsyncpa [#allocation3], 0 }
   0xa   :  { %19 = vsyncpa [#allocation3 + $0x1], 0 }
   0xb   :  { %20 = vsyncpa [#allocation5], 0 }
   0xc   :  { %22 = vsyncpa [#allocation5 + $0x1], 0 }
   0xd   :  { %23 = vsyncpa [#allocation8], 0 }
   0xe   :  { %25 = vsyncpa [#allocation8 + $0x1], 0 }
   0xf   :  { %26 = vsyncpa [#allocation11], 0 }
  0x10   :  { %27 = vsyncpa [#allocation14], 0 }
  0x11   :  { %28 = vsyncpa [#allocation17], 0  ;;  %s8523_s21 = smov 0   ;;  %s8525_s22 = smov 0  }
  0x12   :  { %s8527_s23 = smov 0   ;;  %s8529_s24 = smov 0  }
  0x13 LB: > { %8938 = sst [smem:[#allocation25_spill]] %s8440_s23  ;;  %s8547_s28 = sadd.s32 4294967295, %s8444_s24   ;;  %s8444_s24 = sphi %s8529_s24, %s8958_s24   ;;  %s8440_s23 = sphi %s8527_s23, %s8960_s23   ;;  %s8436_s22 = sphi %s8525_s22, %s8962_s22   ;;  %s8432_s21 = sphi %s8523_s21, %s8961_s21  }
  0x14   : > { %s8939_s4 = sld [smem:[#allocation29_spill]]  ;;  %p5390_p0 = scmp.ge.s32.totalorder %s8444_s24, 1 }
  0x15   : > { %p55_p1 = scmp.eq.s32.totalorder %s8547_s28, 0  ;;  %p337_p2 = scmp.lt.s32.totalorder %s8444_s24, 5 }
  0x16   : > { %s8446_s30 = smov [#allocation9]   ;;  %s8941_s6 = sld [smem:[#allocation30_spill]] }
  0x17   : > { %p8552_p3 = pnand %p5390_p0, %p337_p2  ;;  %s350_s13 = sshll.u32 %s8446_s30, 4  ;;  %s351_s13 = int_to_ptr.vmem [resolvable:$true] %s350_s13 }
  0x18   : > { %s8943_s8 = sld [smem:[#allocation32_spill]]  ;;  %s8447_s25 = smov [#allocation10]  }
  0x19   : > { %p7995_p4 = pneg %p8552_p3  ;;  %s367_s26 = sshll.u32 %s8447_s25, 4  ;;  %s368_s26 = int_to_ptr.vmem [resolvable:$true] %s367_s26 }
  0x1a   : > { %s348_s27 = sshll.u32 %s8939_s4, 4  ;;  %s8922_s30 = smov 192   ;;  %s349_s27 = int_to_ptr.hbm [resolvable:$true] %s348_s27 }
  0x1b   : > { %p8563_p5 = pnand %p7995_p4, %p55_p1  ;;  %s8923_s14 = smov 12  }
  0x1c   : > { %s365_s16 = sshll.u32 %s8941_s6, 4  ;;  %s8450_s15 = smov [#allocation13]   ;;  %s366_s16 = int_to_ptr.hbm [resolvable:$true] %s365_s16 }
  0x1d   : > { %7998 = dma.hbm_to_vmem [thread:$0]  (!%p8563_p5), %s349_s27, 6144, %s351_s13, [#allocation8], %s8922_s30, %s8922_s30, %s8923_s14  }
  0x1e   : > { %s391_s20 = sshll.u32 %s8943_s8, 4  ;;  %s393_s18 = sshll.u32 %s8450_s15, 4  ;;  %s392_s20 = int_to_ptr.hbm [resolvable:$true] %s391_s20  ;;  %s394_s18 = int_to_ptr.vmem [resolvable:$true] %s393_s18 }
  0x1f   : > { %8001 = dma.hbm_to_vmem [thread:$0]  (!%p8563_p5), %s366_s16, 3072, %s368_s26, [#allocation11], %s8922_s30, %s8922_s30, %s8923_s14  }
  0x20   : > { %8007 = dma.hbm_to_vmem [thread:$0]  (!%p8563_p5), %s392_s20, 27648, %s394_s18, [#allocation14], %s8922_s30, %s8922_s30, %s8923_s14  }
  0x21   : > { %s8586_s27 = sadd.s32 1, %s8444_s24   ;;  %s41_s19 = sadd.s32 1, %s8440_s23 }
  0x22   : > { %8944 = sst [smem:[#allocation26_spill]] %s8586_s27  ;;  %s38_s13 = ssub.s32 %s8444_s24, %s8586_s27 }
  0x23   : > { %p39_p6 = scmp.eq.s32.totalorder %s38_s13, 0  ;;  %p48_p7 = scmp.ne.s32.totalorder %s8440_s23, %s8436_s22 }
  0x24   : > { %p49_p8 = scmp.eq.s32.totalorder %s8444_s24, 0  ;;  %p54_p9 = scmp.ne.s32.totalorder %s8436_s22, %s8432_s21 }
  0x25   : > { %s8597_s16 = scalar_select %p39_p6, %s8440_s23, %s41_s19  }
  0x26   : > { %p50_p10 = por %p49_p8, %p48_p7  ;;  %p8601_p11 = por %p55_p1, %p54_p9 }
  0x27   : > { %8945 = sst [smem:[#allocation27_spill]] %s8597_s16  ;;  %p8033_p12 = scmp.lt.s32.totalorder %s8444_s24, 4 }
  0x28   : > { %s8607_s20 = sand.u32 1, %s8440_s23   ;;  %s8927_s15 = sshll.u32 %s8444_s24, 3 }
  0x29   : > { %s8925_s26 = sshll.u32 %s8607_s20, 3  ;;  %p8611_p13 = pnand %p8033_p12, %p50_p10 }
  0x2a   : > { %s8926_s21 = sand.u32 1, %s8444_s24   ;;  %s8948_s1 = sld [smem:[#allocation28_spill]] }
  0x2b   : > { %s462_s4 = scalar_lea.vmem [#allocation4], %s8925_s26  ;;  %s8625_s8 = scalar_lea.sflag [#allocation5], %s8926_s21 }
  0x2c   : > { %s470_s6 = sshll.u32 %s462_s4, 4  ;;  %p8180_p2 = pneg %p8611_p13  ;;  %s471_s6 = int_to_ptr.vmem [resolvable:$true] %s470_s6 }
  0x30   : > { %s467_s30 = scalar_lea.hbm %s8948_s1, %s8927_s15  ;;  %s8183_s19 = scalar_lea.hbm %s8948_s1, 32 }
  0x31   : > { %s468_s14 = sshll.u32 %s467_s30, 4  ;;  %s469_s14 = int_to_ptr.hbm [resolvable:$true] %s468_s14 }
  0x32   : > { %s8176_s16 = sshra.s32 %s469_s14, 4  ;;  %s8177_s16 = int_to_ptr.hbm [resolvable:$true] %s8176_s16 }
  0x33   : > { %s8178_s23 = scalar_lea.hbm %s8177_s16, 8  ;;  %p8184_p7 = scmp.lt.s32.totalorder %s8177_s16, %s8948_s1 }
  0x34   : > { %p8179_p0 = scmp.ne.s32.totalorder %s8177_s16, %s8178_s23  ;;  %p8185_p8 = scmp.lt.s32.totalorder %s8183_s19, %s8178_s23 }
  0x36   : > { %p8181_p4 = pnand %p8180_p2, %p8179_p0  ;;  %p8186_p9 = por %p8185_p8, %p8184_p7 }
  0x38   : > { %p8182_p6 = pneg %p8181_p4 }
  0x3a   : > { %p8187_p10 = pnand %p8186_p9, %p8182_p6 }
  0x3c   : > { %8190 = shalt.err (!%p8187_p10)
}
  0x3d   : > { %s8451_s21 = smov 64   ;;  %s8452_s15 = smov 4  }
  0x3e   : > { %8020 = dma.hbm_to_vmem [thread:$0]  (!%p8611_p13), %s469_s14, 128, %s471_s6, %s8625_s8, %s8451_s21, %s8451_s21, %s8452_s15  }
  0x3f   : > { %s8949_s7 = sld [smem:[#allocation31_spill]]  ;;  %s8453_s30 = smov [#allocation12]  }
  0x40   : > { %s382_s26 = sshll.u32 %s8453_s30, 4  ;;  %s8950_s10 = sld [smem:[#allocation33_spill]]  ;;  %s383_s26 = int_to_ptr.vmem [resolvable:$true] %s382_s26 }
  0x41   : > { %s8454_s4 = smov [#allocation15]   ;;  %s8951_s11 = sld [smem:[#allocation34_spill]] }
  0x42   : > { %s410_s6 = sshll.u32 %s8454_s4, 4  ;;  %s8952_s27 = smov 12   ;;  %s411_s6 = int_to_ptr.vmem [resolvable:$true] %s410_s6 }
  0x43   : > { %s8953_s21 = smov 192   ;;  %s8455_s30 = smov [#allocation16]  }
  0x44   : > { %s424_s23 = sshll.u32 %s8455_s30, 4  ;;  %s8954_s16 = sshll.u32 %s8444_s24, 3  ;;  %s425_s23 = int_to_ptr.vmem [resolvable:$true] %s424_s23 }
  0x45   : > { %s380_s13 = sshll.u32 %s8949_s7, 4  ;;  %s447_s15 = scalar_lea.hbm %s8909_s0, %s8954_s16  ;;  %s381_s13 = int_to_ptr.hbm [resolvable:$true] %s380_s13 }
  0x46   : > { %s408_s19 = sshll.u32 %s8950_s10, 4  ;;  %s449_s1 = sshll.u32 %s447_s15, 4  ;;  %s409_s19 = int_to_ptr.hbm [resolvable:$true] %s408_s19  ;;  %s450_s1 = int_to_ptr.hbm [resolvable:$true] %s449_s1 }
  0x47   : > { %8004 = dma.hbm_to_vmem [thread:$0]  (!%p8563_p5), %s381_s13, 48, %s383_s26, [#allocation11]  }
  0x48   : > { %s422_s12 = sshll.u32 %s8951_s11, 4  ;;  %s8456_s13 = smov 48   ;;  %s423_s12 = int_to_ptr.hbm [resolvable:$true] %s422_s12 }
  0x49   : > { %8010 = dma.hbm_to_vmem [thread:$0]  (!%p8563_p5), %s409_s19, 27648, %s411_s6, [#allocation14], %s8953_s21, %s8953_s21, %s8952_s27  }
  0x4a   : > { %s8457_s26 = smov 3   ;;  %s8955_s7 = sshll.u32 %s8607_s20, 3 }
  0x4b   : > { %8013 = dma.hbm_to_vmem [thread:$0]  (!%p8563_p5), %s423_s12, 144, %s425_s23, [#allocation17], %s8456_s13, %s8456_s13, %s8457_s26  }
  0x4c   : > { %s442_s10 = scalar_lea.vmem [#allocation2], %s8955_s7  ;;  %s439_s19 = scalar_lea.sflag [#allocation3], %s8607_s20 }
  0x4d   : > { %s451_s11 = sshll.u32 %s442_s10, 4  ;;  %s8296_s6 = sshra.s32 %s450_s1, 4  ;;  %s452_s11 = int_to_ptr.vmem [resolvable:$true] %s451_s11  ;;  %s8297_s6 = int_to_ptr.hbm [resolvable:$true] %s8296_s6 }
  0x4e   : > { %s8298_s27 = scalar_lea.hbm %s8297_s6, 8  ;;  %s8303_s21 = scalar_lea.hbm %s8909_s0, 32 }
  0x4f   : > { %p8299_p12 = scmp.ne.s32.totalorder %s8297_s6, %s8298_s27  ;;  %p8304_p4 = scmp.lt.s32.totalorder %s8297_s6, %s8909_s0 }
  0x50   : > { %p8305_p6 = scmp.lt.s32.totalorder %s8303_s21, %s8298_s27 }
  0x51   : > { %p8301_p0 = pnand %p8299_p12, %p8180_p2 }
  0x52   : > { %p8306_p7 = por %p8305_p6, %p8304_p4 }
  0x53   : > { %p8302_p5 = pneg %p8301_p0 }
  0x55   : > { %p8307_p8 = pnand %p8306_p7, %p8302_p5 }
  0x57   : > { %8310 = shalt.err (!%p8307_p8)
}
  0x58   : > { %8017 = dma.hbm_to_vmem [thread:$0]  (!%p8611_p13), %s450_s1, 128, %s452_s11, %s439_s19  }
  0x59   : > { %s5404_s7 = sshll.u32 %s8607_s20, 2  ;;  %s5405_s10 = sshll.u32 %s8444_s24, 2 }
  0x5a   : > { %s488_s16 = scalar_lea.hbm %s8911_s2, %s5405_s10  ;;  %s484_s14 = scalar_lea.vmem [#allocation6], %s5404_s7 }
  0x5b   : > { %s490_s4 = sshll.u32 %s488_s16, 4  ;;  %s492_s15 = sshll.u32 %s484_s14, 4  ;;  %s491_s4 = int_to_ptr.hbm [resolvable:$true] %s490_s4  ;;  %s493_s15 = int_to_ptr.vmem [resolvable:$true] %s492_s15 }
  0x5c   : > { %s8326_s6 = sshra.s32 %s491_s4, 4  ;;  %s8333_s20 = scalar_lea.hbm %s8911_s2, 16  ;;  %s8327_s6 = int_to_ptr.hbm [resolvable:$true] %s8326_s6 }
  0x5d   : > { %s8328_s27 = scalar_lea.hbm %s8327_s6, 4  ;;  %p8334_p0 = scmp.lt.s32.totalorder %s8327_s6, %s8911_s2 }
  0x5e   : > { %p8329_p9 = scmp.ne.s32.totalorder %s8327_s6, %s8328_s27  ;;  %p8335_p5 = scmp.lt.s32.totalorder %s8333_s20, %s8328_s27 }
  0x60   : > { %p8331_p10 = pnand %p8329_p9, %p8180_p2  ;;  %p8336_p4 = por %p8335_p5, %p8334_p0 }
  0x62   : > { %p8332_p12 = pneg %p8331_p10 }
  0x64   : > { %p8337_p6 = pnand %p8336_p4, %p8332_p12 }
  0x66   : > { %8340 = shalt.err (!%p8337_p6)
}
  0x67   : > { %8023 = dma.hbm_to_vmem [thread:$0]  (!%p8611_p13), %s491_s4, 64, %s493_s15, %s8625_s8  }
  0x68   : > { %s507_s30 = scalar_lea.hbm %s8912_s3, %s5405_s10  ;;  %s503_s23 = scalar_lea.vmem [#allocation7], %s5404_s7 }
  0x69   : > { %s511_s13 = sshll.u32 %s503_s23, 4  ;;  %s509_s26 = sshll.u32 %s507_s30, 4  ;;  %s512_s13 = int_to_ptr.vmem [resolvable:$true] %s511_s13  ;;  %s510_s26 = int_to_ptr.hbm [resolvable:$true] %s509_s26 }
  0x6a   : > { %s8956_s16 = sand.u32 1, %s8444_s24   ;;  %s8356_s6 = sshra.s32 %s510_s26, 4  ;;  %s8357_s6 = int_to_ptr.hbm [resolvable:$true] %s8356_s6 }
  0x6b   : > { %s500_s14 = scalar_lea.sflag [#allocation8], %s8956_s16  ;;  %s8358_s27 = scalar_lea.hbm %s8357_s6, 4 }
  0x6c   : > { %p8359_p7 = scmp.ne.s32.totalorder %s8357_s6, %s8358_s27  ;;  %s8363_s15 = scalar_lea.hbm %s8912_s3, 16 }
  0x6d   : > { %p8364_p10 = scmp.lt.s32.totalorder %s8357_s6, %s8912_s3  ;;  %p8365_p12 = scmp.lt.s32.totalorder %s8363_s15, %s8358_s27 }
  0x6e   : > { %p8361_p8 = pnand %p8359_p7, %p8180_p2 }
  0x6f   : > { %p8366_p0 = por %p8365_p12, %p8364_p10 }
  0x70   : > { %p8362_p9 = pneg %p8361_p8 }
  0x72   : > { %p8367_p5 = pnand %p8366_p0, %p8362_p9 }
  0x74   : > { %8370 = shalt.err (!%p8367_p5)
}
  0x75   : > { %8026 = dma.hbm_to_vmem [thread:$0]  (!%p8611_p13), %s510_s26, 64, %s512_s13, %s500_s14  }
  0x76   : > { %520 = sbr.rel (%p8552_p3) target bundleno = 1751 (0x6d7), region = 68  ;;  %s522_s24 = sand.u32 (!%p8552_p3), 1, %s8436_s22  }
  0x77   : > { %s5409_s1 = sshll.u32 (!%p8552_p3), %s522_s24, 3  ;;  %s523_s11 = scalar_lea.sflag (!%p8552_p3), [#allocation3], %s522_s24 }
  0x78   : > { %s8714_s20 = scalar_lea.vmem (!%p8552_p3), [#allocation2], %s5409_s1 }
  0x7b   : > { %8403 = dma.done.wait (%p8601_p11), %s523_s11, 128  }
  0x7c   : > { %8405 = vsyncadd (%p8601_p11), %s523_s11, 4294967168  ;;  %s532_s19 = sand.u32 1, %s8547_s28   ;;  %s8721_s17 = scalar_lea.vmem [#allocation4], %s5409_s1 }
  0x7d   : > { %s533_s18 = scalar_lea.sflag [#allocation5], %s532_s19 }
  0x7e   : > { %8407 = dma.done.wait (%p8601_p11), %s533_s18, 192  }
  0x7f   : > { %8409 = vsyncadd (%p8601_p11), %s533_s18, 4294967104  ;;  %s5411_s29 = sshll.u32 %s522_s24, 2  ;;  %s553_s21 = scalar_lea.sflag [#allocation8], %s532_s19 }
  0x80   : > { %s8727_s12 = scalar_lea.vmem [#allocation6], %s5411_s29  ;;  %s8729_s30 = scalar_lea.vmem [#allocation7], %s5411_s29 }
  0x81   : > { %8411 = dma.done.wait (%p8601_p11), %s553_s21, 64  }
  0x82   : > { %8413 = vsyncadd (%p8601_p11), %s553_s21, 4294967232 }
  0x83   : > { %8415 = dma.done.wait (%p55_p1), [#allocation8], 6144  }
  0x84   : > { %8417 = vsyncadd (%p55_p1), [#allocation8], 4294961152 }
  0x85   : > { %8419 = dma.done.wait (%p55_p1), [#allocation11], 3120  }
  0x86   : > { %8421 = vsyncadd (%p55_p1), [#allocation11], 4294964176 }
  0x87   : > { %8423 = dma.done.wait (%p55_p1), [#allocation14], 55296  }
  0x88   : > { %8425 = vsyncadd (%p55_p1), [#allocation14], 4294912000 }
  0x89   : > { %8427 = dma.done.wait (%p55_p1), [#allocation17], 144  }
  0x8a   : > { %8429 = vsyncadd (%p55_p1), [#allocation17], 4294967152  ;;  %v5505_v0 = vld [vmem:[#allocation9 + $0xa8] sm:$0xf]  ;;  %v7479_v1 = vld [vmem:[#allocation9 + $0xb0] sm:$0xf0] }
  0x8b   : > { %v7478_v2 = vld [vmem:[#allocation9 + $0xac] sm:$0xf]  ;;  %v5506_v3 = vor.u32 %v7479_v1, %v5505_v0  ;;  %v5507_v4 = vld [vmem:[#allocation9 + $0xb4] sm:$0xf0]  ;;  %v5493_v9 = vld [vmem:[#allocation9 + $0x90] sm:$0xf] }
  0x8c   : > { %v7502_v5 = vld [vmem:[#allocation9 + $0x16c] sm:$0xf]  ;;  %v5603_v6 = vld [vmem:[#allocation9 + $0x174] sm:$0xf0]  ;;  %v5510_v7 = vor.u32 %v7478_v2, %v5507_v4  ;;  %v7476_v10 = vld [vmem:[#allocation9 + $0x98] sm:$0xf0] }
  0x8d   : > { %v5606_v8 = vor.u32 %v7502_v5, %v5603_v6  ;;  %v7475_v11 = vld [vmem:[#allocation9 + $0x94] sm:$0xf]  ;;  %983 = vmatpush.bf16.msra.mxu0 %v5506_v3  ;;  %v5494_v12 = vor.u32 %v7476_v10, %v5493_v9  ;;  %v5495_v13 = vld [vmem:[#allocation9 + $0x9c] sm:$0xf0]  ;;  %v5481_v18 = vld [vmem:[#allocation9 + $0x78] sm:$0xf] }
  0x8e   : > { %v7499_v14 = vld [vmem:[#allocation9 + $0x154] sm:$0xf]  ;;  %v5591_v15 = vld [vmem:[#allocation9 + $0x15c] sm:$0xf0]  ;;  %1009 = vmatpush.bf16.msra.mxu2 %v5510_v7  ;;  %v5498_v16 = vor.u32 %v7475_v11, %v5495_v13  ;;  %v7473_v19 = vld [vmem:[#allocation9 + $0x80] sm:$0xf0] }
  0x8f   : > { %1022 = vmatpush.bf16.msra.mxu3 %v5606_v8  ;;  %v5594_v17 = vor.u32 %v7499_v14, %v5591_v15  ;;  %v7472_v20 = vld [vmem:[#allocation9 + $0x7c] sm:$0xf]  ;;  %v5483_v21 = vld [vmem:[#allocation9 + $0x84] sm:$0xf0]  ;;  %v5482_v24 = vor.u32 %v7473_v19, %v5481_v18  ;;  %v7503_v26 = vld [vmem:[#allocation9 + $0x170] sm:$0xf0] }
  0x90   : > { %v7496_v22 = vld [vmem:[#allocation9 + $0x13c] sm:$0xf]  ;;  %v5579_v23 = vld [vmem:[#allocation9 + $0x144] sm:$0xf0]  ;;  %v5486_v27 = vor.u32 %v7472_v20, %v5483_v21  ;;  %v5469_v29 = vld [vmem:[#allocation9 + $0x60] sm:$0xf] }
  0x91   : > { %984 = vmatpush.bf16.msra.mxu0 %v5494_v12  ;;  %v5601_v25 = vld [vmem:[#allocation9 + $0x168] sm:$0xf]  ;;  %v5582_v28 = vor.u32 %v7496_v22, %v5579_v23  ;;  %v7470_v30 = vld [vmem:[#allocation9 + $0x68] sm:$0xf0]  ;;  %v7469_v31 = vld [vmem:[#allocation9 + $0x64] sm:$0xf] }
  0x92   : > { %1010 = vmatpush.bf16.msra.mxu2 %v5498_v16  ;;  %v5602_v32 = vor.u32 %v7503_v26, %v5601_v25  ;;  %v5471_v33 = vld [vmem:[#allocation9 + $0x6c] sm:$0xf0]  ;;  %v7493_v34 = vld [vmem:[#allocation9 + $0x124] sm:$0xf]  ;;  %v7500_v37 = vld [vmem:[#allocation9 + $0x158] sm:$0xf0]  ;;  %v5470_v38 = vor.u32 %v7470_v30, %v5469_v29 }
  0x93   : > { %1023 = vmatpush.bf16.msra.mxu3 %v5594_v17  ;;  %v5567_v35 = vld [vmem:[#allocation9 + $0x12c] sm:$0xf0]  ;;  %v5457_v39 = vld [vmem:[#allocation9 + $0x48] sm:$0xf]  ;;  %v7467_v40 = vld [vmem:[#allocation9 + $0x50] sm:$0xf0]  ;;  %v5474_v42 = vor.u32 %v7469_v31, %v5471_v33 }
  0x94   : > { %996 = vmatpush.bf16.msra.mxu1 %v5602_v32  ;;  %v5589_v36 = vld [vmem:[#allocation9 + $0x150] sm:$0xf]  ;;  %v5570_v43 = vor.u32 %v7493_v34, %v5567_v35  ;;  %v7466_v44 = vld [vmem:[#allocation9 + $0x4c] sm:$0xf]  ;;  %v5459_v45 = vld [vmem:[#allocation9 + $0x54] sm:$0xf0]  ;;  %v5458_v51 = vor.u32 %v7467_v40, %v5457_v39 }
  0x95   : > { %985 = vmatpush.bf16.msra.mxu0 %v5482_v24  ;;  %v5590_v41 = vor.u32 %v7500_v37, %v5589_v36  ;;  %v5577_v46 = vld [vmem:[#allocation9 + $0x138] sm:$0xf]  ;;  %v7490_v47 = vld [vmem:[#allocation9 + $0x10c] sm:$0xf]  ;;  %v7497_v49 = vld [vmem:[#allocation9 + $0x140] sm:$0xf0]  ;;  %v5462_v54 = vor.u32 %v7466_v44, %v5459_v45 }
  0x96   : > { %1011 = vmatpush.bf16.msra.mxu2 %v5486_v27  ;;  %v5555_v48 = vld [vmem:[#allocation9 + $0x114] sm:$0xf0]  ;;  %v5578_v50 = vor.u32 %v7497_v49, %v5577_v46  ;;  %v5565_v52 = vld [vmem:[#allocation9 + $0x120] sm:$0xf]  ;;  %v7494_v53 = vld [vmem:[#allocation9 + $0x128] sm:$0xf0] }
  0x97   : > { %1024 = vmatpush.bf16.msra.mxu3 %v5582_v28  ;;  %v5558_v55 = vor.u32 %v7490_v47, %v5555_v48  ;;  %v5445_v56 = vld [vmem:[#allocation9 + $0x30] sm:$0xf]  ;;  %v7464_v57 = vld [vmem:[#allocation9 + $0x38] sm:$0xf0]  ;;  %v7463_v58 = vld [vmem:[#allocation9 + $0x34] sm:$0xf]  ;;  %v5566_v62 = vor.u32 %v7494_v53, %v5565_v52 }
  0x98   : > { %997 = vmatpush.bf16.msra.mxu1 %v5590_v41  ;;  %v5447_v59 = vld [vmem:[#allocation9 + $0x3c] sm:$0xf0]  ;;  %v7487_v60 = vld [vmem:[#allocation9 + $0xf4] sm:$0xf]  ;;  %v5446_v63 = vor.u32 %v7464_v57, %v5445_v56  ;;  %v5553_v0 = vld [vmem:[#allocation9 + $0x108] sm:$0xf] }
  0x99   : > { %986 = vmatpush.bf16.msra.mxu0 %v5470_v38  ;;  %v5543_v61 = vld [vmem:[#allocation9 + $0xfc] sm:$0xf0]  ;;  %v7491_v1 = vld [vmem:[#allocation9 + $0x110] sm:$0xf0]  ;;  %v5450_v2 = vor.u32 %v7463_v58, %v5447_v59  ;;  %v5433_v4 = vld [vmem:[#allocation9 + $0x18] sm:$0xf] }
  0x9a   : > { %1012 = vmatpush.bf16.msra.mxu2 %v5474_v42  ;;  %v5546_v3 = vor.u32 %v7487_v60, %v5543_v61  ;;  %v7461_v5 = vld [vmem:[#allocation9 + $0x20] sm:$0xf0]  ;;  %v7460_v6 = vld [vmem:[#allocation9 + $0x1c] sm:$0xf]  ;;  %v5435_v7 = vld [vmem:[#allocation9 + $0x24] sm:$0xf0]  ;;  %v5554_v11 = vor.u32 %v7491_v1, %v5553_v0 }
  0x9b   : > { %1025 = vmatpush.bf16.msra.mxu3 %v5570_v43  ;;  %v7484_v8 = vld [vmem:[#allocation9 + $0xdc] sm:$0xf]  ;;  %v5531_v9 = vld [vmem:[#allocation9 + $0xe4] sm:$0xf0]  ;;  %v5421_v10 = vld [vmem:[#allocation9] sm:$0xf]  ;;  %v5434_v12 = vor.u32 %v7461_v5, %v5433_v4  ;;  %v5438_v16 = vor.u32 %v7460_v6, %v5435_v7 }
  0x9c   : > { %998 = vmatpush.bf16.msra.mxu1 %v5578_v50  ;;  %v7458_v13 = vld [vmem:[#allocation9 + $0x8] sm:$0xf0]  ;;  %v5541_v14 = vld [vmem:[#allocation9 + $0xf0] sm:$0xf]  ;;  %v7488_v15 = vld [vmem:[#allocation9 + $0xf8] sm:$0xf0]  ;;  %v5534_v17 = vor.u32 %v7484_v8, %v5531_v9 }
  0x9d   : > { %987 = vmatpush.bf16.msra.mxu0 %v5458_v51  ;;  %v7457_v18 = vld [vmem:[#allocation9 + $0x4] sm:$0xf]  ;;  %v5423_v19 = vld [vmem:[#allocation9 + $0xc] sm:$0xf0]  ;;  %v7480_v21 = vld [vmem:[#allocation9 + $0xb8] sm:$0xf0]  ;;  %v5542_v27 = vor.u32 %v7488_v15, %v5541_v14  ;;  %v5422_v28 = vor.u32 %v7458_v13, %v5421_v10 }
  0x9e   : > { %1013 = vmatpush.bf16.msra.mxu2 %v5462_v54  ;;  %v5513_v20 = vld [vmem:[#allocation9 + $0xb0] sm:$0xf]  ;;  %v5701_v22 = vld [vmem:[#allocation10 + $0xa8] sm:$0xf]  ;;  %v7528_v23 = vld [vmem:[#allocation10 + $0xb0] sm:$0xf0]  ;;  %v5426_v32 = vor.u32 %v7457_v18, %v5423_v19 }
  0x9f   : > { %1026 = vmatpush.bf16.msra.mxu3 %v5558_v55  ;;  %v7481_v24 = vld [vmem:[#allocation9 + $0xc4] sm:$0xf]  ;;  %v5519_v25 = vld [vmem:[#allocation9 + $0xcc] sm:$0xf0]  ;;  %v7527_v26 = vld [vmem:[#allocation10 + $0xac] sm:$0xf]  ;;  %v5514_v33 = vor.u32 %v7480_v21, %v5513_v20  ;;  %v5702_v35 = vor.u32 %v7528_v23, %v5701_v22 }
  0xa0   : > { %999 = vmatpush.bf16.msra.mxu1 %v5566_v62  ;;  %v5703_v29 = vld [vmem:[#allocation10 + $0xb4] sm:$0xf0]  ;;  %v7485_v31 = vld [vmem:[#allocation9 + $0xe0] sm:$0xf0]  ;;  %v5522_v36 = vor.u32 %v7481_v24, %v5519_v25  ;;  %v5689_v42 = vld [vmem:[#allocation10 + $0x90] sm:$0xf] }
  0xa1   : > { %988 = vmatpush.bf16.msra.mxu0 %v5446_v63  ;;  %v5529_v30 = vld [vmem:[#allocation9 + $0xd8] sm:$0xf]  ;;  %v7477_v38 = vld [vmem:[#allocation9 + $0xa0] sm:$0xf0]  ;;  %v5706_v41 = vor.u32 %v7527_v26, %v5703_v29  ;;  %v7525_v43 = vld [vmem:[#allocation10 + $0x98] sm:$0xf0] }
  0xa2   : > { %1014 = vmatpush.bf16.msra.mxu2 %v5450_v2  ;;  %v647_v34 = vld [vmem:[%s8714_s20] sm:$0xff]  ;;  %v5530_v45 = vor.u32 %v7485_v31, %v5529_v30  ;;  %v5691_v46 = vld [vmem:[#allocation10 + $0x9c] sm:$0xf0]  ;;  %v7482_v48 = vld [vmem:[#allocation9 + $0xc8] sm:$0xf0]  ;;  %v5690_v54 = vor.u32 %v7525_v43, %v5689_v42  ;;  %vm1337_vm0 = vcmask 1043456  }
  0xa3   : > { %1027 = vmatpush.bf16.msra.mxu3 %v5546_v3  ;;  %v5501_v37 = vld [vmem:[#allocation9 + $0x98] sm:$0xf]  ;;  %v721_v39 = vunpack.c.l.b16 %v647_v34  ;;  %v722_v40 = vunpack.c.h.b16 %v647_v34  ;;  %v7524_v44 = vld [vmem:[#allocation10 + $0x94] sm:$0xf]  ;;  %v5517_v47 = vld [vmem:[#allocation9 + $0xc0] sm:$0xf] }
  0xa4   : > { %1000 = vmatpush.bf16.msra.mxu1 %v5554_v11  ;;  %v5502_v50 = vor.u32 %v7477_v38, %v5501_v37  ;;  %v5609_v51 = vld [vmem:[#allocation9 + $0x170] sm:$0xf]  ;;  %v7504_v52 = vld [vmem:[#allocation9 + $0x178] sm:$0xf0]  ;;  %v5489_v55 = vld [vmem:[#allocation9 + $0x80] sm:$0xf]  ;;  %v5694_v57 = vor.u32 %v7524_v44, %v5691_v46  ;;  %v5518_v60 = vor.u32 %v7482_v48, %v5517_v47 }
  0xa5   : > { %989 = vmatpush.bf16.msra.mxu0 %v5434_v12  ;;  %v8752_v49 = vpack.c.b16 %v721_v39, %v721_v39  ;;  %v8754_v53 = vpack.c.b16 %v722_v40, %v722_v40  ;;  %v7474_v56 = vld [vmem:[#allocation9 + $0x88] sm:$0xf0]  ;;  %v5677_v58 = vld [vmem:[#allocation10 + $0x78] sm:$0xf]  ;;  %v7522_v59 = vld [vmem:[#allocation10 + $0x80] sm:$0xf0]  ;;  %v5610_v63 = vor.u32 %v7504_v52, %v5609_v51 }
  0xa6   : > { %1015 = vmatpush.bf16.msra.mxu2 %v5438_v16  ;;  %v7521_v61 = vld [vmem:[#allocation10 + $0x7c] sm:$0xf]  ;;  %v5679_v62 = vld [vmem:[#allocation10 + $0x84] sm:$0xf0]  ;;  %v5490_v0 = vor.u32 %v7474_v56, %v5489_v55  ;;  %v5597_v1 = vld [vmem:[#allocation9 + $0x158] sm:$0xf]  ;;  %v5678_v3 = vor.u32 %v7522_v59, %v5677_v58 }
  0xa7   : > { %1028 = vmatpush.bf16.msra.mxu3 %v5534_v17  ;;  %v7501_v2 = vld [vmem:[#allocation9 + $0x160] sm:$0xf0]  ;;  %v5477_v4 = vld [vmem:[#allocation9 + $0x68] sm:$0xf]  ;;  %v7471_v5 = vld [vmem:[#allocation9 + $0x70] sm:$0xf0]  ;;  %v5682_v6 = vor.u32 %v7521_v61, %v5679_v62 }
  0xa8   : > { %1001 = vmatpush.bf16.msra.mxu1 %v5542_v27  ;;  %v5665_v7 = vld [vmem:[#allocation10 + $0x60] sm:$0xf]  ;;  %v7519_v8 = vld [vmem:[#allocation10 + $0x68] sm:$0xf0]  ;;  %v7518_v9 = vld [vmem:[#allocation10 + $0x64] sm:$0xf]  ;;  %v5598_v11 = vor.u32 %v7501_v2, %v5597_v1  ;;  %v5478_v12 = vor.u32 %v7471_v5, %v5477_v4 }
  0xa9   : > { %990 = vmatpush.bf16.msra.mxu0 %v5422_v28  ;;  %v5667_v10 = vld [vmem:[#allocation10 + $0x6c] sm:$0xf0]  ;;  %v5585_v13 = vld [vmem:[#allocation9 + $0x140] sm:$0xf]  ;;  %v7498_v14 = vld [vmem:[#allocation9 + $0x148] sm:$0xf0]  ;;  %v5666_v15 = vor.u32 %v7519_v8, %v5665_v7 }
  0xaa   : > { %1016 = vmatpush.bf16.msra.mxu2 %v5426_v32  ;;  %v5465_v16 = vld [vmem:[#allocation9 + $0x50] sm:$0xf]  ;;  %v7468_v17 = vld [vmem:[#allocation9 + $0x58] sm:$0xf0]  ;;  %v5670_v18 = vor.u32 %v7518_v9, %v5667_v10  ;;  %v5653_v19 = vld [vmem:[#allocation10 + $0x48] sm:$0xf]  ;;  %v5586_v23 = vor.u32 %v7498_v14, %v5585_v13 }
  0xab   : > { %1029 = vmatpush.bf16.msra.mxu3 %v5522_v36  ;;  %v7516_v20 = vld [vmem:[#allocation10 + $0x50] sm:$0xf0]  ;;  %v7515_v21 = vld [vmem:[#allocation10 + $0x4c] sm:$0xf]  ;;  %v5655_v22 = vld [vmem:[#allocation10 + $0x54] sm:$0xf0]  ;;  %v5466_v24 = vor.u32 %v7468_v17, %v5465_v16 }
  0xac   : > { %1002 = vmatpush.bf16.msra.mxu1 %v5530_v45  ;;  %991 = vmatmul.bf16.vlgmr.msra.gmra.mxu0 %v8752_v49  ;;  %v5573_v25 = vld [vmem:[#allocation9 + $0x128] sm:$0xf]  ;;  %v7495_v26 = vld [vmem:[#allocation9 + $0x130] sm:$0xf0]  ;;  %v5654_v27 = vor.u32 %v7516_v20, %v5653_v19  ;;  %v5453_v28 = vld [vmem:[#allocation9 + $0x38] sm:$0xf]  ;;  %v5658_v30 = vor.u32 %v7515_v21, %v5655_v22 }
  0xad   : > { %1035 = vmatpush.bf16.msrb.mxu0 %v5514_v33  ;;  %1017 = vmatmul.bf16.vlgmr.msra.gmra.mxu2 %v8752_v49  ;;  %v7465_v29 = vld [vmem:[#allocation9 + $0x40] sm:$0xf0]  ;;  %v5641_v31 = vld [vmem:[#allocation10 + $0x30] sm:$0xf]  ;;  %v7513_v32 = vld [vmem:[#allocation10 + $0x38] sm:$0xf0] }
  0xae   : > { %1240 = vmatpush.bf16.msrb.mxu2 %v5702_v35  ;;  %1030 = vmatmul.bf16.vlgmr.msra.gmra.mxu3 %v8754_v53  ;;  %v7512_v33 = vld [vmem:[#allocation10 + $0x34] sm:$0xf]  ;;  %v5643_v34 = vld [vmem:[#allocation10 + $0x3c] sm:$0xf0]  ;;  %v5574_v35 = vor.u32 %v7495_v26, %v5573_v25  ;;  %v5454_v36 = vor.u32 %v7465_v29, %v5453_v28  ;;  %v5561_v37 = vld [vmem:[#allocation9 + $0x110] sm:$0xf]  ;;  %v5642_v39 = vor.u32 %v7513_v32, %v5641_v31 }
  0xaf   : > { %1254 = vmatpush.bf16.msrb.mxu3 %v5706_v41  ;;  %v7492_v38 = vld [vmem:[#allocation9 + $0x118] sm:$0xf0]  ;;  %v5441_v40 = vld [vmem:[#allocation9 + $0x20] sm:$0xf]  ;;  %v7462_v41 = vld [vmem:[#allocation9 + $0x28] sm:$0xf0]  ;;  %v5646_v42 = vor.u32 %v7512_v33, %v5643_v34 }
  0xb0   : > { %1003 = vmatpush.bf16.msra.mxu1 %v5518_v60  ;;  %v5629_v43 = vld [vmem:[#allocation10 + $0x18] sm:$0xf]  ;;  %v7510_v44 = vld [vmem:[#allocation10 + $0x20] sm:$0xf0]  ;;  %v7509_v45 = vld [vmem:[#allocation10 + $0x1c] sm:$0xf]  ;;  %v5562_v47 = vor.u32 %v7492_v38, %v5561_v37  ;;  %v5442_v48 = vor.u32 %v7462_v41, %v5441_v40 }
  0xb1   : > { %1036 = vmatpush.bf16.msrb.mxu0 %v5502_v50  ;;  %v5631_v46 = vld [vmem:[#allocation10 + $0x24] sm:$0xf0]  ;;  %v5549_v50 = vld [vmem:[#allocation9 + $0xf8] sm:$0xf]  ;;  %v7489_v51 = vld [vmem:[#allocation9 + $0x100] sm:$0xf0]  ;;  %v5630_v52 = vor.u32 %v7510_v44, %v5629_v43 }
  0xb2   : > { %1241 = vmatpush.bf16.msrb.mxu2 %v5690_v54  ;;  %v5429_v54 = vld [vmem:[#allocation9 + $0x8] sm:$0xf]  ;;  %v7459_v55 = vld [vmem:[#allocation9 + $0x10] sm:$0xf0]  ;;  %v5617_v56 = vld [vmem:[#allocation10] sm:$0xf] }
  0xb3   : > { %1255 = vmatpush.bf16.msrb.mxu3 %v5694_v57  ;;  %1004 = vmatmul.bf16.vlgmr.msra.gmra.mxu1 %v8754_v53  ;;  %v5634_v57 = vor.u32 %v7509_v45, %v5631_v46  ;;  %v7507_v58 = vld [vmem:[#allocation10 + $0x8] sm:$0xf0]  ;;  %v5709_v59 = vld [vmem:[#allocation10 + $0xb0] sm:$0xf]  ;;  %v7529_v60 = vld [vmem:[#allocation10 + $0xb8] sm:$0xf0] }
  0xb4   : > { %1048 = vmatpush.bf16.msrb.mxu1 %v5610_v63  ;;  %v7506_v61 = vld [vmem:[#allocation10 + $0x4] sm:$0xf]  ;;  %v5619_v62 = vld [vmem:[#allocation10 + $0xc] sm:$0xf0]  ;;  %v5550_v63 = vor.u32 %v7489_v51, %v5549_v50  ;;  %v5537_v1 = vld [vmem:[#allocation9 + $0xe0] sm:$0xf]  ;;  %v5710_v4 = vor.u32 %v7529_v60, %v5709_v59 }
  0xb5   : > { %1037 = vmatpush.bf16.msrb.mxu0 %v5490_v0  ;;  %v5430_v0 = vor.u32 %v7459_v55, %v5429_v54  ;;  %v7486_v2 = vld [vmem:[#allocation9 + $0xe8] sm:$0xf0]  ;;  %v5622_v5 = vor.u32 %v7506_v61, %v5619_v62  ;;  %v7526_v7 = vld [vmem:[#allocation10 + $0xa0] sm:$0xf0]  ;;  %v5525_v10 = vld [vmem:[#allocation9 + $0xc8] sm:$0xf] }
  0xb6   : > { %1242 = vmatpush.bf16.msrb.mxu2 %v5678_v3  ;;  %v5618_v3 = vor.u32 %v7507_v58, %v5617_v56  ;;  %v5538_v8 = vor.u32 %v7486_v2, %v5537_v1  ;;  %v7505_v9 = vld [vmem:[%s8721_s17] sm:$0xff]  ;;  %v5661_v20 = vld [vmem:[#allocation10 + $0x50] sm:$0xf]  ;;  %v7517_v21 = vld [vmem:[#allocation10 + $0x58] sm:$0xf0]  ;;  %vm1286_vm1 = vcmask 130048  }
  0xb7   : > { %1256 = vmatpush.bf16.msrb.mxu3 %v5682_v6  ;;  %v5697_v6 = vld [vmem:[#allocation10 + $0x98] sm:$0xf]  ;;  %v5685_v13 = vld [vmem:[#allocation10 + $0x80] sm:$0xf]  ;;  %v7523_v14 = vld [vmem:[#allocation10 + $0x88] sm:$0xf0]  ;;  %v5662_v22 = vor.u32 %v7517_v21, %v5661_v20 }
  0xb8   : > { %1049 = vmatpush.bf16.msrb.mxu1 %v5598_v11  ;;  %v7483_v11 = vld [vmem:[#allocation9 + $0xd0] sm:$0xf0]  ;;  %v5686_v16 = vor.u32 %v7523_v14, %v5685_v13  ;;  %v5673_v17 = vld [vmem:[#allocation10 + $0x68] sm:$0xf]  ;;  %v5637_v25 = vld [vmem:[#allocation10 + $0x20] sm:$0xf] }
  0xb9   : > { %1038 = vmatpush.bf16.msrb.mxu0 %v5478_v12  ;;  %v5698_v12 = vor.u32 %v7526_v7, %v5697_v6  ;;  %v7511_v26 = vld [vmem:[#allocation10 + $0x28] sm:$0xf0]  ;;  %v5625_v28 = vld [vmem:[#allocation10 + $0x8] sm:$0xf]  ;;  %v7508_v29 = vld [vmem:[#allocation10 + $0x10] sm:$0xf0] }
  0xba   : > { %1243 = vmatpush.bf16.msrb.mxu2 %v5666_v15  ;;  %v5526_v15 = vor.u32 %v7483_v11, %v5525_v10  ;;  %v712_v38 = vld [vmem:[%s8914_s5] sm:$0x7]  ;;  %v1098_v45 = vld [vmem:[#allocation12] sm:$0x7]  ;;  %v1282_v6 = vld [vmem:[%s8729_s30] sm:$0xf] }
  0xbb   : > { %1257 = vmatpush.bf16.msrb.mxu3 %v5670_v18  ;;  %v7520_v18 = vld [vmem:[#allocation10 + $0x70] sm:$0xf0]  ;;  %v714_v40 = vperm.slane %v712_v38, 0  ;;  %v1101_v55 = vperm.slane %v1098_v45, 1  ;;  %v716_v7 = vperm.slane %v712_v38, 2  ;;  %v1102_v20 = vperm.slane %v1098_v45, 2 }
  0xbc   : > { %1050 = vmatpush.bf16.msrb.mxu1 %v5586_v23  ;;  %v5674_v19 = vor.u32 %v7520_v18, %v5673_v17  ;;  %v5649_v23 = vld [vmem:[#allocation10 + $0x38] sm:$0xf]  ;;  %v5803_v10 = vld [vmem:[#allocation13 + $0xa8] sm:$0xf]  ;;  %v5779_v17 = vld [vmem:[#allocation13 + $0x78] sm:$0xf] }
  0xbd   : > { %1039 = vmatpush.bf16.msrb.mxu0 %v5466_v24  ;;  %v7514_v24 = vld [vmem:[#allocation10 + $0x40] sm:$0xf0]  ;;  %v7552_v11 = vld [vmem:[#allocation13 + $0xb0] sm:$0xf0]  ;;  %v7546_v18 = vld [vmem:[#allocation13 + $0x80] sm:$0xf0] }
  0xbe   : > { %1244 = vmatpush.bf16.msrb.mxu2 %v5654_v27  ;;  %v5638_v27 = vor.u32 %v7511_v26, %v5637_v25  ;;  %v5804_v14 = vor.u32 %v7552_v11, %v5803_v10  ;;  %v8772_v21 = vld [vmem:[%s8727_s12] sm:$0xf]  ;;  %vm1333_vm2 = vcmask 64512   ;;  %v5767_v25 = vld [vmem:[#allocation13 + $0x60] sm:$0xf]  ;;  %p642_p1 = scmp.lt.s32.totalorder %s8547_s28, 3 }
  0xbf   : > { %1258 = vmatpush.bf16.msrb.mxu3 %v5658_v30  ;;  %v5626_v30 = vor.u32 %v7508_v29, %v5625_v28  ;;  %v7543_v26 = vld [vmem:[#allocation13 + $0x68] sm:$0xf0]  ;;  %v5745_v10 = vld [vmem:[#allocation13 + $0x3c] sm:$0xf0]  ;;  %vm5191_vm3 = vcmask 1040384   ;;  %vm5193_vm4 = vcmask 1041408  }
  0xc0   : > { %1051 = vmatpush.bf16.msrb.mxu1 %v5574_v35  ;;  %s8964_s28 = smov (!%p642_p1, %s8547_s28), 3  ;;  %s8957_s10 = sld [smem:[#allocation35_spill]] }
  0xc1   : > { %1040 = vmatpush.bf16.msrb.mxu0 %v5454_v36  ;;  %s7962_s8 = smul.u32 3, %s8964_s28 }
  0xc2   : > { %1245 = vmatpush.bf16.msrb.mxu2 %v5642_v39  ;;  %v715_v39 = vperm.slane %v712_v38, 1 }
  0xc3   : > { %1259 = vmatpush.bf16.msrb.mxu3 %v5646_v42 }
  0xc4   : > { %1052 = vmatpush.bf16.msrb.mxu1 %v5562_v47 }
  0xc5   : > { %1041 = vmatpush.bf16.msrb.mxu0 %v5442_v48 }
  0xc6   : > { %1246 = vmatpush.bf16.msrb.mxu2 %v5630_v52  ;;  %v1100_v52 = vperm.slane %v1098_v45, 0  ;;  %s645_s7 = scalar_lea.vmem %s8957_s10, %s7962_s8 }
  0xc7   : > { %1260 = vmatpush.bf16.msrb.mxu3 %v5634_v57 }
  0xc8   : > { %1053 = vmatpush.bf16.msrb.mxu1 %v5550_v63 }
  0xc9   : > { %1042 = vmatpush.bf16.msrb.mxu0 %v5430_v0 }
  0xca   : > { %1247 = vmatpush.bf16.msrb.mxu2 %v5618_v3 }
  0xcb   : > { %1261 = vmatpush.bf16.msrb.mxu3 %v5622_v5 }
  0xcc   : > { %1043 = vmatmul.bf16.vlgmr.msrb.gmra.mxu0 %v8752_v49  ;;  %1054 = vmatpush.bf16.msrb.mxu1 %v5538_v8  ;;  %v5650_v49 = vor.u32 %v7514_v24, %v5649_v23  ;;  %v5899_v23 = vld [vmem:[#allocation13 + $0x168] sm:$0xf]  ;;  %v7576_v24 = vld [vmem:[#allocation13 + $0x170] sm:$0xf0] }
  0xcd   : > { %1268 = vmatpush.bf16.msra.mxu0 %v5710_v4  ;;  %1248 = vmatmul.bf16.vlgmr.msrb.gmra.mxu2 %v7505_v9 }
  0xce   : > { %1262 = vmatmul.bf16.vlgmr.msrb.gmra.mxu3 %v7505_v9 }
  0xd0   : > { %1055 = vmatpush.bf16.msrb.mxu1 %v5526_v15  ;;  %v7549_v15 = vld [vmem:[#allocation13 + $0x98] sm:$0xf0] }
  0xd1   : > { %1269 = vmatpush.bf16.msra.mxu0 %v5698_v12  ;;  %v5791_v12 = vld [vmem:[#allocation13 + $0x90] sm:$0xf] }
  0xd3   : > { %1056 = vmatmul.bf16.vlgmr.msrb.gmra.mxu1 %v8754_v53 }
  0xd5   : > { %1270 = vmatpush.bf16.msra.mxu0 %v5686_v16  ;;  %v5792_v16 = vor.u32 %v7549_v15, %v5791_v12  ;;  %v7569_v15 = vld [vmem:[#allocation13 + $0x13c] sm:$0xf] }
  0xd9   : > { %1271 = vmatpush.bf16.msra.mxu0 %v5674_v19 }
  0xdd   : > { %1272 = vmatpush.bf16.msra.mxu0 %v5662_v22  ;;  %v5780_v22 = vor.u32 %v7546_v18, %v5779_v17  ;;  %v5877_v17 = vld [vmem:[#allocation13 + $0x144] sm:$0xf0]  ;;  %v5863_v18 = vld [vmem:[#allocation13 + $0x120] sm:$0xf] }
  0xe1   : > { %1273 = vmatpush.bf16.msra.mxu0 %v5650_v49 }
  0xe5   : > { %1274 = vmatpush.bf16.msra.mxu0 %v5638_v27  ;;  %v5900_v27 = vor.u32 %v7576_v24, %v5899_v23  ;;  %v7530_v23 = vld [vmem:[#allocation13 + $0x4] sm:$0xf]  ;;  %v5721_v24 = vld [vmem:[#allocation13 + $0xc] sm:$0xf0] }
  0xe9   : > { %1275 = vmatpush.bf16.msra.mxu0 %v5626_v30 }
  0xec   : > { %1276 = vmatmul.bf16.vlgmr.msra.gmra.mxu0 %v7505_v9 }
  0xed   : > { %1877 = vmatpush.bf16.msrb.mxu0 %v5804_v14  ;;  %v5733_v14 = vld [vmem:[#allocation13 + $0x24] sm:$0xf0] }
  0xf1   : > { %1878 = vmatpush.bf16.msrb.mxu0 %v5792_v16 }
  0xf5   : > { %1879 = vmatpush.bf16.msrb.mxu0 %v5780_v22 }
 0x129   : > { %v992_v31 = vpop.f32.mrf.mxu0 }
 0x12a   : > { %v993_v43 = vadd.f32 %v992_v31, %v714_v40  ;;  %v7551_v31 = vld [vmem:[#allocation13 + $0xac] sm:$0xf] }
 0x130   : > { %v1018_v32 = vpop.f32.mrf.mxu2  ;;  %v1005_v33 = vpop.f32.mrf.mxu1 }
 0x131   : > { %v1031_v53 = vpop.f32.mrf.mxu3  ;;  %v994_v34 = vpop.f32.mrf.mxu0  ;;  %v1019_v42 = vadd.f32 %v1018_v32, %v715_v39  ;;  %v1006_v48 = vadd.f32 %v1005_v33, %v993_v43  ;;  %v5805_v32 = vld [vmem:[#allocation13 + $0xb4] sm:$0xf0]  ;;  %v5887_v33 = vld [vmem:[#allocation13 + $0x150] sm:$0xf]  ;;  %v7548_v43 = vld [vmem:[#allocation13 + $0x94] sm:$0xf] }
 0x132   : > { %v5808_v40 = vor.u32 %v7551_v31, %v5805_v32  ;;  %v7600_v31 = vld [vmem:[#allocation13 + $0x230] sm:$0xf0]  ;;  %v5907_v32 = vld [vmem:[#allocation13 + $0x170] sm:$0xf] }
 0x133   : > { %v1032_v44 = vadd.f32 %v1031_v53, %v1019_v42  ;;  %v1061_v56 = vmax.f32 %v1006_v48, 0.0  ;;  %v7573_v53 = vld [vmem:[#allocation13 + $0x158] sm:$0xf0]  ;;  %v7570_v42 = vld [vmem:[#allocation13 + $0x140] sm:$0xf0] }
 0x134   : > { %v5888_v38 = vor.u32 %v7573_v53, %v5887_v33  ;;  %v7577_v53 = vld [vmem:[#allocation13 + $0x178] sm:$0xf0] }
 0x135   : > { %v1062_v54 = vmax.f32 %v1032_v44, 0.0  ;;  %v1330_v62 = vpack.c.bf16 %v1061_v56, %v1061_v56  ;;  %v5793_v44 = vld [vmem:[#allocation13 + $0x9c] sm:$0xf0]  ;;  %v7534_v56 = vld [vmem:[#allocation13 + $0x20] sm:$0xf0] }
 0x137   : > { %v1331_v58 = vpack.c.bf16 %v1062_v54, %v1062_v54  ;;  %v1339_v5 = vsel %vm1337_vm0, %v1330_v62, 0  ;;  %v7531_v62 = vld [vmem:[#allocation13 + $0x8] sm:$0xf0] }
 0x138   : > { %v1020_v35 = vpop.f32.mrf.mxu2  ;;  %v1007_v36 = vpop.f32.mrf.mxu1 }
 0x139   : > { %v1033_v37 = vpop.f32.mrf.mxu3  ;;  %v1342_v4 = vsel %vm1337_vm0, %v1331_v58, 0  ;;  %v5768_v35 = vor.u32 %v7543_v26, %v5767_v25  ;;  %v5755_v36 = vld [vmem:[#allocation13 + $0x48] sm:$0xf]  ;;  %v7542_v58 = vld [vmem:[#allocation13 + $0x64] sm:$0xf] }
 0x13a   : > { %v7540_v37 = vld [vmem:[#allocation13 + $0x50] sm:$0xf0]  ;;  %v5865_v25 = vld [vmem:[#allocation13 + $0x12c] sm:$0xf0]  ;;  %v5851_v26 = vld [vmem:[#allocation13 + $0x108] sm:$0xf] }
 0x13b   : > { %1880 = vmatpush.bf16.msrb.mxu0 %v5768_v35  ;;  %v5756_v45 = vor.u32 %v7540_v37, %v5755_v36  ;;  %v7563_v35 = vld [vmem:[#allocation13 + $0x10c] sm:$0xf]  ;;  %v5853_v36 = vld [vmem:[#allocation13 + $0x114] sm:$0xf0] }
 0x13c   : > { %v5856_v37 = vor.u32 %v7563_v35, %v5853_v36  ;;  %v7559_v35 = vld [vmem:[#allocation13 + $0xe8] sm:$0xf0] }
 0x13f   : > { %1881 = vmatpush.bf16.msrb.mxu0 %v5756_v45 }
 0x149   : > { %v1044_v41 = vpop.f32.mrf.mxu0 }
 0x14a   : > { %v1045_v8 = vadd.f32 %v1044_v41, %v716_v7  ;;  %v5875_v41 = vld [vmem:[#allocation13 + $0x138] sm:$0xf]  ;;  %v7572_v7 = vld [vmem:[#allocation13 + $0x154] sm:$0xf] }
 0x14b   : > { %v5876_v48 = vor.u32 %v7570_v42, %v5875_v41  ;;  %v7597_v42 = vld [vmem:[#allocation13 + $0x218] sm:$0xf0] }
 0x150   : > { %v1249_v46 = vpop.f32.mrf.mxu2  ;;  %v1057_v47 = vpop.f32.mrf.mxu1 }
 0x151   : > { %v1263_v50 = vpop.f32.mrf.mxu3  ;;  %v1046_v51 = vpop.f32.mrf.mxu0  ;;  %v1250_v57 = vadd.f32 %v1249_v46, %v1100_v52  ;;  %v1058_v13 = vadd.f32 %v1057_v47, %v1045_v8  ;;  %v5743_v46 = vld [vmem:[#allocation13 + $0x30] sm:$0xf]  ;;  %v7537_v47 = vld [vmem:[#allocation13 + $0x38] sm:$0xf0]  ;;  %v5889_v8 = vld [vmem:[#allocation13 + $0x15c] sm:$0xf0] }
 0x152   : > { %v1264_v59 = vadd.f32 %v1263_v50, %v1101_v55  ;;  %v5796_v50 = vor.u32 %v7548_v43, %v5793_v44  ;;  %v7545_v51 = vld [vmem:[#allocation13 + $0x7c] sm:$0xf]  ;;  %v5744_v54 = vor.u32 %v7537_v47, %v5743_v46  ;;  %v5892_v11 = vor.u32 %v7572_v7, %v5889_v8  ;;  %v5895_v43 = vld [vmem:[#allocation13 + $0x158] sm:$0xf]  ;;  %v7574_v44 = vld [vmem:[#allocation13 + $0x160] sm:$0xf0] }
 0x153   : > { %v1063_v19 = vmax.f32 %v1058_v13, 0.0  ;;  %v7533_v13 = vld [vmem:[#allocation13 + $0x1c] sm:$0xf]  ;;  %v5896_v46 = vor.u32 %v7574_v44, %v5895_v43  ;;  %v7560_v47 = vld [vmem:[#allocation13 + $0xf4] sm:$0xf] }
 0x154   : > { %1882 = vmatpush.bf16.msrb.mxu0 %v5744_v54  ;;  %v5736_v16 = vor.u32 %v7533_v13, %v5733_v14  ;;  %v5971_v54 = vld [vmem:[#allocation13 + $0x1f8] sm:$0xf]  ;;  %v5817_v13 = vld [vmem:[#allocation13 + $0xcc] sm:$0xf0]  ;;  %v7556_v44 = vld [vmem:[#allocation13 + $0xd0] sm:$0xf0] }
 0x155   : > { %v1332_v28 = vpack.c.bf16 %v1063_v19, %v1063_v19  ;;  %v7567_v19 = vld [vmem:[#allocation13 + $0x128] sm:$0xf0] }
 0x156   : > { %v5864_v22 = vor.u32 %v7567_v19, %v5863_v18  ;;  %v7565_v19 = vld [vmem:[#allocation13 + $0x118] sm:$0xf0] }
 0x157   : > { %v1345_v39 = vsel %vm1337_vm0, %v1332_v28, 0 }
 0x158   : > { %v1251_v60 = vpop.f32.mrf.mxu2  ;;  %v1059_v61 = vpop.f32.mrf.mxu1 }
 0x159   : > { %v1252_v63 = vadd.f32 %v1251_v60, %v1100_v52  ;;  %v1265_v0 = vpop.f32.mrf.mxu3  ;;  %v5781_v52 = vld [vmem:[#allocation13 + $0x84] sm:$0xf0]  ;;  %v5719_v61 = vld [vmem:[#allocation13] sm:$0xf] }
 0x15a   : > { %v1266_v1 = vadd.f32 %v1265_v0, %v1101_v55  ;;  %v5731_v55 = vld [vmem:[#allocation13 + $0x18] sm:$0xf]  ;;  %v7575_v0 = vld [vmem:[#allocation13 + $0x16c] sm:$0xf] }
 0x15b   : > { %v1283_v2 = vpack.c.bf16 %v1252_v63, %v1250_v57  ;;  %v5784_v57 = vor.u32 %v7545_v51, %v5781_v52  ;;  %v5732_v60 = vor.u32 %v7534_v56, %v5731_v55  ;;  %v7558_v52 = vld [vmem:[#allocation13 + $0xe0] sm:$0xf0] }
 0x15c   : > { %v1284_v3 = vpack.c.bf16 %v1266_v1, %v1264_v59  ;;  %v5769_v59 = vld [vmem:[#allocation13 + $0x6c] sm:$0xf0]  ;;  %v5901_v1 = vld [vmem:[#allocation13 + $0x174] sm:$0xf0]  ;;  %v7594_v55 = vld [vmem:[#allocation13 + $0x200] sm:$0xf0] }
 0x15d   : > { %1297 = vmatpush.bf16.msra.mxu1 %v1283_v2  ;;  %v5772_v63 = vor.u32 %v7542_v58, %v5769_v59  ;;  %v7539_v2 = vld [vmem:[#allocation13 + $0x4c] sm:$0xf]  ;;  %1883 = vmatpush.bf16.msrb.mxu0 %v5732_v60  ;;  %v5883_v58 = vld [vmem:[#allocation13 + $0x140] sm:$0xf] }
 0x15e   : > { %1310 = vmatpush.bf16.msra.mxu2 %v1284_v3  ;;  %v5757_v3 = vld [vmem:[#allocation13 + $0x54] sm:$0xf0]  ;;  %v7571_v59 = vld [vmem:[#allocation13 + $0x148] sm:$0xf0] }
 0x15f   : > { %v5884_v60 = vor.u32 %v7571_v59, %v5883_v58  ;;  %v7550_v59 = vld [vmem:[#allocation13 + $0xa0] sm:$0xf0] }
 0x160   : > { %5711 = vmatmul.msk.bf16.vlgmr.msra.gmra.mxu1 %vm1286_vm1, %v1282_v6 }
 0x161   : > { %1354 = vmatpush.bf16.msrb.mxu1 %v1339_v5  ;;  %5712 = vmatmul.msk.bf16.vlgmr.msra.gmra.mxu2 %vm1286_vm1, %v1282_v6  ;;  %v5904_v5 = vor.u32 %v7575_v0, %v5901_v1  ;;  %v5815_v0 = vld [vmem:[#allocation13 + $0xc0] sm:$0xf]  ;;  %v7555_v1 = vld [vmem:[#allocation13 + $0xc8] sm:$0xf0] }
 0x162   : > { %1367 = vmatpush.bf16.msrb.mxu2 %v1342_v4  ;;  %v5720_v4 = vor.u32 %v7531_v62, %v5719_v61  ;;  %v7557_v61 = vld [vmem:[#allocation13 + $0xdc] sm:$0xf]  ;;  %v5829_v62 = vld [vmem:[#allocation13 + $0xe4] sm:$0xf0] }
 0x164   : > { %1884 = vmatpush.bf16.msrb.mxu0 %v5720_v4  ;;  %v7591_v4 = vld [vmem:[#allocation13 + $0x1e8] sm:$0xf0] }
 0x165   : > { %1890 = vmatpush.bf16.msra.mxu1 %v5900_v27  ;;  %v7564_v27 = vld [vmem:[#allocation13 + $0x110] sm:$0xf0] }
 0x168   : > { %1929 = vmatpush.bf16.msra.mxu0 %v5904_v5  ;;  %v5871_v5 = vld [vmem:[#allocation13 + $0x128] sm:$0xf] }
 0x169   : > { %v1277_v9 = vpop.f32.mrf.mxu0  ;;  %1891 = vmatpush.bf16.msra.mxu1 %v5888_v38  ;;  %v5839_v38 = vld [vmem:[#allocation13 + $0xf0] sm:$0xf] }
 0x16a   : > { %v1278_v29 = vadd.f32 %v1277_v9, %v1102_v20  ;;  %v7536_v9 = vld [vmem:[#allocation13 + $0x34] sm:$0xf] }
 0x16b   : > { %v5748_v12 = vor.u32 %v7536_v9, %v5745_v10  ;;  %v7599_v9 = vld [vmem:[#allocation13 + $0x22c] sm:$0xf]  ;;  %v5997_v10 = vld [vmem:[#allocation13 + $0x234] sm:$0xf0] }
 0x16c   : > { %1930 = vmatpush.bf16.msra.mxu0 %v5892_v11  ;;  %v6000_v11 = vor.u32 %v7599_v9, %v5997_v10  ;;  %v7544_v9 = vld [vmem:[#allocation13 + $0x70] sm:$0xf0] }
 0x16d   : > { %1892 = vmatpush.bf16.msra.mxu1 %v5876_v48  ;;  %v5841_v48 = vld [vmem:[#allocation13 + $0xfc] sm:$0xf0] }
 0x16e   : > { %v5844_v51 = vor.u32 %v7560_v47, %v5841_v48  ;;  %v7587_v47 = vld [vmem:[#allocation13 + $0x1cc] sm:$0xf]  ;;  %v5949_v48 = vld [vmem:[#allocation13 + $0x1d4] sm:$0xf0] }
 0x170   : > { %5714 = vmatmul.msk.bf16.vlgmr.msrb.gmra.mxu1 %vm1333_vm2, %v8772_v21 }
 0x171   : > { %v1279_v49 = vpop.f32.mrf.mxu0  ;;  %5715 = vmatmul.msk.bf16.vlgmr.msrb.gmra.mxu2 %vm1333_vm2, %v8772_v21  ;;  %1893 = vmatpush.bf16.msra.mxu1 %v5864_v22  ;;  %v7596_v22 = vld [vmem:[#allocation13 + $0x214] sm:$0xf] }
 0x172   : > { %v1280_v30 = vadd.f32 %v1279_v49, %v1102_v20  ;;  %v5880_v20 = vor.u32 %v7569_v15, %v5877_v17  ;;  %v7566_v49 = vld [vmem:[#allocation13 + $0x124] sm:$0xf]  ;;  %v5947_v15 = vld [vmem:[#allocation13 + $0x1c8] sm:$0xf]  ;;  %v5859_v17 = vld [vmem:[#allocation13 + $0x110] sm:$0xf] }
 0x173   : > { %v5868_v28 = vor.u32 %v7566_v49, %v5865_v25  ;;  %v5935_v49 = vld [vmem:[#allocation13 + $0x1b0] sm:$0xf]  ;;  %v5847_v25 = vld [vmem:[#allocation13 + $0xf8] sm:$0xf] }
 0x174   : > { %v1285_v34 = vpack.c.bf16 %v1280_v30, %v1278_v29  ;;  %1931 = vmatpush.bf16.msra.mxu0 %v5880_v20  ;;  %v5852_v29 = vor.u32 %v7564_v27, %v5851_v26  ;;  %v5995_v30 = vld [vmem:[#allocation13 + $0x228] sm:$0xf]  ;;  %v5860_v20 = vor.u32 %v7565_v19, %v5859_v17  ;;  %v7562_v27 = vld [vmem:[#allocation13 + $0x100] sm:$0xf0] }
 0x175   : > { %v5996_v33 = vor.u32 %v7600_v31, %v5995_v30  ;;  %v5973_v30 = vld [vmem:[#allocation13 + $0x204] sm:$0xf0] }
 0x176   : > { %1323 = vmatpush.bf16.msra.mxu3 %v1285_v34  ;;  %v5908_v34 = vor.u32 %v7577_v53, %v5907_v32  ;;  %1894 = vmatpush.bf16.msra.mxu1 %v5852_v29  ;;  %v7593_v29 = vld [vmem:[#allocation13 + $0x1fc] sm:$0xf]  ;;  %v5923_v32 = vld [vmem:[#allocation13 + $0x198] sm:$0xf]  ;;  %v5835_v53 = vld [vmem:[#allocation13 + $0xe0] sm:$0xf] }
 0x177   : > { %1903 = vmatpush.bf16.msra.mxu2 %v5996_v33  ;;  %v5976_v31 = vor.u32 %v7593_v29, %v5973_v30  ;;  %v7582_v33 = vld [vmem:[#allocation13 + $0x1a0] sm:$0xf0]  ;;  %v5836_v36 = vor.u32 %v7559_v35, %v5835_v53  ;;  %v5979_v29 = vld [vmem:[#allocation13 + $0x200] sm:$0xf]  ;;  %v7595_v30 = vld [vmem:[#allocation13 + $0x208] sm:$0xf0] }
 0x178   : > { %1932 = vmatpush.bf16.msra.mxu0 %v5868_v28  ;;  %v5848_v28 = vor.u32 %v7562_v27, %v5847_v25  ;;  %v5739_v25 = vld [vmem:[#allocation13 + $0x20] sm:$0xf]  ;;  %v5727_v53 = vld [vmem:[#allocation13 + $0x8] sm:$0xf] }
 0x179   : > { %5713 = vmatmul.msk.bf16.vlgmr.msra.gmra.mxu3 %vm1286_vm1, %v1282_v6  ;;  %v5760_v6 = vor.u32 %v7539_v2, %v5757_v3  ;;  %v5959_v2 = vld [vmem:[#allocation13 + $0x1e0] sm:$0xf]  ;;  %v5816_v3 = vor.u32 %v7555_v1, %v5815_v0  ;;  %v5925_v0 = vld [vmem:[#allocation13 + $0x1a4] sm:$0xf0] }
 0x17a   : > { %1380 = vmatpush.bf16.msrb.mxu3 %v1345_v39  ;;  %v7561_v39 = vld [vmem:[#allocation13 + $0xf8] sm:$0xf0]  ;;  %v5960_v7 = vor.u32 %v7591_v4, %v5959_v2  ;;  %v5787_v1 = vld [vmem:[#allocation13 + $0x80] sm:$0xf] }
 0x17b   : > { %v5840_v41 = vor.u32 %v7561_v39, %v5839_v38  ;;  %v5961_v38 = vld [vmem:[#allocation13 + $0x1ec] sm:$0xf0] }
 0x17c   : > { %1933 = vmatpush.bf16.msra.mxu0 %v5856_v37  ;;  %v7590_v37 = vld [vmem:[#allocation13 + $0x1e4] sm:$0xf] }
 0x17d   : > { %1895 = vmatpush.bf16.msra.mxu1 %v5840_v41  ;;  %v5964_v39 = vor.u32 %v7590_v37, %v5961_v38  ;;  %v7579_v41 = vld [vmem:[#allocation13 + $0x188] sm:$0xf0]  ;;  %v5967_v37 = vld [vmem:[#allocation13 + $0x1e8] sm:$0xf]  ;;  %v7592_v38 = vld [vmem:[#allocation13 + $0x1f0] sm:$0xf0] }
 0x17e   : > { %1916 = vmatpush.bf16.msra.mxu3 %v5808_v40  ;;  %v5983_v40 = vld [vmem:[#allocation13 + $0x210] sm:$0xf] }
 0x17f   : > { %v5984_v45 = vor.u32 %v7597_v42, %v5983_v40  ;;  %v5911_v40 = vld [vmem:[#allocation13 + $0x180] sm:$0xf]  ;;  %v5823_v42 = vld [vmem:[#allocation13 + $0xc8] sm:$0xf] }
 0x180   : > { %1934 = vmatpush.bf16.msra.mxu0 %v5844_v51  ;;  %v5912_v43 = vor.u32 %v7579_v41, %v5911_v40  ;;  %v5952_v51 = vor.u32 %v7587_v47, %v5949_v48  ;;  %v5968_v41 = vor.u32 %v7592_v38, %v5967_v37  ;;  %v7624_v47 = vld [vmem:[#allocation15 + $0xb0] sm:$0xf0]  ;;  %v6079_v48 = vld [vmem:[#allocation15 + $0x90] sm:$0xf] }
 0x181   : > { %1904 = vmatpush.bf16.msra.mxu2 %v5984_v45  ;;  %v6057_v38 = vld [vmem:[#allocation15 + $0x6c] sm:$0xf0] }
 0x182   : > { %1917 = vmatpush.bf16.msra.mxu3 %v5796_v50  ;;  %v5827_v50 = vld [vmem:[#allocation13 + $0xd8] sm:$0xf] }
 0x183   : > { %v5828_v56 = vor.u32 %v7558_v52, %v5827_v50  ;;  %v5811_v50 = vld [vmem:[#allocation13 + $0xb0] sm:$0xf]  ;;  %v7553_v52 = vld [vmem:[#allocation13 + $0xb8] sm:$0xf0] }
 0x185   : > { %1896 = vmatpush.bf16.msra.mxu1 %v5828_v56  ;;  %v5937_v56 = vld [vmem:[#allocation13 + $0x1bc] sm:$0xf0] }
 0x186   : > { %1918 = vmatpush.bf16.msra.mxu3 %v5784_v57  ;;  %v5972_v57 = vor.u32 %v7594_v55, %v5971_v54  ;;  %v5812_v54 = vor.u32 %v7553_v52, %v5811_v50  ;;  %v7584_v55 = vld [vmem:[#allocation13 + $0x1b4] sm:$0xf]  ;;  %v7621_v52 = vld [vmem:[#allocation15 + $0x98] sm:$0xf0] }
 0x187   : > { %v5940_v58 = vor.u32 %v7584_v55, %v5937_v56  ;;  %v7586_v55 = vld [vmem:[#allocation13 + $0x1c0] sm:$0xf0] }
 0x188   : > { %1905 = vmatpush.bf16.msra.mxu2 %v5972_v57  ;;  %v5799_v57 = vld [vmem:[#allocation13 + $0x98] sm:$0xf] }
 0x189   : > { %5716 = vmatmul.msk.bf16.vlgmr.msrb.gmra.mxu3 %vm1333_vm2, %v8772_v21  ;;  %v5724_v21 = vor.u32 %v7530_v23, %v5721_v24  ;;  %1897 = vmatpush.bf16.msra.mxu1 %v5816_v3  ;;  %v5985_v23 = vld [vmem:[#allocation13 + $0x21c] sm:$0xf0]  ;;  %v7547_v3 = vld [vmem:[#allocation13 + $0x88] sm:$0xf0] }
 0x18a   : > { %1919 = vmatpush.bf16.msra.mxu3 %v5772_v63  ;;  %v5832_v63 = vor.u32 %v7557_v61, %v5829_v62  ;;  %v5988_v24 = vor.u32 %v7596_v22, %v5985_v23  ;;  %v5788_v4 = vor.u32 %v7547_v3, %v5787_v1  ;;  %v5991_v22 = vld [vmem:[#allocation13 + $0x218] sm:$0xf]  ;;  %v7598_v23 = vld [vmem:[#allocation13 + $0x220] sm:$0xf0]  ;;  %v6055_v1 = vld [vmem:[#allocation15 + $0x60] sm:$0xf] }
 0x18b   : > { %v5992_v27 = vor.u32 %v7598_v23, %v5991_v22  ;;  %v7620_v22 = vld [vmem:[#allocation15 + $0x94] sm:$0xf] }
 0x18c   : > { %1935 = vmatpush.bf16.msra.mxu0 %v5832_v63  ;;  %1906 = vmatpush.bf16.msra.mxu2 %v5960_v7  ;;  %v7581_v63 = vld [vmem:[#allocation13 + $0x19c] sm:$0xf]  ;;  %v5775_v7 = vld [vmem:[#allocation13 + $0x68] sm:$0xf] }
 0x18d   : > { %1942 = vmatpush.bf16.msrb.mxu1 %v6000_v11  ;;  %v5928_v2 = vor.u32 %v7581_v63, %v5925_v0  ;;  %v5776_v10 = vor.u32 %v7544_v9, %v5775_v7  ;;  %v7583_v63 = vld [vmem:[#allocation13 + $0x1a8] sm:$0xf0]  ;;  %v6093_v9 = vld [vmem:[#allocation15 + $0xb4] sm:$0xf0] }
 0x18e   : > { %1920 = vmatpush.bf16.msra.mxu3 %v5760_v6  ;;  %v7568_v6 = vld [vmem:[#allocation13 + $0x130] sm:$0xf0] }
 0x18f   : > { %v5872_v8 = vor.u32 %v7568_v6, %v5871_v5  ;;  %v7578_v5 = vld [vmem:[#allocation13 + $0x184] sm:$0xf]  ;;  %v5913_v6 = vld [vmem:[#allocation13 + $0x18c] sm:$0xf0] }
 0x191   : > { %1943 = vmatpush.bf16.msrb.mxu1 %v5988_v24  ;;  %v5751_v24 = vld [vmem:[#allocation13 + $0x38] sm:$0xf] }
 0x192   : > { %1921 = vmatpush.bf16.msra.mxu3 %v5748_v12  ;;  %v7554_v12 = vld [vmem:[#allocation13 + $0xc4] sm:$0xf] }
 0x193   : > { %v5820_v14 = vor.u32 %v7554_v12, %v5817_v13  ;;  %v6003_v12 = vld [vmem:[#allocation13 + $0x230] sm:$0xf]  ;;  %v7601_v13 = vld [vmem:[#allocation13 + $0x238] sm:$0xf0] }
 0x194   : > { %v6004_v19 = vor.u32 %v7601_v13, %v6003_v12 }
 0x195   : > { %1936 = vmatpush.bf16.msra.mxu0 %v5820_v14  ;;  %1944 = vmatpush.bf16.msrb.mxu1 %v5976_v31 }
 0x196   : > { %1922 = vmatpush.bf16.msra.mxu3 %v5736_v16  ;;  %v7588_v16 = vld [vmem:[#allocation13 + $0x1d0] sm:$0xf0] }
 0x197   : > { %v5948_v18 = vor.u32 %v7588_v16, %v5947_v15  ;;  %v5763_v15 = vld [vmem:[#allocation13 + $0x50] sm:$0xf]  ;;  %v7541_v16 = vld [vmem:[#allocation13 + $0x58] sm:$0xf0] }
 0x199   : > { %1907 = vmatpush.bf16.msra.mxu2 %v5948_v18  ;;  %1945 = vmatpush.bf16.msrb.mxu1 %v5964_v39  ;;  %v5764_v18 = vor.u32 %v7541_v16, %v5763_v15  ;;  %v6043_v15 = vld [vmem:[#allocation15 + $0x48] sm:$0xf]  ;;  %v7612_v16 = vld [vmem:[#allocation15 + $0x50] sm:$0xf0] }
 0x19a   : > { %1923 = vmatpush.bf16.msra.mxu3 %v5724_v21  ;;  %v7585_v21 = vld [vmem:[#allocation13 + $0x1b8] sm:$0xf0] }
 0x19b   : > { %v5936_v26 = vor.u32 %v7585_v21, %v5935_v49  ;;  %v7538_v49 = vld [vmem:[#allocation13 + $0x40] sm:$0xf0] }
 0x19c   : > { %v5752_v21 = vor.u32 %v7538_v49, %v5751_v24  ;;  %v6081_v24 = vld [vmem:[#allocation15 + $0x9c] sm:$0xf0] }
 0x19d   : > { %1908 = vmatpush.bf16.msra.mxu2 %v5936_v26  ;;  %1946 = vmatpush.bf16.msrb.mxu1 %v5952_v51  ;;  %v7535_v26 = vld [vmem:[#allocation13 + $0x28] sm:$0xf0]  ;;  %v6084_v49 = vor.u32 %v7620_v22, %v6081_v24  ;;  %v7602_v24 = vld [vmem:[#allocation15 + $0x4] sm:$0xf] }
 0x19e   : > { %1968 = vmatpush.bf16.msrb.mxu3 %v5908_v34  ;;  %v5924_v34 = vor.u32 %v7582_v33, %v5923_v32  ;;  %v5740_v33 = vor.u32 %v7535_v26, %v5739_v25  ;;  %v7609_v25 = vld [vmem:[#allocation15 + $0x38] sm:$0xf0] }
 0x1a1   : > { %1909 = vmatpush.bf16.msra.mxu2 %v5924_v34  ;;  %1947 = vmatpush.bf16.msrb.mxu1 %v5940_v58  ;;  %v7532_v34 = vld [vmem:[#allocation13 + $0x10] sm:$0xf0]  ;;  %v6067_v58 = vld [vmem:[#allocation15 + $0x78] sm:$0xf] }
 0x1a2   : > { %1969 = vmatpush.bf16.msrb.mxu3 %v5896_v46  ;;  %v5824_v46 = vor.u32 %v7556_v44, %v5823_v42  ;;  %v5728_v40 = vor.u32 %v7532_v34, %v5727_v53  ;;  %v5955_v42 = vld [vmem:[#allocation13 + $0x1d0] sm:$0xf]  ;;  %v6163_v34 = vld [vmem:[#allocation15 + $0x138] sm:$0xf] }
 0x1a5   : > { %1910 = vmatpush.bf16.msra.mxu2 %v5912_v43  ;;  %1948 = vmatpush.bf16.msrb.mxu1 %v5928_v2  ;;  %v7589_v43 = vld [vmem:[#allocation13 + $0x1d8] sm:$0xf0]  ;;  %v7615_v2 = vld [vmem:[#allocation15 + $0x68] sm:$0xf0] }
 0x1a6   : > { %1970 = vmatpush.bf16.msrb.mxu3 %v5884_v60  ;;  %v5800_v60 = vor.u32 %v7550_v59, %v5799_v57  ;;  %v5956_v50 = vor.u32 %v7589_v43, %v5955_v42  ;;  %v6080_v57 = vor.u32 %v7621_v52, %v6079_v48  ;;  %v7618_v59 = vld [vmem:[#allocation15 + $0x80] sm:$0xf0]  ;;  %v6056_v7 = vor.u32 %v7615_v2, %v6055_v1  ;;  %v6189_v52 = vld [vmem:[#allocation15 + $0x174] sm:$0xf0]  ;;  %v7644_v2 = vld [vmem:[#allocation15 + $0x154] sm:$0xf] }
 0x1a7   : > { %v6068_v0 = vor.u32 %v7618_v59, %v6067_v58  ;;  %v6283_v58 = vld [vmem:[#allocation15 + $0x228] sm:$0xf] }
 0x1a9   : > { %1955 = vmatpush.bf16.msrb.mxu2 %v5812_v54  ;;  %v5943_v54 = vld [vmem:[#allocation13 + $0x1b8] sm:$0xf] }
 0x1aa   : > { %1971 = vmatpush.bf16.msrb.mxu3 %v5872_v8  ;;  %v5916_v8 = vor.u32 %v7578_v5, %v5913_v6  ;;  %v7580_v5 = vld [vmem:[#allocation13 + $0x190] sm:$0xf0] }
 0x1ac   : > { %1949 = vmatpush.bf16.msrb.mxu1 %v5916_v8  ;;  %v7623_v8 = vld [vmem:[#allocation15 + $0xac] sm:$0xf] }
 0x1ad   : > { %1956 = vmatpush.bf16.msrb.mxu2 %v5800_v60  ;;  %v5944_v60 = vor.u32 %v7586_v55, %v5943_v54  ;;  %v6096_v13 = vor.u32 %v7623_v8, %v6093_v9  ;;  %v7669_v9 = vld [vmem:[#allocation15 + $0x218] sm:$0xf0] }
 0x1ae   : > { %1972 = vmatpush.bf16.msrb.mxu3 %v5860_v20 }
 0x1b1   : > { %1957 = vmatpush.bf16.msrb.mxu2 %v5788_v4  ;;  %v5919_v4 = vld [vmem:[#allocation13 + $0x188] sm:$0xf] }
 0x1b2   : > { %1973 = vmatpush.bf16.msrb.mxu3 %v5848_v28 }
 0x1b5   : > { %1958 = vmatpush.bf16.msrb.mxu2 %v5776_v10 }
 0x1b6   : > { %1974 = vmatpush.bf16.msrb.mxu3 %v5836_v36  ;;  %v5980_v36 = vor.u32 %v7595_v30, %v5979_v29  ;;  %v7617_v29 = vld [vmem:[#allocation15 + $0x7c] sm:$0xf] }
 0x1b9   : > { %1959 = vmatpush.bf16.msrb.mxu2 %v5764_v18  ;;  %v6187_v18 = vld [vmem:[#allocation15 + $0x168] sm:$0xf] }
 0x1ba   : > { %1975 = vmatpush.bf16.msrb.mxu3 %v5824_v46  ;;  %v6091_v46 = vld [vmem:[#allocation15 + $0xa8] sm:$0xf] }
 0x1bb   : > { %v6092_v51 = vor.u32 %v7624_v47, %v6091_v46  ;;  %v7639_v46 = vld [vmem:[#allocation15 + $0x128] sm:$0xf0] }
 0x1bc   : > { %v7611_v47 = vld [vmem:[#allocation15 + $0x4c] sm:$0xf] }
 0x1bd   : > { %1960 = vmatpush.bf16.msrb.mxu2 %v5752_v21  ;;  %v6031_v21 = vld [vmem:[#allocation15 + $0x30] sm:$0xf] }
 0x1be   : > { %v6032_v26 = vor.u32 %v7609_v25, %v6031_v21 }
 0x1c1   : > { %1961 = vmatpush.bf16.msrb.mxu2 %v5740_v33  ;;  %v7606_v33 = vld [vmem:[#allocation15 + $0x20] sm:$0xf0] }
 0x1c5   : > { %1962 = vmatpush.bf16.msrb.mxu2 %v5728_v40  ;;  %v6007_v40 = vld [vmem:[#allocation15] sm:$0xf] }
 0x1dd   : > { %v8782_v45 = vpop.f32.mrf.mxu1 }
 0x1e4   : > { %v8784_v61 = vpop.f32.mrf.mxu2 }
 0x1e5   : > { %v1301_v62 = vpop.f32.mrf.mxu1 }
 0x1e6   : > { %v5931_v62 = vld [vmem:[#allocation13 + $0x1a0] sm:$0xf] }
 0x1e7   : > { %v5932_v3 = vor.u32 %v7583_v63, %v5931_v62  ;;  %v7608_v62 = vld [vmem:[#allocation15 + $0x34] sm:$0xf]  ;;  %v6033_v63 = vld [vmem:[#allocation15 + $0x3c] sm:$0xf0] }
 0x1e8   : > { %v6036_v1 = vor.u32 %v7608_v62, %v6033_v63  ;;  %v6223_v63 = vld [vmem:[#allocation15 + $0x1b0] sm:$0xf] }
 0x1ec   : > { %v1314_v11 = vpop.f32.mrf.mxu2 }
 0x1ed   : > { %v1356_v14 = vpop.f32.mrf.mxu1  ;;  %v5920_v11 = vor.u32 %v7580_v5, %v5919_v4  ;;  %v6127_v5 = vld [vmem:[#allocation15 + $0xf0] sm:$0xf] }
 0x1ee   : > { %v1357_v17 = vadd.f32 %v1356_v14, %v8782_v45 }
 0x1f0   : > { %v8787_v20 = vpack.c.bf16 %v1357_v17, %v1357_v17  ;;  %v6044_v17 = vor.u32 %v7612_v16, %v6043_v15  ;;  %v6165_v15 = vld [vmem:[#allocation15 + $0x144] sm:$0xf0] }
 0x1f2   : > { %1885 = vmatmul.bf16.vlgmr.msrb.gmra.mxu0 %v8787_v20  ;;  %1924 = vmatmul.bf16.vlgmr.msra.gmra.mxu3 %v8787_v20 }
 0x1f3   : > { %1981 = vmatpush.bf16.msrb.mxu0 %v6004_v19  ;;  %v7648_v19 = vld [vmem:[#allocation15 + $0x170] sm:$0xf0] }
 0x1f4   : > { %v1369_v28 = vpop.f32.mrf.mxu2  ;;  %v6188_v23 = vor.u32 %v7648_v19, %v6187_v18  ;;  %v7630_v18 = vld [vmem:[#allocation15 + $0xe0] sm:$0xf0]  ;;  %v6259_v19 = vld [vmem:[#allocation15 + $0x1f8] sm:$0xf] }
 0x1f5   : > { %v1370_v31 = vadd.f32 %v1369_v28, %v8784_v61  ;;  %v1358_v32 = vpop.f32.mrf.mxu1  ;;  %v7645_v28 = vld [vmem:[#allocation15 + $0x158] sm:$0xf0] }
 0x1f6   : > { %v6019_v32 = vld [vmem:[#allocation15 + $0x18] sm:$0xf] }
 0x1f7   : > { %v1387_v35 = vpack.c.bf16 %v1370_v31, %v1370_v31  ;;  %1982 = vmatpush.bf16.msrb.mxu0 %v5992_v27  ;;  %v6175_v27 = vld [vmem:[#allocation15 + $0x150] sm:$0xf]  ;;  %v6020_v53 = vor.u32 %v7606_v33, %v6019_v32  ;;  %v7627_v32 = vld [vmem:[#allocation15 + $0xc8] sm:$0xf0]  ;;  %v6247_v33 = vld [vmem:[#allocation15 + $0x1e0] sm:$0xf] }
 0x1f8   : > { %v6176_v30 = vor.u32 %v7645_v28, %v6175_v27  ;;  %v6153_v27 = vld [vmem:[#allocation15 + $0x12c] sm:$0xf0] }
 0x1f9   : > { %1898 = vmatmul.bf16.vlgmr.msra.gmra.mxu1 %v1387_v35  ;;  %v6195_v28 = vld [vmem:[#allocation15 + $0x170] sm:$0xf] }
 0x1fa   : > { %2488 = vmatpush.bf16.msra.mxu1 %v6092_v51  ;;  %v7647_v51 = vld [vmem:[#allocation15 + $0x16c] sm:$0xf] }
 0x1fb   : > { %1983 = vmatpush.bf16.msrb.mxu0 %v5980_v36  ;;  %v7614_v36 = vld [vmem:[#allocation15 + $0x64] sm:$0xf]  ;;  %v6192_v55 = vor.u32 %v7647_v51, %v6189_v52 }
 0x1fc   : > { %v8792_v39 = vpop.f32.mrf.mxu3  ;;  %v1371_v44 = vpop.f32.mrf.mxu2  ;;  %v6060_v42 = vor.u32 %v7614_v36, %v6057_v38  ;;  %v6141_v36 = vld [vmem:[#allocation15 + $0x114] sm:$0xf0] }
 0x1fd   : > { %v6151_v44 = vld [vmem:[#allocation15 + $0x120] sm:$0xf] }
 0x1fe   : > { %2489 = vmatpush.bf16.msra.mxu1 %v6080_v57  ;;  %v6152_v48 = vor.u32 %v7639_v46, %v6151_v44  ;;  %v7636_v57 = vld [vmem:[#allocation15 + $0x110] sm:$0xf0]  ;;  %v7646_v44 = vld [vmem:[#allocation15 + $0x160] sm:$0xf0] }
 0x1ff   : > { %1984 = vmatpush.bf16.msrb.mxu0 %v5968_v41  ;;  %v7603_v41 = vld [vmem:[#allocation15 + $0x8] sm:$0xf0] }
 0x200   : > { %v6008_v43 = vor.u32 %v7603_v41, %v6007_v40  ;;  %v7671_v40 = vld [vmem:[#allocation15 + $0x22c] sm:$0xf]  ;;  %v6285_v41 = vld [vmem:[#allocation15 + $0x234] sm:$0xf0] }
 0x202   : > { %1937 = vmatmul.bf16.vlgmr.msra.gmra.mxu0 %v1387_v35  ;;  %1976 = vmatmul.bf16.vlgmr.msrb.gmra.mxu3 %v1387_v35  ;;  %v7642_v35 = vld [vmem:[#allocation15 + $0x140] sm:$0xf0] }
 0x203   : > { %1985 = vmatpush.bf16.msrb.mxu0 %v5956_v50  ;;  %2490 = vmatpush.bf16.msra.mxu1 %v6068_v0  ;;  %v6164_v37 = vor.u32 %v7642_v35, %v6163_v34  ;;  %v6045_v50 = vld [vmem:[#allocation15 + $0x54] sm:$0xf0]  ;;  %v7663_v34 = vld [vmem:[#allocation15 + $0x1e8] sm:$0xf0] }
 0x204   : > { %v1327_v56 = vpop.f32.mrf.mxu3  ;;  %v6048_v54 = vor.u32 %v7611_v47, %v6045_v50  ;;  %v7635_v35 = vld [vmem:[#allocation15 + $0x10c] sm:$0xf]  ;;  %v6235_v47 = vld [vmem:[#allocation15 + $0x1c8] sm:$0xf]  ;;  %v7632_v50 = vld [vmem:[#allocation15 + $0xf4] sm:$0xf] }
 0x205   : > { %v6139_v56 = vld [vmem:[#allocation15 + $0x108] sm:$0xf]  ;;  %v6144_v38 = vor.u32 %v7635_v35, %v6141_v36 }
 0x206   : > { %v6140_v59 = vor.u32 %v7636_v57, %v6139_v56  ;;  %v6273_v56 = vld [vmem:[#allocation15 + $0x21c] sm:$0xf0] }
 0x207   : > { %1986 = vmatpush.bf16.msrb.mxu0 %v5944_v60  ;;  %2491 = vmatpush.bf16.msra.mxu1 %v6056_v7  ;;  %v7672_v60 = vld [vmem:[#allocation15 + $0x230] sm:$0xf0]  ;;  %v6271_v7 = vld [vmem:[#allocation15 + $0x210] sm:$0xf] }
 0x208   : > { %v6284_v0 = vor.u32 %v7672_v60, %v6283_v58  ;;  %v7643_v60 = vld [vmem:[#allocation15 + $0x148] sm:$0xf0] }
 0x20a   : > { %2514 = vmatpush.bf16.msra.mxu3 %v6284_v0  ;;  %v7657_v0 = vld [vmem:[#allocation15 + $0x1b8] sm:$0xf0] }
 0x20b   : > { %1987 = vmatpush.bf16.msrb.mxu0 %v5932_v3  ;;  %2492 = vmatpush.bf16.msra.mxu1 %v6044_v17  ;;  %v6177_v3 = vld [vmem:[#allocation15 + $0x15c] sm:$0xf0]  ;;  %v6115_v17 = vld [vmem:[#allocation15 + $0xd8] sm:$0xf] }
 0x20c   : > { %v1382_v6 = vpop.f32.mrf.mxu3  ;;  %v6180_v4 = vor.u32 %v7644_v2, %v6177_v3  ;;  %v6116_v22 = vor.u32 %v7630_v18, %v6115_v17  ;;  %v6224_v2 = vor.u32 %v7657_v0, %v6223_v63  ;;  %v6117_v3 = vld [vmem:[#allocation15 + $0xe4] sm:$0xf0]  ;;  %v6105_v18 = vld [vmem:[#allocation15 + $0xcc] sm:$0xf0] }
 0x20d   : > { %v1383_v10 = vadd.f32 %v1382_v6, %v8792_v39  ;;  %v7633_v6 = vld [vmem:[#allocation15 + $0xf8] sm:$0xf0] }
 0x20e   : > { %v6128_v8 = vor.u32 %v7633_v6, %v6127_v5  ;;  %v6261_v5 = vld [vmem:[#allocation15 + $0x204] sm:$0xf0] }
 0x20f   : > { %v1388_v12 = vpack.c.bf16 %v1383_v10, %v1383_v10  ;;  %1988 = vmatpush.bf16.msrb.mxu0 %v5920_v11  ;;  %2493 = vmatpush.bf16.msra.mxu1 %v6032_v26  ;;  %v7605_v10 = vld [vmem:[#allocation15 + $0x1c] sm:$0xf]  ;;  %v6021_v11 = vld [vmem:[#allocation15 + $0x24] sm:$0xf0]  ;;  %v7638_v26 = vld [vmem:[#allocation15 + $0x124] sm:$0xf] }
 0x211   : > { %1911 = vmatmul.bf16.vlgmr.msra.gmra.mxu2 %v1388_v12  ;;  %1950 = vmatmul.bf16.vlgmr.msrb.gmra.mxu1 %v1388_v12 }
 0x212   : > { %1989 = vmatmul.bf16.vlgmr.msrb.gmra.mxu0 %v1388_v12  ;;  %2501 = vmatpush.bf16.msra.mxu2 %v6188_v23  ;;  %v6272_v12 = vor.u32 %v7669_v9, %v6271_v7  ;;  %v7666_v23 = vld [vmem:[#allocation15 + $0x200] sm:$0xf0]  ;;  %v7640_v9 = vld [vmem:[#allocation15 + $0x130] sm:$0xf0] }
 0x213   : > { %2527 = vmatpush.bf16.msra.mxu0 %v6096_v13  ;;  %2494 = vmatpush.bf16.msra.mxu1 %v6020_v53  ;;  %v6024_v13 = vor.u32 %v7605_v10, %v6021_v11  ;;  %v6260_v21 = vor.u32 %v7666_v23, %v6259_v19  ;;  %v7662_v19 = vld [vmem:[#allocation15 + $0x1e4] sm:$0xf] }
 0x214   : > { %v1384_v14 = vpop.f32.mrf.mxu3  ;;  %2515 = vmatpush.bf16.msra.mxu3 %v6272_v12 }
 0x215   : > { %v7641_v14 = vld [vmem:[#allocation15 + $0x13c] sm:$0xf] }
 0x216   : > { %2502 = vmatpush.bf16.msra.mxu2 %v6176_v30  ;;  %v6168_v16 = vor.u32 %v7641_v14, %v6165_v15  ;;  %v7649_v30 = vld [vmem:[#allocation15 + $0x178] sm:$0xf0]  ;;  %v7654_v14 = vld [vmem:[#allocation15 + $0x1a0] sm:$0xf0] }
 0x217   : > { %2528 = vmatpush.bf16.msra.mxu0 %v6084_v49  ;;  %2495 = vmatpush.bf16.msra.mxu1 %v6008_v43  ;;  %v6009_v49 = vld [vmem:[#allocation15 + $0xc] sm:$0xf0]  ;;  %v6288_v43 = vor.u32 %v7671_v40, %v6285_v41  ;;  %v7626_v15 = vld [vmem:[#allocation15 + $0xc4] sm:$0xf]  ;;  %v7656_v40 = vld [vmem:[#allocation15 + $0x1b4] sm:$0xf] }
 0x218   : > { %v6012_v25 = vor.u32 %v7602_v24, %v6009_v49  ;;  %2516 = vmatpush.bf16.msra.mxu3 %v6260_v21  ;;  %v6108_v23 = vor.u32 %v7626_v15, %v6105_v18  ;;  %v6147_v49 = vld [vmem:[#allocation15 + $0x110] sm:$0xf]  ;;  %v7637_v21 = vld [vmem:[#allocation15 + $0x118] sm:$0xf0]  ;;  %v6225_v41 = vld [vmem:[#allocation15 + $0x1bc] sm:$0xf0] }
 0x219   : > { %v6051_v15 = vld [vmem:[#allocation15 + $0x50] sm:$0xf] }
 0x21a   : > { %2503 = vmatpush.bf16.msra.mxu2 %v6164_v37  ;;  %v6248_v37 = vor.u32 %v7663_v34, %v6247_v33  ;;  %v6135_v33 = vld [vmem:[#allocation15 + $0xf8] sm:$0xf] }
 0x21b   : > { %2540 = vmatpush.bf16.msrb.mxu1 %v6192_v55  ;;  %v7668_v55 = vld [vmem:[#allocation15 + $0x214] sm:$0xf] }
 0x21c   : > { %2517 = vmatpush.bf16.msra.mxu3 %v6248_v37  ;;  %v6276_v58 = vor.u32 %v7668_v55, %v6273_v56  ;;  %v7653_v55 = vld [vmem:[#allocation15 + $0x19c] sm:$0xf]  ;;  %v6213_v56 = vld [vmem:[#allocation15 + $0x1a4] sm:$0xf0] }
 0x21e   : > { %2504 = vmatpush.bf16.msra.mxu2 %v6152_v48  ;;  %v7660_v48 = vld [vmem:[#allocation15 + $0x1d0] sm:$0xf0] }
 0x21f   : > { %2541 = vmatpush.bf16.msrb.mxu1 %v6180_v4  ;;  %v6236_v52 = vor.u32 %v7660_v48, %v6235_v47  ;;  %v7665_v4 = vld [vmem:[#allocation15 + $0x1fc] sm:$0xf]  ;;  %v7631_v47 = vld [vmem:[#allocation15 + $0xe8] sm:$0xf0] }
 0x220   : > { %v6264_v7 = vor.u32 %v7665_v4, %v6261_v5  ;;  %v8805_v48 = vld [vmem:[%s8918_s9] sm:$0x7]  ;;  %v7650_v4 = vld [vmem:[#allocation15 + $0x184] sm:$0xf]  ;;  %v6201_v5 = vld [vmem:[#allocation15 + $0x18c] sm:$0xf0] }
 0x221   : > { %1963 = vmatmul.bf16.vlgmr.msrb.gmra.mxu2 %v8787_v20  ;;  %v6069_v20 = vld [vmem:[#allocation15 + $0x84] sm:$0xf0]  ;;  %2518 = vmatpush.bf16.msra.mxu3 %v6236_v52 }
 0x222   : > { %v6072_v31 = vor.u32 %v7617_v29, %v6069_v20  ;;  %2505 = vmatpush.bf16.msra.mxu2 %v6140_v59  ;;  %v6156_v29 = vor.u32 %v7638_v26, %v6153_v27  ;;  %v6196_v20 = vor.u32 %v7649_v30, %v6195_v28  ;;  %v6171_v59 = vld [vmem:[#allocation15 + $0x140] sm:$0xf]  ;;  %v7651_v27 = vld [vmem:[#allocation15 + $0x188] sm:$0xf0]  ;;  %v6237_v30 = vld [vmem:[#allocation15 + $0x1d4] sm:$0xf0] }
 0x223   : > { %2542 = vmatpush.bf16.msrb.mxu1 %v6168_v16  ;;  %v6172_v62 = vor.u32 %v7643_v60, %v6171_v59  ;;  %v6199_v26 = vld [vmem:[#allocation15 + $0x180] sm:$0xf]  ;;  %v7619_v59 = vld [vmem:[#allocation15 + $0x88] sm:$0xf0]  ;;  %v6111_v60 = vld [vmem:[#allocation15 + $0xc8] sm:$0xf] }
 0x224   : > { %2529 = vmatpush.bf16.msra.mxu0 %v6072_v31  ;;  %v6103_v31 = vld [vmem:[#allocation15 + $0xc0] sm:$0xf]  ;;  %v6200_v28 = vor.u32 %v7651_v27, %v6199_v26 }
 0x225   : > { %v6104_v53 = vor.u32 %v7627_v32, %v6103_v31  ;;  %2519 = vmatpush.bf16.msra.mxu3 %v6224_v2  ;;  %v7625_v32 = vld [vmem:[#allocation15 + $0xb8] sm:$0xf0] }
 0x226   : > { %2506 = vmatpush.bf16.msra.mxu2 %v6128_v8  ;;  %v6159_v8 = vld [vmem:[#allocation15 + $0x128] sm:$0xf] }
 0x227   : > { %2543 = vmatpush.bf16.msrb.mxu1 %v6156_v29  ;;  %v6160_v11 = vor.u32 %v7640_v9, %v6159_v8  ;;  %v7659_v29 = vld [vmem:[#allocation15 + $0x1cc] sm:$0xf]  ;;  %v6204_v8 = vor.u32 %v7650_v4, %v6201_v5  ;;  %v7616_v9 = vld [vmem:[#allocation15 + $0x70] sm:$0xf0]  ;;  %v6219_v5 = vld [vmem:[#allocation15 + $0x1a0] sm:$0xf] }
 0x228   : > { %2530 = vmatpush.bf16.msra.mxu0 %v6060_v42  ;;  %v6183_v42 = vld [vmem:[#allocation15 + $0x158] sm:$0xf]  ;;  %v6240_v31 = vor.u32 %v7659_v29, %v6237_v30  ;;  %v7607_v29 = vld [vmem:[#allocation15 + $0x28] sm:$0xf0] }
 0x229   : > { %v6184_v46 = vor.u32 %v7646_v44, %v6183_v42  ;;  %v6087_v42 = vld [vmem:[#allocation15 + $0x98] sm:$0xf]  ;;  %v7622_v44 = vld [vmem:[#allocation15 + $0xa0] sm:$0xf0] }
 0x22a   : > { %2507 = vmatpush.bf16.msra.mxu2 %v6116_v22  ;;  %v6249_v22 = vld [vmem:[#allocation15 + $0x1ec] sm:$0xf0] }
 0x22b   : > { %2544 = vmatpush.bf16.msrb.mxu1 %v6144_v38  ;;  %v6252_v24 = vor.u32 %v7662_v19, %v6249_v22  ;;  %v6039_v22 = vld [vmem:[#allocation15 + $0x38] sm:$0xf] }
 0x22c   : > { %2531 = vmatpush.bf16.msra.mxu0 %v6048_v54  ;;  %v6129_v54 = vld [vmem:[#allocation15 + $0xfc] sm:$0xf0] }
 0x22d   : > { %v6132_v57 = vor.u32 %v7632_v50, %v6129_v54  ;;  %v6088_v50 = vor.u32 %v7622_v44, %v6087_v42  ;;  %v1488_v54 = vperm.slane %v8805_v48, 1  ;;  %v7667_v44 = vld [vmem:[#allocation15 + $0x208] sm:$0xf0] }
 0x22e   : > { %2508 = vmatpush.bf16.msra.mxu2 %v6104_v53  ;;  %v7634_v53 = vld [vmem:[#allocation15 + $0x100] sm:$0xf0] }
 0x22f   : > { %2545 = vmatpush.bf16.msrb.mxu1 %v6132_v57  ;;  %v6136_v35 = vor.u32 %v7634_v53, %v6135_v33  ;;  %v6075_v57 = vld [vmem:[#allocation15 + $0x80] sm:$0xf] }
 0x230   : > { %2532 = vmatpush.bf16.msra.mxu0 %v6036_v1  ;;  %v7629_v1 = vld [vmem:[#allocation15 + $0xdc] sm:$0xf]  ;;  %v6076_v0 = vor.u32 %v7619_v59, %v6075_v57  ;;  %v6243_v57 = vld [vmem:[#allocation15 + $0x1d0] sm:$0xf] }
 0x231   : > { %v6120_v6 = vor.u32 %v7629_v1, %v6117_v3 }
 0x232   : > { %2553 = vmatpush.bf16.msrb.mxu2 %v6288_v43  ;;  %v6228_v43 = vor.u32 %v7656_v40, %v6225_v41 }
 0x233   : > { %2546 = vmatpush.bf16.msrb.mxu1 %v6120_v6  ;;  %v6063_v6 = vld [vmem:[#allocation15 + $0x68] sm:$0xf] }
 0x234   : > { %2533 = vmatpush.bf16.msra.mxu0 %v6024_v13  ;;  %v6211_v13 = vld [vmem:[#allocation15 + $0x198] sm:$0xf] }
 0x235   : > { %v6212_v17 = vor.u32 %v7654_v14, %v6211_v13 }
 0x236   : > { %2554 = vmatpush.bf16.msrb.mxu2 %v6276_v58  ;;  %v6216_v58 = vor.u32 %v7653_v55, %v6213_v56 }
 0x237   : > { %2520 = vmatpush.bf16.msra.mxu3 %v6212_v17  ;;  %2547 = vmatpush.bf16.msrb.mxu1 %v6108_v23  ;;  %v7610_v23 = vld [vmem:[#allocation15 + $0x40] sm:$0xf0] }
 0x238   : > { %2534 = vmatpush.bf16.msra.mxu0 %v6012_v25  ;;  %v6148_v25 = vor.u32 %v7637_v21, %v6147_v49  ;;  %v6040_v21 = vor.u32 %v7610_v23, %v6039_v22 }
 0x23a   : > { %2555 = vmatpush.bf16.msrb.mxu2 %v6264_v7  ;;  %v1487_v7 = vperm.slane %v8805_v48, 0 }
 0x23b   : > { %2521 = vmatpush.bf16.msra.mxu3 %v6200_v28  ;;  %v6027_v28 = vld [vmem:[#allocation15 + $0x20] sm:$0xf] }
 0x23c   : > { %2579 = vmatpush.bf16.msrb.mxu0 %v6196_v20  ;;  %v6099_v20 = vld [vmem:[#allocation15 + $0xb0] sm:$0xf] }
 0x23d   : > { %v6100_v34 = vor.u32 %v7625_v32, %v6099_v20  ;;  %v6291_v20 = vld [vmem:[#allocation15 + $0x230] sm:$0xf]  ;;  %v6028_v32 = vor.u32 %v7607_v29, %v6027_v28 }
 0x23e   : > { %2556 = vmatpush.bf16.msrb.mxu2 %v6252_v24 }
 0x23f   : > { %2566 = vmatpush.bf16.msrb.mxu3 %v6100_v34 }
 0x240   : > { %2580 = vmatpush.bf16.msrb.mxu0 %v6184_v46  ;;  %v6123_v46 = vld [vmem:[#allocation15 + $0xe0] sm:$0xf] }
 0x241   : > { %v6124_v52 = vor.u32 %v7631_v47, %v6123_v46  ;;  %v1489_v47 = vperm.slane %v8805_v48, 2 }
 0x242   : > { %2557 = vmatpush.bf16.msrb.mxu2 %v6240_v31  ;;  %v7673_v31 = vld [vmem:[#allocation15 + $0x238] sm:$0xf0] }
 0x243   : > { %2567 = vmatpush.bf16.msrb.mxu3 %v6088_v50  ;;  %v6292_v53 = vor.u32 %v7673_v31, %v6291_v20  ;;  %v6255_v50 = vld [vmem:[#allocation15 + $0x1e8] sm:$0xf] }
 0x244   : > { %2581 = vmatpush.bf16.msrb.mxu0 %v6172_v62  ;;  %v7628_v62 = vld [vmem:[#allocation15 + $0xd0] sm:$0xf0]  ;;  %v6383_v31 = vld [vmem:[#allocation13 + $0x2e8] sm:$0xf] }
 0x245   : > { %v6112_v1 = vor.u32 %v7628_v62, %v6111_v60 }
 0x246   : > { %2558 = vmatpush.bf16.msrb.mxu2 %v6228_v43  ;;  %v6267_v43 = vld [vmem:[#allocation15 + $0x200] sm:$0xf] }
 0x247   : > { %2568 = vmatpush.bf16.msrb.mxu3 %v6076_v0  ;;  %v6268_v46 = vor.u32 %v7667_v44, %v6267_v43  ;;  %v6231_v0 = vld [vmem:[#allocation15 + $0x1b8] sm:$0xf]  ;;  %v7693_v43 = vld [vmem:[#allocation13 + $0x2d8] sm:$0xf0] }
 0x248   : > { %2582 = vmatpush.bf16.msrb.mxu0 %v6160_v11  ;;  %v6064_v11 = vor.u32 %v7616_v9, %v6063_v6  ;;  %v7655_v6 = vld [vmem:[#allocation15 + $0x1a8] sm:$0xf0] }
 0x24a   : > { %2559 = vmatpush.bf16.msrb.mxu2 %v6216_v58  ;;  %v7661_v58 = vld [vmem:[#allocation15 + $0x1d8] sm:$0xf0] }
 0x24b   : > { %2569 = vmatpush.bf16.msrb.mxu3 %v6064_v11  ;;  %v6244_v60 = vor.u32 %v7661_v58, %v6243_v57  ;;  %v6359_v57 = vld [vmem:[#allocation13 + $0x2b8] sm:$0xf]  ;;  %v7690_v58 = vld [vmem:[#allocation13 + $0x2c0] sm:$0xf0] }
 0x24c   : > { %2583 = vmatpush.bf16.msrb.mxu0 %v6148_v25 }
 0x24e   : > { %2560 = vmatpush.bf16.msrb.mxu2 %v6204_v8  ;;  %v6207_v8 = vld [vmem:[#allocation15 + $0x188] sm:$0xf] }
 0x250   : > { %2584 = vmatpush.bf16.msrb.mxu0 %v6136_v35  ;;  %v6279_v35 = vld [vmem:[#allocation15 + $0x218] sm:$0xf] }
 0x254   : > { %2585 = vmatpush.bf16.msrb.mxu0 %v6124_v52  ;;  %v7664_v52 = vld [vmem:[#allocation15 + $0x1f0] sm:$0xf0] }
 0x255   : > { %v6256_v55 = vor.u32 %v7664_v52, %v6255_v50  ;;  %v6455_v50 = vld [vmem:[#allocation13 + $0x378] sm:$0xf] }
 0x258   : > { %2586 = vmatpush.bf16.msrb.mxu0 %v6112_v1  ;;  %v7658_v1 = vld [vmem:[#allocation15 + $0x1c0] sm:$0xf0] }
 0x259   : > { %v6232_v48 = vor.u32 %v7658_v1, %v6231_v0  ;;  %v7711_v0 = vld [vmem:[#allocation13 + $0x368] sm:$0xf0] }
 0x26f   : > { %v8796_v51 = vpop.f32.mrf.mxu0 }
 0x275   : > { %v8798_v10 = vpop.f32.mrf.mxu3 }
 0x276   : > { %v8800_v12 = vpop.f32.mrf.mxu1  ;;  %v1926_v2 = vadd.f32 %v8798_v10, %v1488_v54  ;;  %v1887_v10 = vadd.f32 %v8796_v51, %v1487_v7  ;;  %v6220_v7 = vor.u32 %v7655_v6, %v6219_v5  ;;  %v6575_v6 = vld [vmem:[#allocation13 + $0x468] sm:$0xf] }
 0x277   : > { %v1888_v16 = vpop.f32.mrf.mxu0 }
 0x278   : > { %v7613_v16 = vld [vmem:[#allocation15 + $0x58] sm:$0xf0]  ;;  %v1900_v25 = vadd.f32 %v8800_v12, %v1887_v10  ;;  %v7604_v12 = vld [vmem:[#allocation15 + $0x10] sm:$0xf0] }
 0x279   : > { %v6052_v18 = vor.u32 %v7613_v16, %v6051_v15 }
 0x27b   : > { %2570 = vmatpush.bf16.msrb.mxu3 %v6052_v18 }
 0x27d   : > { %v1927_v36 = vpop.f32.mrf.mxu3 }
 0x27e   : > { %v1901_v37 = vpop.f32.mrf.mxu1  ;;  %v7670_v36 = vld [vmem:[#allocation15 + $0x220] sm:$0xf0] }
 0x27f   : > { %v1938_v38 = vpop.f32.mrf.mxu0  ;;  %2571 = vmatpush.bf16.msrb.mxu3 %v6040_v21  ;;  %v6280_v42 = vor.u32 %v7670_v36, %v6279_v35 }
 0x280   : > { %v1939_v13 = vadd.f32 %v1938_v38, %v1926_v2  ;;  %v6015_v38 = vld [vmem:[#allocation15 + $0x8] sm:$0xf] }
 0x281   : > { %v6016_v40 = vor.u32 %v7604_v12, %v6015_v38  ;;  %v6467_v12 = vld [vmem:[#allocation13 + $0x390] sm:$0xf] }
 0x283   : > { %2572 = vmatpush.bf16.msrb.mxu3 %v6028_v32 }
 0x285   : > { %v8808_v63 = vpop.f32.mrf.mxu3 }
 0x287   : > { %v1940_v3 = vpop.f32.mrf.mxu0  ;;  %2573 = vmatpush.bf16.msrb.mxu3 %v6016_v40  ;;  %v7717_v40 = vld [vmem:[#allocation13 + $0x398] sm:$0xf0] }
 0x288   : > { %v6468_v44 = vor.u32 %v7717_v40, %v6467_v12  ;;  %v6311_v12 = vld [vmem:[#allocation13 + $0x258] sm:$0xf]  ;;  %v7678_v40 = vld [vmem:[#allocation13 + $0x260] sm:$0xf0] }
 0x28d   : > { %v1979_v19 = vpop.f32.mrf.mxu3 }
 0x28e   : > { %v1951_v14 = vpop.f32.mrf.mxu1 }
 0x28f   : > { %v1952_v17 = vadd.f32 %v1951_v14, %v1939_v13  ;;  %v1990_v49 = vpop.f32.mrf.mxu0 }
 0x291   : > { %v1995_v24 = vmax.f32 %v1952_v17, 0.0  ;;  %v8816_v17 = vld [vmem:[#allocation16] sm:$0x7] }
 0x292   : > { %v2098_v19 = vperm.slane %v8816_v17, 0  ;;  %v2099_v23 = vperm.slane %v8816_v17, 1  ;;  %v2100_v1 = vperm.slane %v8816_v17, 2  ;;  %v6563_v17 = vld [vmem:[#allocation13 + $0x450] sm:$0xf] }
 0x293   : > { %v1998_v26 = vpack.c.bf16 %v1995_v24, %v1995_v24 }
 0x294   : > { %v1912_v27 = vpop.f32.mrf.mxu2 }
 0x295   : > { %v1913_v30 = vadd.f32 %v1912_v27, %v1900_v25  ;;  %2509 = vmatmul.bf16.vlgmr.msra.gmra.mxu2 %v1998_v26 }
 0x296   : > { %v1953_v51 = vpop.f32.mrf.mxu1 }
 0x297   : > { %v1994_v33 = vmax.f32 %v1913_v30, 0.0  ;;  %v1992_v37 = vpop.f32.mrf.mxu0  ;;  %v7696_v51 = vld [vmem:[#allocation13 + $0x2f0] sm:$0xf0] }
 0x298   : > { %v6384_v38 = vor.u32 %v7696_v51, %v6383_v31  ;;  %v7738_v31 = vld [vmem:[#allocation13 + $0x440] sm:$0xf0] }
 0x299   : > { %v1997_v34 = vpack.c.bf16 %v1994_v33, %v1994_v33 }
 0x29b   : > { %2496 = vmatmul.bf16.vlgmr.msra.gmra.mxu1 %v1997_v34  ;;  %2535 = vmatmul.bf16.vlgmr.msra.gmra.mxu0 %v1997_v34 }
 0x29c   : > { %v1914_v41 = vpop.f32.mrf.mxu2  ;;  %2592 = vmatpush.bf16.msra.mxu1 %v6292_v53  ;;  %v6479_v53 = vld [vmem:[#allocation13 + $0x3a8] sm:$0xf] }
 0x2a0   : > { %2593 = vmatpush.bf16.msra.mxu1 %v6280_v42  ;;  %v6371_v42 = vld [vmem:[#allocation13 + $0x2d0] sm:$0xf] }
 0x2a4   : > { %v1964_v54 = vpop.f32.mrf.mxu2  ;;  %2594 = vmatpush.bf16.msra.mxu1 %v6268_v46 }
 0x2a5   : > { %v1965_v56 = vadd.f32 %v1964_v54, %v1489_v47 }
 0x2a7   : > { %v1978_v59 = vadd.f32 %v8808_v63, %v1965_v56  ;;  %v7652_v63 = vld [vmem:[#allocation15 + $0x190] sm:$0xf0]  ;;  %v6372_v56 = vor.u32 %v7693_v43, %v6371_v42  ;;  %v6395_v42 = vld [vmem:[#allocation13 + $0x300] sm:$0xf]  ;;  %v7699_v43 = vld [vmem:[#allocation13 + $0x308] sm:$0xf0] }
 0x2a8   : > { %2595 = vmatpush.bf16.msra.mxu1 %v6256_v55  ;;  %v6208_v9 = vor.u32 %v7652_v63, %v6207_v8  ;;  %v7714_v55 = vld [vmem:[#allocation13 + $0x380] sm:$0xf0]  ;;  %v6431_v8 = vld [vmem:[#allocation13 + $0x348] sm:$0xf]  ;;  %v7708_v63 = vld [vmem:[#allocation13 + $0x350] sm:$0xf0] }
 0x2a9   : > { %v1991_v62 = vadd.f32 %v1990_v49, %v1978_v59  ;;  %v6456_v59 = vor.u32 %v7714_v55, %v6455_v50  ;;  %v7689_v50 = vld [vmem:[#allocation13 + $0x2bc] sm:$0xf] }
 0x2ab   : > { %v1996_v2 = vmax.f32 %v1991_v62, 0.0  ;;  %2548 = vmatmul.bf16.vlgmr.msrb.gmra.mxu1 %v1998_v26  ;;  %2587 = vmatmul.bf16.vlgmr.msrb.gmra.mxu0 %v1998_v26  ;;  %v6443_v62 = vld [vmem:[#allocation13 + $0x360] sm:$0xf] }
 0x2ac   : > { %v1966_v3 = vpop.f32.mrf.mxu2  ;;  %2596 = vmatpush.bf16.msra.mxu1 %v6244_v60  ;;  %v8825_v60 = vld [vmem:[%s8727_s12] sm:$0xf]  ;;  %v6444_v5 = vor.u32 %v7711_v0, %v6443_v62  ;;  %v6396_v0 = vor.u32 %v7699_v43, %v6395_v42  ;;  %v7718_v42 = vld [vmem:[#allocation13 + $0x3a0] sm:$0xf0] }
 0x2ad   : > { %v1999_v4 = vpack.c.bf16 %v1996_v2, %v1996_v2  ;;  %v6360_v2 = vor.u32 %v7690_v58, %v6359_v57  ;;  %v6347_v3 = vld [vmem:[#allocation13 + $0x2a0] sm:$0xf]  ;;  %v6312_v57 = vor.u32 %v7678_v40, %v6311_v12  ;;  %v7675_v62 = vld [vmem:[#allocation13 + $0x248] sm:$0xf0] }
 0x2ae   : > { %v6299_v58 = vld [vmem:[#allocation13 + $0x240] sm:$0xf] }
 0x2af   : > { %2522 = vmatmul.bf16.vlgmr.msra.gmra.mxu3 %v1999_v4  ;;  %2561 = vmatmul.bf16.vlgmr.msrb.gmra.mxu2 %v1999_v4 }
 0x2b0   : > { %2597 = vmatpush.bf16.msra.mxu1 %v6232_v48 }
 0x2b4   : > { %2598 = vmatpush.bf16.msra.mxu1 %v6220_v7  ;;  %v7744_v7 = vld [vmem:[#allocation13 + $0x470] sm:$0xf0] }
 0x2b8   : > { %2599 = vmatpush.bf16.msra.mxu1 %v6208_v9  ;;  %v6576_v9 = vor.u32 %v7744_v7, %v6575_v6  ;;  %v7740_v6 = vld [vmem:[#allocation13 + $0x454] sm:$0xf]  ;;  %v6565_v7 = vld [vmem:[#allocation13 + $0x45c] sm:$0xf0] }
 0x2bb   : > { %2600 = vmatmul.bf16.vlgmr.msra.gmra.mxu1 %v1999_v4  ;;  %v7687_v4 = vld [vmem:[#allocation13 + $0x2a8] sm:$0xf0] }
 0x2bc   : > { %3178 = vmatpush.bf16.msrb.mxu1 %v6576_v9  ;;  %v7686_v9 = vld [vmem:[#allocation13 + $0x2a4] sm:$0xf] }
 0x2bf   : > { %2574 = vmatmul.bf16.vlgmr.msrb.gmra.mxu3 %v1997_v34  ;;  %v7720_v34 = vld [vmem:[#allocation13 + $0x3b0] sm:$0xf0] }
 0x2c0   : > { %v6480_v35 = vor.u32 %v7720_v34, %v6479_v53 }
 0x2c2   : > { %3165 = vmatpush.bf16.msra.mxu0 %v6480_v35 }
 0x2c6   : > { %3166 = vmatpush.bf16.msra.mxu0 %v6468_v44 }
 0x2ca   : > { %3167 = vmatpush.bf16.msra.mxu0 %v6456_v59  ;;  %v6577_v59 = vld [vmem:[#allocation13 + $0x474] sm:$0xf0] }
 0x2ce   : > { %3168 = vmatpush.bf16.msra.mxu0 %v6444_v5 }
 0x318   : > { %v2497_v11 = vpop.f32.mrf.mxu1  ;;  %v2510_v13 = vpop.f32.mrf.mxu2 }
 0x319   : > { %v2536_v14 = vpop.f32.mrf.mxu0  ;;  %v2498_v24 = vadd.f32 %v2497_v11, %v2098_v19 }
 0x31a   : > { %v2537_v49 = vadd.f32 %v2536_v14, %v2099_v23  ;;  %v6348_v14 = vor.u32 %v7687_v4, %v6347_v3  ;;  %v6419_v23 = vld [vmem:[#allocation13 + $0x330] sm:$0xf]  ;;  %v7719_v3 = vld [vmem:[#allocation13 + $0x3ac] sm:$0xf] }
 0x31b   : > { %v2511_v25 = vadd.f32 %v2510_v13, %v2498_v24  ;;  %v7705_v24 = vld [vmem:[#allocation13 + $0x338] sm:$0xf0] }
 0x320   : > { %v2499_v15 = vpop.f32.mrf.mxu1  ;;  %v2512_v16 = vpop.f32.mrf.mxu2 }
 0x321   : > { %v2538_v10 = vpop.f32.mrf.mxu0  ;;  %v6335_v15 = vld [vmem:[#allocation13 + $0x288] sm:$0xf]  ;;  %v7684_v16 = vld [vmem:[#allocation13 + $0x290] sm:$0xf0] }
 0x322   : > { %v6432_v10 = vor.u32 %v7708_v63, %v6431_v8  ;;  %v6300_v63 = vor.u32 %v7675_v62, %v6299_v58  ;;  %v6553_v58 = vld [vmem:[#allocation13 + $0x444] sm:$0xf0] }
 0x324   : > { %3169 = vmatpush.bf16.msra.mxu0 %v6432_v10  ;;  %v7683_v10 = vld [vmem:[#allocation13 + $0x28c] sm:$0xf] }
 0x328   : > { %v2549_v18 = vpop.f32.mrf.mxu1 }
 0x329   : > { %v8819_v22 = vpop.f32.mrf.mxu0  ;;  %v2550_v26 = vadd.f32 %v2549_v18, %v2537_v49  ;;  %v7741_v18 = vld [vmem:[#allocation13 + $0x458] sm:$0xf0] }
 0x32a   : > { %v6564_v49 = vor.u32 %v7741_v18, %v6563_v17  ;;  %v6337_v17 = vld [vmem:[#allocation13 + $0x294] sm:$0xf0] }
 0x32c   : > { %3179 = vmatpush.bf16.msrb.mxu1 %v6564_v49  ;;  %v7680_v49 = vld [vmem:[#allocation13 + $0x274] sm:$0xf] }
 0x330   : > { %v2551_v21 = vpop.f32.mrf.mxu1 }
 0x331   : > { %v2590_v27 = vpop.f32.mrf.mxu0 }
 0x332   : > { %v2523_v28 = vpop.f32.mrf.mxu3  ;;  %v2562_v29 = vpop.f32.mrf.mxu2  ;;  %v6336_v27 = vor.u32 %v7684_v16, %v6335_v15  ;;  %v6469_v15 = vld [vmem:[#allocation13 + $0x39c] sm:$0xf0]  ;;  %v6568_v16 = vor.u32 %v7740_v6, %v6565_v7  ;;  %v6397_v6 = vld [vmem:[#allocation13 + $0x30c] sm:$0xf0]  ;;  %v7734_v7 = vld [vmem:[#allocation13 + $0x424] sm:$0xf] }
 0x333   : > { %v2524_v30 = vadd.f32 %v2523_v28, %v2511_v25  ;;  %v2563_v20 = vadd.f32 %v2562_v29, %v2550_v26  ;;  %v7695_v25 = vld [vmem:[#allocation13 + $0x2ec] sm:$0xf]  ;;  %v6385_v26 = vld [vmem:[#allocation13 + $0x2f4] sm:$0xf0]  ;;  %v6323_v28 = vld [vmem:[#allocation13 + $0x270] sm:$0xf] }
 0x334   : > { %v7681_v29 = vld [vmem:[#allocation13 + $0x278] sm:$0xf0]  ;;  %v6388_v35 = vor.u32 %v7695_v25, %v6385_v26  ;;  %v7710_v26 = vld [vmem:[#allocation13 + $0x364] sm:$0xf] }
 0x335   : > { %v2605_v32 = vmax.f32 %v2524_v30, 0.0  ;;  %v2606_v33 = vmax.f32 %v2563_v20, 0.0  ;;  %v6420_v30 = vor.u32 %v7705_v24, %v6419_v23  ;;  %v6551_v20 = vld [vmem:[#allocation13 + $0x438] sm:$0xf]  ;;  %v6457_v23 = vld [vmem:[#allocation13 + $0x384] sm:$0xf0]  ;;  %v6340_v24 = vor.u32 %v7683_v10, %v6337_v17 }
 0x336   : > { %v6552_v53 = vor.u32 %v7738_v31, %v6551_v20  ;;  %v7707_v31 = vld [vmem:[#allocation13 + $0x34c] sm:$0xf]  ;;  %v6529_v17 = vld [vmem:[#allocation13 + $0x414] sm:$0xf0] }
 0x337   : > { %v2608_v36 = vpack.c.bf16 %v2605_v32, %v2605_v32  ;;  %v2609_v37 = vpack.c.bf16 %v2606_v33, %v2606_v33  ;;  %v6407_v32 = vld [vmem:[#allocation13 + $0x318] sm:$0xf]  ;;  %v7702_v33 = vld [vmem:[#allocation13 + $0x320] sm:$0xf0]  ;;  %3170 = vmatpush.bf16.msra.mxu0 %v6420_v30  ;;  %v6313_v30 = vld [vmem:[#allocation13 + $0x264] sm:$0xf0] }
 0x338   : > { %v2601_v41 = vpop.f32.mrf.mxu1  ;;  %3180 = vmatpush.bf16.msrb.mxu1 %v6552_v53  ;;  %v6301_v53 = vld [vmem:[#allocation13 + $0x24c] sm:$0xf0]  ;;  %v7731_v10 = vld [vmem:[#allocation13 + $0x40c] sm:$0xf] }
 0x339   : > { %v2612_v46 = vsel %vm1337_vm0, %v2608_v36, 0  ;;  %v2615_v47 = vsel %vm1337_vm0, %v2609_v37, 0  ;;  %v7692_v36 = vld [vmem:[#allocation13 + $0x2d4] sm:$0xf]  ;;  %v6373_v37 = vld [vmem:[#allocation13 + $0x2dc] sm:$0xf0] }
 0x33a   : > { %v2525_v52 = vpop.f32.mrf.mxu3  ;;  %v2564_v54 = vpop.f32.mrf.mxu2  ;;  %2627 = vmatpush.bf16.msra.mxu2 %v2612_v46  ;;  %2640 = vmatpush.bf16.msra.mxu3 %v2615_v47  ;;  %v6539_v46 = vld [vmem:[#allocation13 + $0x420] sm:$0xf]  ;;  %v7735_v47 = vld [vmem:[#allocation13 + $0x428] sm:$0xf0]  ;;  %v6376_v55 = vor.u32 %v7692_v36, %v6373_v37  ;;  %v7704_v36 = vld [vmem:[#allocation13 + $0x334] sm:$0xf] }
 0x33b   : > { %v6540_v52 = vor.u32 %v7735_v47, %v6539_v46  ;;  %v7743_v54 = vld [vmem:[#allocation13 + $0x46c] sm:$0xf]  ;;  %v6421_v37 = vld [vmem:[#allocation13 + $0x33c] sm:$0xf0] }
 0x33c   : > { %v6580_v4 = vor.u32 %v7743_v54, %v6577_v59  ;;  %v6424_v40 = vor.u32 %v7704_v36, %v6421_v37  ;;  %v7715_v46 = vld [vmem:[#allocation13 + $0x388] sm:$0xf0]  ;;  %v7701_v54 = vld [vmem:[#allocation13 + $0x31c] sm:$0xf]  ;;  %v6403_v36 = vld [vmem:[#allocation13 + $0x308] sm:$0xf] }
 0x33d   : > { %6293 = vmatmul.msk.bf16.vlgmr.msra.gmra.mxu2 %vm1333_vm2, %v8825_v60  ;;  %6294 = vmatmul.msk.bf16.vlgmr.msra.gmra.mxu3 %vm1333_vm2, %v8825_v60  ;;  %v7700_v37 = vld [vmem:[#allocation13 + $0x310] sm:$0xf0] }
 0x33e   : > { %3152 = vmatpush.bf16.msrb.mxu3 %v6384_v38  ;;  %v6324_v38 = vor.u32 %v7681_v29, %v6323_v28  ;;  %3181 = vmatpush.bf16.msrb.mxu1 %v6540_v52  ;;  %v7677_v29 = vld [vmem:[#allocation13 + $0x25c] sm:$0xf] }
 0x33f   : > { %v7729_v52 = vld [vmem:[#allocation13 + $0x3f8] sm:$0xf0] }
 0x340   : > { %v2603_v48 = vpop.f32.mrf.mxu1 }
 0x341   : > { %v6481_v48 = vld [vmem:[#allocation13 + $0x3b4] sm:$0xf0] }
 0x342   : > { %3153 = vmatpush.bf16.msrb.mxu3 %v6372_v56  ;;  %v2575_v11 = vpop.f32.mrf.mxu3  ;;  %v6361_v56 = vld [vmem:[#allocation13 + $0x2c4] sm:$0xf0] }
 0x343   : > { %v2576_v13 = vadd.f32 %v2575_v11, %v2100_v1  ;;  %v6527_v1 = vld [vmem:[#allocation13 + $0x408] sm:$0xf]  ;;  %v6364_v8 = vor.u32 %v7689_v50, %v6361_v56  ;;  %v6349_v11 = vld [vmem:[#allocation13 + $0x2ac] sm:$0xf0] }
 0x344   : > { %v6515_v50 = vld [vmem:[#allocation13 + $0x3f0] sm:$0xf]  ;;  %v6409_v56 = vld [vmem:[#allocation13 + $0x324] sm:$0xf0] }
 0x345   : > { %v2589_v19 = vadd.f32 %v8819_v22, %v2576_v13  ;;  %v6484_v13 = vor.u32 %v7719_v3, %v6481_v48  ;;  %v6412_v59 = vor.u32 %v7701_v54, %v6409_v56  ;;  %v6503_v3 = vld [vmem:[#allocation13 + $0x3d8] sm:$0xf]  ;;  %v7726_v48 = vld [vmem:[#allocation13 + $0x3e0] sm:$0xf0] }
 0x346   : > { %3154 = vmatpush.bf16.msrb.mxu3 %v6360_v2  ;;  %v7732_v2 = vld [vmem:[#allocation13 + $0x410] sm:$0xf0]  ;;  %v6331_v54 = vld [vmem:[#allocation13 + $0x278] sm:$0xf] }
 0x347   : > { %v2602_v21 = vadd.f32 %v2601_v41, %v2589_v19  ;;  %v6408_v41 = vor.u32 %v7702_v33, %v6407_v32  ;;  %v6528_v5 = vor.u32 %v7732_v2, %v6527_v1  ;;  %v7713_v19 = vld [vmem:[#allocation13 + $0x37c] sm:$0xf]  ;;  %v6316_v32 = vor.u32 %v7677_v29, %v6313_v30  ;;  %v7674_v33 = vld [vmem:[#allocation13 + $0x244] sm:$0xf]  ;;  %v7712_v1 = vld [vmem:[#allocation13 + $0x370] sm:$0xf0] }
 0x348   : > { %v6460_v25 = vor.u32 %v7713_v19, %v6457_v23  ;;  %v6532_v19 = vor.u32 %v7731_v10, %v6529_v17  ;;  %v7697_v23 = vld [vmem:[#allocation13 + $0x2f8] sm:$0xf0]  ;;  %v7694_v29 = vld [vmem:[#allocation13 + $0x2e0] sm:$0xf0]  ;;  %v6671_v10 = vld [vmem:[#allocation15 + $0x2e8] sm:$0xf] }
 0x349   : > { %v2607_v51 = vmax.f32 %v2602_v21, 0.0  ;;  %3171 = vmatpush.bf16.msra.mxu0 %v6408_v41  ;;  %3182 = vmatpush.bf16.msrb.mxu1 %v6528_v5  ;;  %v6325_v21 = vld [vmem:[#allocation13 + $0x27c] sm:$0xf0]  ;;  %v6475_v41 = vld [vmem:[#allocation13 + $0x398] sm:$0xf]  ;;  %v6504_v5 = vor.u32 %v7726_v48, %v6503_v3 }
 0x34a   : > { %3155 = vmatpush.bf16.msrb.mxu3 %v6348_v14  ;;  %v2577_v22 = vpop.f32.mrf.mxu3  ;;  %v7716_v14 = vld [vmem:[#allocation13 + $0x394] sm:$0xf]  ;;  %v6328_v28 = vor.u32 %v7680_v49, %v6325_v21  ;;  %v6476_v43 = vor.u32 %v7718_v42, %v6475_v41  ;;  %v7706_v49 = vld [vmem:[#allocation13 + $0x340] sm:$0xf0]  ;;  %v6493_v41 = vld [vmem:[#allocation13 + $0x3cc] sm:$0xf0] }
 0x34b   : > { %v2610_v34 = vpack.c.bf16 %v2607_v51, %v2607_v51  ;;  %v6472_v18 = vor.u32 %v7716_v14, %v6469_v15  ;;  %v6433_v51 = vld [vmem:[#allocation13 + $0x354] sm:$0xf0]  ;;  %v6487_v22 = vld [vmem:[#allocation13 + $0x3b0] sm:$0xf]  ;;  %v6491_v15 = vld [vmem:[#allocation13 + $0x3c0] sm:$0xf] }
 0x34c   : > { %v6355_v42 = vld [vmem:[#allocation13 + $0x2a8] sm:$0xf]  ;;  %v7768_v17 = vld [vmem:[#allocation15 + $0x2f0] sm:$0xf0] }
 0x34d   : > { %v2618_v44 = vsel %vm1337_vm0, %v2610_v34, 0  ;;  %3172 = vmatpush.bf16.msra.mxu0 %v6396_v0  ;;  %v6436_v34 = vor.u32 %v7707_v31, %v6433_v51  ;;  %v6451_v0 = vld [vmem:[#allocation13 + $0x368] sm:$0xf]  ;;  %v6415_v31 = vld [vmem:[#allocation13 + $0x320] sm:$0xf] }
 0x34e   : > { %3156 = vmatpush.bf16.msrb.mxu3 %v6336_v27  ;;  %2653 = vmatpush.bf16.msrb.mxu2 %v2618_v44  ;;  %v6445_v27 = vld [vmem:[#allocation13 + $0x36c] sm:$0xf0]  ;;  %v6463_v44 = vld [vmem:[#allocation13 + $0x380] sm:$0xf]  ;;  %v6452_v2 = vor.u32 %v7712_v1, %v6451_v0  ;;  %v7703_v51 = vld [vmem:[#allocation13 + $0x328] sm:$0xf0] }
 0x34f   : > { %v6448_v20 = vor.u32 %v7710_v26, %v6445_v27  ;;  %v6464_v47 = vor.u32 %v7715_v46, %v6463_v44  ;;  %v7728_v26 = vld [vmem:[#allocation13 + $0x3f4] sm:$0xf]  ;;  %v6517_v27 = vld [vmem:[#allocation13 + $0x3fc] sm:$0xf0] }
 0x350   : > { %v6520_v30 = vor.u32 %v7728_v26, %v6517_v27  ;;  %v7688_v44 = vld [vmem:[#allocation13 + $0x2b0] sm:$0xf0]  ;;  %v6647_v26 = vld [vmem:[#allocation15 + $0x2b8] sm:$0xf]  ;;  %v7762_v27 = vld [vmem:[#allocation15 + $0x2c0] sm:$0xf0] }
 0x351   : > { %6295 = vmatmul.msk.bf16.vlgmr.msrb.gmra.mxu2 %vm1333_vm2, %v8825_v60  ;;  %3217 = vmatpush.bf16.msrb.mxu0 %v6580_v4  ;;  %v6352_v60 = vor.u32 %v7686_v9, %v6349_v11  ;;  %v7698_v4 = vld [vmem:[#allocation13 + $0x304] sm:$0xf]  ;;  %v6439_v11 = vld [vmem:[#allocation13 + $0x350] sm:$0xf]  ;;  %v6356_v46 = vor.u32 %v7688_v44, %v6355_v42  ;;  %v7727_v44 = vld [vmem:[#allocation13 + $0x3e8] sm:$0xf0] }
 0x352   : > { %3191 = vmatpush.bf16.msra.mxu2 %v6388_v35  ;;  %3157 = vmatpush.bf16.msrb.mxu3 %v6324_v38  ;;  %v7721_v35 = vld [vmem:[#allocation13 + $0x3b8] sm:$0xf0]  ;;  %v6304_v38 = vor.u32 %v7674_v33, %v6301_v53  ;;  %v6505_v53 = vld [vmem:[#allocation13 + $0x3e4] sm:$0xf0] }
 0x353   : > { %v6488_v12 = vor.u32 %v7721_v35, %v6487_v22  ;;  %v7725_v33 = vld [vmem:[#allocation13 + $0x3dc] sm:$0xf]  ;;  %v6367_v22 = vld [vmem:[#allocation13 + $0x2c0] sm:$0xf]  ;;  %v7691_v35 = vld [vmem:[#allocation13 + $0x2c8] sm:$0xf0] }
 0x355   : > { %3218 = vmatpush.bf16.msrb.mxu0 %v6568_v16  ;;  %v7723_v16 = vld [vmem:[#allocation13 + $0x3c8] sm:$0xf0] }
 0x356   : > { %3192 = vmatpush.bf16.msra.mxu2 %v6376_v55  ;;  %3158 = vmatpush.bf16.msrb.mxu3 %v6312_v57  ;;  %v6516_v55 = vor.u32 %v7729_v52, %v6515_v50  ;;  %v7737_v57 = vld [vmem:[#allocation13 + $0x43c] sm:$0xf] }
 0x357   : > { %v6556_v62 = vor.u32 %v7737_v57, %v6553_v58  ;;  %v7685_v50 = vld [vmem:[#allocation13 + $0x298] sm:$0xf0]  ;;  %v6319_v57 = vld [vmem:[#allocation13 + $0x260] sm:$0xf]  ;;  %v7679_v58 = vld [vmem:[#allocation13 + $0x268] sm:$0xf0] }
 0x358   : > { %3183 = vmatpush.bf16.msrb.mxu1 %v6516_v55  ;;  %v7682_v55 = vld [vmem:[#allocation13 + $0x280] sm:$0xf0] }
 0x359   : > { %3219 = vmatpush.bf16.msrb.mxu0 %v6556_v62  ;;  %v6332_v56 = vor.u32 %v7682_v55, %v6331_v54  ;;  %v7745_v62 = vld [vmem:[#allocation13 + $0x478] sm:$0xf0] }
 0x35a   : > { %3193 = vmatpush.bf16.msra.mxu2 %v6364_v8  ;;  %3159 = vmatpush.bf16.msrb.mxu3 %v6300_v63  ;;  %v6541_v8 = vld [vmem:[#allocation13 + $0x42c] sm:$0xf0]  ;;  %v6400_v63 = vor.u32 %v7698_v4, %v6397_v6  ;;  %v7753_v54 = vld [vmem:[#allocation15 + $0x278] sm:$0xf0] }
 0x35b   : > { %v6544_v9 = vor.u32 %v7734_v7, %v6541_v8  ;;  %v6571_v7 = vld [vmem:[#allocation13 + $0x458] sm:$0xf]  ;;  %v7742_v8 = vld [vmem:[#allocation13 + $0x460] sm:$0xf0] }
 0x35c   : > { %3184 = vmatpush.bf16.msrb.mxu1 %v6504_v5 }
 0x35d   : > { %3220 = vmatpush.bf16.msrb.mxu0 %v6544_v9  ;;  %v7676_v9 = vld [vmem:[#allocation13 + $0x250] sm:$0xf0] }
 0x35e   : > { %3204 = vmatpush.bf16.msra.mxu3 %v6484_v13  ;;  %3194 = vmatpush.bf16.msra.mxu2 %v6352_v60  ;;  %v7709_v13 = vld [vmem:[#allocation13 + $0x358] sm:$0xf0]  ;;  %v6492_v60 = vor.u32 %v7723_v16, %v6491_v15  ;;  %v7739_v15 = vld [vmem:[#allocation13 + $0x448] sm:$0xf0] }
 0x35f   : > { %v6440_v14 = vor.u32 %v7709_v13, %v6439_v11  ;;  %v6572_v13 = vor.u32 %v7742_v8, %v6571_v7 }
 0x360   : > { %3185 = vmatpush.bf16.msrb.mxu1 %v6492_v60 }
 0x361   : > { %3221 = vmatpush.bf16.msrb.mxu0 %v6532_v19 }
 0x362   : > { %3205 = vmatpush.bf16.msra.mxu3 %v6472_v18  ;;  %3195 = vmatpush.bf16.msra.mxu2 %v6340_v24  ;;  %v6391_v18 = vld [vmem:[#allocation13 + $0x2f0] sm:$0xf]  ;;  %v6427_v24 = vld [vmem:[#allocation13 + $0x338] sm:$0xf] }
 0x363   : > { %v6392_v21 = vor.u32 %v7697_v23, %v6391_v18  ;;  %v6659_v18 = vld [vmem:[#allocation15 + $0x2d0] sm:$0xf]  ;;  %v6672_v23 = vor.u32 %v7768_v17, %v6671_v10  ;;  %v7791_v10 = vld [vmem:[#allocation15 + $0x3ac] sm:$0xf]  ;;  %v6769_v17 = vld [vmem:[#allocation15 + $0x3b4] sm:$0xf0] }
 0x365   : > { %3230 = vmatpush.bf16.msra.mxu1 %v6392_v21  ;;  %3222 = vmatpush.bf16.msrb.mxu0 %v6520_v30  ;;  %v7736_v21 = vld [vmem:[#allocation13 + $0x430] sm:$0xf0]  ;;  %v7733_v30 = vld [vmem:[#allocation13 + $0x418] sm:$0xf0] }
 0x366   : > { %3206 = vmatpush.bf16.msra.mxu3 %v6460_v25  ;;  %3196 = vmatpush.bf16.msra.mxu2 %v6328_v28  ;;  %v6428_v25 = vor.u32 %v7706_v49, %v6427_v24  ;;  %v6379_v28 = vld [vmem:[#allocation13 + $0x2d8] sm:$0xf]  ;;  %v7765_v24 = vld [vmem:[#allocation15 + $0x2d8] sm:$0xf0]  ;;  %v6547_v49 = vld [vmem:[#allocation13 + $0x428] sm:$0xf] }
 0x36a   : > { %3207 = vmatpush.bf16.msra.mxu3 %v6448_v20  ;;  %3197 = vmatpush.bf16.msra.mxu2 %v6316_v32  ;;  %v6380_v20 = vor.u32 %v7694_v29, %v6379_v28  ;;  %v6416_v32 = vor.u32 %v7703_v51, %v6415_v31  ;;  %v6548_v28 = vor.u32 %v7736_v21, %v6547_v49  ;;  %v6535_v29 = vld [vmem:[#allocation13 + $0x410] sm:$0xf]  ;;  %v6635_v31 = vld [vmem:[#allocation15 + $0x2a0] sm:$0xf]  ;;  %v7759_v51 = vld [vmem:[#allocation15 + $0x2a8] sm:$0xf0] }
 0x36b   : > { %v6772_v49 = vor.u32 %v7791_v10, %v6769_v17  ;;  %v7815_v17 = vld [vmem:[#allocation15 + $0x46c] sm:$0xf] }
 0x36c   : > { %3231 = vmatpush.bf16.msra.mxu1 %v6380_v20  ;;  %v6648_v20 = vor.u32 %v7762_v27, %v6647_v26  ;;  %v6637_v26 = vld [vmem:[#allocation15 + $0x2ac] sm:$0xf0] }
 0x36e   : > { %3208 = vmatpush.bf16.msra.mxu3 %v6436_v34  ;;  %3198 = vmatpush.bf16.msra.mxu2 %v6304_v38  ;;  %v6508_v34 = vor.u32 %v7725_v33, %v6505_v53  ;;  %v6368_v38 = vor.u32 %v7691_v35, %v6367_v22  ;;  %v6523_v33 = vld [vmem:[#allocation13 + $0x3f8] sm:$0xf]  ;;  %v7730_v53 = vld [vmem:[#allocation13 + $0x400] sm:$0xf0]  ;;  %v6767_v22 = vld [vmem:[#allocation15 + $0x3a8] sm:$0xf] }
 0x370   : > { %3223 = vmatpush.bf16.msrb.mxu0 %v6508_v34  ;;  %3232 = vmatpush.bf16.msra.mxu1 %v6368_v38  ;;  %v7792_v34 = vld [vmem:[#allocation15 + $0x3b0] sm:$0xf0]  ;;  %v6623_v38 = vld [vmem:[#allocation15 + $0x288] sm:$0xf] }
 0x371   : > { %v6768_v42 = vor.u32 %v7792_v34, %v6767_v22  ;;  %v6613_v22 = vld [vmem:[#allocation15 + $0x27c] sm:$0xf0] }
 0x372   : > { %3243 = vmatpush.bf16.msrb.mxu2 %v6488_v12  ;;  %3209 = vmatpush.bf16.msra.mxu3 %v6424_v40  ;;  %v6404_v12 = vor.u32 %v7700_v37, %v6403_v36  ;;  %v7722_v40 = vld [vmem:[#allocation13 + $0x3c4] sm:$0xf]  ;;  %v6636_v36 = vor.u32 %v7759_v51, %v6635_v31  ;;  %v7780_v31 = vld [vmem:[#allocation15 + $0x350] sm:$0xf0]  ;;  %v6863_v51 = vld [vmem:[#allocation15 + $0x468] sm:$0xf] }
 0x374   : > { %3233 = vmatpush.bf16.msra.mxu1 %v6356_v46  ;;  %v6755_v46 = vld [vmem:[#allocation15 + $0x390] sm:$0xf] }
 0x376   : > { %3244 = vmatpush.bf16.msrb.mxu2 %v6476_v43  ;;  %3210 = vmatpush.bf16.msra.mxu3 %v6412_v59  ;;  %v6496_v43 = vor.u32 %v7722_v40, %v6493_v41  ;;  %v6583_v59 = vld [vmem:[#allocation13 + $0x470] sm:$0xf]  ;;  %v6524_v40 = vor.u32 %v7730_v53, %v6523_v33  ;;  %v6511_v41 = vld [vmem:[#allocation13 + $0x3e0] sm:$0xf]  ;;  %v7816_v33 = vld [vmem:[#allocation15 + $0x470] sm:$0xf0] }
 0x377   : > { %v6584_v4 = vor.u32 %v7745_v62, %v6583_v59  ;;  %v6512_v55 = vor.u32 %v7727_v44, %v6511_v41  ;;  %v6743_v59 = vld [vmem:[#allocation15 + $0x378] sm:$0xf]  ;;  %v7786_v62 = vld [vmem:[#allocation15 + $0x380] sm:$0xf0]  ;;  %v7752_v53 = vld [vmem:[#allocation15 + $0x274] sm:$0xf]  ;;  %v6864_v34 = vor.u32 %v7816_v33, %v6863_v51 }
 0x378   : > { %3224 = vmatpush.bf16.msrb.mxu0 %v6496_v43  ;;  %v6744_v7 = vor.u32 %v7786_v62, %v6743_v59  ;;  %v7810_v59 = vld [vmem:[#allocation15 + $0x440] sm:$0xf0] }
 0x379   : > { %v7746_v62 = vld [vmem:[#allocation15 + $0x244] sm:$0xf] }
 0x37a   : > { %3245 = vmatpush.bf16.msrb.mxu2 %v6464_v47  ;;  %3211 = vmatpush.bf16.msra.mxu3 %v6400_v63  ;;  %v6343_v47 = vld [vmem:[#allocation13 + $0x290] sm:$0xf]  ;;  %v6307_v63 = vld [vmem:[#allocation13 + $0x248] sm:$0xf] }
 0x37b   : > { %v6344_v52 = vor.u32 %v7685_v50, %v6343_v47  ;;  %v6308_v11 = vor.u32 %v7676_v9, %v6307_v63  ;;  %v7789_v47 = vld [vmem:[#allocation15 + $0x398] sm:$0xf0]  ;;  %v6731_v63 = vld [vmem:[#allocation15 + $0x360] sm:$0xf]  ;;  %v7783_v9 = vld [vmem:[#allocation15 + $0x368] sm:$0xf0] }
 0x37d   : > { %3234 = vmatpush.bf16.msra.mxu1 %v6344_v52  ;;  %v6611_v52 = vld [vmem:[#allocation15 + $0x270] sm:$0xf] }
 0x37e   : > { %3246 = vmatpush.bf16.msrb.mxu2 %v6452_v2  ;;  %v6320_v2 = vor.u32 %v7679_v58, %v6319_v57  ;;  %v6756_v57 = vor.u32 %v7789_v47, %v6755_v46  ;;  %v7724_v58 = vld [vmem:[#allocation13 + $0x3d0] sm:$0xf0]  ;;  %v6601_v46 = vld [vmem:[#allocation15 + $0x264] sm:$0xf0]  ;;  %v7785_v47 = vld [vmem:[#allocation15 + $0x37c] sm:$0xf] }
 0x381   : > { %3235 = vmatpush.bf16.msra.mxu1 %v6332_v56  ;;  %v6499_v56 = vld [vmem:[#allocation13 + $0x3c8] sm:$0xf] }
 0x382   : > { %3247 = vmatpush.bf16.msrb.mxu2 %v6440_v14  ;;  %v6559_v14 = vld [vmem:[#allocation13 + $0x440] sm:$0xf] }
 0x383   : > { %v6560_v19 = vor.u32 %v7739_v15, %v6559_v14  ;;  %v6587_v15 = vld [vmem:[#allocation15 + $0x240] sm:$0xf] }
 0x385   : > { %3236 = vmatpush.bf16.msra.mxu1 %v6320_v2  ;;  %v6673_v2 = vld [vmem:[#allocation15 + $0x2f4] sm:$0xf0] }
 0x386   : > { %3248 = vmatpush.bf16.msrb.mxu2 %v6428_v25  ;;  %v6660_v25 = vor.u32 %v7765_v24, %v6659_v18 }
 0x389   : > { %3237 = vmatpush.bf16.msra.mxu1 %v6308_v11  ;;  %v7764_v11 = vld [vmem:[#allocation15 + $0x2d4] sm:$0xf] }
 0x38a   : > { %3249 = vmatpush.bf16.msrb.mxu2 %v6416_v32  ;;  %v6536_v32 = vor.u32 %v7733_v30, %v6535_v29  ;;  %v6625_v29 = vld [vmem:[#allocation15 + $0x294] sm:$0xf0] }
 0x38e   : > { %3250 = vmatpush.bf16.msrb.mxu2 %v6404_v12  ;;  %v7756_v12 = vld [vmem:[#allocation15 + $0x290] sm:$0xf0] }
 0x38f   : > { %v6624_v50 = vor.u32 %v7756_v12, %v6623_v38  ;;  %v6707_v38 = vld [vmem:[#allocation15 + $0x330] sm:$0xf]  ;;  %v7777_v12 = vld [vmem:[#allocation15 + $0x338] sm:$0xf0] }
 0x390   : > { %v6708_v41 = vor.u32 %v7777_v12, %v6707_v38 }
 0x3c0   : > { %v2629_v0 = vpop.f32.mrf.mxu2  ;;  %v2642_v1 = vpop.f32.mrf.mxu3 }
 0x3c1   : > { %v2630_v3 = vadd.f32 %v2629_v0, %v8782_v45  ;;  %v2643_v48 = vadd.f32 %v2642_v1, %v8784_v61  ;;  %v7767_v1 = vld [vmem:[#allocation15 + $0x2ec] sm:$0xf] }
 0x3c2   : > { %v6676_v8 = vor.u32 %v7767_v1, %v6673_v2 }
 0x3c3   : > { %v8838_v5 = vpack.c.bf16 %v2630_v3, %v2630_v3  ;;  %v2660_v6 = vpack.c.bf16 %v2643_v48, %v2643_v48  ;;  %v6612_v3 = vor.u32 %v7753_v54, %v6611_v52  ;;  %v6599_v48 = vld [vmem:[#allocation15 + $0x258] sm:$0xf] }
 0x3c5   : > { %3160 = vmatmul.bf16.vlgmr.msrb.gmra.mxu3 %v8838_v5  ;;  %3173 = vmatmul.bf16.vlgmr.msra.gmra.mxu0 %v2660_v6 }
 0x3c6   : > { %3199 = vmatmul.bf16.vlgmr.msra.gmra.mxu2 %v8838_v5  ;;  %3256 = vmatpush.bf16.msrb.mxu3 %v6584_v4  ;;  %v7750_v4 = vld [vmem:[#allocation15 + $0x260] sm:$0xf0] }
 0x3c7   : > { %3765 = vmatpush.bf16.msra.mxu0 %v6672_v23  ;;  %v6600_v14 = vor.u32 %v7750_v4, %v6599_v48  ;;  %v6649_v23 = vld [vmem:[#allocation15 + $0x2c4] sm:$0xf0]  ;;  %3791 = vmatpush.bf16.msra.mxu2 %v6864_v34  ;;  %v6733_v48 = vld [vmem:[#allocation15 + $0x36c] sm:$0xf0]  ;;  %v7773_v34 = vld [vmem:[#allocation15 + $0x31c] sm:$0xf] }
 0x3c8   : > { %v2631_v16 = vpop.f32.mrf.mxu2  ;;  %v2644_v60 = vpop.f32.mrf.mxu3  ;;  %v6775_v4 = vld [vmem:[#allocation15 + $0x3b0] sm:$0xf] }
 0x3c9   : > { %v7747_v16 = vld [vmem:[#allocation15 + $0x248] sm:$0xf0]  ;;  %v6732_v60 = vor.u32 %v7783_v9, %v6731_v63  ;;  %v6683_v63 = vld [vmem:[#allocation15 + $0x300] sm:$0xf] }
 0x3ca   : > { %3257 = vmatpush.bf16.msrb.mxu3 %v6572_v13  ;;  %v6661_v13 = vld [vmem:[#allocation15 + $0x2dc] sm:$0xf0]  ;;  %v6588_v24 = vor.u32 %v7747_v16, %v6587_v15  ;;  %v7771_v9 = vld [vmem:[#allocation15 + $0x308] sm:$0xf0]  ;;  %v6721_v16 = vld [vmem:[#allocation15 + $0x354] sm:$0xf0] }
 0x3cb   : > { %3766 = vmatpush.bf16.msra.mxu0 %v6660_v25  ;;  %v6664_v18 = vor.u32 %v7764_v11, %v6661_v13  ;;  %v7758_v25 = vld [vmem:[#allocation15 + $0x2a4] sm:$0xf]  ;;  %v6827_v11 = vld [vmem:[#allocation15 + $0x420] sm:$0xf]  ;;  %v6684_v13 = vor.u32 %v7771_v9, %v6683_v63  ;;  %v7779_v15 = vld [vmem:[#allocation15 + $0x34c] sm:$0xf] }
 0x3cc   : > { %v6640_v27 = vor.u32 %v7758_v25, %v6637_v26  ;;  %v6724_v10 = vor.u32 %v7779_v15, %v6721_v16  ;;  %v6667_v15 = vld [vmem:[#allocation15 + $0x2d8] sm:$0xf] }
 0x3ce   : > { %3258 = vmatpush.bf16.msrb.mxu3 %v6560_v19  ;;  %v7761_v19 = vld [vmem:[#allocation15 + $0x2bc] sm:$0xf] }
 0x3cf   : > { %3767 = vmatpush.bf16.msra.mxu0 %v6648_v20  ;;  %v6652_v21 = vor.u32 %v7761_v19, %v6649_v23  ;;  %v6719_v20 = vld [vmem:[#allocation15 + $0x348] sm:$0xf]  ;;  %v6763_v19 = vld [vmem:[#allocation15 + $0x398] sm:$0xf] }
 0x3d2   : > { %3259 = vmatpush.bf16.msrb.mxu3 %v6548_v28  ;;  %v7755_v28 = vld [vmem:[#allocation15 + $0x28c] sm:$0xf] }
 0x3d3   : > { %3768 = vmatpush.bf16.msra.mxu0 %v6636_v36  ;;  %v6628_v30 = vor.u32 %v7755_v28, %v6625_v29  ;;  %v7788_v36 = vld [vmem:[#allocation15 + $0x394] sm:$0xf]  ;;  %v6709_v28 = vld [vmem:[#allocation15 + $0x33c] sm:$0xf0] }
 0x3d4   : > { %v2655_v35 = vpop.f32.mrf.mxu2 }
 0x3d5   : > { %v2656_v37 = vadd.f32 %v2655_v35, %v8792_v39  ;;  %3212 = vmatmul.bf16.vlgmr.msra.gmra.mxu3 %v2660_v6  ;;  %v6616_v35 = vor.u32 %v7752_v53, %v6613_v22  ;;  %v6803_v53 = vld [vmem:[#allocation15 + $0x3f0] sm:$0xf]  ;;  %v7801_v22 = vld [vmem:[#allocation15 + $0x3f8] sm:$0xf0] }
 0x3d6   : > { %3251 = vmatmul.bf16.vlgmr.msrb.gmra.mxu2 %v2660_v6  ;;  %3260 = vmatpush.bf16.msrb.mxu3 %v6536_v32  ;;  %v6500_v6 = vor.u32 %v7724_v58, %v6499_v56  ;;  %v6720_v32 = vor.u32 %v7780_v31, %v6719_v20  ;;  %v7774_v56 = vld [vmem:[#allocation15 + $0x320] sm:$0xf0]  ;;  %v6853_v20 = vld [vmem:[#allocation15 + $0x45c] sm:$0xf0] }
 0x3d7   : > { %v2661_v43 = vpack.c.bf16 %v2656_v37, %v2656_v37  ;;  %3769 = vmatpush.bf16.msra.mxu0 %v6624_v50  ;;  %v6757_v37 = vld [vmem:[#allocation15 + $0x39c] sm:$0xf0]  ;;  %v6745_v50 = vld [vmem:[#allocation15 + $0x384] sm:$0xf0] }
 0x3d8   : > { %v6748_v54 = vor.u32 %v7785_v47, %v6745_v50  ;;  %v6751_v31 = vld [vmem:[#allocation15 + $0x380] sm:$0xf]  ;;  %v6685_v50 = vld [vmem:[#allocation15 + $0x30c] sm:$0xf0] }
 0x3d9   : > { %3186 = vmatmul.bf16.vlgmr.msrb.gmra.mxu1 %v2661_v43  ;;  %3225 = vmatmul.bf16.vlgmr.msrb.gmra.mxu0 %v2661_v43 }
 0x3da   : > { %3261 = vmatpush.bf16.msrb.mxu3 %v6524_v40  ;;  %3778 = vmatpush.bf16.msrb.mxu1 %v6768_v42  ;;  %v6851_v40 = vld [vmem:[#allocation15 + $0x450] sm:$0xf]  ;;  %v7813_v42 = vld [vmem:[#allocation15 + $0x458] sm:$0xf0] }
 0x3db   : > { %3770 = vmatpush.bf16.msra.mxu0 %v6612_v3  ;;  %v6852_v44 = vor.u32 %v7813_v42, %v6851_v40  ;;  %v7782_v3 = vld [vmem:[#allocation15 + $0x364] sm:$0xf]  ;;  %v6739_v40 = vld [vmem:[#allocation15 + $0x368] sm:$0xf] }
 0x3dc   : > { %v2657_v0 = vpop.f32.mrf.mxu2 }
 0x3dd   : > { %3792 = vmatpush.bf16.msra.mxu2 %v6852_v44  ;;  %v6589_v0 = vld [vmem:[#allocation15 + $0x24c] sm:$0xf0]  ;;  %v7798_v44 = vld [vmem:[#allocation15 + $0x3e0] sm:$0xf0] }
 0x3de   : > { %3262 = vmatpush.bf16.msrb.mxu3 %v6512_v55  ;;  %3779 = vmatpush.bf16.msrb.mxu1 %v6756_v57  ;;  %v6695_v55 = vld [vmem:[#allocation15 + $0x318] sm:$0xf]  ;;  %v6592_v2 = vor.u32 %v7746_v62, %v6589_v0  ;;  %v6779_v62 = vld [vmem:[#allocation15 + $0x3c0] sm:$0xf]  ;;  %v7795_v0 = vld [vmem:[#allocation15 + $0x3c8] sm:$0xf0] }
 0x3df   : > { %3771 = vmatpush.bf16.msra.mxu0 %v6600_v14  ;;  %v6839_v57 = vld [vmem:[#allocation15 + $0x438] sm:$0xf]  ;;  %v6696_v58 = vor.u32 %v7774_v56, %v6695_v55  ;;  %v7807_v14 = vld [vmem:[#allocation15 + $0x428] sm:$0xf0] }
 0x3e0   : > { %v6840_v1 = vor.u32 %v7810_v59, %v6839_v57  ;;  %v6727_v57 = vld [vmem:[#allocation15 + $0x350] sm:$0xf] }
 0x3e2   : > { %3263 = vmatpush.bf16.msrb.mxu3 %v6500_v6  ;;  %3780 = vmatpush.bf16.msrb.mxu1 %v6744_v7  ;;  %v6736_v6 = vor.u32 %v7782_v3, %v6733_v48  ;;  %v7793_v7 = vld [vmem:[#allocation15 + $0x3b8] sm:$0xf0]  ;;  %v6817_v3 = vld [vmem:[#allocation15 + $0x414] sm:$0xf0]  ;;  %v6679_v48 = vld [vmem:[#allocation15 + $0x2f0] sm:$0xf] }
 0x3e3   : > { %3772 = vmatpush.bf16.msra.mxu0 %v6588_v24  ;;  %3793 = vmatpush.bf16.msra.mxu2 %v6840_v1  ;;  %v7790_v24 = vld [vmem:[#allocation15 + $0x3a0] sm:$0xf0]  ;;  %v6780_v1 = vor.u32 %v7795_v0, %v6779_v62 }
 0x3e4   : > { %v6764_v25 = vor.u32 %v7790_v24, %v6763_v19  ;;  %v7797_v24 = vld [vmem:[#allocation15 + $0x3dc] sm:$0xf] }
 0x3e5   : > { %3264 = vmatmul.bf16.vlgmr.msrb.gmra.mxu3 %v2661_v43  ;;  %v7749_v43 = vld [vmem:[#allocation15 + $0x25c] sm:$0xf] }
 0x3e6   : > { %3804 = vmatpush.bf16.msra.mxu3 %v6676_v8  ;;  %3781 = vmatpush.bf16.msrb.mxu1 %v6732_v60  ;;  %v6604_v52 = vor.u32 %v7749_v43, %v6601_v46  ;;  %v6776_v8 = vor.u32 %v7793_v7, %v6775_v4  ;;  %v6828_v60 = vor.u32 %v7807_v14, %v6827_v11  ;;  %v6791_v43 = vld [vmem:[#allocation15 + $0x3d8] sm:$0xf]  ;;  %v7770_v46 = vld [vmem:[#allocation15 + $0x304] sm:$0xf]  ;;  %v6805_v14 = vld [vmem:[#allocation15 + $0x3fc] sm:$0xf0] }
 0x3e7   : > { %3817 = vmatpush.bf16.msrb.mxu0 %v6772_v49  ;;  %v6815_v49 = vld [vmem:[#allocation15 + $0x408] sm:$0xf]  ;;  %v6792_v47 = vor.u32 %v7798_v44, %v6791_v43  ;;  %v6688_v55 = vor.u32 %v7770_v46, %v6685_v50  ;;  %v6715_v7 = vld [vmem:[#allocation15 + $0x338] sm:$0xf]  ;;  %v7754_v43 = vld [vmem:[#allocation15 + $0x280] sm:$0xf0] }
 0x3e8   : > { %3794 = vmatpush.bf16.msra.mxu2 %v6828_v60  ;;  %v7766_v60 = vld [vmem:[#allocation15 + $0x2e0] sm:$0xf0] }
 0x3e9   : > { %3238 = vmatmul.bf16.vlgmr.msra.gmra.mxu1 %v8838_v5  ;;  %v6760_v5 = vor.u32 %v7788_v36, %v6757_v37  ;;  %v6697_v36 = vld [vmem:[#allocation15 + $0x324] sm:$0xf0]  ;;  %v7809_v37 = vld [vmem:[#allocation15 + $0x43c] sm:$0xf] }
 0x3ea   : > { %3805 = vmatpush.bf16.msra.mxu3 %v6664_v18  ;;  %3782 = vmatpush.bf16.msrb.mxu1 %v6720_v32  ;;  %v6865_v18 = vld [vmem:[#allocation15 + $0x474] sm:$0xf0]  ;;  %v7787_v32 = vld [vmem:[#allocation15 + $0x388] sm:$0xf0]  ;;  %v6700_v38 = vor.u32 %v7773_v34, %v6697_v36 }
 0x3eb   : > { %3818 = vmatpush.bf16.msrb.mxu0 %v6760_v5  ;;  %v6868_v23 = vor.u32 %v7815_v17, %v6865_v18  ;;  %v6752_v33 = vor.u32 %v7787_v32, %v6751_v31  ;;  %v6841_v5 = vld [vmem:[#allocation15 + $0x444] sm:$0xf0]  ;;  %v7775_v17 = vld [vmem:[#allocation15 + $0x328] sm:$0xf0]  ;;  %v6668_v18 = vor.u32 %v7766_v60, %v6667_v15  ;;  %v7794_v32 = vld [vmem:[#allocation15 + $0x3c4] sm:$0xf] }
 0x3ec   : > { %v6844_v12 = vor.u32 %v7809_v37, %v6841_v5  ;;  %v6631_v5 = vld [vmem:[#allocation15 + $0x290] sm:$0xf] }
 0x3ee   : > { %3806 = vmatpush.bf16.msra.mxu3 %v6652_v21  ;;  %3783 = vmatpush.bf16.msrb.mxu1 %v6708_v41  ;;  %v7804_v21 = vld [vmem:[#allocation15 + $0x410] sm:$0xf0] }
 0x3ef   : > { %3819 = vmatpush.bf16.msrb.mxu0 %v6748_v54  ;;  %v6816_v26 = vor.u32 %v7804_v21, %v6815_v49  ;;  %v7784_v41 = vld [vmem:[#allocation15 + $0x370] sm:$0xf0]  ;;  %v6829_v54 = vld [vmem:[#allocation15 + $0x42c] sm:$0xf0]  ;;  %v6793_v49 = vld [vmem:[#allocation15 + $0x3e4] sm:$0xf0] }
 0x3f0   : > { %v6740_v42 = vor.u32 %v7784_v41, %v6739_v40  ;;  %v6655_v21 = vld [vmem:[#allocation15 + $0x2c0] sm:$0xf] }
 0x3f1   : > { %3795 = vmatpush.bf16.msra.mxu2 %v6816_v26  ;;  %v6796_v26 = vor.u32 %v7797_v24, %v6793_v49  ;;  %v6835_v49 = vld [vmem:[#allocation15 + $0x428] sm:$0xf] }
 0x3f2   : > { %3807 = vmatpush.bf16.msra.mxu3 %v6640_v27  ;;  %3784 = vmatpush.bf16.msrb.mxu1 %v6696_v58  ;;  %v7776_v27 = vld [vmem:[#allocation15 + $0x334] sm:$0xf]  ;;  %v7781_v58 = vld [vmem:[#allocation15 + $0x358] sm:$0xf0] }
 0x3f3   : > { %3820 = vmatpush.bf16.msrb.mxu0 %v6736_v6  ;;  %v6712_v29 = vor.u32 %v7776_v27, %v6709_v28  ;;  %v6728_v59 = vor.u32 %v7781_v58, %v6727_v57  ;;  %v7769_v6 = vld [vmem:[#allocation15 + $0x2f8] sm:$0xf0]  ;;  %v7763_v27 = vld [vmem:[#allocation15 + $0x2c8] sm:$0xf0]  ;;  %v6691_v28 = vld [vmem:[#allocation15 + $0x308] sm:$0xf] }
 0x3f4   : > { %v6680_v9 = vor.u32 %v7769_v6, %v6679_v48  ;;  %v6656_v31 = vor.u32 %v7763_v27, %v6655_v21  ;;  %v6871_v58 = vld [vmem:[#allocation15 + $0x470] sm:$0xf]  ;;  %v7808_v21 = vld [vmem:[#allocation15 + $0x430] sm:$0xf0] }
 0x3f6   : > { %3808 = vmatpush.bf16.msra.mxu3 %v6628_v30  ;;  %3785 = vmatpush.bf16.msrb.mxu1 %v6684_v13  ;;  %v7812_v30 = vld [vmem:[#allocation15 + $0x454] sm:$0xf] }
 0x3f7   : > { %3821 = vmatpush.bf16.msrb.mxu0 %v6724_v10  ;;  %v6856_v51 = vor.u32 %v7812_v30, %v6853_v20  ;;  %v7800_v13 = vld [vmem:[#allocation15 + $0x3f4] sm:$0xf]  ;;  %v6703_v10 = vld [vmem:[#allocation15 + $0x320] sm:$0xf]  ;;  %v8847_v30 = vld [vmem:[%s8918_s9 + $0x3] sm:$0x7] }
 0x3f8   : > { %v6808_v16 = vor.u32 %v7800_v13, %v6805_v14  ;;  %v6704_v19 = vor.u32 %v7775_v17, %v6703_v10  ;;  %v2763_v44 = vperm.slane %v8847_v30, 1  ;;  %v6847_v10 = vld [vmem:[#allocation15 + $0x440] sm:$0xf]  ;;  %v7811_v17 = vld [vmem:[#allocation15 + $0x448] sm:$0xf0]  ;;  %v2764_v24 = vperm.slane %v8847_v30, 2 }
 0x3fa   : > { %3809 = vmatpush.bf16.msra.mxu3 %v6616_v35  ;;  %3830 = vmatpush.bf16.msra.mxu1 %v6868_v23  ;;  %v6804_v35 = vor.u32 %v7801_v22, %v6803_v53  ;;  %v6643_v53 = vld [vmem:[#allocation15 + $0x2a8] sm:$0xf]  ;;  %v2762_v22 = vperm.slane %v8847_v30, 0 }
 0x3fb   : > { %3822 = vmatpush.bf16.msrb.mxu0 %v6712_v29  ;;  %v7772_v29 = vld [vmem:[#allocation15 + $0x310] sm:$0xf0] }
 0x3fc   : > { %3796 = vmatpush.bf16.msra.mxu2 %v6804_v35  ;;  %v7760_v35 = vld [vmem:[#allocation15 + $0x2b0] sm:$0xf0] }
 0x3fd   : > { %v6644_v36 = vor.u32 %v7760_v35, %v6643_v53  ;;  %v7802_v53 = vld [vmem:[#allocation15 + $0x400] sm:$0xf0] }
 0x3fe   : > { %3810 = vmatpush.bf16.msra.mxu3 %v6604_v52  ;;  %3831 = vmatpush.bf16.msra.mxu1 %v6856_v51  ;;  %v7806_v52 = vld [vmem:[#allocation15 + $0x424] sm:$0xf]  ;;  %v6692_v51 = vor.u32 %v7772_v29, %v6691_v28  ;;  %v6823_v28 = vld [vmem:[#allocation15 + $0x410] sm:$0xf]  ;;  %v7805_v29 = vld [vmem:[#allocation15 + $0x418] sm:$0xf0] }
 0x3ff   : > { %3823 = vmatpush.bf16.msrb.mxu0 %v6700_v38  ;;  %v6832_v56 = vor.u32 %v7806_v52, %v6829_v54  ;;  %v7757_v38 = vld [vmem:[#allocation15 + $0x298] sm:$0xf0]  ;;  %v6607_v54 = vld [vmem:[#allocation15 + $0x260] sm:$0xf] }
 0x400   : > { %3797 = vmatpush.bf16.msra.mxu2 %v6792_v47  ;;  %v6632_v41 = vor.u32 %v7757_v38, %v6631_v5 }
 0x402   : > { %3811 = vmatpush.bf16.msra.mxu3 %v6592_v2  ;;  %3832 = vmatpush.bf16.msra.mxu1 %v6844_v12  ;;  %v7803_v2 = vld [vmem:[#allocation15 + $0x40c] sm:$0xf] }
 0x403   : > { %3824 = vmatpush.bf16.msrb.mxu0 %v6688_v55  ;;  %v6820_v4 = vor.u32 %v7803_v2, %v6817_v3  ;;  %v7751_v55 = vld [vmem:[#allocation15 + $0x268] sm:$0xf0] }
 0x404   : > { %3798 = vmatpush.bf16.msra.mxu2 %v6780_v1  ;;  %v6608_v0 = vor.u32 %v7751_v55, %v6607_v54 }
 0x406   : > { %3856 = vmatpush.bf16.msrb.mxu3 %v6776_v8  ;;  %3833 = vmatpush.bf16.msra.mxu1 %v6832_v56  ;;  %v7778_v8 = vld [vmem:[#allocation15 + $0x340] sm:$0xf0] }
 0x407   : > { %v6716_v11 = vor.u32 %v7778_v8, %v6715_v7  ;;  %v6859_v7 = vld [vmem:[#allocation15 + $0x458] sm:$0xf]  ;;  %v7814_v8 = vld [vmem:[#allocation15 + $0x460] sm:$0xf0] }
 0x408   : > { %3843 = vmatpush.bf16.msrb.mxu2 %v6680_v9  ;;  %v7748_v9 = vld [vmem:[#allocation15 + $0x250] sm:$0xf0] }
 0x40a   : > { %3857 = vmatpush.bf16.msrb.mxu3 %v6764_v25  ;;  %3834 = vmatpush.bf16.msra.mxu1 %v6820_v4 }
 0x40c   : > { %3844 = vmatpush.bf16.msrb.mxu2 %v6668_v18 }
 0x40e   : > { %3858 = vmatpush.bf16.msrb.mxu3 %v6752_v33  ;;  %3835 = vmatpush.bf16.msra.mxu1 %v6808_v16  ;;  %v6781_v33 = vld [vmem:[#allocation15 + $0x3cc] sm:$0xf0]  ;;  %v6860_v16 = vor.u32 %v7814_v8, %v6859_v7  ;;  %v7840_v7 = vld [vmem:[#allocation13 + $0x530] sm:$0xf0] }
 0x40f   : > { %v6784_v34 = vor.u32 %v7794_v32, %v6781_v33  ;;  %v6811_v33 = vld [vmem:[#allocation15 + $0x3f8] sm:$0xf] }
 0x410   : > { %3845 = vmatpush.bf16.msrb.mxu2 %v6656_v31  ;;  %v6812_v30 = vor.u32 %v7802_v53, %v6811_v33  ;;  %v7035_v33 = vld [vmem:[#allocation13 + $0x5b8] sm:$0xf]  ;;  %v7858_v53 = vld [vmem:[#allocation13 + $0x5c0] sm:$0xf0] }
 0x412   : > { %3859 = vmatpush.bf16.msrb.mxu3 %v6740_v42  ;;  %3836 = vmatpush.bf16.msra.mxu1 %v6796_v26  ;;  %v6619_v42 = vld [vmem:[#allocation15 + $0x278] sm:$0xf]  ;;  %v6836_v26 = vor.u32 %v7808_v21, %v6835_v49  ;;  %v8860_v49 = vld [vmem:[%s8727_s12] sm:$0xf] }
 0x413   : > { %v6620_v46 = vor.u32 %v7754_v43, %v6619_v42 }
 0x414   : > { %3846 = vmatpush.bf16.msrb.mxu2 %v6644_v36  ;;  %v6799_v36 = vld [vmem:[#allocation15 + $0x3e0] sm:$0xf] }
 0x416   : > { %3860 = vmatpush.bf16.msrb.mxu3 %v6728_v59  ;;  %3837 = vmatpush.bf16.msra.mxu1 %v6784_v34  ;;  %v7817_v59 = vld [vmem:[#allocation15 + $0x478] sm:$0xf0] }
 0x417   : > { %v6872_v48 = vor.u32 %v7817_v59, %v6871_v58 }
 0x418   : > { %3847 = vmatpush.bf16.msrb.mxu2 %v6632_v41 }
 0x41a   : > { %3861 = vmatpush.bf16.msrb.mxu3 %v6716_v11 }
 0x41c   : > { %3848 = vmatpush.bf16.msrb.mxu2 %v6620_v46 }
 0x41e   : > { %3862 = vmatpush.bf16.msrb.mxu3 %v6704_v19 }
 0x420   : > { %3849 = vmatpush.bf16.msrb.mxu2 %v6608_v0 }
 0x422   : > { %3863 = vmatpush.bf16.msrb.mxu3 %v6692_v51  ;;  %v6824_v51 = vor.u32 %v7805_v29, %v6823_v28 }
 0x442   : > { %v3174_v63 = vpop.f32.mrf.mxu0 }
 0x448   : > { %v3161_v23 = vpop.f32.mrf.mxu3 }
 0x449   : > { %v3200_v25 = vpop.f32.mrf.mxu2  ;;  %v3162_v12 = vadd.f32 %v3161_v23, %v2762_v22  ;;  %v6848_v23 = vor.u32 %v7811_v17, %v6847_v10  ;;  %v7059_v10 = vld [vmem:[#allocation13 + $0x5e8] sm:$0xf] }
 0x44a   : > { %v3176_v20 = vpop.f32.mrf.mxu0  ;;  %v3201_v56 = vadd.f32 %v3200_v25, %v2763_v44 }
 0x44b   : > { %v3175_v47 = vadd.f32 %v3174_v63, %v3162_v12  ;;  %v6595_v63 = vld [vmem:[#allocation15 + $0x248] sm:$0xf] }
 0x44c   : > { %v6596_v13 = vor.u32 %v7748_v9, %v6595_v63  ;;  %v6787_v12 = vld [vmem:[#allocation15 + $0x3c8] sm:$0xf]  ;;  %v6951_v9 = vld [vmem:[#allocation13 + $0x510] sm:$0xf] }
 0x44e   : > { %3850 = vmatpush.bf16.msrb.mxu2 %v6596_v13 }
 0x450   : > { %v3163_v37 = vpop.f32.mrf.mxu3 }
 0x451   : > { %v3202_v40 = vpop.f32.mrf.mxu2  ;;  %v7799_v37 = vld [vmem:[#allocation15 + $0x3e8] sm:$0xf0] }
 0x452   : > { %v6800_v38 = vor.u32 %v7799_v37, %v6799_v36  ;;  %v7796_v40 = vld [vmem:[#allocation15 + $0x3d0] sm:$0xf0]  ;;  %v7023_v37 = vld [vmem:[#allocation13 + $0x5a0] sm:$0xf] }
 0x453   : > { %v6788_v41 = vor.u32 %v7796_v40, %v6787_v12  ;;  %v7155_v12 = vld [vmem:[#allocation13 + $0x6a8] sm:$0xf]  ;;  %v7888_v40 = vld [vmem:[#allocation13 + $0x6b0] sm:$0xf0] }
 0x456   : > { %v3187_v50 = vpop.f32.mrf.mxu1  ;;  %v3226_v52 = vpop.f32.mrf.mxu0 }
 0x457   : > { %v3188_v57 = vadd.f32 %v3187_v50, %v3175_v47  ;;  %v8852_v47 = vld [vmem:[#allocation16 + $0x3] sm:$0x7] }
 0x458   : > { %v3213_v62 = vpop.f32.mrf.mxu3  ;;  %v3377_v36 = vperm.slane %v8852_v47, 2 }
 0x459   : > { %v3269_v1 = vmax.f32 %v3188_v57, 0.0  ;;  %v3214_v2 = vadd.f32 %v3213_v62, %v3201_v56  ;;  %v3252_v3 = vpop.f32.mrf.mxu2  ;;  %v3375_v57 = vperm.slane %v8852_v47, 0 }
 0x45b   : > { %v3272_v4 = vpack.c.bf16 %v3269_v1, %v3269_v1  ;;  %v3227_v6 = vadd.f32 %v3226_v52, %v3214_v2  ;;  %v3376_v52 = vperm.slane %v8852_v47, 1 }
 0x45d   : > { %v3270_v11 = vmax.f32 %v3227_v6, 0.0  ;;  %3773 = vmatmul.bf16.vlgmr.msra.gmra.mxu0 %v3272_v4  ;;  %3812 = vmatmul.bf16.vlgmr.msra.gmra.mxu3 %v3272_v4  ;;  %v6963_v6 = vld [vmem:[#allocation13 + $0x528] sm:$0xf] }
 0x45e   : > { %v3189_v14 = vpop.f32.mrf.mxu1  ;;  %v3228_v15 = vpop.f32.mrf.mxu0  ;;  %3869 = vmatpush.bf16.msra.mxu0 %v6872_v48  ;;  %v6964_v63 = vor.u32 %v7840_v7, %v6963_v6  ;;  %v7849_v6 = vld [vmem:[#allocation13 + $0x578] sm:$0xf0]  ;;  %v6965_v7 = vld [vmem:[#allocation13 + $0x534] sm:$0xf0] }
 0x45f   : > { %v3273_v60 = vpack.c.bf16 %v3270_v11, %v3270_v11  ;;  %v7837_v11 = vld [vmem:[#allocation13 + $0x518] sm:$0xf0] }
 0x460   : > { %v3215_v18 = vpop.f32.mrf.mxu3 }
 0x461   : > { %v3254_v19 = vpop.f32.mrf.mxu2  ;;  %3786 = vmatmul.bf16.vlgmr.msrb.gmra.mxu1 %v3273_v60  ;;  %v6939_v18 = vld [vmem:[#allocation13 + $0x4f8] sm:$0xf] }
 0x462   : > { %3870 = vmatpush.bf16.msra.mxu0 %v6860_v16  ;;  %v7834_v19 = vld [vmem:[#allocation13 + $0x500] sm:$0xf0] }
 0x463   : > { %v6940_v29 = vor.u32 %v7834_v19, %v6939_v18  ;;  %v7061_v18 = vld [vmem:[#allocation13 + $0x5f4] sm:$0xf0] }
 0x464   : > { %v6987_v19 = vld [vmem:[#allocation13 + $0x558] sm:$0xf] }
 0x466   : > { %v3239_v25 = vpop.f32.mrf.mxu1  ;;  %3871 = vmatpush.bf16.msra.mxu0 %v6848_v23  ;;  %v7864_v23 = vld [vmem:[#allocation13 + $0x5f0] sm:$0xf0] }
 0x467   : > { %v3240_v27 = vadd.f32 %v3239_v25, %v2764_v24  ;;  %v7060_v21 = vor.u32 %v7864_v23, %v7059_v10  ;;  %v7047_v25 = vld [vmem:[#allocation13 + $0x5d0] sm:$0xf]  ;;  %v7846_v23 = vld [vmem:[#allocation13 + $0x560] sm:$0xf0] }
 0x468   : > { %v3265_v20 = vpop.f32.mrf.mxu3 }
 0x469   : > { %v3253_v31 = vadd.f32 %v3252_v3, %v3240_v27  ;;  %v7861_v27 = vld [vmem:[#allocation13 + $0x5d8] sm:$0xf0]  ;;  %4442 = vmatpush.bf16.msra.mxu3 %v7060_v21  ;;  %v6953_v21 = vld [vmem:[#allocation13 + $0x51c] sm:$0xf0] }
 0x46a   : > { %3872 = vmatpush.bf16.msra.mxu0 %v6836_v26 }
 0x46b   : > { %v3266_v32 = vadd.f32 %v3265_v20, %v3253_v31  ;;  %v6927_v31 = vld [vmem:[#allocation13 + $0x4e0] sm:$0xf] }
 0x46d   : > { %v3271_v22 = vmax.f32 %v3266_v32, 0.0  ;;  %3825 = vmatmul.bf16.vlgmr.msrb.gmra.mxu0 %v3273_v60  ;;  %3864 = vmatmul.bf16.vlgmr.msrb.gmra.mxu3 %v3273_v60  ;;  %v6952_v60 = vor.u32 %v7837_v11, %v6951_v9  ;;  %v7048_v32 = vor.u32 %v7861_v27, %v7047_v25  ;;  %v7119_v27 = vld [vmem:[#allocation13 + $0x660] sm:$0xf] }
 0x46e   : > { %v3241_v34 = vpop.f32.mrf.mxu1  ;;  %3873 = vmatpush.bf16.msra.mxu0 %v6824_v51  ;;  %v7831_v51 = vld [vmem:[#allocation13 + $0x4e8] sm:$0xf0] }
 0x46f   : > { %v3274_v35 = vpack.c.bf16 %v3271_v22, %v3271_v22  ;;  %v6928_v22 = vor.u32 %v7831_v51, %v6927_v31  ;;  %v6915_v34 = vld [vmem:[#allocation13 + $0x4c8] sm:$0xf]  ;;  %4443 = vmatpush.bf16.msra.mxu3 %v7048_v32  ;;  %v7860_v51 = vld [vmem:[#allocation13 + $0x5d4] sm:$0xf]  ;;  %v7049_v32 = vld [vmem:[#allocation13 + $0x5dc] sm:$0xf0] }
 0x470   : > { %v3267_v5 = vpop.f32.mrf.mxu3 }
 0x471   : > { %3799 = vmatmul.bf16.vlgmr.msra.gmra.mxu2 %v3274_v35  ;;  %3838 = vmatmul.bf16.vlgmr.msra.gmra.mxu1 %v3274_v35  ;;  %v7855_v5 = vld [vmem:[#allocation13 + $0x5a8] sm:$0xf0] }
 0x472   : > { %3874 = vmatpush.bf16.msra.mxu0 %v6812_v30  ;;  %v7828_v30 = vld [vmem:[#allocation13 + $0x4d0] sm:$0xf0] }
 0x476   : > { %3875 = vmatpush.bf16.msra.mxu0 %v6800_v38 }
 0x47a   : > { %3876 = vmatpush.bf16.msra.mxu0 %v6788_v41  ;;  %v6916_v41 = vor.u32 %v7828_v30, %v6915_v34  ;;  %v6975_v34 = vld [vmem:[#allocation13 + $0x540] sm:$0xf]  ;;  %v7843_v30 = vld [vmem:[#allocation13 + $0x548] sm:$0xf0] }
 0x47d   : > { %3877 = vmatmul.bf16.vlgmr.msra.gmra.mxu0 %v3274_v35  ;;  %v7036_v35 = vor.u32 %v7858_v53, %v7035_v33  ;;  %v6988_v33 = vor.u32 %v7846_v23, %v6987_v19  ;;  %v7862_v19 = vld [vmem:[#allocation13 + $0x5e0] sm:$0xf0] }
 0x47f   : > { %4444 = vmatpush.bf16.msra.mxu3 %v7036_v35  ;;  %v7887_v35 = vld [vmem:[#allocation13 + $0x6ac] sm:$0xf] }
 0x481   : > { %3851 = vmatmul.bf16.vlgmr.msrb.gmra.mxu2 %v3272_v4 }
 0x4da   : > { %v3774_v42 = vpop.f32.mrf.mxu0 }
 0x4db   : > { %v3775_v1 = vadd.f32 %v3774_v42, %v3375_v57  ;;  %v7156_v42 = vor.u32 %v7888_v40, %v7155_v12  ;;  %v7885_v57 = vld [vmem:[#allocation13 + $0x698] sm:$0xf0]  ;;  %v7052_v12 = vor.u32 %v7860_v51, %v7049_v32  ;;  %v6976_v40 = vor.u32 %v7843_v30, %v6975_v34  ;;  %v7133_v51 = vld [vmem:[#allocation13 + $0x684] sm:$0xf0]  ;;  %v7083_v30 = vld [vmem:[#allocation13 + $0x618] sm:$0xf] }
 0x4dd   : > { %4455 = vmatpush.bf16.msrb.mxu0 %v7156_v42  ;;  %v7830_v42 = vld [vmem:[#allocation13 + $0x4e4] sm:$0xf] }
 0x4de   : > { %v3787_v43 = vpop.f32.mrf.mxu1 }
 0x4df   : > { %v3788_v48 = vadd.f32 %v3787_v43, %v3775_v1  ;;  %v7822_v1 = vld [vmem:[#allocation13 + $0x4a0] sm:$0xf0] }
 0x4e0   : > { %v3813_v44 = vpop.f32.mrf.mxu3 }
 0x4e1   : > { %v3814_v56 = vadd.f32 %v3813_v44, %v3376_v52  ;;  %v6903_v44 = vld [vmem:[#allocation13 + $0x4b0] sm:$0xf] }
 0x4e2   : > { %v3776_v46 = vpop.f32.mrf.mxu0 }
 0x4e3   : > { %v7825_v46 = vld [vmem:[#allocation13 + $0x4b8] sm:$0xf0] }
 0x4e6   : > { %v3789_v50 = vpop.f32.mrf.mxu1 }
 0x4e7   : > { %v7024_v50 = vor.u32 %v7855_v5, %v7023_v37  ;;  %v7107_v37 = vld [vmem:[#allocation13 + $0x648] sm:$0xf]  ;;  %v7876_v5 = vld [vmem:[#allocation13 + $0x650] sm:$0xf0] }
 0x4e8   : > { %v3815_v54 = vpop.f32.mrf.mxu3 }
 0x4e9   : > { %v7011_v54 = vld [vmem:[#allocation13 + $0x588] sm:$0xf]  ;;  %4445 = vmatpush.bf16.msra.mxu3 %v7024_v50  ;;  %v6929_v50 = vld [vmem:[#allocation13 + $0x4ec] sm:$0xf0] }
 0x4ea   : > { %v3826_v55 = vpop.f32.mrf.mxu0 }
 0x4eb   : > { %v3827_v58 = vadd.f32 %v3826_v55, %v3814_v56  ;;  %v7852_v55 = vld [vmem:[#allocation13 + $0x590] sm:$0xf0]  ;;  %v7143_v56 = vld [vmem:[#allocation13 + $0x690] sm:$0xf] }
 0x4ee   : > { %v3839_v59 = vpop.f32.mrf.mxu1 }
 0x4ef   : > { %v3840_v62 = vadd.f32 %v3839_v59, %v3827_v58  ;;  %v6904_v58 = vor.u32 %v7825_v46, %v6903_v44  ;;  %v7144_v59 = vor.u32 %v7885_v57, %v7143_v56  ;;  %v7037_v44 = vld [vmem:[#allocation13 + $0x5c4] sm:$0xf0]  ;;  %v7854_v56 = vld [vmem:[#allocation13 + $0x5a4] sm:$0xf]  ;;  %v7025_v57 = vld [vmem:[#allocation13 + $0x5ac] sm:$0xf0] }
 0x4f0   : > { %v8856_v0 = vpop.f32.mrf.mxu3 }
 0x4f1   : > { %v3883_v2 = vmax.f32 %v3840_v62, 0.0  ;;  %v6891_v62 = vld [vmem:[#allocation13 + $0x498] sm:$0xf]  ;;  %4456 = vmatpush.bf16.msrb.mxu0 %v7144_v59 }
 0x4f2   : > { %v3828_v3 = vpop.f32.mrf.mxu0  ;;  %v6892_v11 = vor.u32 %v7822_v1, %v6891_v62  ;;  %v6917_v59 = vld [vmem:[#allocation13 + $0x4d4] sm:$0xf0]  ;;  %v7028_v62 = vor.u32 %v7854_v56, %v7025_v57  ;;  %v7841_v57 = vld [vmem:[#allocation13 + $0x538] sm:$0xf0] }
 0x4f3   : > { %v3886_v4 = vpack.c.bf16 %v3883_v2, %v3883_v2  ;;  %v7012_v2 = vor.u32 %v7852_v55, %v7011_v54  ;;  %v7145_v54 = vld [vmem:[#allocation13 + $0x69c] sm:$0xf0] }
 0x4f4   : > { %v3800_v8 = vpop.f32.mrf.mxu2 }
 0x4f5   : > { %v3801_v13 = vadd.f32 %v3800_v8, %v3788_v48  ;;  %v3892_v14 = vsel %vm1337_vm0, %v3886_v4, 0  ;;  %v7839_v48 = vld [vmem:[#allocation13 + $0x52c] sm:$0xf]  ;;  %v6999_v4 = vld [vmem:[#allocation13 + $0x570] sm:$0xf]  ;;  %4446 = vmatpush.bf16.msra.mxu3 %v7012_v2 }
 0x4f6   : > { %v3841_v15 = vpop.f32.mrf.mxu1  ;;  %3917 = vmatpush.bf16.msra.mxu2 %v3892_v14  ;;  %v7131_v8 = vld [vmem:[#allocation13 + $0x678] sm:$0xf]  ;;  %v6879_v14 = vld [vmem:[#allocation13 + $0x480] sm:$0xf]  ;;  %v7851_v2 = vld [vmem:[#allocation13 + $0x58c] sm:$0xf] }
 0x4f7   : > { %v3882_v16 = vmax.f32 %v3801_v13, 0.0  ;;  %v7819_v15 = vld [vmem:[#allocation13 + $0x488] sm:$0xf0] }
 0x4f8   : > { %v3867_v17 = vpop.f32.mrf.mxu3 }
 0x4f9   : > { %v3885_v24 = vpack.c.bf16 %v3882_v16, %v3882_v16  ;;  %6874 = vmatmul.msk.bf16.vlgmr.msra.gmra.mxu2 %vm1333_vm2, %v8860_v49  ;;  %v7863_v16 = vld [vmem:[#allocation13 + $0x5ec] sm:$0xf]  ;;  %v6968_v17 = vor.u32 %v7839_v48, %v6965_v7  ;;  %v7824_v48 = vld [vmem:[#allocation13 + $0x4b4] sm:$0xf] }
 0x4fa   : > { %4429 = vmatpush.bf16.msrb.mxu2 %v6964_v63  ;;  %v3878_v26 = vpop.f32.mrf.mxu0  ;;  %v7882_v63 = vld [vmem:[#allocation13 + $0x680] sm:$0xf0]  ;;  %v7064_v31 = vor.u32 %v7863_v16, %v7061_v18  ;;  %v7067_v16 = vld [vmem:[#allocation13 + $0x5f0] sm:$0xf]  ;;  %v7055_v18 = vld [vmem:[#allocation13 + $0x5d8] sm:$0xf] }
 0x4fb   : > { %v3889_v28 = vsel %vm1337_vm0, %v3885_v24, 0  ;;  %v7132_v13 = vor.u32 %v7882_v63, %v7131_v8  ;;  %v7836_v24 = vld [vmem:[#allocation13 + $0x514] sm:$0xf]  ;;  %v7001_v63 = vld [vmem:[#allocation13 + $0x57c] sm:$0xf0]  ;;  %v7056_v23 = vor.u32 %v7862_v19, %v7055_v18 }
 0x4fc   : > { %v3802_v20 = vpop.f32.mrf.mxu2  ;;  %3904 = vmatpush.bf16.msrb.mxu1 %v3889_v28  ;;  %v7879_v28 = vld [vmem:[#allocation13 + $0x668] sm:$0xf0]  ;;  %v7848_v8 = vld [vmem:[#allocation13 + $0x574] sm:$0xf]  ;;  %v7073_v18 = vld [vmem:[#allocation13 + $0x60c] sm:$0xf0] }
 0x4fd   : > { %4457 = vmatpush.bf16.msrb.mxu0 %v7132_v13  ;;  %v6941_v20 = vld [vmem:[#allocation13 + $0x504] sm:$0xf0]  ;;  %v7120_v53 = vor.u32 %v7879_v28, %v7119_v27  ;;  %v7004_v13 = vor.u32 %v7848_v8, %v7001_v63  ;;  %v7873_v27 = vld [vmem:[#allocation13 + $0x638] sm:$0xf0] }
 0x4fe   : > { %4430 = vmatpush.bf16.msrb.mxu2 %v6952_v60  ;;  %v7000_v60 = vor.u32 %v7849_v6, %v6999_v4  ;;  %v6905_v4 = vld [vmem:[#allocation13 + $0x4bc] sm:$0xf0]  ;;  %v7845_v28 = vld [vmem:[#allocation13 + $0x55c] sm:$0xf]  ;;  %v6935_v19 = vld [vmem:[#allocation13 + $0x4e8] sm:$0xf] }
 0x4ff   : > { %6873 = vmatmul.msk.bf16.vlgmr.msrb.gmra.mxu1 %vm1333_vm2, %v8860_v49  ;;  %v6908_v7 = vor.u32 %v7824_v48, %v6905_v4  ;;  %v7838_v4 = vld [vmem:[#allocation13 + $0x520] sm:$0xf0] }
 0x500   : > { %4447 = vmatpush.bf16.msra.mxu3 %v7000_v60  ;;  %v7865_v60 = vld [vmem:[#allocation13 + $0x5f8] sm:$0xf0] }
 0x501   : > { %4458 = vmatpush.bf16.msrb.mxu0 %v7120_v53  ;;  %v7031_v53 = vld [vmem:[#allocation13 + $0x5a8] sm:$0xf] }
 0x502   : > { %4431 = vmatpush.bf16.msrb.mxu2 %v6940_v29  ;;  %v3880_v38 = vpop.f32.mrf.mxu0  ;;  %v7833_v29 = vld [vmem:[#allocation13 + $0x4fc] sm:$0xf] }
 0x503   : > { %v7108_v38 = vor.u32 %v7876_v5, %v7107_v37  ;;  %v6977_v5 = vld [vmem:[#allocation13 + $0x54c] sm:$0xf0] }
 0x504   : > { %v3852_v43 = vpop.f32.mrf.mxu2  ;;  %4448 = vmatpush.bf16.msra.mxu3 %v6988_v33 }
 0x505   : > { %v3853_v52 = vadd.f32 %v3852_v43, %v3377_v36  ;;  %v7157_v36 = vld [vmem:[#allocation13 + $0x6b4] sm:$0xf0]  ;;  %v7857_v43 = vld [vmem:[#allocation13 + $0x5bc] sm:$0xf]  ;;  %4459 = vmatpush.bf16.msrb.mxu0 %v7108_v38  ;;  %v7878_v38 = vld [vmem:[#allocation13 + $0x664] sm:$0xf] }
 0x506   : > { %4432 = vmatpush.bf16.msrb.mxu2 %v6928_v22  ;;  %v6956_v22 = vor.u32 %v7836_v24, %v6953_v21  ;;  %v7160_v46 = vor.u32 %v7887_v35, %v7157_v36  ;;  %v7040_v55 = vor.u32 %v7857_v43, %v7037_v44  ;;  %v7043_v24 = vld [vmem:[#allocation13 + $0x5c0] sm:$0xf]  ;;  %v7859_v21 = vld [vmem:[#allocation13 + $0x5c8] sm:$0xf0]  ;;  %v7870_v35 = vld [vmem:[#allocation13 + $0x620] sm:$0xf0] }
 0x507   : > { %v3866_v47 = vadd.f32 %v8856_v0, %v3853_v52  ;;  %v7884_v52 = vld [vmem:[#allocation13 + $0x694] sm:$0xf]  ;;  %v7842_v36 = vld [vmem:[#allocation13 + $0x544] sm:$0xf]  ;;  %v7084_v37 = vor.u32 %v7870_v35, %v7083_v30  ;;  %v7853_v43 = vld [vmem:[#allocation13 + $0x598] sm:$0xf0] }
 0x508   : > { %4449 = vmatpush.bf16.msra.mxu3 %v6976_v40  ;;  %v6980_v40 = vor.u32 %v7842_v36, %v6977_v5 }
 0x509   : > { %v3879_v3 = vadd.f32 %v3878_v26, %v3866_v47  ;;  %v6880_v26 = vor.u32 %v7819_v15, %v6879_v14  ;;  %v7148_v47 = vor.u32 %v7884_v52, %v7145_v54  ;;  %v7818_v14 = vld [vmem:[#allocation13 + $0x484] sm:$0xf]  ;;  %v6881_v15 = vld [vmem:[#allocation13 + $0x48c] sm:$0xf0]  ;;  %v7875_v54 = vld [vmem:[#allocation13 + $0x64c] sm:$0xf] }
 0x50a   : > { %4433 = vmatpush.bf16.msrb.mxu2 %v6916_v41  ;;  %v6944_v41 = vor.u32 %v7833_v29, %v6941_v20  ;;  %v6989_v20 = vld [vmem:[#allocation13 + $0x564] sm:$0xf0] }
 0x50b   : > { %v3884_v9 = vmax.f32 %v3879_v3, 0.0  ;;  %v7013_v3 = vld [vmem:[#allocation13 + $0x594] sm:$0xf0]  ;;  %v6992_v32 = vor.u32 %v7845_v28, %v6989_v20 }
 0x50c   : > { %v3854_v0 = vpop.f32.mrf.mxu2  ;;  %4494 = vmatpush.bf16.msrb.mxu3 %v7160_v46  ;;  %v7016_v6 = vor.u32 %v7851_v2, %v7013_v3  ;;  %v7071_v46 = vld [vmem:[#allocation13 + $0x600] sm:$0xf]  ;;  %v6959_v3 = vld [vmem:[#allocation13 + $0x518] sm:$0xf] }
 0x50d   : > { %v3887_v10 = vpack.c.bf16 %v3884_v9, %v3884_v9  ;;  %v7821_v9 = vld [vmem:[#allocation13 + $0x49c] sm:$0xf]  ;;  %v7097_v2 = vld [vmem:[#allocation13 + $0x63c] sm:$0xf0]  ;;  %v6960_v8 = vor.u32 %v7838_v4, %v6959_v3  ;;  %v6911_v28 = vld [vmem:[#allocation13 + $0x4b8] sm:$0xf] }
 0x50e   : > { %4434 = vmatpush.bf16.msrb.mxu2 %v6904_v58  ;;  %v7827_v58 = vld [vmem:[#allocation13 + $0x4cc] sm:$0xf]  ;;  %v7877_v3 = vld [vmem:[#allocation13 + $0x658] sm:$0xf0]  ;;  %v7215_v4 = vld [vmem:[#allocation15 + $0x4e0] sm:$0xf] }
 0x50f   : > { %v3895_v25 = vsel %vm1337_vm0, %v3887_v10, 0  ;;  %v6920_v1 = vor.u32 %v7827_v58, %v6917_v59  ;;  %v6884_v10 = vor.u32 %v7818_v14, %v6881_v15  ;;  %v7850_v58 = vld [vmem:[#allocation13 + $0x580] sm:$0xf0]  ;;  %v7835_v14 = vld [vmem:[#allocation13 + $0x508] sm:$0xf0] }
 0x510   : > { %3930 = vmatpush.bf16.msra.mxu1 %v3895_v25  ;;  %4495 = vmatpush.bf16.msrb.mxu3 %v7148_v47  ;;  %v7044_v25 = vor.u32 %v7859_v21, %v7043_v24  ;;  %v7007_v47 = vld [vmem:[#allocation13 + $0x578] sm:$0xf]  ;;  %v6983_v15 = vld [vmem:[#allocation13 + $0x548] sm:$0xf]  ;;  %v7832_v24 = vld [vmem:[#allocation13 + $0x4f0] sm:$0xf0] }
 0x511   : > { %v6936_v21 = vor.u32 %v7832_v24, %v6935_v19  ;;  %v7871_v19 = vld [vmem:[#allocation13 + $0x628] sm:$0xf0]  ;;  %v7933_v24 = vld [vmem:[#allocation15 + $0x5d8] sm:$0xf0] }
 0x512   : > { %4435 = vmatpush.bf16.msrb.mxu2 %v6892_v11  ;;  %v6893_v11 = vld [vmem:[#allocation13 + $0x4a4] sm:$0xf0] }
 0x513   : > { %6875 = vmatmul.msk.bf16.vlgmr.msra.gmra.mxu1 %vm1333_vm2, %v8860_v49  ;;  %v6932_v49 = vor.u32 %v7830_v42, %v6929_v50  ;;  %v6896_v0 = vor.u32 %v7821_v9, %v6893_v11  ;;  %v7019_v42 = vld [vmem:[#allocation13 + $0x590] sm:$0xf]  ;;  %v7867_v50 = vld [vmem:[#allocation13 + $0x608] sm:$0xf0]  ;;  %v7869_v9 = vld [vmem:[#allocation13 + $0x61c] sm:$0xf] }
 0x514   : > { %4468 = vmatpush.bf16.msrb.mxu1 %v6968_v17  ;;  %v7068_v17 = vor.u32 %v7865_v60, %v7067_v16  ;;  %v7020_v44 = vor.u32 %v7853_v43, %v7019_v42  ;;  %v7072_v52 = vor.u32 %v7867_v50, %v7071_v46  ;;  %v7085_v11 = vld [vmem:[#allocation13 + $0x624] sm:$0xf0]  ;;  %v7844_v16 = vld [vmem:[#allocation13 + $0x550] sm:$0xf0] }
 0x515   : > { %v7251_v50 = vld [vmem:[#allocation15 + $0x528] sm:$0xf] }
 0x516   : > { %4436 = vmatpush.bf16.msrb.mxu2 %v6880_v26  ;;  %v7095_v26 = vld [vmem:[#allocation13 + $0x630] sm:$0xf] }
 0x517   : > { %v7096_v29 = vor.u32 %v7873_v27, %v7095_v26  ;;  %v7829_v26 = vld [vmem:[#allocation13 + $0x4d8] sm:$0xf0] }
 0x518   : > { %4469 = vmatpush.bf16.msrb.mxu1 %v6956_v22  ;;  %v7856_v22 = vld [vmem:[#allocation13 + $0x5b0] sm:$0xf0] }
 0x519   : > { %4460 = vmatpush.bf16.msrb.mxu0 %v7096_v29  ;;  %v7032_v34 = vor.u32 %v7856_v22, %v7031_v53  ;;  %v7826_v29 = vld [vmem:[#allocation13 + $0x4c0] sm:$0xf0] }
 0x51a   : > { %4481 = vmatpush.bf16.msra.mxu2 %v7064_v31  ;;  %v7881_v31 = vld [vmem:[#allocation13 + $0x67c] sm:$0xf]  ;;  %v6912_v20 = vor.u32 %v7826_v29, %v6911_v28  ;;  %v7868_v29 = vld [vmem:[#allocation13 + $0x610] sm:$0xf0] }
 0x51b   : > { %v7136_v33 = vor.u32 %v7881_v31, %v7133_v51  ;;  %v6899_v31 = vld [vmem:[#allocation13 + $0x4a0] sm:$0xf]  ;;  %v7823_v51 = vld [vmem:[#allocation13 + $0x4a8] sm:$0xf0] }
 0x51c   : > { %4470 = vmatpush.bf16.msrb.mxu1 %v6944_v41 }
 0x51d   : > { %4496 = vmatpush.bf16.msrb.mxu3 %v7136_v33  ;;  %4461 = vmatpush.bf16.msrb.mxu0 %v7084_v37  ;;  %v7889_v33 = vld [vmem:[#allocation13 + $0x6b8] sm:$0xf0] }
 0x51e   : > { %4482 = vmatpush.bf16.msra.mxu2 %v7052_v12  ;;  %v7121_v12 = vld [vmem:[#allocation13 + $0x66c] sm:$0xf0] }
 0x51f   : > { %v7124_v41 = vor.u32 %v7878_v38, %v7121_v12  ;;  %v7151_v38 = vld [vmem:[#allocation13 + $0x698] sm:$0xf]  ;;  %v7886_v12 = vld [vmem:[#allocation13 + $0x6a0] sm:$0xf0] }
 0x520   : > { %4471 = vmatpush.bf16.msrb.mxu1 %v6932_v49  ;;  %v6971_v49 = vld [vmem:[#allocation13 + $0x530] sm:$0xf]  ;;  %v7152_v43 = vor.u32 %v7886_v12, %v7151_v38  ;;  %v7241_v38 = vld [vmem:[#allocation15 + $0x51c] sm:$0xf0] }
 0x521   : > { %4497 = vmatpush.bf16.msrb.mxu3 %v7124_v41  ;;  %v6972_v59 = vor.u32 %v7841_v57, %v6971_v49  ;;  %4462 = vmatpush.bf16.msrb.mxu0 %v7072_v52  ;;  %v7820_v41 = vld [vmem:[#allocation13 + $0x490] sm:$0xf0]  ;;  %v7127_v57 = vld [vmem:[#allocation13 + $0x668] sm:$0xf] }
 0x522   : > { %4483 = vmatpush.bf16.msra.mxu2 %v7040_v55  ;;  %v7109_v55 = vld [vmem:[#allocation13 + $0x654] sm:$0xf0]  ;;  %v7912_v52 = vld [vmem:[#allocation15 + $0x530] sm:$0xf0] }
 0x523   : > { %v7112_v56 = vor.u32 %v7875_v54, %v7109_v55  ;;  %v7239_v54 = vld [vmem:[#allocation15 + $0x510] sm:$0xf]  ;;  %v7252_v49 = vor.u32 %v7912_v52, %v7251_v50 }
 0x524   : > { %4472 = vmatpush.bf16.msrb.mxu1 %v6920_v1  ;;  %v7872_v1 = vld [vmem:[#allocation13 + $0x634] sm:$0xf] }
 0x525   : > { %4498 = vmatpush.bf16.msrb.mxu3 %v7112_v56  ;;  %4507 = vmatpush.bf16.msra.mxu0 %v6972_v59  ;;  %v7100_v48 = vor.u32 %v7872_v1, %v7097_v2  ;;  %v7909_v56 = vld [vmem:[#allocation15 + $0x518] sm:$0xf0]  ;;  %v7227_v59 = vld [vmem:[#allocation15 + $0x4f8] sm:$0xf]  ;;  %v7115_v2 = vld [vmem:[#allocation13 + $0x650] sm:$0xf] }
 0x526   : > { %4484 = vmatpush.bf16.msra.mxu2 %v7028_v62  ;;  %v7008_v62 = vor.u32 %v7850_v58, %v7007_v47  ;;  %v7880_v47 = vld [vmem:[#allocation13 + $0x670] sm:$0xf0]  ;;  %v7240_v58 = vor.u32 %v7909_v56, %v7239_v54  ;;  %v7902_v54 = vld [vmem:[#allocation15 + $0x4e4] sm:$0xf]  ;;  %v7899_v56 = vld [vmem:[#allocation15 + $0x4cc] sm:$0xf] }
 0x527   : > { %v7128_v1 = vor.u32 %v7880_v47, %v7127_v57  ;;  %v7205_v57 = vld [vmem:[#allocation15 + $0x4d4] sm:$0xf0] }
 0x528   : > { %4473 = vmatpush.bf16.msrb.mxu1 %v6908_v7  ;;  %v7847_v7 = vld [vmem:[#allocation13 + $0x568] sm:$0xf0]  ;;  %v7208_v47 = vor.u32 %v7899_v56, %v7205_v57  ;;  %v7289_v56 = vld [vmem:[#allocation15 + $0x57c] sm:$0xf0] }
 0x529   : > { %4499 = vmatpush.bf16.msrb.mxu3 %v7100_v48  ;;  %4508 = vmatpush.bf16.msra.mxu0 %v6960_v8  ;;  %v7103_v8 = vld [vmem:[#allocation13 + $0x638] sm:$0xf]  ;;  %v7331_v57 = vld [vmem:[#allocation15 + $0x5c0] sm:$0xf] }
 0x52a   : > { %4485 = vmatpush.bf16.msra.mxu2 %v7016_v6  ;;  %v6995_v6 = vld [vmem:[#allocation13 + $0x560] sm:$0xf] }
 0x52b   : > { %v6996_v63 = vor.u32 %v7847_v7, %v6995_v6  ;;  %v7903_v6 = vld [vmem:[#allocation15 + $0x4e8] sm:$0xf0]  ;;  %v7116_v7 = vor.u32 %v7877_v3, %v7115_v2  ;;  %v7960_v2 = vld [vmem:[#allocation15 + $0x6b0] sm:$0xf0] }
 0x52c   : > { %4474 = vmatpush.bf16.msrb.mxu1 %v6896_v0  ;;  %v7088_v0 = vor.u32 %v7869_v9, %v7085_v11  ;;  %v7347_v9 = vld [vmem:[#allocation15 + $0x5e8] sm:$0xf]  ;;  %v7936_v11 = vld [vmem:[#allocation15 + $0x5f0] sm:$0xf0] }
 0x52d   : > { %v7896_v3 = vld [vmem:[#allocation15 + $0x4b4] sm:$0xf] }
 0x52e   : > { %4486 = vmatpush.bf16.msra.mxu2 %v7004_v13  ;;  %v6947_v13 = vld [vmem:[#allocation13 + $0x500] sm:$0xf]  ;;  %4500 = vmatpush.bf16.msrb.mxu3 %v7088_v0  ;;  %v7216_v0 = vor.u32 %v7903_v6, %v7215_v4  ;;  %v7932_v6 = vld [vmem:[#allocation15 + $0x5d4] sm:$0xf] }
 0x52f   : > { %v6948_v60 = vor.u32 %v7835_v14, %v6947_v13  ;;  %v7193_v4 = vld [vmem:[#allocation15 + $0x4bc] sm:$0xf0] }
 0x530   : > { %4475 = vmatpush.bf16.msrb.mxu1 %v6884_v10  ;;  %v6984_v10 = vor.u32 %v7844_v16, %v6983_v15  ;;  %v7203_v15 = vld [vmem:[#allocation15 + $0x4c8] sm:$0xf]  ;;  %v7900_v16 = vld [vmem:[#allocation15 + $0x4d0] sm:$0xf0] }
 0x531   : > { %4509 = vmatpush.bf16.msra.mxu0 %v6948_v60 }
 0x532   : > { %4487 = vmatpush.bf16.msra.mxu2 %v6992_v32  ;;  %v7163_v32 = vld [vmem:[#allocation13 + $0x6b0] sm:$0xf] }
 0x533   : > { %v7164_v36 = vor.u32 %v7889_v33, %v7163_v32  ;;  %v7911_v32 = vld [vmem:[#allocation15 + $0x52c] sm:$0xf]  ;;  %v7253_v33 = vld [vmem:[#allocation15 + $0x534] sm:$0xf0] }
 0x534   : > { %4520 = vmatpush.bf16.msra.mxu1 %v7068_v17  ;;  %v7866_v17 = vld [vmem:[#allocation13 + $0x604] sm:$0xf] }
 0x535   : > { %4510 = vmatpush.bf16.msra.mxu0 %v6936_v21  ;;  %v7204_v21 = vor.u32 %v7900_v16, %v7203_v15  ;;  %v7181_v16 = vld [vmem:[#allocation15 + $0x4a4] sm:$0xf0] }
 0x536   : > { %4488 = vmatpush.bf16.msra.mxu2 %v6980_v40  ;;  %v6887_v40 = vld [vmem:[#allocation13 + $0x488] sm:$0xf] }
 0x537   : > { %v6888_v42 = vor.u32 %v7820_v41, %v6887_v40  ;;  %v7167_v40 = vld [vmem:[#allocation15 + $0x480] sm:$0xf]  ;;  %v7891_v41 = vld [vmem:[#allocation15 + $0x488] sm:$0xf0] }
 0x538   : > { %4521 = vmatpush.bf16.msra.mxu1 %v7056_v23  ;;  %v7076_v23 = vor.u32 %v7866_v17, %v7073_v18  ;;  %v7348_v17 = vor.u32 %v7936_v11, %v7347_v9  ;;  %v7924_v9 = vld [vmem:[#allocation15 + $0x590] sm:$0xf0] }
 0x53a   : > { %4501 = vmatpush.bf16.msrb.mxu3 %v7076_v23  ;;  %v7335_v23 = vld [vmem:[#allocation15 + $0x5d0] sm:$0xf] }
 0x53b   : > { %v7336_v28 = vor.u32 %v7933_v24, %v7335_v23  ;;  %v7921_v23 = vld [vmem:[#allocation15 + $0x578] sm:$0xf0] }
 0x53c   : > { %4522 = vmatpush.bf16.msra.mxu1 %v7044_v25  ;;  %v6923_v25 = vld [vmem:[#allocation13 + $0x4d0] sm:$0xf] }
 0x53d   : > { %v6924_v27 = vor.u32 %v7829_v26, %v6923_v25  ;;  %v7191_v25 = vld [vmem:[#allocation15 + $0x4b0] sm:$0xf]  ;;  %v7897_v26 = vld [vmem:[#allocation15 + $0x4b8] sm:$0xf0] }
 0x53f   : > { %4511 = vmatpush.bf16.msra.mxu0 %v6924_v27  ;;  %v7079_v27 = vld [vmem:[#allocation13 + $0x608] sm:$0xf] }
 0x540   : > { %4523 = vmatpush.bf16.msra.mxu1 %v7032_v34  ;;  %v6900_v34 = vor.u32 %v7823_v51, %v6899_v31  ;;  %v7930_v31 = vld [vmem:[#allocation15 + $0x5c0] sm:$0xf0] }
 0x543   : > { %4512 = vmatpush.bf16.msra.mxu0 %v6912_v20  ;;  %v7323_v20 = vld [vmem:[#allocation15 + $0x5b8] sm:$0xf] }
 0x544   : > { %4524 = vmatpush.bf16.msra.mxu1 %v7020_v44  ;;  %v7883_v44 = vld [vmem:[#allocation13 + $0x688] sm:$0xf0] }
 0x547   : > { %4513 = vmatpush.bf16.msra.mxu0 %v6900_v34  ;;  %v7894_v34 = vld [vmem:[#allocation15 + $0x4a0] sm:$0xf0] }
 0x548   : > { %4525 = vmatpush.bf16.msra.mxu1 %v7008_v62  ;;  %v7906_v62 = vld [vmem:[#allocation15 + $0x500] sm:$0xf0] }
 0x549   : > { %v7228_v48 = vor.u32 %v7906_v62, %v7227_v59  ;;  %v7927_v59 = vld [vmem:[#allocation15 + $0x5a8] sm:$0xf0] }
 0x54b   : > { %4514 = vmatpush.bf16.msra.mxu0 %v6888_v42  ;;  %v7935_v42 = vld [vmem:[#allocation15 + $0x5ec] sm:$0xf] }
 0x54c   : > { %4526 = vmatpush.bf16.msra.mxu1 %v6996_v63  ;;  %v7874_v63 = vld [vmem:[#allocation13 + $0x640] sm:$0xf0] }
 0x54d   : > { %v7104_v60 = vor.u32 %v7874_v63, %v7103_v8  ;;  %v7299_v63 = vld [vmem:[#allocation15 + $0x588] sm:$0xf] }
 0x54e   : > { %v7300_v11 = vor.u32 %v7924_v9, %v7299_v63 }
 0x550   : > { %4527 = vmatpush.bf16.msra.mxu1 %v6984_v10  ;;  %v7091_v10 = vld [vmem:[#allocation13 + $0x620] sm:$0xf] }
 0x57c   : > { %v3906_v53 = vpop.f32.mrf.mxu1  ;;  %v3919_v22 = vpop.f32.mrf.mxu2 }
 0x57d   : > { %v3907_v30 = vadd.f32 %v3906_v53, %v8782_v45  ;;  %v3920_v35 = vadd.f32 %v3919_v22, %v8784_v61  ;;  %v7139_v45 = vld [vmem:[#allocation13 + $0x680] sm:$0xf]  ;;  %v7192_v53 = vor.u32 %v7897_v26, %v7191_v25  ;;  %v7179_v22 = vld [vmem:[#allocation15 + $0x498] sm:$0xf]  ;;  %v7954_v25 = vld [vmem:[#allocation15 + $0x680] sm:$0xf0] }
 0x57e   : > { %v7140_v55 = vor.u32 %v7883_v44, %v7139_v45  ;;  %v7180_v12 = vor.u32 %v7894_v34, %v7179_v22  ;;  %v7905_v44 = vld [vmem:[#allocation15 + $0x4fc] sm:$0xf]  ;;  %v7890_v26 = vld [vmem:[#allocation15 + $0x484] sm:$0xf] }
 0x57f   : > { %v8874_v37 = vpack.c.bf16 %v3907_v30, %v3907_v30  ;;  %v3937_v5 = vpack.c.bf16 %v3920_v35, %v3920_v35  ;;  %v7080_v30 = vor.u32 %v7868_v29, %v7079_v27  ;;  %v7324_v35 = vor.u32 %v7930_v31, %v7323_v20  ;;  %v7169_v27 = vld [vmem:[#allocation15 + $0x48c] sm:$0xf0]  ;;  %v7918_v22 = vld [vmem:[#allocation15 + $0x560] sm:$0xf0] }
 0x580   : > { %v7313_v29 = vld [vmem:[#allocation15 + $0x5ac] sm:$0xf0]  ;;  %v7172_v20 = vor.u32 %v7890_v26, %v7169_v27  ;;  %v7359_v26 = vld [vmem:[#allocation15 + $0x600] sm:$0xf] }
 0x581   : > { %4437 = vmatmul.bf16.vlgmr.msrb.gmra.mxu2 %v8874_v37  ;;  %4450 = vmatmul.bf16.vlgmr.msra.gmra.mxu3 %v3937_v5 }
 0x582   : > { %4476 = vmatmul.bf16.vlgmr.msrb.gmra.mxu1 %v8874_v37  ;;  %4533 = vmatpush.bf16.msrb.mxu2 %v7164_v36  ;;  %v7256_v36 = vor.u32 %v7911_v32, %v7253_v33  ;;  %v7937_v32 = vld [vmem:[#allocation15 + $0x5f8] sm:$0xf0]  ;;  %v7275_v33 = vld [vmem:[#allocation15 + $0x558] sm:$0xf] }
 0x583   : > { %5042 = vmatpush.bf16.msra.mxu3 %v7252_v49  ;;  %v7276_v34 = vor.u32 %v7918_v22, %v7275_v33  ;;  %v7947_v33 = vld [vmem:[#allocation15 + $0x64c] sm:$0xf] }
 0x584   : > { %v3908_v61 = vpop.f32.mrf.mxu1  ;;  %v3921_v46 = vpop.f32.mrf.mxu2 }
 0x585   : > { %v7229_v61 = vld [vmem:[#allocation15 + $0x504] sm:$0xf0]  ;;  %v7168_v46 = vor.u32 %v7891_v41, %v7167_v40  ;;  %v7934_v40 = vld [vmem:[#allocation15 + $0x5e0] sm:$0xf0] }
 0x586   : > { %4534 = vmatpush.bf16.msrb.mxu2 %v7152_v43  ;;  %v7349_v43 = vld [vmem:[#allocation15 + $0x5f4] sm:$0xf0]  ;;  %v7232_v52 = vor.u32 %v7905_v44, %v7229_v61  ;;  %v7959_v61 = vld [vmem:[#allocation15 + $0x6ac] sm:$0xf] }
 0x587   : > { %5043 = vmatpush.bf16.msra.mxu3 %v7240_v58  ;;  %v7352_v50 = vor.u32 %v7935_v42, %v7349_v43  ;;  %v7311_v58 = vld [vmem:[#allocation15 + $0x5a0] sm:$0xf] }
 0x588   : > { %v7312_v62 = vor.u32 %v7927_v59, %v7311_v58  ;;  %v7263_v43 = vld [vmem:[#allocation15 + $0x540] sm:$0xf] }
 0x58a   : > { %4535 = vmatpush.bf16.msrb.mxu2 %v7140_v55  ;;  %v7217_v55 = vld [vmem:[#allocation15 + $0x4ec] sm:$0xf0] }
 0x58b   : > { %5044 = vmatpush.bf16.msra.mxu3 %v7228_v48  ;;  %v7220_v49 = vor.u32 %v7902_v54, %v7217_v55  ;;  %v7948_v54 = vld [vmem:[#allocation15 + $0x650] sm:$0xf0] }
 0x58c   : > { %v7920_v55 = vld [vmem:[#allocation15 + $0x574] sm:$0xf] }
 0x58d   : > { %v7292_v58 = vor.u32 %v7920_v55, %v7289_v56  ;;  %v7941_v55 = vld [vmem:[#allocation15 + $0x61c] sm:$0xf] }
 0x58e   : > { %4536 = vmatpush.bf16.msrb.mxu2 %v7128_v1  ;;  %v7443_v1 = vld [vmem:[#allocation15 + $0x6a8] sm:$0xf] }
 0x58f   : > { %5045 = vmatpush.bf16.msra.mxu3 %v7216_v0  ;;  %v7444_v48 = vor.u32 %v7960_v2, %v7443_v1  ;;  %v7957_v0 = vld [vmem:[#allocation15 + $0x698] sm:$0xf0]  ;;  %v7433_v1 = vld [vmem:[#allocation15 + $0x69c] sm:$0xf0] }
 0x590   : > { %v3932_v13 = vpop.f32.mrf.mxu1 }
 0x591   : > { %v3933_v14 = vadd.f32 %v3932_v13, %v8792_v39  ;;  %4489 = vmatmul.bf16.vlgmr.msra.gmra.mxu2 %v3937_v5  ;;  %v7092_v39 = vor.u32 %v7871_v19, %v7091_v10  ;;  %5068 = vmatpush.bf16.msrb.mxu1 %v7444_v48  ;;  %v7431_v13 = vld [vmem:[#allocation15 + $0x690] sm:$0xf]  ;;  %v7325_v10 = vld [vmem:[#allocation15 + $0x5c4] sm:$0xf0]  ;;  %v7945_v48 = vld [vmem:[#allocation15 + $0x638] sm:$0xf0] }
 0x592   : > { %4528 = vmatmul.bf16.vlgmr.msra.gmra.mxu1 %v3937_v5  ;;  %4537 = vmatpush.bf16.msrb.mxu2 %v7116_v7  ;;  %v7908_v5 = vld [vmem:[#allocation15 + $0x514] sm:$0xf]  ;;  %v7337_v7 = vld [vmem:[#allocation15 + $0x5dc] sm:$0xf0]  ;;  %v7432_v15 = vor.u32 %v7957_v0, %v7431_v13  ;;  %v7287_v19 = vld [vmem:[#allocation15 + $0x570] sm:$0xf] }
 0x593   : > { %v3938_v18 = vpack.c.bf16 %v3933_v14, %v3933_v14  ;;  %5046 = vmatpush.bf16.msra.mxu3 %v7204_v21  ;;  %v7244_v45 = vor.u32 %v7908_v5, %v7241_v38  ;;  %v7340_v8 = vor.u32 %v7932_v6, %v7337_v7  ;;  %v7893_v14 = vld [vmem:[#allocation15 + $0x49c] sm:$0xf]  ;;  %v7288_v24 = vor.u32 %v7921_v23, %v7287_v19  ;;  %v7419_v21 = vld [vmem:[#allocation15 + $0x678] sm:$0xf]  ;;  %v7277_v7 = vld [vmem:[#allocation15 + $0x564] sm:$0xf0] }
 0x594   : > { %v7301_v38 = vld [vmem:[#allocation15 + $0x594] sm:$0xf0]  ;;  %v7421_v13 = vld [vmem:[#allocation15 + $0x684] sm:$0xf0] }
 0x595   : > { %4463 = vmatmul.bf16.vlgmr.msrb.gmra.mxu0 %v3938_v18  ;;  %4502 = vmatmul.bf16.vlgmr.msrb.gmra.mxu3 %v3938_v18 }
 0x596   : > { %4538 = vmatpush.bf16.msrb.mxu2 %v7104_v60  ;;  %5055 = vmatpush.bf16.msrb.mxu0 %v7348_v17  ;;  %v7929_v60 = vld [vmem:[#allocation15 + $0x5bc] sm:$0xf]  ;;  %v7184_v17 = vor.u32 %v7893_v14, %v7181_v16  ;;  %v7371_v14 = vld [vmem:[#allocation15 + $0x618] sm:$0xf]  ;;  %v7914_v16 = vld [vmem:[#allocation15 + $0x544] sm:$0xf] }
 0x597   : > { %5047 = vmatpush.bf16.msra.mxu3 %v7192_v53  ;;  %5069 = vmatpush.bf16.msrb.mxu1 %v7432_v15  ;;  %v7942_v15 = vld [vmem:[#allocation15 + $0x620] sm:$0xf0] }
 0x598   : > { %v3934_v51 = vpop.f32.mrf.mxu1 }
 0x599   : > { %v7355_v51 = vld [vmem:[#allocation15 + $0x5f0] sm:$0xf] }
 0x59a   : > { %4539 = vmatpush.bf16.msrb.mxu2 %v7092_v39  ;;  %5056 = vmatpush.bf16.msrb.mxu0 %v7336_v28  ;;  %v7420_v39 = vor.u32 %v7954_v25, %v7419_v21  ;;  %v7926_v28 = vld [vmem:[#allocation15 + $0x5a4] sm:$0xf]  ;;  %v7356_v53 = vor.u32 %v7937_v32, %v7355_v51  ;;  %v7409_v21 = vld [vmem:[#allocation15 + $0x66c] sm:$0xf0] }
 0x59b   : > { %5048 = vmatpush.bf16.msra.mxu3 %v7180_v12  ;;  %v7316_v31 = vor.u32 %v7926_v28, %v7313_v29  ;;  %v7343_v12 = vld [vmem:[#allocation15 + $0x5d8] sm:$0xf]  ;;  %v7259_v28 = vld [vmem:[#allocation15 + $0x530] sm:$0xf]  ;;  %v7913_v29 = vld [vmem:[#allocation15 + $0x538] sm:$0xf0] }
 0x59c   : > { %5070 = vmatpush.bf16.msrb.mxu1 %v7420_v39  ;;  %v7344_v42 = vor.u32 %v7934_v40, %v7343_v12  ;;  %v7939_v39 = vld [vmem:[#allocation15 + $0x608] sm:$0xf0]  ;;  %v7922_v51 = vld [vmem:[#allocation15 + $0x580] sm:$0xf0]  ;;  %v7944_v40 = vld [vmem:[#allocation15 + $0x634] sm:$0xf] }
 0x59d   : > { %v7360_v27 = vor.u32 %v7939_v39, %v7359_v26 }
 0x59e   : > { %4540 = vmatpush.bf16.msrb.mxu2 %v7080_v30  ;;  %5057 = vmatpush.bf16.msrb.mxu0 %v7324_v35  ;;  %v7407_v30 = vld [vmem:[#allocation15 + $0x660] sm:$0xf]  ;;  %v7951_v35 = vld [vmem:[#allocation15 + $0x668] sm:$0xf0] }
 0x59f   : > { %5049 = vmatpush.bf16.msra.mxu3 %v7168_v46  ;;  %v7408_v5 = vor.u32 %v7951_v35, %v7407_v30  ;;  %v7445_v46 = vld [vmem:[#allocation15 + $0x6b4] sm:$0xf0]  ;;  %v7910_v35 = vld [vmem:[#allocation15 + $0x520] sm:$0xf0] }
 0x5a0   : > { %v7247_v30 = vld [vmem:[#allocation15 + $0x518] sm:$0xf] }
 0x5a1   : > { %4541 = vmatmul.bf16.vlgmr.msrb.gmra.mxu2 %v3938_v18  ;;  %v7328_v18 = vor.u32 %v7929_v60, %v7325_v10  ;;  %5071 = vmatpush.bf16.msrb.mxu1 %v7408_v5  ;;  %v7372_v60 = vor.u32 %v7942_v15, %v7371_v14  ;;  %v7265_v10 = vld [vmem:[#allocation15 + $0x54c] sm:$0xf0]  ;;  %v7283_v5 = vld [vmem:[#allocation15 + $0x560] sm:$0xf] }
 0x5a2   : > { %5081 = vmatpush.bf16.msra.mxu2 %v7256_v36  ;;  %5058 = vmatpush.bf16.msrb.mxu0 %v7312_v62  ;;  %v7923_v36 = vld [vmem:[#allocation15 + $0x58c] sm:$0xf]  ;;  %v7956_v62 = vld [vmem:[#allocation15 + $0x694] sm:$0xf]  ;;  %v7268_v19 = vor.u32 %v7914_v16, %v7265_v10 }
 0x5a3   : > { %5094 = vmatpush.bf16.msrb.mxu3 %v7352_v50  ;;  %v7304_v41 = vor.u32 %v7923_v36, %v7301_v38  ;;  %v7448_v50 = vor.u32 %v7959_v61, %v7445_v46  ;;  %v7436_v2 = vor.u32 %v7956_v62, %v7433_v1  ;;  %v7248_v36 = vor.u32 %v7910_v35, %v7247_v30  ;;  %v7919_v38 = vld [vmem:[#allocation15 + $0x568] sm:$0xf0]  ;;  %v7271_v46 = vld [vmem:[#allocation15 + $0x548] sm:$0xf] }
 0x5a4   : > { %v7284_v12 = vor.u32 %v7919_v38, %v7283_v5  ;;  %v7907_v61 = vld [vmem:[#allocation15 + $0x508] sm:$0xf0] }
 0x5a5   : > { %4515 = vmatmul.bf16.vlgmr.msra.gmra.mxu0 %v8874_v37  ;;  %v7196_v37 = vor.u32 %v7896_v3, %v7193_v4  ;;  %v7383_v3 = vld [vmem:[#allocation15 + $0x630] sm:$0xf]  ;;  %v7917_v4 = vld [vmem:[#allocation15 + $0x55c] sm:$0xf]  ;;  %v7895_v10 = vld [vmem:[#allocation15 + $0x4a8] sm:$0xf0] }
 0x5a6   : > { %5082 = vmatpush.bf16.msra.mxu2 %v7244_v45  ;;  %5059 = vmatpush.bf16.msrb.mxu0 %v7300_v11  ;;  %v7915_v45 = vld [vmem:[#allocation15 + $0x548] sm:$0xf0]  ;;  %v7384_v6 = vor.u32 %v7945_v48, %v7383_v3  ;;  %v7280_v63 = vor.u32 %v7917_v4, %v7277_v7  ;;  %v7953_v11 = vld [vmem:[#allocation15 + $0x67c] sm:$0xf]  ;;  %v7361_v3 = vld [vmem:[#allocation15 + $0x60c] sm:$0xf0] }
 0x5a7   : > { %5095 = vmatpush.bf16.msrb.mxu3 %v7340_v8  ;;  %v7264_v44 = vor.u32 %v7915_v45, %v7263_v43  ;;  %v7928_v8 = vld [vmem:[#allocation15 + $0x5b0] sm:$0xf0]  ;;  %v7424_v0 = vor.u32 %v7953_v11, %v7421_v13  ;;  %v7211_v7 = vld [vmem:[#allocation15 + $0x4d0] sm:$0xf]  ;;  %v7199_v11 = vld [vmem:[#allocation15 + $0x4b8] sm:$0xf] }
 0x5a8   : > { %v7898_v13 = vld [vmem:[#allocation15 + $0x4c0] sm:$0xf0] }
 0x5aa   : > { %5083 = vmatpush.bf16.msra.mxu2 %v7232_v52  ;;  %5060 = vmatpush.bf16.msrb.mxu0 %v7288_v24  ;;  %v7395_v52 = vld [vmem:[#allocation15 + $0x648] sm:$0xf]  ;;  %v7950_v24 = vld [vmem:[#allocation15 + $0x664] sm:$0xf] }
 0x5ab   : > { %5096 = vmatpush.bf16.msrb.mxu3 %v7328_v18  ;;  %v7925_v18 = vld [vmem:[#allocation15 + $0x598] sm:$0xf0]  ;;  %v7412_v25 = vor.u32 %v7950_v24, %v7409_v21 }
 0x5ae   : > { %5084 = vmatpush.bf16.msra.mxu2 %v7220_v49  ;;  %5061 = vmatpush.bf16.msrb.mxu0 %v7276_v34  ;;  %v7396_v49 = vor.u32 %v7948_v54, %v7395_v52  ;;  %v7916_v52 = vld [vmem:[#allocation15 + $0x550] sm:$0xf0] }
 0x5af   : > { %5097 = vmatpush.bf16.msrb.mxu3 %v7316_v31  ;;  %v7260_v31 = vor.u32 %v7913_v29, %v7259_v28  ;;  %v7272_v54 = vor.u32 %v7916_v52, %v7271_v46  ;;  %v7439_v29 = vld [vmem:[#allocation15 + $0x698] sm:$0xf]  ;;  %v7403_v46 = vld [vmem:[#allocation15 + $0x650] sm:$0xf] }
 0x5b0   : > { %5072 = vmatpush.bf16.msrb.mxu1 %v7396_v49  ;;  %v7373_v49 = vld [vmem:[#allocation15 + $0x624] sm:$0xf0] }
 0x5b2   : > { %5085 = vmatpush.bf16.msra.mxu2 %v7208_v47  ;;  %v7931_v47 = vld [vmem:[#allocation15 + $0x5c8] sm:$0xf0]  ;;  %5062 = vmatpush.bf16.msrb.mxu0 %v7264_v44  ;;  %v7235_v44 = vld [vmem:[#allocation15 + $0x500] sm:$0xf] }
 0x5b3   : > { %5098 = vmatpush.bf16.msrb.mxu3 %v7304_v41  ;;  %v7332_v59 = vor.u32 %v7931_v47, %v7331_v57  ;;  %v7385_v41 = vld [vmem:[#allocation15 + $0x63c] sm:$0xf0]  ;;  %v7376_v57 = vor.u32 %v7941_v55, %v7373_v49  ;;  %v8885_v47 = vld [vmem:[%s8918_s9 + $0x6] sm:$0x7] }
 0x5b4   : > { %5073 = vmatpush.bf16.msrb.mxu1 %v7384_v6  ;;  %v4039_v62 = vperm.slane %v8885_v47, 0  ;;  %v4040_v14 = vperm.slane %v8885_v47, 1 }
 0x5b6   : > { %5086 = vmatpush.bf16.msra.mxu2 %v7196_v37  ;;  %5107 = vmatpush.bf16.msra.mxu0 %v7448_v50  ;;  %v7319_v37 = vld [vmem:[#allocation15 + $0x5a8] sm:$0xf]  ;;  %v7236_v50 = vor.u32 %v7907_v61, %v7235_v44 }
 0x5b7   : > { %5099 = vmatpush.bf16.msrb.mxu3 %v7292_v58  ;;  %v7320_v9 = vor.u32 %v7928_v8, %v7319_v37  ;;  %v7223_v58 = vld [vmem:[#allocation15 + $0x4e8] sm:$0xf]  ;;  %v7901_v37 = vld [vmem:[#allocation15 + $0x4d8] sm:$0xf0] }
 0x5b8   : > { %5074 = vmatpush.bf16.msrb.mxu1 %v7372_v60  ;;  %v7187_v60 = vld [vmem:[#allocation15 + $0x4a0] sm:$0xf] }
 0x5ba   : > { %5087 = vmatpush.bf16.msra.mxu2 %v7184_v17  ;;  %5108 = vmatpush.bf16.msra.mxu0 %v7436_v2  ;;  %v7307_v17 = vld [vmem:[#allocation15 + $0x590] sm:$0xf]  ;;  %v7938_v2 = vld [vmem:[#allocation15 + $0x604] sm:$0xf] }
 0x5bb   : > { %5100 = vmatpush.bf16.msrb.mxu3 %v7280_v63  ;;  %v7308_v23 = vor.u32 %v7925_v18, %v7307_v17  ;;  %v7364_v48 = vor.u32 %v7938_v2, %v7361_v3  ;;  %v7212_v63 = vor.u32 %v7901_v37, %v7211_v7  ;;  %v7451_v18 = vld [vmem:[#allocation15 + $0x6b0] sm:$0xf]  ;;  %v7943_v2 = vld [vmem:[#allocation15 + $0x628] sm:$0xf0] }
 0x5bc   : > { %5075 = vmatpush.bf16.msrb.mxu1 %v7360_v27 }
 0x5be   : > { %5088 = vmatpush.bf16.msra.mxu2 %v7172_v20  ;;  %5109 = vmatpush.bf16.msra.mxu0 %v7424_v0  ;;  %v7295_v20 = vld [vmem:[#allocation15 + $0x578] sm:$0xf]  ;;  %v7200_v0 = vor.u32 %v7898_v13, %v7199_v11 }
 0x5bf   : > { %5101 = vmatpush.bf16.msrb.mxu3 %v7268_v19  ;;  %v7296_v32 = vor.u32 %v7922_v51, %v7295_v20  ;;  %v7961_v19 = vld [vmem:[#allocation15 + $0x6b8] sm:$0xf0]  ;;  %v7958_v20 = vld [vmem:[#allocation15 + $0x6a0] sm:$0xf0]  ;;  %v7175_v51 = vld [vmem:[#allocation15 + $0x488] sm:$0xf] }
 0x5c0   : > { %5120 = vmatpush.bf16.msra.mxu1 %v7260_v31  ;;  %v7452_v26 = vor.u32 %v7961_v19, %v7451_v18  ;;  %v7440_v30 = vor.u32 %v7958_v20, %v7439_v29 }
 0x5c2   : > { %5133 = vmatpush.bf16.msrb.mxu2 %v7356_v53  ;;  %5110 = vmatpush.bf16.msra.mxu0 %v7412_v25  ;;  %v7397_v53 = vld [vmem:[#allocation15 + $0x654] sm:$0xf0] }
 0x5c3   : > { %v7400_v34 = vor.u32 %v7947_v33, %v7397_v53 }
 0x5c4   : > { %5121 = vmatpush.bf16.msra.mxu1 %v7248_v36  ;;  %v7955_v36 = vld [vmem:[#allocation15 + $0x688] sm:$0xf0] }
 0x5c6   : > { %5134 = vmatpush.bf16.msrb.mxu2 %v7344_v42  ;;  %5111 = vmatpush.bf16.msra.mxu0 %v7400_v34  ;;  %v7388_v42 = vor.u32 %v7944_v40, %v7385_v41  ;;  %v4041_v40 = vperm.slane %v8885_v47, 2  ;;  %v7415_v41 = vld [vmem:[#allocation15 + $0x668] sm:$0xf] }
 0x5c8   : > { %5122 = vmatpush.bf16.msra.mxu1 %v7236_v50  ;;  %v7949_v50 = vld [vmem:[#allocation15 + $0x658] sm:$0xf0] }
 0x5c9   : > { %v7404_v55 = vor.u32 %v7949_v50, %v7403_v46 }
 0x5ca   : > { %5135 = vmatpush.bf16.msrb.mxu2 %v7332_v59  ;;  %5112 = vmatpush.bf16.msra.mxu0 %v7388_v42  ;;  %v7904_v59 = vld [vmem:[#allocation15 + $0x4f0] sm:$0xf0] }
 0x5cb   : > { %v7224_v1 = vor.u32 %v7904_v59, %v7223_v58  ;;  %v7952_v42 = vld [vmem:[#allocation15 + $0x670] sm:$0xf0] }
 0x5cc   : > { %v7416_v44 = vor.u32 %v7952_v42, %v7415_v41 }
 0x5cd   : > { %5123 = vmatpush.bf16.msra.mxu1 %v7224_v1  ;;  %v7379_v1 = vld [vmem:[#allocation15 + $0x620] sm:$0xf] }
 0x5ce   : > { %5136 = vmatpush.bf16.msrb.mxu2 %v7320_v9  ;;  %5113 = vmatpush.bf16.msra.mxu0 %v7376_v57  ;;  %v7946_v57 = vld [vmem:[#allocation15 + $0x640] sm:$0xf0] }
 0x5d1   : > { %5124 = vmatpush.bf16.msra.mxu1 %v7212_v63 }
 0x5d2   : > { %5137 = vmatpush.bf16.msrb.mxu2 %v7308_v23  ;;  %5114 = vmatpush.bf16.msra.mxu0 %v7364_v48  ;;  %v7188_v23 = vor.u32 %v7895_v10, %v7187_v60  ;;  %v7380_v48 = vor.u32 %v7943_v2, %v7379_v1 }
 0x5d5   : > { %5125 = vmatpush.bf16.msra.mxu1 %v7200_v0 }
 0x5d6   : > { %5138 = vmatpush.bf16.msrb.mxu2 %v7296_v32  ;;  %v7892_v32 = vld [vmem:[#allocation15 + $0x490] sm:$0xf0] }
 0x5d7   : > { %v7176_v53 = vor.u32 %v7892_v32, %v7175_v51 }
 0x5d9   : > { %5126 = vmatpush.bf16.msra.mxu1 %v7188_v23 }
 0x5da   : > { %5139 = vmatpush.bf16.msrb.mxu2 %v7284_v12 }
 0x5dd   : > { %5127 = vmatpush.bf16.msra.mxu1 %v7176_v53 }
 0x5de   : > { %5140 = vmatpush.bf16.msrb.mxu2 %v7272_v54 }
 0x5ff   : > { %v8880_v22 = vpop.f32.mrf.mxu1 }
 0x600   : > { %v4478_v21 = vadd.f32 %v8880_v22, %v4040_v14  ;;  %v7427_v22 = vld [vmem:[#allocation15 + $0x680] sm:$0xf] }
 0x601   : > { %v7428_v12 = vor.u32 %v7955_v36, %v7427_v22 }
 0x604   : > { %v4438_v43 = vpop.f32.mrf.mxu2  ;;  %v4451_v45 = vpop.f32.mrf.mxu3 }
 0x605   : > { %v4439_v8 = vadd.f32 %v4438_v43, %v4039_v62 }
 0x607   : > { %v4479_v56 = vpop.f32.mrf.mxu1  ;;  %v4452_v15 = vadd.f32 %v4451_v45, %v4439_v8 }
 0x608   : > { %v7391_v56 = vld [vmem:[#allocation15 + $0x638] sm:$0xf] }
 0x609   : > { %v7392_v59 = vor.u32 %v7946_v57, %v7391_v56 }
 0x60c   : > { %v4440_v4 = vpop.f32.mrf.mxu2  ;;  %v4453_v6 = vpop.f32.mrf.mxu3 }
 0x60d   : > { %v7367_v4 = vld [vmem:[#allocation15 + $0x608] sm:$0xf]  ;;  %v7940_v6 = vld [vmem:[#allocation15 + $0x610] sm:$0xf0] }
 0x60e   : > { %v7368_v7 = vor.u32 %v7940_v6, %v7367_v4 }
 0x60f   : > { %v4529_v9 = vpop.f32.mrf.mxu1 }
 0x612   : > { %v4464_v16 = vpop.f32.mrf.mxu0 }
 0x613   : > { %v4465_v17 = vadd.f32 %v4464_v16, %v4452_v15 }
 0x614   : > { %v4490_v24 = vpop.f32.mrf.mxu2 }
 0x615   : > { %v4546_v25 = vmax.f32 %v4465_v17, 0.0  ;;  %v4491_v27 = vadd.f32 %v4490_v24, %v4478_v21 }
 0x617   : > { %v4549_v39 = vpack.c.bf16 %v4546_v25, %v4546_v25  ;;  %v4531_v28 = vpop.f32.mrf.mxu1 }
 0x618   : > { %v4503_v31 = vpop.f32.mrf.mxu3 }
 0x619   : > { %v4504_v33 = vadd.f32 %v4503_v31, %v4491_v27  ;;  %5050 = vmatmul.bf16.vlgmr.msra.gmra.mxu3 %v4549_v39  ;;  %5089 = vmatmul.bf16.vlgmr.msra.gmra.mxu2 %v4549_v39 }
 0x61a   : > { %v4466_v34 = vpop.f32.mrf.mxu0  ;;  %5146 = vmatpush.bf16.msra.mxu3 %v7452_v26 }
 0x61b   : > { %v4547_v35 = vmax.f32 %v4504_v33, 0.0 }
 0x61c   : > { %v4492_v5 = vpop.f32.mrf.mxu2 }
 0x61d   : > { %v4550_v38 = vpack.c.bf16 %v4547_v35, %v4547_v35 }
 0x61e   : > { %5147 = vmatpush.bf16.msra.mxu3 %v7440_v30 }
 0x61f   : > { %5063 = vmatmul.bf16.vlgmr.msrb.gmra.mxu0 %v4550_v38 }
 0x620   : > { %v4505_v43 = vpop.f32.mrf.mxu3 }
 0x622   : > { %v4516_v45 = vpop.f32.mrf.mxu0  ;;  %5148 = vmatpush.bf16.msra.mxu3 %v7428_v12 }
 0x623   : > { %v4517_v61 = vadd.f32 %v4516_v45, %v4041_v40 }
 0x624   : > { %v4542_v52 = vpop.f32.mrf.mxu2 }
 0x625   : > { %v4530_v54 = vadd.f32 %v4529_v9, %v4517_v61  ;;  %v4650_v9 = vld [vmem:[#allocation16 + $0x6] sm:$0x7] }
 0x626   : > { %5149 = vmatpush.bf16.msra.mxu3 %v7416_v44  ;;  %v4652_v11 = vperm.slane %v4650_v9, 0  ;;  %v4653_v15 = vperm.slane %v4650_v9, 1  ;;  %v4654_v33 = vperm.slane %v4650_v9, 2 }
 0x627   : > { %v4543_v49 = vadd.f32 %v4542_v52, %v4530_v54 }
 0x629   : > { %v4548_v58 = vmax.f32 %v4543_v49, 0.0  ;;  %5102 = vmatmul.bf16.vlgmr.msrb.gmra.mxu3 %v4550_v38  ;;  %5141 = vmatmul.bf16.vlgmr.msrb.gmra.mxu2 %v4550_v38 }
 0x62a   : > { %v4518_v47 = vpop.f32.mrf.mxu0  ;;  %5150 = vmatpush.bf16.msra.mxu3 %v7404_v55 }
 0x62b   : > { %v4551_v62 = vpack.c.bf16 %v4548_v58, %v4548_v58 }
 0x62c   : > { %v4544_v3 = vpop.f32.mrf.mxu2 }
 0x62d   : > { %5076 = vmatmul.bf16.vlgmr.msrb.gmra.mxu1 %v4551_v62 }
 0x62e   : > { %5151 = vmatpush.bf16.msra.mxu3 %v7392_v59 }
 0x62f   : > { %5115 = vmatmul.bf16.vlgmr.msra.gmra.mxu0 %v4551_v62 }
 0x632   : > { %5152 = vmatpush.bf16.msra.mxu3 %v7380_v48 }
 0x636   : > { %5153 = vmatpush.bf16.msra.mxu3 %v7368_v7 }
 0x639   : > { %5154 = vmatmul.bf16.vlgmr.msra.gmra.mxu3 %v4551_v62  ;;  %v5196_v62 = vlaneseq }
 0x63b   : > { %vm5198_vm5 = vcmp.lt.s32.totalorder %v5196_v62, 384 }
 0x63d   : > { %5128 = vmatmul.bf16.vlgmr.msra.gmra.mxu1 %v4549_v39 }
 0x69c   : > { %v5051_v37 = vpop.f32.mrf.mxu3  ;;  %v5064_v8 = vpop.f32.mrf.mxu0 }
 0x69d   : > { %v5090_v63 = vpop.f32.mrf.mxu2  ;;  %v5052_v16 = vadd.f32 %v5051_v37, %v4652_v11 }
 0x69e   : > { %v5091_v10 = vadd.f32 %v5090_v63, %v4653_v15 }
 0x69f   : > { %v5065_v17 = vadd.f32 %v5064_v8, %v5052_v16 }
 0x6a4   : > { %v5053_v13 = vpop.f32.mrf.mxu3  ;;  %v5066_v0 = vpop.f32.mrf.mxu0 }
 0x6a5   : > { %v5092_v14 = vpop.f32.mrf.mxu2 }
 0x6aa   : > { %v5077_v60 = vpop.f32.mrf.mxu1 }
 0x6ab   : > { %v5078_v21 = vadd.f32 %v5077_v60, %v5065_v17 }
 0x6ac   : > { %v5103_v18 = vpop.f32.mrf.mxu3  ;;  %v5116_v19 = vpop.f32.mrf.mxu0 }
 0x6ad   : > { %v5104_v23 = vadd.f32 %v5103_v18, %v5091_v10  ;;  %v5142_v24 = vpop.f32.mrf.mxu2  ;;  %v5159_v39 = vpack.c.bf16 %v5078_v21, %v5078_v21 }
 0x6af   : > { %v5117_v25 = vadd.f32 %v5116_v19, %v5104_v23  ;;  %v5162_v32 = vunpack.c.l.bf16 %v5159_v39 }
 0x6b1   : > { %v5160_v26 = vpack.c.bf16 %v5117_v25, %v5117_v25  ;;  %v5165_v34 = vrot.slane %v5162_v32, 4 }
 0x6b2   : > { %v5079_v27 = vpop.f32.mrf.mxu1 }
 0x6b3   : > { %v5163_v28 = vunpack.c.l.bf16 %v5160_v26  ;;  %v5166_v38 = vadd.f32 %v5165_v34, %v5162_v32 }
 0x6b4   : > { %v5105_v29 = vpop.f32.mrf.mxu3  ;;  %v5118_v20 = vpop.f32.mrf.mxu0 }
 0x6b5   : > { %v5171_v31 = vrot.slane %v5163_v28, 4  ;;  %v5144_v51 = vpop.f32.mrf.mxu2  ;;  %v5167_v42 = vrot.slane %v5166_v38, 2 }
 0x6b7   : > { %v5172_v53 = vadd.f32 %v5171_v31, %v5163_v28  ;;  %v5168_v50 = vadd.f32 %v5167_v42, %v5166_v38 }
 0x6b9   : > { %v5173_v22 = vrot.slane %v5172_v53, 2  ;;  %v5169_v49 = vrot.slane %v5168_v50, 1 }
 0x6ba   : > { %v5129_v30 = vpop.f32.mrf.mxu1 }
 0x6bb   : > { %v5130_v35 = vadd.f32 %v5129_v30, %v4654_v33  ;;  %v5174_v40 = vadd.f32 %v5173_v22, %v5172_v53  ;;  %v5170_v47 = vadd.f32 %v5169_v49, %v5168_v50 }
 0x6bc   : > { %v5155_v36 = vpop.f32.mrf.mxu3 }
 0x6bd   : > { %v5143_v5 = vadd.f32 %v5142_v24, %v5130_v35  ;;  %v5175_v44 = vrot.slane %v5174_v40, 1  ;;  %v5183_v3 = vmul.f32 0.125, %v5170_v47 }
 0x6bf   : > { %v5156_v12 = vadd.f32 %v5155_v36, %v5143_v5  ;;  %v5176_v54 = vadd.f32 %v5175_v44, %v5174_v40 }
 0x6c1   : > { %v5161_v41 = vpack.c.bf16 %v5156_v12, %v5156_v12  ;;  %v5184_v57 = vmul.f32 0.125, %v5176_v54 }
 0x6c2   : > { %v5131_v43 = vpop.f32.mrf.mxu1 }
 0x6c3   : > { %v5164_v45 = vunpack.c.l.bf16 %v5161_v41  ;;  %v5189_v1 = vrot.slane %v5184_v57, 7 }
 0x6c4   : > { %v5157_v61 = vpop.f32.mrf.mxu3 }
 0x6c5   : > { %v5177_v46 = vrot.slane %v5164_v45, 4  ;;  %v5192_v4 = vsel %vm5191_vm3, %v5183_v3, %v5189_v1 }
 0x6c7   : > { %v5178_v52 = vadd.f32 %v5177_v46, %v5164_v45 }
 0x6c9   : > { %v5179_v55 = vrot.slane %v5178_v52, 2 }
 0x6cb   : > { %v5180_v56 = vadd.f32 %v5179_v55, %v5178_v52 }
 0x6cd   : > { %v5181_v58 = vrot.slane %v5180_v56, 1 }
 0x6cf   : > { %v5182_v59 = vadd.f32 %v5181_v58, %v5180_v56 }
 0x6d1   : > { %v5185_v2 = vmul.f32 0.125, %v5182_v59 }
 0x6d3   : > { %v5190_v48 = vrot.slane %v5185_v2, 6 }
 0x6d5   : > { %v5194_v6 = vsel %vm5193_vm4, %v5192_v4, %v5190_v48 }
 0x6d6   : > { %5200 = vst.msk [vmem:[%s645_s7] sm:$0x7] %vm5198_vm5, %v5194_v6 }
 0x6d7 PF: > { %s8958_s24 = sld [smem:[#allocation26_spill]]  ;;  %s8961_s21 = smov %s8436_s22 }
 0x6d8   : > { %s8959_s28 = sld [smem:[#allocation25_spill]] }
 0x6d9   : > { %s8960_s23 = sld [smem:[#allocation27_spill]] }
 0x6dd   : > { %p31_p3 = scmp.ge.s32.totalorder %s8958_s24, 6  }
 0x6de   : > { %s8962_s22 = smov %s8959_s28 }
 0x6df   :  { %33 = sbr.rel (!%p31_p3) target bundleno = 19 (0x13), region = 177 }
 0x6e4   :  { %5220 = vsyncpa [#allocation3], 1 }
 0x6e5   :  { %5222 = vsyncpa [#allocation3 + $0x1], 1 }
 0x6e6   :  { %5223 = vsyncpa [#allocation5], 1 }
 0x6e7   :  { %5225 = vsyncpa [#allocation5 + $0x1], 1 }
 0x6e8   :  { %5226 = vsyncpa [#allocation8], 1 }
 0x6e9   :  { %5228 = vsyncpa [#allocation8 + $0x1], 1 }
 0x6ea   :  { %5229 = vsyncpa [#allocation11], 1 }
 0x6eb   :  { %5230 = vsyncpa [#allocation14], 1 }
 0x6ec   :  { %5231 = vsyncpa [#allocation17], 1 }

</bundles_post_ra>
